<compile_context>
chip_gen: v5e
topology: v5e:2x2
jax: 0.10.0
libtpu: 0.0.40
codegen_flags: <defaults>
</compile_context>

<pallas_src>
import functools

import jax
import jax.numpy as jnp
from jax.experimental import pallas as pl
from jax.experimental.pallas import tpu as pltpu


def _heads_per_step(num_heads: int, head_dim: int) -> int:
    """Largest divisor of num_heads whose packed width hg*head_dim <= 256."""
    best = 1
    for cand in range(1, num_heads + 1):
        if num_heads % cand == 0 and cand * head_dim <= 256:
            best = cand
    return best


def mha_kernel(x_ref, wqkv_ref, wproj_ref, bproj_ref,       # inputs
               o_ref, attn_ref,                              # outputs
               qkv_ref, acc_ref,                             # scratch
               *, num_groups, heads_per_step, head_dim, scale, seq_valid):
    # x_ref:    (1, S, E)              wqkv_ref:  (E, 3E)      bf16, resident
    # wproj_ref:(G, W, E) bf16 resident   bproj_ref:(1, E) f32
    # o_ref:    (1, S, E)              attn_ref:  (1, hg, S, S)
    # qkv_ref:  (3G, S, W) bf16 scratch (group-major q/k/v, persists over g)
    # acc_ref:  (S, E) f32 scratch (output-projection accumulator)
    g = pl.program_id(1)
    S = x_ref.shape[1]
    E = x_ref.shape[2]
    W = heads_per_step * head_dim

    # ---- once per batch element (first head-group step) --------------------
    @pl.when(g == 0)
    def _():
        x_bf = x_ref[0].astype(jnp.bfloat16)                        # (S, E)
        # Q / K / V chunks: three full-depth (S,E)@(E,E) MXU matmuls with f32
        # accumulation, scattered into the group-major scratch with static,
        # group-width-aligned lane slices only.
        for t in range(3):
            res = jnp.dot(x_bf, wqkv_ref[:, t * E:(t + 1) * E],
                          preferred_element_type=jnp.float32)       # (S, E)
            if t == 0:
                res = res * scale          # fold softmax scale into Q once
            res = res.astype(jnp.bfloat16)
            for gg in range(num_groups):
                qkv_ref[t * num_groups + gg] = res[:, gg * W:(gg + 1) * W]
        acc_ref[...] = jnp.zeros_like(acc_ref)

    # ---- per head-group -----------------------------------------------------
    q_g = qkv_ref[g]                       # (S, W) bf16, already scaled
    k_g = qkv_ref[num_groups + g]          # (S, W) bf16
    v_g = qkv_ref[2 * num_groups + g]      # (S, W) bf16

    pad_keys = seq_valid < S               # static Python condition
    if pad_keys:
        key_valid = jax.lax.broadcasted_iota(jnp.int32, (S, S), 1) < seq_valid

    ctx_parts = []
    for j in range(heads_per_step):        # small static unroll (hg heads)
        q_j = q_g[:, j * head_dim:(j + 1) * head_dim]
        k_j = k_g[:, j * head_dim:(j + 1) * head_dim]
        v_j = v_g[:, j * head_dim:(j + 1) * head_dim]

        s = jnp.einsum("qd,kd->qk", q_j, k_j,
                       preferred_element_type=jnp.float32)          # (S, S)
        if pad_keys:
            s = jnp.where(key_valid, s, jnp.float32(-1e30))

        m = jnp.max(s, axis=-1, keepdims=True)
        p = jnp.exp(s - m)
        l = jnp.sum(p, axis=-1, keepdims=True)
        attn = p / l          # exact normalisation for the user-visible weights

        # dropout(attn): identity in eval mode.
        attn_ref[0, j] = attn.astype(attn_ref.dtype)

        ctx_parts.append(jnp.dot(attn.astype(jnp.bfloat16), v_j,
                                 preferred_element_type=jnp.float32
                                 ).astype(jnp.bfloat16))             # (S, hd)

    ctx_g = (ctx_parts[0] if heads_per_step == 1
             else jnp.concatenate(ctx_parts, axis=-1))               # (S, W)

    # Per-group slice of the output projection; lane-dense (S, E) accumulate.
    acc_ref[...] += jnp.dot(ctx_g, wproj_ref[g],
                            preferred_element_type=jnp.float32)

    @pl.when(g == num_groups - 1)
    def _():
        o_ref[0] = (acc_ref[...] + bproj_ref[...]).astype(o_ref.dtype)


@functools.partial(jax.jit, static_argnames=("num_heads", "attn_dtype"))
def mha_pallas(x, wqkv, wproj, bproj, *, num_heads=8, attn_dtype=jnp.float32):
    """x: (B, S, E). wqkv: (E, 3E), wproj: (E, E), bproj: (E,).

    Weights are laid out (in, out) so the kernel computes x @ W directly
    (PyTorch stores (out, in) and does x @ W.T).
    """
    B, S, E = x.shape
    assert E % num_heads == 0
    hd = E // num_heads
    scale = float(hd) ** -0.5

    hg = _heads_per_step(num_heads, hd)    # heads packed per grid step
    G = num_heads // hg                    # head-group grid extent
    W = hg * hd                            # packed per-step width (<= 256)

    # Pad sequence to a lane/MXU friendly multiple of 128 (ViT S=197 -> 256);
    # padded keys are masked in-kernel, padded rows sliced off afterwards.
    S_pad = ((S + 127) // 128) * 128
    x_p = jnp.pad(x, ((0, 0), (0, S_pad - S), (0, 0))) if S_pad != S else x

    # bf16 weights: MXU-native operands, half the resident VMEM footprint.
    wqkv_bf = wqkv.astype(jnp.bfloat16)                              # (E, 3E)
    wproj_bf = wproj.astype(jnp.bfloat16).reshape(G, W, E)           # group-major rows
    bproj_2 = bproj.reshape(1, E).astype(jnp.float32)

    kernel = functools.partial(
        mha_kernel, num_groups=G, heads_per_step=hg, head_dim=hd,
        scale=scale, seq_valid=S)

    x_isize = jnp.dtype(x.dtype).itemsize
    a_isize = jnp.dtype(attn_dtype).itemsize

    # Actual VMEM footprint (double-buffered blocks + scratch), with headroom,
    # capped at 48 MiB so it fits v7x's 64 MiB physical VMEM per TensorCore.
    vmem_bytes = (2 * S_pad * E * x_isize                 # x block
                  + 2 * S_pad * E * x_isize               # out block
                  + 2 * hg * S_pad * S_pad * a_isize      # per-step attn block
                  + 2 * (3 * E * E + E * E) * 2 + 2 * E * 4   # weights + bias
                  + 3 * G * S_pad * W * 2                 # qkv scratch (bf16)
                  + S_pad * E * 4)                        # f32 accumulator
    vmem_limit = min(48 * 1024 * 1024,
                     max(16 * 1024 * 1024, int(1.5 * vmem_bytes) + (2 << 20)))

    flops = (2 * B * S_pad * E * 3 * E                    # qkv projection
             + 2 * (2 * B * num_heads * S_pad * S_pad * hd)  # scores + attn@v
             + 2 * B * S_pad * E * E)                     # output projection
    transcendentals = B * num_heads * S_pad * S_pad
    bytes_accessed = (B * S_pad * E * x_isize
                      + (3 * E * E + E * E) * 2 + E * 4
                      + B * S_pad * E * x_isize
                      + B * num_heads * S_pad * S_pad * a_isize)

    out_p, attn_p = pl.pallas_call(
        kernel,
        out_shape=(
            jax.ShapeDtypeStruct((B, S_pad, E), x.dtype),
            jax.ShapeDtypeStruct((B, num_heads, S_pad, S_pad), attn_dtype),
        ),
        grid_spec=pltpu.PrefetchScalarGridSpec(
            num_scalar_prefetch=0,
            grid=(B, G),
            in_specs=[
                pl.BlockSpec((1, S_pad, E), lambda b, g: (b, 0, 0)),   # x
                pl.BlockSpec((E, 3 * E), lambda b, g: (0, 0)),         # Wqkv (resident)
                pl.BlockSpec((G, W, E), lambda b, g: (0, 0, 0)),       # Wproj (resident)
                pl.BlockSpec((1, E), lambda b, g: (0, 0)),             # bias
            ],
            out_specs=(
                pl.BlockSpec((1, S_pad, E), lambda b, g: (b, 0, 0)),
                pl.BlockSpec((1, hg, S_pad, S_pad), lambda b, g: (b, g, 0, 0)),
            ),
            scratch_shapes=[
                pltpu.VMEM((3 * G, S_pad, W), jnp.bfloat16),   # group-major qkv
                pltpu.VMEM((S_pad, E), jnp.float32),           # proj accumulator
            ],
        ),
        compiler_params=pltpu.CompilerParams(
            dimension_semantics=("parallel", "arbitrary"),
            vmem_limit_bytes=vmem_limit,
        ),
        cost_estimate=pl.CostEstimate(
            flops=flops,
            transcendentals=transcendentals,
            bytes_accessed=bytes_accessed,
        ),
    )(x_p, wqkv_bf, wproj_bf, bproj_2)

    out = out_p[:, :S, :]
    attn = attn_p[:, :, :S, :S]
    return out, attn


def mha_reference(x, wqkv, wproj, bproj, num_heads):
    """Pure-JAX f32 reference mirroring the PyTorch forward."""
    B, S, E = x.shape
    hd = E // num_heads
    scale = float(hd) ** -0.5
    qkv = x @ wqkv                                                   # (B, S, 3E)
    qkv = qkv.reshape(B, S, 3, num_heads, hd).transpose(2, 0, 3, 1, 4)
    q, k, v = qkv[0], qkv[1], qkv[2]                                 # (B, H, S, hd)
    s = jnp.einsum("bhqd,bhkd->bhqk", q, k) * scale
    attn = jax.nn.softmax(s, axis=-1)
    ctx = jnp.einsum("bhqk,bhkd->bhqd", attn, v)
    ctx = ctx.transpose(0, 2, 1, 3).reshape(B, S, E)
    out = ctx @ wproj + bproj
    return out, attn


if __name__ == "__main__":
    # Small shapes consistent with the module (embed_dim divisible by num_heads).
    B, S = 2, 16
    embed_dim, num_heads = 128, 8

    key = jax.random.PRNGKey(0)
    kx, kqkv, kp, kb = jax.random.split(key, 4)

    x = jax.random.normal(kx, (B, S, embed_dim), dtype=jnp.float32)

    # Deterministic parameter init (stand-in for nn.Linear init), laid out
    # (in, out) so the kernel does x @ W + b directly.
    wqkv = jax.random.normal(kqkv, (embed_dim, 3 * embed_dim), jnp.float32) * (embed_dim ** -0.5)
    wproj = jax.random.normal(kp, (embed_dim, embed_dim), jnp.float32) * (embed_dim ** -0.5)
    bproj = jax.random.normal(kb, (embed_dim,), jnp.float32) * 0.02

    out, attn = mha_pallas(x, wqkv, wproj, bproj, num_heads=num_heads)
    jax.block_until_ready((out, attn))

    out_expected, attn_expected = mha_reference(x, wqkv, wproj, bproj, num_heads)

    assert out.shape == (B, S, embed_dim)
    assert attn.shape == (B, num_heads, S, S)
    # bf16 matmul operands (f32 accumulation) -> loosened tolerances vs f32 ref.
    assert jnp.allclose(attn, attn_expected, atol=2e-2, rtol=2e-2), "attention weights mismatch"
    assert jnp.allclose(out, out_expected, atol=7.5e-2, rtol=5e-2), "output mismatch"

    print("KERNEL_OK")
</pallas_src>

<mosaic_0001>
module attributes {stable_mosaic.version = 11 : i64} {
  func.func @mha_kernel(%arg0: i32, %arg1: i32, %arg2: memref<1x128x128xf32, #tpu.memory_space<vmem>>, %arg3: memref<128x384xbf16, #tpu.memory_space<vmem>>, %arg4: memref<1x128x128xbf16, #tpu.memory_space<vmem>>, %arg5: memref<1x128xf32, #tpu.memory_space<vmem>>, %arg6: memref<1x128x128xf32, #tpu.memory_space<vmem>>, %arg7: memref<1x8x128x128xf32, #tpu.memory_space<vmem>>, %arg8: memref<3x128x128xbf16, #tpu.memory_space<vmem>>, %arg9: memref<128x128xf32, #tpu.memory_space<vmem>>) attributes {dimension_semantics = [#tpu.dimension_semantics<parallel>, #tpu.dimension_semantics<arbitrary>], iteration_bounds = array<i64: 2, 1>, scalar_prefetch = 0 : i64, scratch_operands = 2 : i64, tpu.core_type = #tpu.core_type<tc>, window_params = [{transform_indices = @transform_0, window_bounds = array<i64: 1, 128, 128>}, {pipeline_mode = #tpu.pipeline_mode<synchronous>, transform_indices = @transform_1, window_bounds = array<i64: 128, 384>}, {pipeline_mode = #tpu.pipeline_mode<synchronous>, transform_indices = @transform_2, window_bounds = array<i64: 1, 128, 128>}, {pipeline_mode = #tpu.pipeline_mode<synchronous>, transform_indices = @transform_3, window_bounds = array<i64: 1, 128>}, {transform_indices = @transform_4, window_bounds = array<i64: 1, 128, 128>}, {transform_indices = @transform_5, window_bounds = array<i64: 1, 8, 128, 128>}]} {
    %c0_i32 = arith.constant 0 : i32
    %0 = arith.cmpi eq, %arg1, %c0_i32 : i32
    %1 = arith.extui %0 : i1 to i32
    %c0_i32_0 = arith.constant 0 : i32
    %2 = arith.cmpi ne, %1, %c0_i32_0 : i32
    scf.if %2 {
      %c0_79 = arith.constant 0 : index
      %c0_80 = arith.constant 0 : index
      %c0_81 = arith.constant 0 : index
      %196 = vector.load %arg2[%c0_79, %c0_80, %c0_81] : memref<1x128x128xf32, #tpu.memory_space<vmem>>, vector<1x128x128xf32>
      %197 = vector.shape_cast %196 : vector<1x128x128xf32> to vector<128x128xf32>
      %198 = arith.truncf %197 : vector<128x128xf32> to vector<128x128xbf16>
      %c0_82 = arith.constant 0 : index
      %c0_83 = arith.constant 0 : index
      %199 = vector.load %arg3[%c0_82, %c0_83] : memref<128x384xbf16, #tpu.memory_space<vmem>>, vector<128x128xbf16>
      %cst_84 = arith.constant dense<0.000000e+00> : vector<128x128xf32>
      %200 = tpu.matmul %198, %199, %cst_84 {dimension_numbers = #tpu.dot_dimension_numbers<[1], [0], [0], [1], [0, 0, 1, 1], [], []>} : vector<128x128xbf16>, vector<128x128xbf16>, vector<128x128xf32> -> vector<128x128xf32>
      %cst_85 = arith.constant 2.500000e-01 : f32
      %201 = vector.broadcast %cst_85 : f32 to vector<128x128xf32>
      %202 = arith.mulf %200, %201 : vector<128x128xf32>
      %203 = arith.truncf %202 : vector<128x128xf32> to vector<128x128xbf16>
      %c0_86 = arith.constant 0 : index
      %c0_87 = arith.constant 0 : index
      %c0_88 = arith.constant 0 : index
      %204 = vector.load %arg8[%c0_86, %c0_87, %c0_88] : memref<3x128x128xbf16, #tpu.memory_space<vmem>>, vector<1x128x128xbf16>
      %205 = vector.shape_cast %204 : vector<1x128x128xbf16> to vector<128x128xbf16>
      %206 = vector.shape_cast %203 : vector<128x128xbf16> to vector<1x128x128xbf16>
      tpu.vector_store %arg8[%c0_86, %c0_87, %c0_88], %206 {strides = array<i32>} : memref<3x128x128xbf16, #tpu.memory_space<vmem>>, vector<1x128x128xbf16>,
      %c0_89 = arith.constant 0 : index
      %c128 = arith.constant 128 : index
      %207 = vector.load %arg3[%c0_89, %c128] : memref<128x384xbf16, #tpu.memory_space<vmem>>, vector<128x128xbf16>
      %cst_90 = arith.constant dense<0.000000e+00> : vector<128x128xf32>
      %208 = tpu.matmul %198, %207, %cst_90 {dimension_numbers = #tpu.dot_dimension_numbers<[1], [0], [0], [1], [0, 0, 1, 1], [], []>} : vector<128x128xbf16>, vector<128x128xbf16>, vector<128x128xf32> -> vector<128x128xf32>
      %209 = arith.truncf %208 : vector<128x128xf32> to vector<128x128xbf16>
      %c1_91 = arith.constant 1 : index
      %c0_92 = arith.constant 0 : index
      %c0_93 = arith.constant 0 : index
      %210 = vector.load %arg8[%c1_91, %c0_92, %c0_93] : memref<3x128x128xbf16, #tpu.memory_space<vmem>>, vector<1x128x128xbf16>
      %211 = vector.shape_cast %210 : vector<1x128x128xbf16> to vector<128x128xbf16>
      %212 = vector.shape_cast %209 : vector<128x128xbf16> to vector<1x128x128xbf16>
      tpu.vector_store %arg8[%c1_91, %c0_92, %c0_93], %212 {strides = array<i32>} : memref<3x128x128xbf16, #tpu.memory_space<vmem>>, vector<1x128x128xbf16>,
      %c0_94 = arith.constant 0 : index
      %c256 = arith.constant 256 : index
      %213 = vector.load %arg3[%c0_94, %c256] : memref<128x384xbf16, #tpu.memory_space<vmem>>, vector<128x128xbf16>
      %cst_95 = arith.constant dense<0.000000e+00> : vector<128x128xf32>
      %214 = tpu.matmul %198, %213, %cst_95 {dimension_numbers = #tpu.dot_dimension_numbers<[1], [0], [0], [1], [0, 0, 1, 1], [], []>} : vector<128x128xbf16>, vector<128x128xbf16>, vector<128x128xf32> -> vector<128x128xf32>
      %215 = arith.truncf %214 : vector<128x128xf32> to vector<128x128xbf16>
      %c2_96 = arith.constant 2 : index
      %c0_97 = arith.constant 0 : index
      %c0_98 = arith.constant 0 : index
      %216 = vector.load %arg8[%c2_96, %c0_97, %c0_98] : memref<3x128x128xbf16, #tpu.memory_space<vmem>>, vector<1x128x128xbf16>
      %217 = vector.shape_cast %216 : vector<1x128x128xbf16> to vector<128x128xbf16>
      %218 = vector.shape_cast %215 : vector<128x128xbf16> to vector<1x128x128xbf16>
      tpu.vector_store %arg8[%c2_96, %c0_97, %c0_98], %218 {strides = array<i32>} : memref<3x128x128xbf16, #tpu.memory_space<vmem>>, vector<1x128x128xbf16>,
      %cst_99 = arith.constant 0.000000e+00 : f32
      %219 = vector.broadcast %cst_99 : f32 to vector<128x128xf32>
      %c0_100 = arith.constant 0 : index
      %c0_101 = arith.constant 0 : index
      %220 = vector.load %arg9[%c0_100, %c0_101] : memref<128x128xf32, #tpu.memory_space<vmem>>, vector<128x128xf32>
      tpu.vector_store %arg9[%c0_100, %c0_101], %219 {strides = array<i32>} : memref<128x128xf32, #tpu.memory_space<vmem>>, vector<128x128xf32>,
    } else {
    }
    %3 = arith.index_cast %arg1 : i32 to index
    %c0 = arith.constant 0 : index
    %c0_1 = arith.constant 0 : index
    %4 = vector.load %arg8[%3, %c0, %c0_1] : memref<3x128x128xbf16, #tpu.memory_space<vmem>>, vector<1x128x128xbf16>
    %5 = vector.shape_cast %4 : vector<1x128x128xbf16> to vector<128x128xbf16>
    %c1_i32 = arith.constant 1 : i32
    %6 = arith.addi %c1_i32, %arg1 : i32
    %7 = arith.index_cast %6 : i32 to index
    %c0_2 = arith.constant 0 : index
    %c0_3 = arith.constant 0 : index
    %8 = vector.load %arg8[%7, %c0_2, %c0_3] : memref<3x128x128xbf16, #tpu.memory_space<vmem>>, vector<1x128x128xbf16>
    %9 = vector.shape_cast %8 : vector<1x128x128xbf16> to vector<128x128xbf16>
    %c2_i32 = arith.constant 2 : i32
    %10 = arith.addi %c2_i32, %arg1 : i32
    %11 = arith.index_cast %10 : i32 to index
    %c0_4 = arith.constant 0 : index
    %c0_5 = arith.constant 0 : index
    %12 = vector.load %arg8[%11, %c0_4, %c0_5] : memref<3x128x128xbf16, #tpu.memory_space<vmem>>, vector<1x128x128xbf16>
    %13 = vector.shape_cast %12 : vector<1x128x128xbf16> to vector<128x128xbf16>
    %14 = tpu.iota {dimensions = array<i32: 1>} : vector<128x128xi32>
    %c16_i32 = arith.constant 16 : i32
    %15 = vector.broadcast %c16_i32 : i32 to vector<128x128xi32>
    %16 = arith.cmpi slt, %14, %15 : vector<128x128xi32>
    %17 = vector.extract_strided_slice %5 {offsets = [0, 0], sizes = [128, 16], strides = [1, 1]} : vector<128x128xbf16> to vector<128x16xbf16>
    %18 = vector.extract_strided_slice %9 {offsets = [0, 0], sizes = [128, 16], strides = [1, 1]} : vector<128x128xbf16> to vector<128x16xbf16>
    %19 = vector.extract_strided_slice %13 {offsets = [0, 0], sizes = [128, 16], strides = [1, 1]} : vector<128x128xbf16> to vector<128x16xbf16>
    "tpu.trace_start"() <{level = 10 : i32, message = "qd,kd->qk"}> : () -> ()
    %cst = arith.constant dense<0.000000e+00> : vector<128x128xf32>
    %20 = tpu.matmul %17, %18, %cst {dimension_numbers = #tpu.dot_dimension_numbers<[1], [1], [0], [0], [0, 0, 1, 0], [], []>} : vector<128x16xbf16>, vector<128x16xbf16>, vector<128x128xf32> -> vector<128x128xf32>
    %cst_6 = arith.constant -1.000000e+30 : f32
    "tpu.trace_stop"() : () -> ()
    %21 = vector.broadcast %cst_6 : f32 to vector<128x128xf32>
    %22 = arith.select %16, %20, %21 : vector<128x128xi1>, vector<128x128xf32>
    %cst_7 = arith.constant dense<0xFF800000> : vector<128xf32>
    %23 = vector.multi_reduction <maximumf>, %22, %cst_7 [1] : vector<128x128xf32> to vector<128xf32>
    %24 = vector.shape_cast %23 : vector<128xf32> to vector<128x1xf32>
    %25 = vector.broadcast %24 : vector<128x1xf32> to vector<128x128xf32>
    %26 = arith.subf %22, %25 : vector<128x128xf32>
    %27 = math.exp %26 : vector<128x128xf32>
    %cst_8 = arith.constant dense<0.000000e+00> : vector<128xf32>
    %28 = vector.multi_reduction <add>, %27, %cst_8 [1] : vector<128x128xf32> to vector<128xf32>
    %29 = vector.shape_cast %28 : vector<128xf32> to vector<128x1xf32>
    %30 = vector.broadcast %29 : vector<128x1xf32> to vector<128x128xf32>
    %31 = arith.divf %27, %30 : vector<128x128xf32>
    %c0_9 = arith.constant 0 : index
    %c0_10 = arith.constant 0 : index
    %c0_11 = arith.constant 0 : index
    %c0_12 = arith.constant 0 : index
    %32 = vector.load %arg7[%c0_9, %c0_10, %c0_11, %c0_12] : memref<1x8x128x128xf32, #tpu.memory_space<vmem>>, vector<1x1x128x128xf32>
    %33 = vector.shape_cast %32 : vector<1x1x128x128xf32> to vector<128x128xf32>
    %34 = vector.shape_cast %31 : vector<128x128xf32> to vector<1x1x128x128xf32>
    tpu.vector_store %arg7[%c0_9, %c0_10, %c0_11, %c0_12], %34 {strides = array<i32>} : memref<1x8x128x128xf32, #tpu.memory_space<vmem>>, vector<1x1x128x128xf32>,
    %35 = arith.truncf %31 : vector<128x128xf32> to vector<128x128xbf16>
    %cst_13 = arith.constant dense<0.000000e+00> : vector<128x16xf32>
    %36 = tpu.matmul %35, %19, %cst_13 {dimension_numbers = #tpu.dot_dimension_numbers<[1], [0], [0], [1], [0, 0, 1, 1], [], []>} : vector<128x128xbf16>, vector<128x16xbf16>, vector<128x16xf32> -> vector<128x16xf32>
    %37 = arith.truncf %36 : vector<128x16xf32> to vector<128x16xbf16>
    %38 = vector.extract_strided_slice %5 {offsets = [0, 16], sizes = [128, 16], strides = [1, 1]} : vector<128x128xbf16> to vector<128x16xbf16>
    %39 = vector.extract_strided_slice %9 {offsets = [0, 16], sizes = [128, 16], strides = [1, 1]} : vector<128x128xbf16> to vector<128x16xbf16>
    %40 = vector.extract_strided_slice %13 {offsets = [0, 16], sizes = [128, 16], strides = [1, 1]} : vector<128x128xbf16> to vector<128x16xbf16>
    "tpu.trace_start"() <{level = 10 : i32, message = "qd,kd->qk"}> : () -> ()
    %cst_14 = arith.constant dense<0.000000e+00> : vector<128x128xf32>
    %41 = tpu.matmul %38, %39, %cst_14 {dimension_numbers = #tpu.dot_dimension_numbers<[1], [1], [0], [0], [0, 0, 1, 0], [], []>} : vector<128x16xbf16>, vector<128x16xbf16>, vector<128x128xf32> -> vector<128x128xf32>
    %cst_15 = arith.constant -1.000000e+30 : f32
    "tpu.trace_stop"() : () -> ()
    %42 = vector.broadcast %cst_15 : f32 to vector<128x128xf32>
    %43 = arith.select %16, %41, %42 : vector<128x128xi1>, vector<128x128xf32>
    %cst_16 = arith.constant dense<0xFF800000> : vector<128xf32>
    %44 = vector.multi_reduction <maximumf>, %43, %cst_16 [1] : vector<128x128xf32> to vector<128xf32>
    %45 = vector.shape_cast %44 : vector<128xf32> to vector<128x1xf32>
    %46 = vector.broadcast %45 : vector<128x1xf32> to vector<128x128xf32>
    %47 = arith.subf %43, %46 : vector<128x128xf32>
    %48 = math.exp %47 : vector<128x128xf32>
    %cst_17 = arith.constant dense<0.000000e+00> : vector<128xf32>
    %49 = vector.multi_reduction <add>, %48, %cst_17 [1] : vector<128x128xf32> to vector<128xf32>
    %50 = vector.shape_cast %49 : vector<128xf32> to vector<128x1xf32>
    %51 = vector.broadcast %50 : vector<128x1xf32> to vector<128x128xf32>
    %52 = arith.divf %48, %51 : vector<128x128xf32>
    %c0_18 = arith.constant 0 : index
    %c1 = arith.constant 1 : index
    %c0_19 = arith.constant 0 : index
    %c0_20 = arith.constant 0 : index
    %53 = vector.load %arg7[%c0_18, %c1, %c0_19, %c0_20] : memref<1x8x128x128xf32, #tpu.memory_space<vmem>>, vector<1x1x128x128xf32>
    %54 = vector.shape_cast %53 : vector<1x1x128x128xf32> to vector<128x128xf32>
    %55 = vector.shape_cast %52 : vector<128x128xf32> to vector<1x1x128x128xf32>
    tpu.vector_store %arg7[%c0_18, %c1, %c0_19, %c0_20], %55 {strides = array<i32>} : memref<1x8x128x128xf32, #tpu.memory_space<vmem>>, vector<1x1x128x128xf32>,
    %56 = arith.truncf %52 : vector<128x128xf32> to vector<128x128xbf16>
    %cst_21 = arith.constant dense<0.000000e+00> : vector<128x16xf32>
    %57 = tpu.matmul %56, %40, %cst_21 {dimension_numbers = #tpu.dot_dimension_numbers<[1], [0], [0], [1], [0, 0, 1, 1], [], []>} : vector<128x128xbf16>, vector<128x16xbf16>, vector<128x16xf32> -> vector<128x16xf32>
    %58 = arith.truncf %57 : vector<128x16xf32> to vector<128x16xbf16>
    %59 = vector.extract_strided_slice %5 {offsets = [0, 32], sizes = [128, 16], strides = [1, 1]} : vector<128x128xbf16> to vector<128x16xbf16>
    %60 = vector.extract_strided_slice %9 {offsets = [0, 32], sizes = [128, 16], strides = [1, 1]} : vector<128x128xbf16> to vector<128x16xbf16>
    %61 = vector.extract_strided_slice %13 {offsets = [0, 32], sizes = [128, 16], strides = [1, 1]} : vector<128x128xbf16> to vector<128x16xbf16>
    "tpu.trace_start"() <{level = 10 : i32, message = "qd,kd->qk"}> : () -> ()
    %cst_22 = arith.constant dense<0.000000e+00> : vector<128x128xf32>
    %62 = tpu.matmul %59, %60, %cst_22 {dimension_numbers = #tpu.dot_dimension_numbers<[1], [1], [0], [0], [0, 0, 1, 0], [], []>} : vector<128x16xbf16>, vector<128x16xbf16>, vector<128x128xf32> -> vector<128x128xf32>
    %cst_23 = arith.constant -1.000000e+30 : f32
    "tpu.trace_stop"() : () -> ()
    %63 = vector.broadcast %cst_23 : f32 to vector<128x128xf32>
    %64 = arith.select %16, %62, %63 : vector<128x128xi1>, vector<128x128xf32>
    %cst_24 = arith.constant dense<0xFF800000> : vector<128xf32>
    %65 = vector.multi_reduction <maximumf>, %64, %cst_24 [1] : vector<128x128xf32> to vector<128xf32>
    %66 = vector.shape_cast %65 : vector<128xf32> to vector<128x1xf32>
    %67 = vector.broadcast %66 : vector<128x1xf32> to vector<128x128xf32>
    %68 = arith.subf %64, %67 : vector<128x128xf32>
    %69 = math.exp %68 : vector<128x128xf32>
    %cst_25 = arith.constant dense<0.000000e+00> : vector<128xf32>
    %70 = vector.multi_reduction <add>, %69, %cst_25 [1] : vector<128x128xf32> to vector<128xf32>
    %71 = vector.shape_cast %70 : vector<128xf32> to vector<128x1xf32>
    %72 = vector.broadcast %71 : vector<128x1xf32> to vector<128x128xf32>
    %73 = arith.divf %69, %72 : vector<128x128xf32>
    %c0_26 = arith.constant 0 : index
    %c2 = arith.constant 2 : index
    %c0_27 = arith.constant 0 : index
    %c0_28 = arith.constant 0 : index
    %74 = vector.load %arg7[%c0_26, %c2, %c0_27, %c0_28] : memref<1x8x128x128xf32, #tpu.memory_space<vmem>>, vector<1x1x128x128xf32>
    %75 = vector.shape_cast %74 : vector<1x1x128x128xf32> to vector<128x128xf32>
    %76 = vector.shape_cast %73 : vector<128x128xf32> to vector<1x1x128x128xf32>
    tpu.vector_store %arg7[%c0_26, %c2, %c0_27, %c0_28], %76 {strides = array<i32>} : memref<1x8x128x128xf32, #tpu.memory_space<vmem>>, vector<1x1x128x128xf32>,
    %77 = arith.truncf %73 : vector<128x128xf32> to vector<128x128xbf16>
    %cst_29 = arith.constant dense<0.000000e+00> : vector<128x16xf32>
    %78 = tpu.matmul %77, %61, %cst_29 {dimension_numbers = #tpu.dot_dimension_numbers<[1], [0], [0], [1], [0, 0, 1, 1], [], []>} : vector<128x128xbf16>, vector<128x16xbf16>, vector<128x16xf32> -> vector<128x16xf32>
    %79 = arith.truncf %78 : vector<128x16xf32> to vector<128x16xbf16>
    %80 = vector.extract_strided_slice %5 {offsets = [0, 48], sizes = [128, 16], strides = [1, 1]} : vector<128x128xbf16> to vector<128x16xbf16>
    %81 = vector.extract_strided_slice %9 {offsets = [0, 48], sizes = [128, 16], strides = [1, 1]} : vector<128x128xbf16> to vector<128x16xbf16>
    %82 = vector.extract_strided_slice %13 {offsets = [0, 48], sizes = [128, 16], strides = [1, 1]} : vector<128x128xbf16> to vector<128x16xbf16>
    "tpu.trace_start"() <{level = 10 : i32, message = "qd,kd->qk"}> : () -> ()
    %cst_30 = arith.constant dense<0.000000e+00> : vector<128x128xf32>
    %83 = tpu.matmul %80, %81, %cst_30 {dimension_numbers = #tpu.dot_dimension_numbers<[1], [1], [0], [0], [0, 0, 1, 0], [], []>} : vector<128x16xbf16>, vector<128x16xbf16>, vector<128x128xf32> -> vector<128x128xf32>
    %cst_31 = arith.constant -1.000000e+30 : f32
    "tpu.trace_stop"() : () -> ()
    %84 = vector.broadcast %cst_31 : f32 to vector<128x128xf32>
    %85 = arith.select %16, %83, %84 : vector<128x128xi1>, vector<128x128xf32>
    %cst_32 = arith.constant dense<0xFF800000> : vector<128xf32>
    %86 = vector.multi_reduction <maximumf>, %85, %cst_32 [1] : vector<128x128xf32> to vector<128xf32>
    %87 = vector.shape_cast %86 : vector<128xf32> to vector<128x1xf32>
    %88 = vector.broadcast %87 : vector<128x1xf32> to vector<128x128xf32>
    %89 = arith.subf %85, %88 : vector<128x128xf32>
    %90 = math.exp %89 : vector<128x128xf32>
    %cst_33 = arith.constant dense<0.000000e+00> : vector<128xf32>
    %91 = vector.multi_reduction <add>, %90, %cst_33 [1] : vector<128x128xf32> to vector<128xf32>
    %92 = vector.shape_cast %91 : vector<128xf32> to vector<128x1xf32>
    %93 = vector.broadcast %92 : vector<128x1xf32> to vector<128x128xf32>
    %94 = arith.divf %90, %93 : vector<128x128xf32>
    %c0_34 = arith.constant 0 : index
    %c3 = arith.constant 3 : index
    %c0_35 = arith.constant 0 : index
    %c0_36 = arith.constant 0 : index
    %95 = vector.load %arg7[%c0_34, %c3, %c0_35, %c0_36] : memref<1x8x128x128xf32, #tpu.memory_space<vmem>>, vector<1x1x128x128xf32>
    %96 = vector.shape_cast %95 : vector<1x1x128x128xf32> to vector<128x128xf32>
    %97 = vector.shape_cast %94 : vector<128x128xf32> to vector<1x1x128x128xf32>
    tpu.vector_store %arg7[%c0_34, %c3, %c0_35, %c0_36], %97 {strides = array<i32>} : memref<1x8x128x128xf32, #tpu.memory_space<vmem>>, vector<1x1x128x128xf32>,
    %98 = arith.truncf %94 : vector<128x128xf32> to vector<128x128xbf16>
    %cst_37 = arith.constant dense<0.000000e+00> : vector<128x16xf32>
    %99 = tpu.matmul %98, %82, %cst_37 {dimension_numbers = #tpu.dot_dimension_numbers<[1], [0], [0], [1], [0, 0, 1, 1], [], []>} : vector<128x128xbf16>, vector<128x16xbf16>, vector<128x16xf32> -> vector<128x16xf32>
    %100 = arith.truncf %99 : vector<128x16xf32> to vector<128x16xbf16>
    %101 = vector.extract_strided_slice %5 {offsets = [0, 64], sizes = [128, 16], strides = [1, 1]} : vector<128x128xbf16> to vector<128x16xbf16>
    %102 = vector.extract_strided_slice %9 {offsets = [0, 64], sizes = [128, 16], strides = [1, 1]} : vector<128x128xbf16> to vector<128x16xbf16>
    %103 = vector.extract_strided_slice %13 {offsets = [0, 64], sizes = [128, 16], strides = [1, 1]} : vector<128x128xbf16> to vector<128x16xbf16>
    "tpu.trace_start"() <{level = 10 : i32, message = "qd,kd->qk"}> : () -> ()
    %cst_38 = arith.constant dense<0.000000e+00> : vector<128x128xf32>
    %104 = tpu.matmul %101, %102, %cst_38 {dimension_numbers = #tpu.dot_dimension_numbers<[1], [1], [0], [0], [0, 0, 1, 0], [], []>} : vector<128x16xbf16>, vector<128x16xbf16>, vector<128x128xf32> -> vector<128x128xf32>
    %cst_39 = arith.constant -1.000000e+30 : f32
    "tpu.trace_stop"() : () -> ()
    %105 = vector.broadcast %cst_39 : f32 to vector<128x128xf32>
    %106 = arith.select %16, %104, %105 : vector<128x128xi1>, vector<128x128xf32>
    %cst_40 = arith.constant dense<0xFF800000> : vector<128xf32>
    %107 = vector.multi_reduction <maximumf>, %106, %cst_40 [1] : vector<128x128xf32> to vector<128xf32>
    %108 = vector.shape_cast %107 : vector<128xf32> to vector<128x1xf32>
    %109 = vector.broadcast %108 : vector<128x1xf32> to vector<128x128xf32>
    %110 = arith.subf %106, %109 : vector<128x128xf32>
    %111 = math.exp %110 : vector<128x128xf32>
    %cst_41 = arith.constant dense<0.000000e+00> : vector<128xf32>
    %112 = vector.multi_reduction <add>, %111, %cst_41 [1] : vector<128x128xf32> to vector<128xf32>
    %113 = vector.shape_cast %112 : vector<128xf32> to vector<128x1xf32>
    %114 = vector.broadcast %113 : vector<128x1xf32> to vector<128x128xf32>
    %115 = arith.divf %111, %114 : vector<128x128xf32>
    %c0_42 = arith.constant 0 : index
    %c4 = arith.constant 4 : index
    %c0_43 = arith.constant 0 : index
    %c0_44 = arith.constant 0 : index
    %116 = vector.load %arg7[%c0_42, %c4, %c0_43, %c0_44] : memref<1x8x128x128xf32, #tpu.memory_space<vmem>>, vector<1x1x128x128xf32>
    %117 = vector.shape_cast %116 : vector<1x1x128x128xf32> to vector<128x128xf32>
    %118 = vector.shape_cast %115 : vector<128x128xf32> to vector<1x1x128x128xf32>
    tpu.vector_store %arg7[%c0_42, %c4, %c0_43, %c0_44], %118 {strides = array<i32>} : memref<1x8x128x128xf32, #tpu.memory_space<vmem>>, vector<1x1x128x128xf32>,
    %119 = arith.truncf %115 : vector<128x128xf32> to vector<128x128xbf16>
    %cst_45 = arith.constant dense<0.000000e+00> : vector<128x16xf32>
    %120 = tpu.matmul %119, %103, %cst_45 {dimension_numbers = #tpu.dot_dimension_numbers<[1], [0], [0], [1], [0, 0, 1, 1], [], []>} : vector<128x128xbf16>, vector<128x16xbf16>, vector<128x16xf32> -> vector<128x16xf32>
    %121 = arith.truncf %120 : vector<128x16xf32> to vector<128x16xbf16>
    %122 = vector.extract_strided_slice %5 {offsets = [0, 80], sizes = [128, 16], strides = [1, 1]} : vector<128x128xbf16> to vector<128x16xbf16>
    %123 = vector.extract_strided_slice %9 {offsets = [0, 80], sizes = [128, 16], strides = [1, 1]} : vector<128x128xbf16> to vector<128x16xbf16>
    %124 = vector.extract_strided_slice %13 {offsets = [0, 80], sizes = [128, 16], strides = [1, 1]} : vector<128x128xbf16> to vector<128x16xbf16>
    "tpu.trace_start"() <{level = 10 : i32, message = "qd,kd->qk"}> : () -> ()
    %cst_46 = arith.constant dense<0.000000e+00> : vector<128x128xf32>
    %125 = tpu.matmul %122, %123, %cst_46 {dimension_numbers = #tpu.dot_dimension_numbers<[1], [1], [0], [0], [0, 0, 1, 0], [], []>} : vector<128x16xbf16>, vector<128x16xbf16>, vector<128x128xf32> -> vector<128x128xf32>
    %cst_47 = arith.constant -1.000000e+30 : f32
    "tpu.trace_stop"() : () -> ()
    %126 = vector.broadcast %cst_47 : f32 to vector<128x128xf32>
    %127 = arith.select %16, %125, %126 : vector<128x128xi1>, vector<128x128xf32>
    %cst_48 = arith.constant dense<0xFF800000> : vector<128xf32>
    %128 = vector.multi_reduction <maximumf>, %127, %cst_48 [1] : vector<128x128xf32> to vector<128xf32>
    %129 = vector.shape_cast %128 : vector<128xf32> to vector<128x1xf32>
    %130 = vector.broadcast %129 : vector<128x1xf32> to vector<128x128xf32>
    %131 = arith.subf %127, %130 : vector<128x128xf32>
    %132 = math.exp %131 : vector<128x128xf32>
    %cst_49 = arith.constant dense<0.000000e+00> : vector<128xf32>
    %133 = vector.multi_reduction <add>, %132, %cst_49 [1] : vector<128x128xf32> to vector<128xf32>
    %134 = vector.shape_cast %133 : vector<128xf32> to vector<128x1xf32>
    %135 = vector.broadcast %134 : vector<128x1xf32> to vector<128x128xf32>
    %136 = arith.divf %132, %135 : vector<128x128xf32>
    %c0_50 = arith.constant 0 : index
    %c5 = arith.constant 5 : index
    %c0_51 = arith.constant 0 : index
    %c0_52 = arith.constant 0 : index
    %137 = vector.load %arg7[%c0_50, %c5, %c0_51, %c0_52] : memref<1x8x128x128xf32, #tpu.memory_space<vmem>>, vector<1x1x128x128xf32>
    %138 = vector.shape_cast %137 : vector<1x1x128x128xf32> to vector<128x128xf32>
    %139 = vector.shape_cast %136 : vector<128x128xf32> to vector<1x1x128x128xf32>
    tpu.vector_store %arg7[%c0_50, %c5, %c0_51, %c0_52], %139 {strides = array<i32>} : memref<1x8x128x128xf32, #tpu.memory_space<vmem>>, vector<1x1x128x128xf32>,
    %140 = arith.truncf %136 : vector<128x128xf32> to vector<128x128xbf16>
    %cst_53 = arith.constant dense<0.000000e+00> : vector<128x16xf32>
    %141 = tpu.matmul %140, %124, %cst_53 {dimension_numbers = #tpu.dot_dimension_numbers<[1], [0], [0], [1], [0, 0, 1, 1], [], []>} : vector<128x128xbf16>, vector<128x16xbf16>, vector<128x16xf32> -> vector<128x16xf32>
    %142 = arith.truncf %141 : vector<128x16xf32> to vector<128x16xbf16>
    %143 = vector.extract_strided_slice %5 {offsets = [0, 96], sizes = [128, 16], strides = [1, 1]} : vector<128x128xbf16> to vector<128x16xbf16>
    %144 = vector.extract_strided_slice %9 {offsets = [0, 96], sizes = [128, 16], strides = [1, 1]} : vector<128x128xbf16> to vector<128x16xbf16>
    %145 = vector.extract_strided_slice %13 {offsets = [0, 96], sizes = [128, 16], strides = [1, 1]} : vector<128x128xbf16> to vector<128x16xbf16>
    "tpu.trace_start"() <{level = 10 : i32, message = "qd,kd->qk"}> : () -> ()
    %cst_54 = arith.constant dense<0.000000e+00> : vector<128x128xf32>
    %146 = tpu.matmul %143, %144, %cst_54 {dimension_numbers = #tpu.dot_dimension_numbers<[1], [1], [0], [0], [0, 0, 1, 0], [], []>} : vector<128x16xbf16>, vector<128x16xbf16>, vector<128x128xf32> -> vector<128x128xf32>
    %cst_55 = arith.constant -1.000000e+30 : f32
    "tpu.trace_stop"() : () -> ()
    %147 = vector.broadcast %cst_55 : f32 to vector<128x128xf32>
    %148 = arith.select %16, %146, %147 : vector<128x128xi1>, vector<128x128xf32>
    %cst_56 = arith.constant dense<0xFF800000> : vector<128xf32>
    %149 = vector.multi_reduction <maximumf>, %148, %cst_56 [1] : vector<128x128xf32> to vector<128xf32>
    %150 = vector.shape_cast %149 : vector<128xf32> to vector<128x1xf32>
    %151 = vector.broadcast %150 : vector<128x1xf32> to vector<128x128xf32>
    %152 = arith.subf %148, %151 : vector<128x128xf32>
    %153 = math.exp %152 : vector<128x128xf32>
    %cst_57 = arith.constant dense<0.000000e+00> : vector<128xf32>
    %154 = vector.multi_reduction <add>, %153, %cst_57 [1] : vector<128x128xf32> to vector<128xf32>
    %155 = vector.shape_cast %154 : vector<128xf32> to vector<128x1xf32>
    %156 = vector.broadcast %155 : vector<128x1xf32> to vector<128x128xf32>
    %157 = arith.divf %153, %156 : vector<128x128xf32>
    %c0_58 = arith.constant 0 : index
    %c6 = arith.constant 6 : index
    %c0_59 = arith.constant 0 : index
    %c0_60 = arith.constant 0 : index
    %158 = vector.load %arg7[%c0_58, %c6, %c0_59, %c0_60] : memref<1x8x128x128xf32, #tpu.memory_space<vmem>>, vector<1x1x128x128xf32>
    %159 = vector.shape_cast %158 : vector<1x1x128x128xf32> to vector<128x128xf32>
    %160 = vector.shape_cast %157 : vector<128x128xf32> to vector<1x1x128x128xf32>
    tpu.vector_store %arg7[%c0_58, %c6, %c0_59, %c0_60], %160 {strides = array<i32>} : memref<1x8x128x128xf32, #tpu.memory_space<vmem>>, vector<1x1x128x128xf32>,
    %161 = arith.truncf %157 : vector<128x128xf32> to vector<128x128xbf16>
    %cst_61 = arith.constant dense<0.000000e+00> : vector<128x16xf32>
    %162 = tpu.matmul %161, %145, %cst_61 {dimension_numbers = #tpu.dot_dimension_numbers<[1], [0], [0], [1], [0, 0, 1, 1], [], []>} : vector<128x128xbf16>, vector<128x16xbf16>, vector<128x16xf32> -> vector<128x16xf32>
    %163 = arith.truncf %162 : vector<128x16xf32> to vector<128x16xbf16>
    %164 = vector.extract_strided_slice %5 {offsets = [0, 112], sizes = [128, 16], strides = [1, 1]} : vector<128x128xbf16> to vector<128x16xbf16>
    %165 = vector.extract_strided_slice %9 {offsets = [0, 112], sizes = [128, 16], strides = [1, 1]} : vector<128x128xbf16> to vector<128x16xbf16>
    %166 = vector.extract_strided_slice %13 {offsets = [0, 112], sizes = [128, 16], strides = [1, 1]} : vector<128x128xbf16> to vector<128x16xbf16>
    "tpu.trace_start"() <{level = 10 : i32, message = "qd,kd->qk"}> : () -> ()
    %cst_62 = arith.constant dense<0.000000e+00> : vector<128x128xf32>
    %167 = tpu.matmul %164, %165, %cst_62 {dimension_numbers = #tpu.dot_dimension_numbers<[1], [1], [0], [0], [0, 0, 1, 0], [], []>} : vector<128x16xbf16>, vector<128x16xbf16>, vector<128x128xf32> -> vector<128x128xf32>
    %cst_63 = arith.constant -1.000000e+30 : f32
    "tpu.trace_stop"() : () -> ()
    %168 = vector.broadcast %cst_63 : f32 to vector<128x128xf32>
    %169 = arith.select %16, %167, %168 : vector<128x128xi1>, vector<128x128xf32>
    %cst_64 = arith.constant dense<0xFF800000> : vector<128xf32>
    %170 = vector.multi_reduction <maximumf>, %169, %cst_64 [1] : vector<128x128xf32> to vector<128xf32>
    %171 = vector.shape_cast %170 : vector<128xf32> to vector<128x1xf32>
    %172 = vector.broadcast %171 : vector<128x1xf32> to vector<128x128xf32>
    %173 = arith.subf %169, %172 : vector<128x128xf32>
    %174 = math.exp %173 : vector<128x128xf32>
    %cst_65 = arith.constant dense<0.000000e+00> : vector<128xf32>
    %175 = vector.multi_reduction <add>, %174, %cst_65 [1] : vector<128x128xf32> to vector<128xf32>
    %176 = vector.shape_cast %175 : vector<128xf32> to vector<128x1xf32>
    %177 = vector.broadcast %176 : vector<128x1xf32> to vector<128x128xf32>
    %178 = arith.divf %174, %177 : vector<128x128xf32>
    %c0_66 = arith.constant 0 : index
    %c7 = arith.constant 7 : index
    %c0_67 = arith.constant 0 : index
    %c0_68 = arith.constant 0 : index
    %179 = vector.load %arg7[%c0_66, %c7, %c0_67, %c0_68] : memref<1x8x128x128xf32, #tpu.memory_space<vmem>>, vector<1x1x128x128xf32>
    %180 = vector.shape_cast %179 : vector<1x1x128x128xf32> to vector<128x128xf32>
    %181 = vector.shape_cast %178 : vector<128x128xf32> to vector<1x1x128x128xf32>
    tpu.vector_store %arg7[%c0_66, %c7, %c0_67, %c0_68], %181 {strides = array<i32>} : memref<1x8x128x128xf32, #tpu.memory_space<vmem>>, vector<1x1x128x128xf32>,
    %182 = arith.truncf %178 : vector<128x128xf32> to vector<128x128xbf16>
    %cst_69 = arith.constant dense<0.000000e+00> : vector<128x16xf32>
    %183 = tpu.matmul %182, %166, %cst_69 {dimension_numbers = #tpu.dot_dimension_numbers<[1], [0], [0], [1], [0, 0, 1, 1], [], []>} : vector<128x128xbf16>, vector<128x16xbf16>, vector<128x16xf32> -> vector<128x16xf32>
    %184 = arith.truncf %183 : vector<128x16xf32> to vector<128x16xbf16>
    %185 = tpu.concatenate %37, %58, %79, %100, %121, %142, %163, %184 in 1 : vector<128x16xbf16>, vector<128x16xbf16>, vector<128x16xbf16>, vector<128x16xbf16>, vector<128x16xbf16>, vector<128x16xbf16>, vector<128x16xbf16>, vector<128x16xbf16> -> vector<128x128xbf16>
    %c0_70 = arith.constant 0 : index
    %c0_71 = arith.constant 0 : index
    %186 = vector.load %arg9[%c0_70, %c0_71] : memref<128x128xf32, #tpu.memory_space<vmem>>, vector<128x128xf32>
    %187 = arith.index_cast %arg1 : i32 to index
    %c0_72 = arith.constant 0 : index
    %c0_73 = arith.constant 0 : index
    %188 = vector.load %arg4[%187, %c0_72, %c0_73] : memref<1x128x128xbf16, #tpu.memory_space<vmem>>, vector<1x128x128xbf16>
    %189 = vector.shape_cast %188 : vector<1x128x128xbf16> to vector<128x128xbf16>
    %cst_74 = arith.constant dense<0.000000e+00> : vector<128x128xf32>
    %190 = tpu.matmul %185, %189, %cst_74 {dimension_numbers = #tpu.dot_dimension_numbers<[1], [0], [0], [1], [0, 0, 1, 1], [], []>} : vector<128x128xbf16>, vector<128x128xbf16>, vector<128x128xf32> -> vector<128x128xf32>
    %191 = arith.addf %186, %190 : vector<128x128xf32>
    %c0_75 = arith.constant 0 : index
    %c0_76 = arith.constant 0 : index
    %192 = vector.load %arg9[%c0_75, %c0_76] : memref<128x128xf32, #tpu.memory_space<vmem>>, vector<128x128xf32>
    tpu.vector_store %arg9[%c0_75, %c0_76], %191 {strides = array<i32>} : memref<128x128xf32, #tpu.memory_space<vmem>>, vector<128x128xf32>,
    %c0_i32_77 = arith.constant 0 : i32
    %193 = arith.cmpi eq, %arg1, %c0_i32_77 : i32
    %194 = arith.extui %193 : i1 to i32
    %c0_i32_78 = arith.constant 0 : i32
    %195 = arith.cmpi ne, %194, %c0_i32_78 : i32
    scf.if %195 {
      %c0_79 = arith.constant 0 : index
      %c0_80 = arith.constant 0 : index
      %196 = vector.load %arg9[%c0_79, %c0_80] : memref<128x128xf32, #tpu.memory_space<vmem>>, vector<128x128xf32>
      %c0_81 = arith.constant 0 : index
      %c0_82 = arith.constant 0 : index
      %197 = vector.load %arg5[%c0_81, %c0_82] : memref<1x128xf32, #tpu.memory_space<vmem>>, vector<1x128xf32>
      %198 = vector.broadcast %197 : vector<1x128xf32> to vector<128x128xf32>
      %199 = arith.addf %196, %198 : vector<128x128xf32>
      %c0_83 = arith.constant 0 : index
      %c0_84 = arith.constant 0 : index
      %c0_85 = arith.constant 0 : index
      %200 = vector.load %arg6[%c0_83, %c0_84, %c0_85] : memref<1x128x128xf32, #tpu.memory_space<vmem>>, vector<1x128x128xf32>
      %201 = vector.shape_cast %200 : vector<1x128x128xf32> to vector<128x128xf32>
      %202 = vector.shape_cast %199 : vector<128x128xf32> to vector<1x128x128xf32>
      tpu.vector_store %arg6[%c0_83, %c0_84, %c0_85], %202 {strides = array<i32>} : memref<1x128x128xf32, #tpu.memory_space<vmem>>, vector<1x128x128xf32>,
    } else {
    }
    return
  }
  func.func @transform_0(%arg0: i32, %arg1: i32) -> (i32, i32, i32) {
    %c0_i32 = arith.constant 0 : i32
    %c0_i32_0 = arith.constant 0 : i32
    %c0_i32_1 = arith.constant 0 : i32
    return %arg0, %c0_i32, %c0_i32_0 : i32, i32, i32
  }
  func.func @transform_1(%arg0: i32, %arg1: i32) -> (i32, i32) {
    %c0_i32 = arith.constant 0 : i32
    %c0_i32_0 = arith.constant 0 : i32
    %c0_i32_1 = arith.constant 0 : i32
    return %c0_i32, %c0_i32_0 : i32, i32
  }
  func.func @transform_2(%arg0: i32, %arg1: i32) -> (i32, i32, i32) {
    %c0_i32 = arith.constant 0 : i32
    %c0_i32_0 = arith.constant 0 : i32
    %c0_i32_1 = arith.constant 0 : i32
    %c0_i32_2 = arith.constant 0 : i32
    return %c0_i32, %c0_i32_0, %c0_i32_1 : i32, i32, i32
  }
  func.func @transform_3(%arg0: i32, %arg1: i32) -> (i32, i32) {
    %c0_i32 = arith.constant 0 : i32
    %c0_i32_0 = arith.constant 0 : i32
    %c0_i32_1 = arith.constant 0 : i32
    return %c0_i32, %c0_i32_0 : i32, i32
  }
  func.func @transform_4(%arg0: i32, %arg1: i32) -> (i32, i32, i32) {
    %c0_i32 = arith.constant 0 : i32
    %c0_i32_0 = arith.constant 0 : i32
    %c0_i32_1 = arith.constant 0 : i32
    return %arg0, %c0_i32, %c0_i32_0 : i32, i32, i32
  }
  func.func @transform_5(%arg0: i32, %arg1: i32) -> (i32, i32, i32, i32) {
    %c0_i32 = arith.constant 0 : i32
    %c0_i32_0 = arith.constant 0 : i32
    %c0_i32_1 = arith.constant 0 : i32
    return %arg0, %arg1, %c0_i32, %c0_i32_0 : i32, i32, i32, i32
  }
}

</mosaic_0001>

<bundles_post_ra>
// kernel: mha_pallas.1
= control target key start
LH: loop header
LB: loop body
LE: loop exit
PB: predicated region body
PF: predicated region fallthrough
CT: control target
= control target key end

     0   :  { %s7977_s18 = smov 0   ;;  %s7979_s19 = smov 0   ;;  %s12764_s0 = inlined_call_operand.vmem [shape: f32[2,128,128], index: 0, kind: input, shape index: {}]   ;;  %s12765_s1 = inlined_call_operand.vmem [shape: bf16[128,384], index: 1, kind: input, shape index: {}]   ;;  %s12766_s2 = inlined_call_operand.vmem [shape: bf16[1,128,128], index: 2, kind: input, shape index: {}]   ;;  %s12767_s3 = inlined_call_operand.vmem [shape: f32[1,128], index: 3, kind: input, shape index: {}]   ;;  %s12768_s4 = inlined_call_operand.vmem [shape: f32[2,128,128], index: 4, kind: output, shape index: {0}]   ;;  %s12769_s5 = inlined_call_operand.vmem [shape: f32[2,8,128,128], index: 5, kind: output, shape index: {1}]  }
   0x1   :  { %s7981_s20 = smov 0  }
   0x2 LB: > { %s28_s21 = sadd.s32 1, %s7934_s19  ;;  %p6700_p0 = scmp.ge.s32.totalorder %s7938_s20, 1  ;;  %s7938_s20 = sphi %s7981_s20, %s16_s20   ;;  %s7934_s19 = sphi %s7979_s19, %s13190_s19   ;;  %s7930_s18 = sphi %s7977_s18, %s13189_s18  }
   0x3   : > { %p30_p1 = scmp.ge.s32.totalorder %s28_s21, 2  ;;  %p204_p2 = scmp.lt.s32.totalorder %s7938_s20, 3 }
   0x5   : > { %s13192_s21 = smov (%p30_p1, %s28_s21), 0  ;;  %p205_p3 = pnand %p6700_p0, %p204_p2 }
   0x7   : > { %208 = sbr.rel (%p205_p3) target bundleno = 2621 (0xa3d), region = 36 }
   0xc   : > { %v6737_v0 = vld [vmem:[%s12765_s1 + $0xa8] sm:$0xf]  ;;  %v7151_v1 = vld [vmem:[%s12765_s1 + $0xb0] sm:$0xf0]  ;;  %v6769_v2 = vld [vmem:[%s12765_s1 + $0xac] sm:$0xf] }
   0xd   : > { %v6738_v3 = vor.u32 %v7151_v1, %v6737_v0  ;;  %v7159_v4 = vld [vmem:[%s12765_s1 + $0xb4] sm:$0xf0]  ;;  %v6801_v5 = vld [vmem:[%s12765_s1 + $0xb0] sm:$0xf]  ;;  %v7167_v6 = vld [vmem:[%s12765_s1 + $0xb8] sm:$0xf0] }
   0xe   : > { %v6770_v7 = vor.u32 %v7159_v4, %v6769_v2  ;;  %v6802_v8 = vor.u32 %v7167_v6, %v6801_v5  ;;  %v6733_v9 = vld [vmem:[%s12765_s1 + $0x90] sm:$0xf]  ;;  %v7150_v10 = vld [vmem:[%s12765_s1 + $0x98] sm:$0xf0]  ;;  %v6765_v11 = vld [vmem:[%s12765_s1 + $0x94] sm:$0xf] }
   0xf   : > { %355 = vmatpush.bf16.msra.mxu0 %v6738_v3  ;;  %v6734_v12 = vor.u32 %v7150_v10, %v6733_v9  ;;  %v7158_v13 = vld [vmem:[%s12765_s1 + $0x9c] sm:$0xf0]  ;;  %v6797_v14 = vld [vmem:[%s12765_s1 + $0x98] sm:$0xf]  ;;  %v7166_v15 = vld [vmem:[%s12765_s1 + $0xa0] sm:$0xf0] }
  0x10   : > { %516 = vmatpush.bf16.msra.mxu1 %v6770_v7  ;;  %662 = vmatpush.bf16.msra.mxu2 %v6802_v8  ;;  %v6766_v16 = vor.u32 %v7158_v13, %v6765_v11  ;;  %v6798_v17 = vor.u32 %v7166_v15, %v6797_v14  ;;  %v6729_v18 = vld [vmem:[%s12765_s1 + $0x78] sm:$0xf]  ;;  %v7149_v19 = vld [vmem:[%s12765_s1 + $0x80] sm:$0xf0]  ;;  %v6761_v20 = vld [vmem:[%s12765_s1 + $0x7c] sm:$0xf] }
  0x11   : > { %v7157_v21 = vld [vmem:[%s12765_s1 + $0x84] sm:$0xf0]  ;;  %v6793_v22 = vld [vmem:[%s12765_s1 + $0x80] sm:$0xf]  ;;  %v7165_v23 = vld [vmem:[%s12765_s1 + $0x88] sm:$0xf0]  ;;  %v6730_v24 = vor.u32 %v7149_v19, %v6729_v18 }
  0x12   : > { %v6762_v25 = vor.u32 %v7157_v21, %v6761_v20  ;;  %v6794_v26 = vor.u32 %v7165_v23, %v6793_v22  ;;  %v6725_v27 = vld [vmem:[%s12765_s1 + $0x60] sm:$0xf]  ;;  %v7148_v28 = vld [vmem:[%s12765_s1 + $0x68] sm:$0xf0]  ;;  %v6757_v29 = vld [vmem:[%s12765_s1 + $0x64] sm:$0xf] }
  0x13   : > { %356 = vmatpush.bf16.msra.mxu0 %v6734_v12  ;;  %v7156_v30 = vld [vmem:[%s12765_s1 + $0x6c] sm:$0xf0]  ;;  %v6789_v31 = vld [vmem:[%s12765_s1 + $0x68] sm:$0xf]  ;;  %v7164_v32 = vld [vmem:[%s12765_s1 + $0x70] sm:$0xf0]  ;;  %v6726_v33 = vor.u32 %v7148_v28, %v6725_v27 }
  0x14   : > { %517 = vmatpush.bf16.msra.mxu1 %v6766_v16  ;;  %663 = vmatpush.bf16.msra.mxu2 %v6798_v17  ;;  %v6758_v34 = vor.u32 %v7156_v30, %v6757_v29  ;;  %v6790_v35 = vor.u32 %v7164_v32, %v6789_v31  ;;  %v6721_v36 = vld [vmem:[%s12765_s1 + $0x48] sm:$0xf]  ;;  %v7147_v37 = vld [vmem:[%s12765_s1 + $0x50] sm:$0xf0]  ;;  %v6753_v38 = vld [vmem:[%s12765_s1 + $0x4c] sm:$0xf] }
  0x15   : > { %v7155_v39 = vld [vmem:[%s12765_s1 + $0x54] sm:$0xf0]  ;;  %v6785_v40 = vld [vmem:[%s12765_s1 + $0x50] sm:$0xf]  ;;  %v7163_v41 = vld [vmem:[%s12765_s1 + $0x58] sm:$0xf0]  ;;  %v6722_v42 = vor.u32 %v7147_v37, %v6721_v36 }
  0x16   : > { %v6717_v43 = vld [vmem:[%s12765_s1 + $0x30] sm:$0xf]  ;;  %v7146_v44 = vld [vmem:[%s12765_s1 + $0x38] sm:$0xf0]  ;;  %v6754_v45 = vor.u32 %v7155_v39, %v6753_v38  ;;  %v6786_v46 = vor.u32 %v7163_v41, %v6785_v40  ;;  %v6749_v47 = vld [vmem:[%s12765_s1 + $0x34] sm:$0xf] }
  0x17   : > { %357 = vmatpush.bf16.msra.mxu0 %v6730_v24  ;;  %p242_p4 = scmp.lt.s32.totalorder %s7930_s18, 1  ;;  %v7154_v48 = vld [vmem:[%s12765_s1 + $0x3c] sm:$0xf0]  ;;  %v6781_v49 = vld [vmem:[%s12765_s1 + $0x38] sm:$0xf]  ;;  %v6718_v51 = vor.u32 %v7146_v44, %v6717_v43  ;;  %s7940_s13 = smov 64  }
  0x18   : > { %518 = vmatpush.bf16.msra.mxu1 %v6762_v25  ;;  %664 = vmatpush.bf16.msra.mxu2 %v6794_v26  ;;  %v7162_v50 = vld [vmem:[%s12765_s1 + $0x40] sm:$0xf0]  ;;  %v6713_v52 = vld [vmem:[%s12765_s1 + $0x18] sm:$0xf]  ;;  %v6750_v53 = vor.u32 %v7154_v48, %v6749_v47  ;;  %v6745_v56 = vld [vmem:[%s12765_s1 + $0x1c] sm:$0xf] }
  0x19   : > { %s13194_s18 = smov (!%p242_p4, %s7930_s18), 1  ;;  %v6782_v54 = vor.u32 %v7162_v50, %v6781_v49  ;;  %v7145_v55 = vld [vmem:[%s12765_s1 + $0x20] sm:$0xf0]  ;;  %v7153_v57 = vld [vmem:[%s12765_s1 + $0x24] sm:$0xf0]  ;;  %s7941_s14 = smov 96  }
  0x1a   : > { %v6777_v58 = vld [vmem:[%s12765_s1 + $0x20] sm:$0xf]  ;;  %v7161_v59 = vld [vmem:[%s12765_s1 + $0x28] sm:$0xf0]  ;;  %s7141_s22 = sshll.u32 %s13194_s18, 7  ;;  %v6714_v60 = vor.u32 %v7145_v55, %v6713_v52  ;;  %v6746_v61 = vor.u32 %v7153_v57, %v6745_v56  ;;  %s7942_s15 = smov 112  }
  0x1b   : > { %358 = vmatpush.bf16.msra.mxu0 %v6726_v33  ;;  %v6778_v62 = vor.u32 %v7161_v59, %v6777_v58  ;;  %v6709_v63 = vld [vmem:[%s12765_s1] sm:$0xf]  ;;  %v7144_v0 = vld [vmem:[%s12765_s1 + $0x8] sm:$0xf0]  ;;  %v6741_v1 = vld [vmem:[%s12765_s1 + $0x4] sm:$0xf]  ;;  %s8142_s6 = scalar_lea.vmem %s12764_s0, %s7141_s22  ;;  %s12677_s7 = scalar_lea.vmem %s12768_s4, %s7141_s22 }
  0x1c   : > { %519 = vmatpush.bf16.msra.mxu1 %v6758_v34  ;;  %665 = vmatpush.bf16.msra.mxu2 %v6790_v35  ;;  %v7152_v2 = vld [vmem:[%s12765_s1 + $0xc] sm:$0xf0]  ;;  %v6773_v3 = vld [vmem:[%s12765_s1 + $0x8] sm:$0xf]  ;;  %v7160_v4 = vld [vmem:[%s12765_s1 + $0x10] sm:$0xf0]  ;;  %v6710_v5 = vor.u32 %v7144_v0, %v6709_v63 }
  0x1d   : > { %v267_v6 = vld [vmem:[%s8142_s6] sm:$0xff]  ;;  %v268_v7 = vld [vmem:[%s8142_s6 + $0x8] sm:$0xff]  ;;  %v6742_v8 = vor.u32 %v7152_v2, %v6741_v1  ;;  %v6774_v9 = vor.u32 %v7160_v4, %v6773_v3  ;;  %v269_v11 = vld [vmem:[%s8142_s6 + $0x10] sm:$0xff]  ;;  %s7943_s16 = smov 80   ;;  %s7944_s17 = smov 48   ;;  %vm902_vm0 = vcmask 130048  }
  0x1e   : > { %v283_v10 = vpack.c.bf16 %v268_v7, %v267_v6  ;;  %v270_v12 = vld [vmem:[%s8142_s6 + $0x18] sm:$0xff]  ;;  %v271_v14 = vld [vmem:[%s8142_s6 + $0x20] sm:$0xff]  ;;  %v272_v15 = vld [vmem:[%s8142_s6 + $0x28] sm:$0xff]  ;;  %s7945_s23 = smov 16   ;;  %s7946_s24 = smov 32  }
  0x1f   : > { %359 = vmatpush.bf16.msra.mxu0 %v6722_v42  ;;  %v284_v13 = vpack.c.bf16 %v270_v12, %v269_v11  ;;  %v285_v16 = vpack.c.bf16 %v272_v15, %v271_v14  ;;  %v273_v17 = vld [vmem:[%s8142_s6 + $0x30] sm:$0xff]  ;;  %v274_v18 = vld [vmem:[%s8142_s6 + $0x38] sm:$0xff]  ;;  %v275_v20 = vld [vmem:[%s8142_s6 + $0x40] sm:$0xff]  ;;  %s7143_s25 = sshll.u32 %s13194_s18, 10 }
  0x20   : > { %520 = vmatpush.bf16.msra.mxu1 %v6754_v45  ;;  %666 = vmatpush.bf16.msra.mxu2 %v6786_v46  ;;  %v286_v19 = vpack.c.bf16 %v274_v18, %v273_v17  ;;  %v276_v21 = vld [vmem:[%s8142_s6 + $0x48] sm:$0xff]  ;;  %v277_v23 = vld [vmem:[%s8142_s6 + $0x50] sm:$0xff]  ;;  %v278_v24 = vld [vmem:[%s8142_s6 + $0x58] sm:$0xff]  ;;  %s9247_s28 = scalar_lea.vmem %s12769_s5, %s7143_s25 }
  0x21   : > { %v287_v22 = vpack.c.bf16 %v276_v21, %v275_v20  ;;  %v288_v25 = vpack.c.bf16 %v278_v24, %v277_v23  ;;  %v279_v26 = vld [vmem:[%s8142_s6 + $0x60] sm:$0xff]  ;;  %v280_v27 = vld [vmem:[%s8142_s6 + $0x68] sm:$0xff]  ;;  %v281_v29 = vld [vmem:[%s8142_s6 + $0x70] sm:$0xff] }
  0x22   : > { %v289_v28 = vpack.c.bf16 %v280_v27, %v279_v26  ;;  %v282_v30 = vld [vmem:[%s8142_s6 + $0x78] sm:$0xff] }
  0x23   : > { %360 = vmatpush.bf16.msra.mxu0 %v6718_v51  ;;  %v290_v31 = vpack.c.bf16 %v282_v30, %v281_v29 }
  0x24   : > { %521 = vmatpush.bf16.msra.mxu1 %v6750_v53  ;;  %667 = vmatpush.bf16.msra.mxu2 %v6782_v54 }
  0x27   : > { %361 = vmatpush.bf16.msra.mxu0 %v6714_v60 }
  0x28   : > { %522 = vmatpush.bf16.msra.mxu1 %v6746_v61  ;;  %668 = vmatpush.bf16.msra.mxu2 %v6778_v62 }
  0x2b   : > { %362 = vmatpush.bf16.msra.mxu0 %v6710_v5 }
  0x2c   : > { %523 = vmatpush.bf16.msra.mxu1 %v6742_v8  ;;  %669 = vmatpush.bf16.msra.mxu2 %v6774_v9 }
  0x2e   : > { %363 = vmatmul.bf16.vlgmr.msra.gmra.mxu0 %v283_v10 }
  0x2f   : > { %524 = vmatmul.bf16.vlgmr.msra.gmra.mxu1 %v283_v10  ;;  %670 = vmatmul.bf16.vlgmr.msra.gmra.mxu2 %v283_v10 }
  0x3e   : > { %368 = vmatmul.bf16.gmra.mxu0 %v284_v13 }
  0x3f   : > { %529 = vmatmul.bf16.gmra.mxu1 %v284_v13  ;;  %675 = vmatmul.bf16.gmra.mxu2 %v284_v13 }
  0x4e   : > { %373 = vmatmul.bf16.gmra.mxu0 %v285_v16 }
  0x4f   : > { %534 = vmatmul.bf16.gmra.mxu1 %v285_v16  ;;  %680 = vmatmul.bf16.gmra.mxu2 %v285_v16 }
  0x5e   : > { %378 = vmatmul.bf16.gmra.mxu0 %v286_v19 }
  0x5f   : > { %539 = vmatmul.bf16.gmra.mxu1 %v286_v19  ;;  %685 = vmatmul.bf16.gmra.mxu2 %v286_v19 }
  0x6e   : > { %383 = vmatmul.bf16.gmra.mxu0 %v287_v22 }
  0x6f   : > { %544 = vmatmul.bf16.gmra.mxu1 %v287_v22  ;;  %690 = vmatmul.bf16.gmra.mxu2 %v287_v22 }
  0x7e   : > { %388 = vmatmul.bf16.gmra.mxu0 %v288_v25 }
  0x7f   : > { %549 = vmatmul.bf16.gmra.mxu1 %v288_v25  ;;  %695 = vmatmul.bf16.gmra.mxu2 %v288_v25 }
  0x8e   : > { %393 = vmatmul.bf16.gmra.mxu0 %v289_v28 }
  0x8f   : > { %554 = vmatmul.bf16.gmra.mxu1 %v289_v28  ;;  %700 = vmatmul.bf16.gmra.mxu2 %v289_v28 }
  0x9e   : > { %398 = vmatmul.bf16.gmra.mxu0 %v290_v31 }
  0x9f   : > { %559 = vmatmul.bf16.gmra.mxu1 %v290_v31  ;;  %705 = vmatmul.bf16.gmra.mxu2 %v290_v31 }
  0xab   : > { %v364_v32 = vpop.f32.mrf.mxu0 }
  0xac   : > { %v525_v33 = vpop.f32.mrf.mxu1  ;;  %v404_v36 = vmul.f32 0.25, %v364_v32 }
  0xb2   : > { %v671_v34 = vpop.f32.mrf.mxu2 }
  0xb3   : > { %v366_v35 = vpop.f32.mrf.mxu0 }
  0xb4   : > { %v405_v37 = vmul.f32 0.25, %v366_v35  ;;  %v527_v38 = vpop.f32.mrf.mxu1 }
  0xb5   : > { %v7243_v39 = vpack.c.bf16 %v527_v38, %v525_v33 }
  0xb6   : > { %v7203_v40 = vpack.c.bf16 %v405_v37, %v404_v36 }
  0xb7   : > { %7244 = vst [vmem:[#allocation2 + $0x88] sm:$0xff] %v7243_v39  }
  0xb8   : > { %7204 = vst [vmem:[#allocation2 + $0xb0] sm:$0xff] %v7203_v40  }
  0xba   : > { %v673_v41 = vpop.f32.mrf.mxu2 }
  0xbb   : > { %v7283_v42 = vpack.c.bf16 %v673_v41, %v671_v34  ;;  %v369_v43 = vpop.f32.mrf.mxu0 }
  0xbc   : > { %v530_v44 = vpop.f32.mrf.mxu1  ;;  %v406_v46 = vmul.f32 0.25, %v369_v43 }
  0xbd   : > { %7284 = vst [vmem:[#allocation2 + $0xa8] sm:$0xff] %v7283_v42  }
  0xbe   : > { %v8169_v45 = vld [vmem:[#allocation2 + $0x88] sm:$0xff] }
  0xbf   : > { %3354 = vrot.lane.b32.xlu0 %v8169_v45, %s7940_s13  ;;  %2132 = vrot.lane.b32.xlu1 %v8169_v45, %s7941_s14  ;;  %v8177_v52 = vld [vmem:[#allocation2 + $0xb0] sm:$0xff] }
  0xc0   : > { %1521 = vrot.lane.b32.xlu2 %v8169_v45, %s7942_s15 }
  0xc2   : > { %v676_v47 = vpop.f32.mrf.mxu2 }
  0xc3   : > { %v371_v48 = vpop.f32.mrf.mxu0 }
  0xc4   : > { %v532_v49 = vpop.f32.mrf.mxu1  ;;  %v407_v50 = vmul.f32 0.25, %v371_v48  ;;  %v8185_v59 = vld [vmem:[#allocation2 + $0xa8] sm:$0xff] }
  0xc5   : > { %v7248_v51 = vpack.c.bf16 %v532_v49, %v530_v44 }
  0xc6   : > { %v7208_v53 = vpack.c.bf16 %v407_v50, %v406_v46 }
  0xc7   : > { %7327 = vst [vmem:[#allocation2 + $0x90] sm:$0xff] %v7248_v51   ;;  %2727 = vrot.lane.b32.xlu1 %v8177_v52, %s7943_s16 }
  0xc8   : > { %7320 = vst [vmem:[#allocation2] sm:$0xff] %v7208_v53   ;;  %2743 = vrot.lane.b32.xlu2 %v8169_v45, %s7943_s16 }
  0xca   : > { %v678_v54 = vpop.f32.mrf.mxu2 }
  0xcb   : > { %v7288_v55 = vpack.c.bf16 %v678_v54, %v676_v47  ;;  %v374_v56 = vpop.f32.mrf.mxu0 }
  0xcc   : > { %v535_v57 = vpop.f32.mrf.mxu1  ;;  %v408_v61 = vmul.f32 0.25, %v374_v56 }
  0xcd   : > { %7334 = vst [vmem:[#allocation2 + $0x68] sm:$0xff] %v7288_v55  }
  0xce   : > { %v8183_v58 = vld [vmem:[#allocation2 + $0x90] sm:$0xff] }
  0xcf   : > { %3356 = vrot.lane.b32.xlu0 %v8183_v58, %s7940_s13  ;;  %2027 = vrot.lane.b32.xlu1 %v8185_v59, %s7942_s15  ;;  %v8193_v2 = vld [vmem:[#allocation2] sm:$0xff] }
  0xd0   : > { %1505 = vrot.lane.b32.xlu2 %v8177_v52, %s7942_s15 }
  0xd2   : > { %v681_v60 = vpop.f32.mrf.mxu2 }
  0xd3   : > { %v376_v62 = vpop.f32.mrf.mxu0 }
  0xd4   : > { %v537_v63 = vpop.f32.mrf.mxu1  ;;  %v409_v0 = vmul.f32 0.25, %v376_v62  ;;  %v8215_v19 = vld [vmem:[#allocation2 + $0x68] sm:$0xff] }
  0xd5   : > { %v7253_v1 = vpack.c.bf16 %v537_v63, %v535_v57 }
  0xd6   : > { %v7213_v3 = vpack.c.bf16 %v409_v0, %v408_v61 }
  0xd7   : > { %7328 = vst [vmem:[#allocation2 + $0x18] sm:$0xff] %v7253_v1   ;;  %3249 = vrot.lane.b32.xlu1 %v8185_v59, %s7943_s16  ;;  %1507 = vrot.lane.b32.xlu0 %v8193_v2, %s7942_s15 }
  0xd8   : > { %7321 = vst [vmem:[#allocation2 + $0x10] sm:$0xff] %v7213_v3   ;;  %2116 = vrot.lane.b32.xlu2 %v8177_v52, %s7941_s14 }
  0xda   : > { %v683_v4 = vpop.f32.mrf.mxu2 }
  0xdb   : > { %v7293_v5 = vpack.c.bf16 %v683_v4, %v681_v60  ;;  %v379_v7 = vpop.f32.mrf.mxu0 }
  0xdc   : > { %v540_v6 = vpop.f32.mrf.mxu1  ;;  %v410_v11 = vmul.f32 0.25, %v379_v7 }
  0xdd   : > { %7335 = vst [vmem:[#allocation2 + $0x30] sm:$0xff] %v7293_v5  }
  0xde   : > { %v8225_v24 = vld [vmem:[#allocation2 + $0x18] sm:$0xff] }
  0xdf   : > { %1523 = vrot.lane.b32.xlu1 %v8183_v58, %s7942_s15  ;;  %2118 = vrot.lane.b32.xlu0 %v8193_v2, %s7941_s14  ;;  %v8213_v18 = vld [vmem:[#allocation2 + $0x10] sm:$0xff] }
  0xe0   : > { %2638 = vrot.lane.b32.xlu2 %v8185_v59, %s7941_s14 }
  0xe2   : > { %v686_v8 = vpop.f32.mrf.mxu2 }
  0xe3   : > { %v381_v12 = vpop.f32.mrf.mxu0 }
  0xe4   : > { %v542_v9 = vpop.f32.mrf.mxu1  ;;  %v411_v14 = vmul.f32 0.25, %v381_v12  ;;  %v8223_v23 = vld [vmem:[#allocation2 + $0x30] sm:$0xff] }
  0xe5   : > { %v7258_v10 = vpack.c.bf16 %v542_v9, %v540_v6 }
  0xe6   : > { %v7218_v17 = vpack.c.bf16 %v411_v14, %v410_v11 }
  0xe7   : > { %7329 = vst [vmem:[#allocation2 + $0x98] sm:$0xff] %v7258_v10   ;;  %2745 = vrot.lane.b32.xlu1 %v8183_v58, %s7943_s16  ;;  %2729 = vrot.lane.b32.xlu0 %v8193_v2, %s7943_s16 }
  0xe8   : > { %2134 = vrot.lane.b32.xlu2 %v8183_v58, %s7941_s14  ;;  %7322 = vst [vmem:[#allocation2 + $0x48] sm:$0xff] %v7218_v17  }
  0xea   : > { %v688_v13 = vpop.f32.mrf.mxu2 }
  0xeb   : > { %v7298_v15 = vpack.c.bf16 %v688_v13, %v686_v8  ;;  %v384_v31 = vpop.f32.mrf.mxu0 }
  0xec   : > { %v545_v16 = vpop.f32.mrf.mxu1  ;;  %v412_v35 = vmul.f32 0.25, %v384_v31 }
  0xed   : > { %7336 = vst [vmem:[#allocation2 + $0x58] sm:$0xff] %v7298_v15  }
  0xee   : > { %v8233_v28 = vld [vmem:[#allocation2 + $0x98] sm:$0xff] }
  0xef   : > { %3967 = vrot.lane.b32.xlu1 %v8183_v58, %s7944_s17  ;;  %2029 = vrot.lane.b32.xlu0 %v8215_v19, %s7942_s15  ;;  %v8253_v43 = vld [vmem:[#allocation2 + $0x48] sm:$0xff] }
  0xf0   : > { %2731 = vrot.lane.b32.xlu2 %v8213_v18, %s7943_s16 }
  0xf2   : > { %v691_v20 = vpop.f32.mrf.mxu2 }
  0xf3   : > { %v386_v37 = vpop.f32.mrf.mxu0 }
  0xf4   : > { %v547_v21 = vpop.f32.mrf.mxu1  ;;  %v413_v38 = vmul.f32 0.25, %v386_v37  ;;  %v7187_v62 = vld [vmem:[#allocation2 + $0x58] sm:$0xff] }
  0xf5   : > { %v7263_v22 = vpack.c.bf16 %v547_v21, %v545_v16 }
  0xf6   : > { %v7223_v39 = vpack.c.bf16 %v413_v38, %v412_v35 }
  0xf7   : > { %7330 = vst [vmem:[#allocation2 + $0x38] sm:$0xff] %v7263_v22   ;;  %3969 = vrot.lane.b32.xlu1 %v8225_v24, %s7944_s17  ;;  %2640 = vrot.lane.b32.xlu0 %v8215_v19, %s7941_s14 }
  0xf8   : > { %2031 = vrot.lane.b32.xlu2 %v8223_v23, %s7942_s15  ;;  %7323 = vst [vmem:[#allocation2 + $0x60] sm:$0xff] %v7223_v39   ;;  %v934_v39 = vsel %vm902_vm0, %v8225_v24, 0 }
  0xfa   : > { %v693_v25 = vpop.f32.mrf.mxu2 }
  0xfb   : > { %v7303_v26 = vpack.c.bf16 %v693_v25, %v691_v20  ;;  %v389_v44 = vpop.f32.mrf.mxu0 }
  0xfc   : > { %v550_v27 = vpop.f32.mrf.mxu1  ;;  %v414_v50 = vmul.f32 0.25, %v389_v44  ;;  %v931_v44 = vsel %vm902_vm0, %v8183_v58, 0 }
  0xfd   : > { %7337 = vst [vmem:[#allocation2 + $0x80] sm:$0xff] %v7303_v26  }
  0xfe   : > { %v8271_v61 = vld [vmem:[#allocation2 + $0x38] sm:$0xff] }
  0xff   : > { %3251 = vrot.lane.b32.xlu0 %v8215_v19, %s7943_s16  ;;  %1509 = vrot.lane.b32.xlu1 %v8213_v18, %s7942_s15  ;;  %v8318_v17 = vld [vmem:[#allocation2 + $0x60] sm:$0xff] }
 0x100   : > { %1527 = vrot.lane.b32.xlu2 %v8233_v28, %s7942_s15 }
 0x102   : > { %v696_v29 = vpop.f32.mrf.mxu2 }
 0x103   : > { %v391_v51 = vpop.f32.mrf.mxu0 }
 0x104   : > { %v552_v30 = vpop.f32.mrf.mxu1  ;;  %v415_v54 = vmul.f32 0.25, %v391_v51  ;;  %v7188_v9 = vld [vmem:[#allocation2 + $0x80] sm:$0xff] }
 0x105   : > { %v7268_v32 = vpack.c.bf16 %v552_v30, %v550_v27  ;;  %v940_v27 = vsel %vm902_vm0, %v8271_v61, 0 }
 0x106   : > { %v7228_v57 = vpack.c.bf16 %v415_v54, %v414_v50 }
 0x107   : > { %7331 = vst [vmem:[#allocation2 + $0x50] sm:$0xff] %v7268_v32   ;;  %1525 = vrot.lane.b32.xlu0 %v8225_v24, %s7942_s15  ;;  %2120 = vrot.lane.b32.xlu1 %v8213_v18, %s7941_s14 }
 0x108   : > { %2749 = vrot.lane.b32.xlu2 %v8233_v28, %s7943_s16  ;;  %7324 = vst [vmem:[#allocation2 + $0x28] sm:$0xff] %v7228_v57  }
 0x10a   : > { %v698_v33 = vpop.f32.mrf.mxu2 }
 0x10b   : > { %v7308_v34 = vpack.c.bf16 %v698_v33, %v696_v29  ;;  %v394_v21 = vpop.f32.mrf.mxu0 }
 0x10c   : > { %v555_v36 = vpop.f32.mrf.mxu1  ;;  %v416_v29 = vmul.f32 0.25, %v394_v21 }
 0x10d   : > { %7338 = vst [vmem:[#allocation2 + $0xb8] sm:$0xff] %v7308_v34  }
 0x10e   : > { %v8313_v15 = vld [vmem:[#allocation2 + $0x50] sm:$0xff] }
 0x10f   : > { %2136 = vrot.lane.b32.xlu0 %v8225_v24, %s7941_s14  ;;  %2642 = vrot.lane.b32.xlu1 %v8223_v23, %s7941_s14  ;;  %v943_v20 = vsel %vm902_vm0, %v8313_v15, 0 }
 0x110   : > { %3971 = vrot.lane.b32.xlu2 %v8233_v28, %s7944_s17 }
 0x112   : > { %v701_v40 = vpop.f32.mrf.mxu2 }
 0x113   : > { %v396_v30 = vpop.f32.mrf.mxu0 }
 0x114   : > { %v557_v41 = vpop.f32.mrf.mxu1  ;;  %v8311_v14 = vld [vmem:[#allocation2 + $0xb8] sm:$0xff]  ;;  %v417_v33 = vmul.f32 0.25, %v396_v30 }
 0x115   : > { %v7273_v42 = vpack.c.bf16 %v557_v41, %v555_v36  ;;  %v8349_v36 = vld [vmem:[#allocation2 + $0x28] sm:$0xff] }
 0x116   : > { %v7233_v35 = vpack.c.bf16 %v417_v33, %v416_v29 }
 0x117   : > { %7332 = vst [vmem:[#allocation2 + $0x70] sm:$0xff] %v7273_v42   ;;  %2747 = vrot.lane.b32.xlu0 %v8225_v24, %s7943_s16  ;;  %3253 = vrot.lane.b32.xlu1 %v8223_v23, %s7943_s16 }
 0x118   : > { %1511 = vrot.lane.b32.xlu2 %v8253_v43, %s7942_s15  ;;  %7325 = vst [vmem:[#allocation2 + $0x40] sm:$0xff] %v7233_v35  }
 0x11a   : > { %v703_v46 = vpop.f32.mrf.mxu2  ;;  %v8261_v48 = vpop.permute.xlu2 %1521 }
 0x11b   : > { %v7313_v47 = vpack.c.bf16 %v703_v46, %v701_v40  ;;  %v399_v42 = vpop.f32.mrf.mxu0 }
 0x11c   : > { %v560_v49 = vpop.f32.mrf.mxu1  ;;  %v418_v50 = vmul.f32 0.25, %v399_v42 }
 0x11d   : > { %7339 = vst [vmem:[#allocation2 + $0x20] sm:$0xff] %v7313_v47  }
 0x11e   : > { %v8291_v6 = vld [vmem:[#allocation2 + $0x70] sm:$0xff] }
 0x11f   : > { %3358 = vrot.lane.b32.xlu0 %v8225_v24, %s7940_s13  ;;  %2138 = vrot.lane.b32.xlu1 %v8233_v28, %s7941_s14  ;;  %v946_v10 = vsel %vm902_vm0, %v8291_v6, 0 }
 0x120   : > { %2122 = vrot.lane.b32.xlu2 %v8253_v43, %s7941_s14 }
 0x122   : > { %v706_v53 = vpop.f32.mrf.mxu2  ;;  %v8269_v55 = vpop.permute.xlu2 %2743 }
 0x123   : > { %12808 = vst [vmem:[#allocation4_spill] sm:$0xff] %v8269_v55  ;;  %v401_v51 = vpop.f32.mrf.mxu0 }
 0x124   : > { %v562_v56 = vpop.f32.mrf.mxu1  ;;  %v8300_v11 = vld [vmem:[#allocation2 + $0x20] sm:$0xff] }
 0x125   : > { %v7278_v60 = vpack.c.bf16 %v562_v56, %v560_v49  ;;  %v928_v56 = vsel %vm902_vm0, %v8169_v45, 0 }
 0x127   : > { %7333 = vst [vmem:[#allocation2 + $0xa0] sm:$0xff] %v7278_v60   ;;  %2033 = vrot.lane.b32.xlu0 %v7187_v62, %s7942_s15  ;;  %3360 = vrot.lane.b32.xlu1 %v8233_v28, %s7940_s13 }
 0x128   : > { %2140 = vrot.lane.b32.xlu2 %v8271_v61, %s7941_s14 }
 0x12a   : > { %v708_v63 = vpop.f32.mrf.mxu2  ;;  %v8278_v1 = vpop.permute.xlu2 %1505 }
 0x12b   : > { %v7318_v0 = vpack.c.bf16 %v708_v63, %v706_v53  ;;  %v419_v53 = vmul.f32 0.25, %v401_v51 }
 0x12d   : > { %7340 = vst [vmem:[#allocation2 + $0x8] sm:$0xff] %v7318_v0   ;;  %v7238_v54 = vpack.c.bf16 %v419_v53, %v418_v50 }
 0x12e   : > { %v8280_v3 = vld [vmem:[#allocation2 + $0xa0] sm:$0xff] }
 0x12f   : > { %2644 = vrot.lane.b32.xlu0 %v7187_v62, %s7941_s14  ;;  %2733 = vrot.lane.b32.xlu1 %v8253_v43, %s7943_s16  ;;  %v949_v4 = vsel %vm902_vm0, %v8280_v3, 0  ;;  %7326 = vst [vmem:[#allocation2 + $0x78] sm:$0xff] %v7238_v54  }
 0x130   : > { %3973 = vrot.lane.b32.xlu2 %v8271_v61, %s7944_s17  ;;  %951 = vmatpush.bf16.xpose.msra.mxu3 %v949_v4 }
 0x131   : > { %v8289_v5 = vpop.permute.xlu1 %2132  ;;  %v8306_v12 = vpop.permute.xlu0 %3354 }
 0x132   : > { %v8293_v7 = vpop.permute.xlu2 %2116  ;;  %12809 = vst [vmem:[#allocation5_spill] sm:$0xff] %v8306_v12 }
 0x134   : > { %v8295_v8 = vld [vmem:[#allocation2 + $0x8] sm:$0xff] }
 0x135   : > { %1440 = vmatpush.bf16.msrb.mxu0 %v8295_v8 }
 0x136   : > { %v8475_v42 = vld [vmem:[#allocation2 + $0x78] sm:$0xff] }
 0x137   : > { %3255 = vrot.lane.b32.xlu0 %v7187_v62, %s7943_s16  ;;  %1529 = vrot.lane.b32.xlu1 %v8271_v61, %s7942_s15 }
 0x138   : > { %2646 = vrot.lane.b32.xlu2 %v7188_v9, %s7941_s14  ;;  %952 = vmatpush.bf16.xpose.msra.mxu3 %v946_v10 }
 0x139   : > { %1441 = vmatpush.bf16.msrb.mxu0 %v8300_v11  ;;  %v8309_v13 = vpop.permute.xlu1 %2727 }
 0x13a   : > { %12810 = vst [vmem:[#allocation6_spill] sm:$0xff] %v8309_v13  ;;  %v8315_v16 = vpop.permute.xlu2 %2638 }
 0x13d   : > { %1442 = vmatpush.bf16.msrb.mxu0 %v8311_v14 }
 0x13f   : > { %2751 = vrot.lane.b32.xlu1 %v8271_v61, %s7943_s16  ;;  %1513 = vrot.lane.b32.xlu0 %v8318_v17, %s7942_s15 }
 0x140   : > { %2753 = vrot.lane.b32.xlu2 %v8313_v15, %s7943_s16  ;;  %953 = vmatpush.bf16.xpose.msra.mxu3 %v943_v20  ;;  %v8433_v20 = vld [vmem:[#allocation2 + $0x40] sm:$0xff] }
 0x141   : > { %1443 = vmatpush.bf16.msrb.mxu0 %v7188_v9  ;;  %v8328_v22 = vpop.permute.xlu0 %3356  ;;  %v8330_v25 = vpop.permute.xlu1 %2027 }
 0x142   : > { %v8332_v26 = vpop.permute.xlu2 %2134 }
 0x145   : > { %1444 = vmatpush.bf16.msrb.mxu0 %v7187_v62 }
 0x147   : > { %3362 = vrot.lane.b32.xlu1 %v8271_v61, %s7940_s13  ;;  %2124 = vrot.lane.b32.xlu0 %v8318_v17, %s7941_s14 }
 0x148   : > { %3975 = vrot.lane.b32.xlu2 %v8313_v15, %s7944_s17  ;;  %954 = vmatpush.bf16.xpose.msra.mxu3 %v940_v27 }
 0x149   : > { %1445 = vmatpush.bf16.msrb.mxu0 %v8223_v23  ;;  %v8343_v31 = vpop.permute.xlu1 %3249  ;;  %v8345_v32 = vpop.permute.xlu0 %1507  ;;  %v937_v23 = vsel %vm902_vm0, %v8233_v28, 0 }
 0x14a   : > { %v8347_v34 = vpop.permute.xlu2 %2731 }
 0x14b   : > { %12811 = vst [vmem:[#allocation7_spill] sm:$0xff] %v8347_v34 }
 0x14d   : > { %1446 = vmatpush.bf16.msrb.mxu0 %v8215_v19 }
 0x14f   : > { %2035 = vrot.lane.b32.xlu1 %v7188_v9, %s7942_s15  ;;  %2735 = vrot.lane.b32.xlu0 %v8318_v17, %s7943_s16 }
 0x150   : > { %1515 = vrot.lane.b32.xlu2 %v8349_v36, %s7942_s15  ;;  %955 = vmatpush.bf16.xpose.msra.mxu3 %v937_v23 }
 0x151   : > { %1447 = vmatpush.bf16.msrb.mxu0 %v8185_v59  ;;  %v8360_v37 = vpop.permute.xlu1 %1523  ;;  %v8362_v38 = vpop.permute.xlu0 %2118 }
 0x152   : > { %v8364_v19 = vpop.permute.xlu2 %2031 }
 0x157   : > { %3364 = vrot.lane.b32.xlu1 %v8313_v15, %s7940_s13  ;;  %3257 = vrot.lane.b32.xlu0 %v7188_v9, %s7943_s16 }
 0x158   : > { %2737 = vrot.lane.b32.xlu2 %v8349_v36, %s7943_s16  ;;  %956 = vmatpush.bf16.xpose.msra.mxu3 %v934_v39 }
 0x159   : > { %v8373_v40 = vpop.permute.xlu1 %2745  ;;  %v8375_v59 = vpop.permute.xlu0 %2729 }
 0x15a   : > { %12812 = vst [vmem:[#allocation8_spill] sm:$0xff] %v8373_v40  ;;  %v8377_v41 = vpop.permute.xlu2 %1527 }
 0x15b   : > { %12813 = vst [vmem:[#allocation9_spill] sm:$0xff] %v8375_v59 }
 0x15f   : > { %1531 = vrot.lane.b32.xlu0 %v8313_v15, %s7942_s15  ;;  %2126 = vrot.lane.b32.xlu1 %v8349_v36, %s7941_s14 }
 0x160   : > { %2037 = vrot.lane.b32.xlu2 %v8311_v14, %s7942_s15  ;;  %957 = vmatpush.bf16.xpose.msra.mxu3 %v931_v44 }
 0x161   : > { %v8387_v46 = vpop.permute.xlu1 %3967  ;;  %v8389_v47 = vpop.permute.xlu0 %2029 }
 0x162   : > { %12814 = vst [vmem:[#allocation10_spill] sm:$0xff] %v8387_v46  ;;  %v8391_v49 = vpop.permute.xlu2 %2749 }
 0x163   : > { %12815 = vst [vmem:[#allocation11_spill] sm:$0xff] %v8391_v49 }
 0x167   : > { %2142 = vrot.lane.b32.xlu0 %v8313_v15, %s7941_s14  ;;  %2648 = vrot.lane.b32.xlu1 %v8311_v14, %s7941_s14 }
 0x168   : > { %3259 = vrot.lane.b32.xlu2 %v8311_v14, %s7943_s16  ;;  %958 = vmatpush.bf16.xpose.msra.mxu3 %v928_v56 }
 0x169   : > { %v8401_v57 = vpop.permute.xlu1 %3969  ;;  %v8403_v60 = vpop.permute.xlu0 %2640 }
 0x16a   : > { %12816 = vst [vmem:[#allocation12_spill] sm:$0xff] %v8401_v57  ;;  %v8405_v62 = vpop.permute.xlu2 %3971 }
 0x16b   : > { %12817 = vst [vmem:[#allocation13_spill] sm:$0xff] %v8405_v62 }
 0x16f   : > { %6899 = vmatmul.msk.bf16.vlgmr.msra.gmra.mxu3 %vm902_vm0, %v8177_v52  ;;  %3977 = vrot.lane.b32.xlu0 %v8291_v6, %s7944_s17 }
 0x170   : > { %2144 = vrot.lane.b32.xlu1 %v8291_v6, %s7941_s14  ;;  %1533 = vrot.lane.b32.xlu2 %v8291_v6, %s7942_s15 }
 0x171   : > { %v8415_v63 = vpop.permute.xlu0 %3251  ;;  %v8417_v0 = vpop.permute.xlu1 %1509 }
 0x172   : > { %12818 = vst [vmem:[#allocation14_spill] sm:$0xff] %v8417_v0  ;;  %v8419_v4 = vpop.permute.xlu2 %1511 }
 0x173   : > { %12819 = vst [vmem:[#allocation15_spill] sm:$0xff] %v8419_v4 }
 0x177   : > { %2039 = vrot.lane.b32.xlu0 %v8300_v11, %s7942_s15 }
 0x178   : > { %2755 = vrot.lane.b32.xlu1 %v8291_v6, %s7943_s16  ;;  %3366 = vrot.lane.b32.xlu2 %v8291_v6, %s7940_s13 }
 0x179   : > { %v8427_v9 = vpop.permute.xlu0 %1525  ;;  %v8429_v10 = vpop.permute.xlu1 %2120 }
 0x17a   : > { %v8431_v14 = vpop.permute.xlu2 %2122 }
 0x17b   : > { %12820 = vst [vmem:[#allocation16_spill] sm:$0xff] %v8431_v14 }
 0x17f   : > { %6900 = vmatmul.msk.bf16.gmra.mxu3 %vm902_vm0, %v8193_v2  ;;  %2650 = vrot.lane.b32.xlu0 %v8300_v11, %s7941_s14 }
 0x180   : > { %2128 = vrot.lane.b32.xlu2 %v8433_v20, %s7941_s14  ;;  %1517 = vrot.lane.b32.xlu1 %v8433_v20, %s7942_s15 }
 0x181   : > { %v8443_v21 = vpop.permute.xlu0 %2136  ;;  %v8445_v27 = vpop.permute.xlu1 %2642 }
 0x182   : > { %v8447_v29 = vpop.permute.xlu2 %2140 }
 0x187   : > { %2757 = vrot.lane.b32.xlu0 %v8280_v3, %s7943_s16 }
 0x188   : > { %3261 = vrot.lane.b32.xlu2 %v8300_v11, %s7943_s16  ;;  %2739 = vrot.lane.b32.xlu1 %v8433_v20, %s7943_s16 }
 0x189   : > { %v8455_v30 = vpop.permute.xlu0 %2747  ;;  %v8457_v33 = vpop.permute.xlu1 %3253 }
 0x18a   : > { %12821 = vst [vmem:[#allocation17_spill] sm:$0xff] %v8455_v30  ;;  %v8459_v35 = vpop.permute.xlu2 %3973 }
 0x18b   : > { %12822 = vst [vmem:[#allocation18_spill] sm:$0xff] %v8459_v35 }
 0x18f   : > { %6901 = vmatmul.msk.bf16.gmra.mxu3 %vm902_vm0, %v8213_v18  ;;  %3979 = vrot.lane.b32.xlu0 %v8280_v3, %s7944_s17 }
 0x190   : > { %2146 = vrot.lane.b32.xlu2 %v8280_v3, %s7941_s14  ;;  %1535 = vrot.lane.b32.xlu1 %v8280_v3, %s7942_s15 }
 0x191   : > { %v8469_v11 = vpop.permute.xlu0 %3358  ;;  %v8471_v23 = vpop.permute.xlu1 %2138 }
 0x192   : > { %v8473_v39 = vpop.permute.xlu2 %2646 }
 0x197   : > { %1519 = vrot.lane.b32.xlu0 %v8475_v42, %s7942_s15 }
 0x198   : > { %3368 = vrot.lane.b32.xlu2 %v8280_v3, %s7940_s13  ;;  %2041 = vrot.lane.b32.xlu1 %v8295_v8, %s7942_s15 }
 0x199   : > { %v8483_v44 = vpop.permute.xlu0 %2033  ;;  %v8485_v50 = vpop.permute.xlu1 %3360 }
 0x19a   : > { %v8487_v51 = vpop.permute.xlu2 %2753 }
 0x19f   : > { %6902 = vmatmul.msk.bf16.gmra.mxu3 %vm902_vm0, %v8253_v43  ;;  %2130 = vrot.lane.b32.xlu0 %v8475_v42, %s7941_s14 }
 0x1a0   : > { %2652 = vrot.lane.b32.xlu2 %v8295_v8, %s7941_s14  ;;  %3965 = vrot.lane.b32.xlu1 %v8169_v45, %s7944_s17 }
 0x1a1   : > { %v8497_v53 = vpop.permute.xlu0 %2644  ;;  %v8499_v54 = vpop.permute.xlu1 %2733 }
 0x1a2   : > { %12823 = vst [vmem:[#allocation19_spill] sm:$0xff] %v8499_v54  ;;  %v8501_v56 = vpop.permute.xlu2 %3975 }
 0x1a3   : > { %12824 = vst [vmem:[#allocation20_spill] sm:$0xff] %v8501_v56 }
 0x1a7   : > { %2741 = vrot.lane.b32.xlu0 %v8475_v42, %s7943_s16 }
 0x1a8   : > { %3338 = vrot.lane.b32.xlu2 %v8177_v52, %s7940_s13  ;;  %3263 = vrot.lane.b32.xlu1 %v8295_v8, %s7943_s16 }
 0x1a9   : > { %v8509_v34 = vpop.permute.xlu0 %3255  ;;  %v8511_v59 = vpop.permute.xlu1 %1529 }
 0x1aa   : > { %v8513_v13 = vpop.permute.xlu2 %1515 }
 0x1ab   : > { %12825 = vst [vmem:[#allocation21_spill] sm:$0xff] %v8513_v13 }
 0x1af   : > { %6903 = vmatmul.msk.bf16.gmra.mxu3 %vm902_vm0, %v8318_v17  ;;  %3949 = vrot.lane.b32.xlu0 %v8177_v52, %s7944_s17 }
 0x1b0   : > { %3340 = vrot.lane.b32.xlu2 %v8193_v2, %s7940_s13  ;;  %3344 = vrot.lane.b32.xlu1 %v8253_v43, %s7940_s13 }
 0x1b1   : > { %v8523_v54 = vpop.permute.xlu1 %2751  ;;  %v8525_v8 = vpop.permute.xlu0 %1513 }
 0x1b2   : > { %12826 = vst [vmem:[#allocation22_spill] sm:$0xff] %v8523_v54  ;;  %v8527_v46 = vpop.permute.xlu2 %2737 }
 0x1b3   : > { %12827 = vst [vmem:[#allocation23_spill] sm:$0xff] %v8525_v8 }
 0x1b4   : > { %12828 = vst [vmem:[#allocation24_spill] sm:$0xff] %v8527_v46 }
 0x1b7   : > { %3342 = vrot.lane.b32.xlu0 %v8213_v18, %s7940_s13 }
 0x1b8   : > { %3951 = vrot.lane.b32.xlu2 %v8193_v2, %s7944_s17  ;;  %3348 = vrot.lane.b32.xlu1 %v8349_v36, %s7940_s13 }
 0x1b9   : > { %v8535_v57 = vpop.permute.xlu1 %3362  ;;  %v8537_v62 = vpop.permute.xlu0 %2124 }
 0x1ba   : > { %12829 = vst [vmem:[#allocation25_spill] sm:$0xff] %v8537_v62  ;;  %v8539_v13 = vpop.permute.xlu2 %2037 }
 0x1bf   : > { %6904 = vmatmul.msk.bf16.gmra.mxu3 %vm902_vm0, %v8349_v36  ;;  %3346 = vrot.lane.b32.xlu0 %v8318_v17, %s7940_s13 }
 0x1c0   : > { %3350 = vrot.lane.b32.xlu2 %v8433_v20, %s7940_s13  ;;  %3953 = vrot.lane.b32.xlu1 %v8213_v18, %s7944_s17 }
 0x1c1   : > { %v8549_v2 = vpop.permute.xlu1 %2035  ;;  %v8551_v46 = vpop.permute.xlu0 %2735 }
 0x1c2   : > { %12830 = vst [vmem:[#allocation26_spill] sm:$0xff] %v8551_v46  ;;  %v8553_v35 = vpop.permute.xlu2 %3259 }
 0x1c7   : > { %3352 = vrot.lane.b32.xlu0 %v8475_v42, %s7940_s13 }
 0x1c8   : > { %5199 = vrot.lane.b32.xlu2 %v8291_v6, %s7945_s23  ;;  %3959 = vrot.lane.b32.xlu1 %v8349_v36, %s7944_s17 }
 0x1c9   : > { %v8561_v56 = vpop.permute.xlu1 %3364  ;;  %v8563_v8 = vpop.permute.xlu0 %3257 }
 0x1ca   : > { %v8565_v18 = vpop.permute.xlu2 %1533 }
 0x1cf   : > { %6905 = vmatmul.msk.bf16.gmra.mxu3 %vm902_vm0, %v8433_v20  ;;  %3955 = vrot.lane.b32.xlu0 %v8253_v43, %s7944_s17 }
 0x1d0   : > { %5195 = vrot.lane.b32.xlu2 %v8271_v61, %s7945_s23  ;;  %5193 = vrot.lane.b32.xlu1 %v8233_v28, %s7945_s23 }
 0x1d1   : > { %v8575_v46 = vpop.permute.xlu0 %1531  ;;  %v8577_v36 = vpop.permute.xlu1 %2126 }
 0x1d2   : > { %12831 = vst [vmem:[#allocation27_spill] sm:$0xff] %v8577_v36  ;;  %v8579_v55 = vpop.permute.xlu2 %3366 }
 0x1d7   : > { %4590 = vrot.lane.b32.xlu0 %v8280_v3, %s7946_s24 }
 0x1d8   : > { %3961 = vrot.lane.b32.xlu2 %v8433_v20, %s7944_s17  ;;  %4578 = vrot.lane.b32.xlu1 %v8183_v58, %s7946_s24 }
 0x1d9   : > { %v2143_v43 = vpop.permute.xlu0 %2142  ;;  %v2649_v4 = vpop.permute.xlu1 %2648 }
 0x1da   : > { %v8587_v40 = vpop.permute.xlu2 %2128 }
 0x1db   : > { %12832 = vst [vmem:[#allocation28_spill] sm:$0xff] %v8587_v40 }
 0x1df   : > { %3957 = vrot.lane.b32.xlu0 %v8318_v17, %s7944_s17  ;;  %6906 = vmatmul.msk.bf16.gmra.mxu3 %vm902_vm0, %v8475_v42 }
 0x1e0   : > { %5191 = vrot.lane.b32.xlu2 %v8225_v24, %s7945_s23  ;;  %4576 = vrot.lane.b32.xlu1 %v8169_v45, %s7946_s24 }
 0x1e1   : > { %v8597_v20 = vpop.permute.xlu0 %3977 }
 0x1e2   : > { %12833 = vst [vmem:[#allocation29_spill] sm:$0xff] %v8597_v20  ;;  %v2145_v36 = vpop.permute.xlu1 %2144  ;;  %v8599_v62 = vpop.permute.xlu2 %3261 }
 0x1e3   : > { %v2191_v12 = vsel %vm902_vm0, %v2145_v36, 0 }
 0x1e7   : > { %5201 = vrot.lane.b32.xlu0 %v8280_v3, %s7945_s23 }
 0x1e8   : > { %5189 = vrot.lane.b32.xlu2 %v8183_v58, %s7945_s23  ;;  %5171 = vrot.lane.b32.xlu1 %v8177_v52, %s7945_s23 }
 0x1e9   : > { %v2040_v17 = vpop.permute.xlu0 %2039 }
 0x1ea   : > { %v8607_v40 = vpop.permute.xlu1 %2755  ;;  %v2147_v30 = vpop.permute.xlu2 %2146 }
 0x1eb   : > { %v2194_v0 = vsel %vm902_vm0, %v2147_v30, 0 }
 0x1ec   : > { %2196 = vmatpush.bf16.xpose.msrb.mxu3 %v2194_v0 }
 0x1ef   : > { %4588 = vrot.lane.b32.xlu0 %v8291_v6, %s7946_s24 }
 0x1f0   : > { %4560 = vrot.lane.b32.xlu2 %v8177_v52, %s7946_s24  ;;  %v2188_v52 = vsel %vm902_vm0, %v2143_v43, 0  ;;  %v819_v43 = vlaneseq }
 0x1f1   : > { %v2651_v3 = vpop.permute.xlu0 %2650 }
 0x1f2   : > { %v8614_v20 = vpop.permute.xlu2 %3368  ;;  %v8616_v58 = vpop.permute.xlu1 %1517 }
 0x1f3   : > { %12834 = vst [vmem:[#allocation30_spill] sm:$0xff] %v8616_v58  ;;  %v8618_v49 = vpop.f32.mrf.mxu3 }
 0x1f4   : > { %2197 = vmatpush.bf16.xpose.msrb.mxu3 %v2191_v12 }
 0x1f7   : > { %4586 = vrot.lane.b32.xlu0 %v8313_v15, %s7946_s24 }
 0x1f9   : > { %v8623_v0 = vpop.permute.xlu0 %2757 }
 0x1fa   : > { %v2653_v30 = vpop.permute.xlu2 %2652  ;;  %v8625_v6 = vpop.permute.xlu1 %2739 }
 0x1fb   : > { %12835 = vst [vmem:[#allocation31_spill] sm:$0xff] %v8625_v6  ;;  %v8627_v14 = vpop.f32.mrf.mxu3  ;;  %2662 = vmatpush.bf16.msra.mxu0 %v2653_v30  ;;  %v2185_v6 = vsel %vm902_vm0, %v8447_v29, 0  ;;  %v2182_v29 = vsel %vm902_vm0, %v8471_v23, 0 }
 0x1fc   : > { %2198 = vmatpush.bf16.xpose.msrb.mxu3 %v2188_v52 }
 0x1ff   : > { %2663 = vmatpush.bf16.msra.mxu0 %v2651_v3  ;;  %5197 = vrot.lane.b32.xlu0 %v8313_v15, %s7945_s23 }
 0x201   : > { %v8632_v36 = vpop.permute.xlu0 %3979 }
 0x202   : > { %v1536_v12 = vpop.permute.xlu1 %1535 }
 0x203   : > { %v965_v58 = vpop.f32.mrf.mxu3  ;;  %2664 = vmatpush.bf16.msra.mxu0 %v2649_v4  ;;  %v1583_v54 = vsel %vm902_vm0, %v1536_v12, 0  ;;  %v1580_v4 = vsel %vm902_vm0, %v8565_v18, 0 }
 0x204   : > { %1585 = vmatpush.bf16.xpose.msrb.mxu1 %v1583_v54  ;;  %2199 = vmatpush.bf16.xpose.msrb.mxu3 %v2185_v6  ;;  %v12836_v6 = vld [vmem:[#allocation22_spill] sm:$0xff] }
 0x207   : > { %2665 = vmatpush.bf16.msra.mxu0 %v8473_v39  ;;  %4584 = vrot.lane.b32.xlu0 %v8271_v61, %s7946_s24  ;;  %v8647_v39 = vand.u32 127, %v819_v43  ;;  %v12837_v43 = vld [vmem:[#allocation16_spill] sm:$0xff] }
 0x209   : > { %v8640_v3 = vpop.permute.xlu0 %1519  ;;  %vm821_vm1 = vcmp.lt.s32.totalorder %v8647_v39, 16 }
 0x20a   : > { %v2042_v15 = vpop.permute.xlu1 %2041  ;;  %v8655_v61 = vsel %vm821_vm1, %v965_v58, -1e+30 }
 0x20b   : > { %v967_v30 = vpop.f32.mrf.mxu3  ;;  %2051 = vmatpush.bf16.msrb.mxu2 %v2042_v15  ;;  %2666 = vmatpush.bf16.msra.mxu0 %v8497_v53 }
 0x20c   : > { %1586 = vmatpush.bf16.xpose.msrb.mxu1 %v1580_v4  ;;  %2200 = vmatpush.bf16.xpose.msrb.mxu3 %v2182_v29  ;;  %v12839_v4 = vld [vmem:[#allocation11_spill] sm:$0xff] }
 0x20d   : > { %v2793_v29 = vsel %vm902_vm0, %v12839_v4, 0 }
 0x20f   : > { %2052 = vmatpush.bf16.msrb.mxu2 %v2040_v17  ;;  %2667 = vmatpush.bf16.msra.mxu0 %v8445_v27  ;;  %v1577_v27 = vsel %vm902_vm0, %v8575_v46, 0  ;;  %v8677_v46 = vsel %vm821_vm1, %v967_v30, -1e+30 }
 0x210   : > { %4582 = vrot.lane.b32.xlu0 %v8233_v28, %s7946_s24  ;;  %v2179_v28 = vsel %vm902_vm0, %v8443_v21, 0 }
 0x211   : > { %v8657_v53 = vpop.permute.xlu0 %2130 }
 0x212   : > { %1020 = vmax.xlane.f32.xlu1 %v8655_v61  ;;  %v8687_v54 = vpop.permute.xlu1 %3965 }
 0x213   : > { %v970_v23 = vpop.f32.mrf.mxu3  ;;  %2053 = vmatpush.bf16.msrb.mxu2 %v8539_v13  ;;  %2668 = vmatpush.bf16.msra.mxu0 %v8403_v60 }
 0x214   : > { %1587 = vmatpush.bf16.xpose.msrb.mxu1 %v1577_v27  ;;  %2201 = vmatpush.bf16.xpose.msrb.mxu3 %v2179_v28  ;;  %v8672_v13 = vsel %vm821_vm1, %v970_v23, -1e+30 }
 0x217   : > { %2054 = vmatpush.bf16.msrb.mxu2 %v8549_v2  ;;  %2669 = vmatpush.bf16.msra.mxu0 %v8315_v16  ;;  %v2176_v16 = vsel %vm902_vm0, %v8332_v26, 0  ;;  %v1571_v26 = vsel %vm902_vm0, %v8377_v41, 0  ;;  %v3413_v41 = vsel %vm902_vm0, %v8579_v55, 0 }
 0x218   : > { %4580 = vrot.lane.b32.xlu0 %v8225_v24, %s7946_s24  ;;  %v1574_v24 = vsel %vm902_vm0, %v8511_v59, 0 }
 0x219   : > { %1024 = vmax.xlane.f32.xlu2 %v8672_v13  ;;  %v8679_v60 = vpop.permute.xlu0 %2741 }
 0x21a   : > { %1022 = vmax.xlane.f32.xlu1 %v8677_v46  ;;  %v3264_v18 = vpop.permute.xlu1 %3263 }
 0x21b   : > { %v972_v21 = vpop.f32.mrf.mxu3  ;;  %2055 = vmatpush.bf16.msrb.mxu2 %v8483_v44 }
 0x21c   : > { %1588 = vmatpush.bf16.xpose.msrb.mxu1 %v1574_v24  ;;  %2202 = vmatpush.bf16.xpose.msrb.mxu3 %v2176_v16  ;;  %v8694_v2 = vsel %vm821_vm1, %v972_v21, -1e+30  ;;  %v12840_v21 = vld [vmem:[#allocation14_spill] sm:$0xff]  ;;  %v12841_v16 = vld [vmem:[#allocation17_spill] sm:$0xff] }
 0x21f   : > { %2056 = vmatpush.bf16.msrb.mxu2 %v8364_v19  ;;  %v2173_v19 = vsel %vm902_vm0, %v8289_v5, 0  ;;  %v1568_v5 = vsel %vm902_vm0, %v8427_v9, 0  ;;  %v1565_v9 = vsel %vm902_vm0, %v8360_v37, 0  ;;  %v1562_v37 = vsel %vm902_vm0, %v8261_v48, 0 }
 0x220   : > { %3963 = vrot.lane.b32.xlu0 %v8475_v42, %s7944_s17  ;;  %v3416_v42 = vsel %vm902_vm0, %v8614_v20, 0  ;;  %v3404_v48 = vsel %vm902_vm0, %v8485_v50, 0  ;;  %v2799_v50 = vsel %vm902_vm0, %v8487_v51, 0  ;;  %v2796_v51 = vsel %vm902_vm0, %v12836_v6, 0  ;;  %v12848_v6 = vld [vmem:[#allocation23_spill] sm:$0xff] }
 0x221   : > { %1026 = vmax.xlane.f32.xlu2 %v8694_v2  ;;  %v8697_v44 = vpop.permute.xlu0 %3949 }
 0x223   : > { %v8699_v59 = vpop.f32.mrf.mxu3  ;;  %2057 = vmatpush.bf16.msrb.mxu2 %v8389_v47 }
 0x224   : > { %1589 = vmatpush.bf16.xpose.msrb.mxu1 %v1571_v26  ;;  %2203 = vmatpush.bf16.xpose.msrb.mxu3 %v2173_v19  ;;  %v8817_v23 = vsel %vm821_vm1, %v8699_v59, -1e+30  ;;  %v2790_v26 = vsel %vm902_vm0, %v12841_v16, 0  ;;  %v12852_v16 = vld [vmem:[#allocation21_spill] sm:$0xff] }
 0x227   : > { %2058 = vmatpush.bf16.msrb.mxu2 %v8330_v25 }
 0x228   : > { %5187 = vrot.lane.b32.xlu0 %v8169_v45, %s7945_s23 }
 0x229   : > { %v8711_v47 = vpop.permute.xlu0 %3342 }
 0x22b   : > { %3273 = vmatpush.bf16.msra.mxu2 %v3264_v18  ;;  %v977_v17 = vpop.f32.mrf.mxu3  ;;  %6963 = vmatmul.msk.bf16.vlgmr.msrb.gmra.mxu3 %vm902_vm0, %v8293_v7 }
 0x22c   : > { %3418 = vmatpush.bf16.xpose.msra.mxu3 %v3416_v42  ;;  %1590 = vmatpush.bf16.xpose.msrb.mxu1 %v1568_v5  ;;  %v8722_v25 = vsel %vm821_vm1, %v977_v17, -1e+30  ;;  %v12842_v17 = vld [vmem:[#allocation25_spill] sm:$0xff]  ;;  %v12843_v5 = vld [vmem:[#allocation8_spill] sm:$0xff] }
 0x22d   : > { %1030 = vmax.xlane.f32.xlu1 %v8722_v25 }
 0x22f   : > { %3274 = vmatpush.bf16.msra.mxu2 %v8599_v62  ;;  %v3410_v62 = vsel %vm902_vm0, %v8561_v56, 0  ;;  %v3407_v56 = vsel %vm902_vm0, %v8535_v57, 0  ;;  %v2802_v57 = vsel %vm902_vm0, %v8607_v40, 0  ;;  %v8781_v40 = vsel %vm821_vm1, %v8618_v49, -1e+30 }
 0x230   : > { %v8795_v49 = vsel %vm821_vm1, %v8627_v14, -1e+30 }
 0x231   : > { %v8726_v45 = vpop.permute.xlu0 %3346 }
 0x233   : > { %3275 = vmatpush.bf16.msra.mxu2 %v8553_v35  ;;  %v980_v7 = vpop.f32.mrf.mxu3 }
 0x234   : > { %3419 = vmatpush.bf16.xpose.msra.mxu3 %v3413_v41  ;;  %1591 = vmatpush.bf16.xpose.msrb.mxu1 %v1565_v9  ;;  %v8733_v55 = vsel %vm821_vm1, %v980_v7, -1e+30  ;;  %v2787_v41 = vsel %vm902_vm0, %v12843_v5, 0 }
 0x235   : > { %1032 = vmax.xlane.f32.xlu2 %v8733_v55 }
 0x237   : > { %3276 = vmatpush.bf16.msra.mxu2 %v8563_v8  ;;  %v2805_v8 = vsel %vm902_vm0, %v8623_v0, 0 }
 0x239   : > { %v8739_v35 = vpop.permute.xlu0 %3352 }
 0x23b   : > { %3277 = vmatpush.bf16.msra.mxu2 %v8509_v34  ;;  %v8741_v20 = vpop.f32.mrf.mxu3  ;;  %6964 = vmatmul.msk.bf16.gmra.mxu3 %vm902_vm0, %v8362_v38 }
 0x23c   : > { %3420 = vmatpush.bf16.xpose.msra.mxu3 %v3410_v62  ;;  %1592 = vmatpush.bf16.xpose.msrb.mxu1 %v1562_v37  ;;  %v8835_v42 = vsel %vm821_vm1, %v8741_v20, -1e+30  ;;  %v12844_v37 = vld [vmem:[#allocation15_spill] sm:$0xff] }
 0x23f   : > { %3278 = vmatpush.bf16.msra.mxu2 %v8457_v33 }
 0x241   : > { %v8753_v34 = vpop.permute.xlu0 %3955 }
 0x243   : > { %3279 = vmatpush.bf16.msra.mxu2 %v8415_v63  ;;  %v985_v58 = vpop.f32.mrf.mxu3  ;;  %6939 = vmatmul.msk.bf16.vlgmr.msrb.gmra.mxu1 %vm902_vm0, %v8278_v1 }
 0x244   : > { %2807 = vmatpush.bf16.xpose.msra.mxu1 %v2805_v8  ;;  %3421 = vmatpush.bf16.xpose.msra.mxu3 %v3407_v56  ;;  %v8762_v38 = vsel %vm821_vm1, %v985_v58, -1e+30  ;;  %v12845_v8 = vld [vmem:[#allocation4_spill] sm:$0xff]  ;;  %v4027_v58 = vsel %vm902_vm0, %v8632_v36, 0 }
 0x245   : > { %1036 = vmax.xlane.f32.xlu1 %v8762_v38  ;;  %v2784_v56 = vsel %vm902_vm0, %v12845_v8, 0  ;;  %v12855_v8 = vld [vmem:[#allocation30_spill] sm:$0xff] }
 0x247   : > { %3280 = vmatpush.bf16.msra.mxu2 %v8343_v31  ;;  %v3401_v31 = vsel %vm902_vm0, %v8469_v11, 0  ;;  %v3398_v11 = vsel %vm902_vm0, %v8328_v22, 0  ;;  %v12838_v22 = vld [vmem:[#allocation5_spill] sm:$0xff] }
 0x248   : > { %v3395_v15 = vsel %vm902_vm0, %v12838_v22, 0 }
 0x249   : > { %v4591_v63 = vpop.permute.xlu0 %4590 }
 0x24a   : > { %v4638_v14 = vsel %vm902_vm0, %v4591_v63, 0 }
 0x24b   : > { %v987_v33 = vpop.f32.mrf.mxu3  ;;  %6965 = vmatmul.msk.bf16.gmra.mxu3 %vm902_vm0, %v8429_v10 }
 0x24c   : > { %3422 = vmatpush.bf16.xpose.msra.mxu3 %v3404_v48  ;;  %2808 = vmatpush.bf16.xpose.msra.mxu1 %v2802_v57  ;;  %v8771_v1 = vsel %vm821_vm1, %v987_v33, -1e+30  ;;  %v12846_v33 = vld [vmem:[#allocation27_spill] sm:$0xff] }
 0x24d   : > { %1038 = vmax.xlane.f32.xlu2 %v8771_v1 }
 0x251   : > { %v8783_v10 = vpop.permute.xlu0 %3957 }
 0x252   : > { %1016 = vmax.xlane.f32.xlu0 %v8781_v40 }
 0x253   : > { %v990_v0 = vpop.f32.mrf.mxu3  ;;  %6940 = vmatmul.msk.bf16.gmra.mxu1 %vm902_vm0, %v8345_v32  ;;  %v8802_v32 = vpop.permute.xlu1 %3344 }
 0x254   : > { %3423 = vmatpush.bf16.xpose.msra.mxu3 %v3401_v31  ;;  %2809 = vmatpush.bf16.xpose.msra.mxu1 %v2799_v50  ;;  %v8847_v62 = vsel %vm821_vm1, %v990_v0, -1e+30  ;;  %v3339_v31 = vpop.permute.xlu2 %3338  ;;  %v12847_v50 = vld [vmem:[#allocation29_spill] sm:$0xff] }
 0x255   : > { %v4024_v0 = vsel %vm902_vm0, %v12847_v50, 0 }
 0x259   : > { %v8797_v52 = vpop.permute.xlu0 %5201 }
 0x25a   : > { %1018 = vmax.xlane.f32.xlu0 %v8795_v49 }
 0x25b   : > { %v992_v12 = vpop.f32.mrf.mxu3  ;;  %6966 = vmatmul.msk.bf16.gmra.mxu3 %vm902_vm0, %v12837_v43  ;;  %v8830_v59 = vpop.permute.xlu1 %3348 }
 0x25c   : > { %3424 = vmatpush.bf16.xpose.msra.mxu3 %v3398_v11  ;;  %2810 = vmatpush.bf16.xpose.msra.mxu1 %v2796_v51  ;;  %v8808_v30 = vsel %vm821_vm1, %v992_v12, -1e+30  ;;  %v12849_v12 = vld [vmem:[#allocation20_spill] sm:$0xff]  ;;  %v3341_v22 = vpop.permute.xlu2 %3340 }
 0x25d   : > { %1042 = vmax.xlane.f32.xlu1 %v8808_v30  ;;  %v4021_v43 = vsel %vm902_vm0, %v12849_v12, 0 }
 0x261   : > { %v4589_v27 = vpop.permute.xlu0 %4588 }
 0x262   : > { %1028 = vmax.xlane.f32.xlu0 %v8817_v23  ;;  %v4635_v19 = vsel %vm902_vm0, %v4589_v27, 0  ;;  %v12851_v27 = vld [vmem:[#allocation18_spill] sm:$0xff] }
 0x263   : > { %v995_v28 = vpop.f32.mrf.mxu3  ;;  %6941 = vmatmul.msk.bf16.gmra.mxu1 %vm902_vm0, %v12840_v21  ;;  %v8843_v9 = vpop.permute.xlu1 %3953 }
 0x264   : > { %3425 = vmatpush.bf16.xpose.msra.mxu3 %v3395_v15  ;;  %2811 = vmatpush.bf16.xpose.msra.mxu1 %v2793_v29  ;;  %v8824_v24 = vsel %vm821_vm1, %v995_v28, -1e+30  ;;  %v4018_v28 = vsel %vm902_vm0, %v12851_v27, 0  ;;  %v8877_v21 = vpop.permute.xlu2 %3951 }
 0x265   : > { %1044 = vmax.xlane.f32.xlu2 %v8824_v24 }
 0x269   : > { %v4587_v18 = vpop.permute.xlu0 %4586 }
 0x26a   : > { %1034 = vmax.xlane.f32.xlu0 %v8835_v42  ;;  %v4632_v7 = vsel %vm902_vm0, %v4587_v18, 0 }
 0x26b   : > { %6967 = vmatmul.msk.bf16.gmra.mxu3 %vm902_vm0, %v12842_v17  ;;  %v8858_v57 = vpop.permute.xlu1 %3959 }
 0x26c   : > { %4640 = vmatpush.bf16.xpose.msrb.mxu3 %v4638_v14  ;;  %2812 = vmatpush.bf16.xpose.msra.mxu1 %v2790_v26  ;;  %v12850_v14 = vld [vmem:[#allocation28_spill] sm:$0xff]  ;;  %v8884_v5 = vpop.permute.xlu2 %3350 }
 0x271   : > { %v8849_v20 = vpop.permute.xlu0 %5197 }
 0x272   : > { %1040 = vmax.xlane.f32.xlu0 %v8847_v62 }
 0x273   : > { %6942 = vmatmul.msk.bf16.gmra.mxu1 %vm902_vm0, %v12844_v37  ;;  %v8868_v51 = vpop.permute.xlu1 %5193 }
 0x274   : > { %4641 = vmatpush.bf16.xpose.msrb.mxu3 %v4635_v19  ;;  %2813 = vmatpush.bf16.xpose.msra.mxu1 %v2787_v41  ;;  %v12853_v19 = vld [vmem:[#allocation13_spill] sm:$0xff] }
 0x275   : > { %v4015_v18 = vsel %vm902_vm0, %v12853_v19, 0 }
 0x279   : > { %v4585_v48 = vpop.permute.xlu0 %4584 }
 0x27a   : > { %v4629_v63 = vsel %vm902_vm0, %v4585_v48, 0 }
 0x27b   : > { %6968 = vmatmul.msk.bf16.gmra.mxu3 %vm902_vm0, %v12846_v33  ;;  %v4579_v29 = vpop.permute.xlu1 %4578 }
 0x27c   : > { %4642 = vmatpush.bf16.xpose.msrb.mxu3 %v4632_v7  ;;  %2814 = vmatpush.bf16.xpose.msra.mxu1 %v2784_v56  ;;  %v4620_v26 = vsel %vm902_vm0, %v4579_v29, 0  ;;  %v12854_v7 = vld [vmem:[#allocation12_spill] sm:$0xff]  ;;  %v5200_v56 = vpop.permute.xlu2 %5199 }
 0x27d   : > { %v4012_v37 = vsel %vm902_vm0, %v12854_v7, 0 }
 0x282   : > { %v4583_v11 = vpop.permute.xlu0 %4582 }
 0x283   : > { %6943 = vmatmul.msk.bf16.gmra.mxu1 %vm902_vm0, %v12848_v6  ;;  %v4626_v36 = vsel %vm902_vm0, %v4583_v11, 0  ;;  %v4577_v17 = vpop.permute.xlu1 %4576 }
 0x284   : > { %4029 = vmatpush.bf16.xpose.msrb.mxu1 %v4027_v58  ;;  %4643 = vmatpush.bf16.xpose.msrb.mxu3 %v4629_v63  ;;  %v4617_v41 = vsel %vm902_vm0, %v4577_v17, 0  ;;  %v12856_v58 = vld [vmem:[#allocation10_spill] sm:$0xff]  ;;  %v997_v63 = vpop.f32.mrf.mxu3  ;;  %v5196_v33 = vpop.permute.xlu2 %5195 }
 0x285   : > { %v4009_v48 = vsel %vm902_vm0, %v12856_v58, 0  ;;  %v8928_v27 = vsel %vm821_vm1, %v997_v63, -1e+30 }
 0x28a   : > { %v4581_v15 = vpop.permute.xlu0 %4580 }
 0x28b   : > { %6969 = vmatmul.msk.bf16.gmra.mxu3 %vm902_vm0, %v12850_v14  ;;  %v4623_v4 = vsel %vm902_vm0, %v4581_v15, 0 }
 0x28c   : > { %4030 = vmatpush.bf16.xpose.msrb.mxu1 %v4024_v0  ;;  %4644 = vmatpush.bf16.xpose.msrb.mxu3 %v4626_v36  ;;  %v8902_v11 = vpop.permute.xlu2 %3961 }
 0x292   : > { %v8898_v50 = vpop.permute.xlu0 %3963 }
 0x293   : > { %6944 = vmatmul.msk.bf16.gmra.mxu1 %vm902_vm0, %v12852_v16  ;;  %12857 = vst [vmem:[#allocation22_spill] sm:$0xff] %v8898_v50 }
 0x294   : > { %4031 = vmatpush.bf16.xpose.msrb.mxu1 %v4021_v43  ;;  %4645 = vmatpush.bf16.xpose.msrb.mxu3 %v4623_v4  ;;  %v5249_v43 = vsel %vm902_vm0, %v8797_v52, 0  ;;  %v8920_v4 = vpop.permute.xlu1 %5171 }
 0x295   : > { %12859 = vst [vmem:[#allocation16_spill] sm:$0xff] %v8920_v4 }
 0x29a   : > { %v8905_v6 = vpop.permute.xlu0 %5187 }
 0x29b   : > { %6970 = vmatmul.msk.bf16.gmra.mxu3 %vm902_vm0, %v8657_v53  ;;  %v4006_v53 = vsel %vm902_vm0, %v8687_v54, 0  ;;  %v8912_v54 = vpop.permute.xlu2 %5191 }
 0x29c   : > { %4032 = vmatpush.bf16.xpose.msrb.mxu1 %v4018_v28  ;;  %4646 = vmatpush.bf16.xpose.msrb.mxu3 %v4620_v26  ;;  %v5246_v28 = vsel %vm902_vm0, %v5200_v56, 0  ;;  %v1021_v7 = vpop.xlane.xlu1 %1020 }
 0x29d   : > { %v1050_v56 = vsub.f32 %v8655_v61, %v1021_v7 }
 0x29f   : > { %v1068_v63 = vmul.f32 1.442695, %v1050_v56 }
 0x2a3   : > { %6945 = vmatmul.msk.bf16.gmra.mxu1 %vm902_vm0, %v12855_v8  ;;  %v8936_v16 = vpop.permute.xlu2 %5189  ;;  %v5243_v8 = vsel %vm902_vm0, %v8849_v20, 0  ;;  %v5240_v20 = vsel %vm902_vm0, %v5196_v33, 0  ;;  %v12861_v33 = vld [vmem:[#allocation7_spill] sm:$0xff] }
 0x2a4   : > { %4033 = vmatpush.bf16.xpose.msrb.mxu1 %v4015_v18  ;;  %4647 = vmatpush.bf16.xpose.msrb.mxu3 %v4617_v41 }
 0x2ab   : > { %7011 = vmatmul.msk.bf16.vlgmr.msra.gmra.mxu3 %vm902_vm0, %v3339_v31  ;;  %v8954_v58 = vpop.permute.xlu2 %4560 }
 0x2ac   : > { %4034 = vmatpush.bf16.xpose.msrb.mxu1 %v4012_v37 }
 0x2ae   : > { %v2205_v0 = vpop.f32.mrf.mxu3 }
 0x2af   : > { %v8941_v37 = vsel %vm821_vm1, %v2205_v0, -1e+30 }
 0x2b3   : > { %6946 = vmatmul.msk.bf16.gmra.mxu1 %vm902_vm0, %v8640_v3  ;;  %v12858_v3 = vld [vmem:[#allocation6_spill] sm:$0xff] }
 0x2b4   : > { %4035 = vmatpush.bf16.xpose.msrb.mxu1 %v4009_v48 }
 0x2b6   : > { %v2207_v36 = vpop.f32.mrf.mxu3 }
 0x2bb   : > { %7012 = vmatmul.msk.bf16.gmra.mxu3 %vm902_vm0, %v3341_v22 }
 0x2bc   : > { %4036 = vmatpush.bf16.xpose.msrb.mxu1 %v4006_v53 }
 0x2be   : > { %v8918_v15 = vpop.f32.mrf.mxu3 }
 0x2c0   : > { %v1594_v12 = vpop.f32.mrf.mxu1 }
 0x2c1   : > { %v8909_v31 = vsel %vm821_vm1, %v1594_v12, -1e+30 }
 0x2c2   : > { %1650 = vmax.xlane.f32.xlu0 %v8909_v31 }
 0x2c3   : > { %6987 = vmatmul.msk.bf16.vlgmr.msra.gmra.mxu1 %vm902_vm0, %v12858_v3  ;;  %v1023_v3 = vpop.xlane.xlu1 %1022 }
 0x2c4   : > { %5251 = vmatpush.bf16.xpose.msra.mxu1 %v5249_v43  ;;  %v1025_v43 = vpop.xlane.xlu2 %1024 }
 0x2c5   : > { %v1017_v22 = vpop.xlane.xlu0 %1016 }
 0x2c6   : > { %v1048_v52 = vsub.f32 %v8781_v40, %v1017_v22  ;;  %v2212_v40 = vpop.f32.mrf.mxu3 }
 0x2c8   : > { %v1596_v14 = vpop.f32.mrf.mxu1  ;;  %v1064_v18 = vmul.f32 1.442695, %v1048_v52  ;;  %v8976_v52 = vsel %vm821_vm1, %v2207_v36, -1e+30 }
 0x2c9   : > { %v8924_v29 = vsel %vm821_vm1, %v1596_v14, -1e+30 }
 0x2ca   : > { %1652 = vmax.xlane.f32.xlu2 %v8924_v29  ;;  %1046 = vmax.xlane.f32.xlu0 %v8928_v27 }
 0x2cb   : > { %7013 = vmatmul.msk.bf16.gmra.mxu3 %vm902_vm0, %v8711_v47 }
 0x2cc   : > { %5252 = vmatpush.bf16.xpose.msra.mxu1 %v5246_v28 }
 0x2cd   : > { %v1019_v26 = vpop.xlane.xlu0 %1018 }
 0x2ce   : > { %v1049_v19 = vsub.f32 %v8795_v49, %v1019_v26  ;;  %v12860_v49 = vld [vmem:[#allocation9_spill] sm:$0xff]  ;;  %v2215_v61 = vpop.f32.mrf.mxu3  ;;  %v1052_v26 = vsub.f32 %v8672_v13, %v1025_v43  ;;  %v1027_v13 = vpop.xlane.xlu2 %1026 }
 0x2d0   : > { %v1066_v17 = vmul.f32 1.442695, %v1049_v19  ;;  %v1599_v41 = vpop.f32.mrf.mxu1  ;;  %v5237_v19 = vsel %vm902_vm0, %v8868_v51, 0  ;;  %v9002_v51 = vsel %vm821_vm1, %v2212_v40, -1e+30 }
 0x2d1   : > { %v8945_v47 = vsel %vm821_vm1, %v1599_v41, -1e+30 }
 0x2d2   : > { %7381 = vpow2.f32 %v1066_v17  ;;  %1654 = vmax.xlane.f32.xlu1 %v8945_v47  ;;  %2261 = vmax.xlane.f32.xlu0 %v8941_v37 }
 0x2d3   : > { %7383 = vpow2.f32 %v1064_v18  ;;  %6988 = vmatmul.msk.bf16.gmra.mxu1 %vm902_vm0, %v12860_v49  ;;  %v1072_v18 = vmul.f32 1.442695, %v1052_v26  ;;  %v5234_v49 = vsel %vm902_vm0, %v8912_v54, 0  ;;  %v1031_v54 = vpop.xlane.xlu1 %1030 }
 0x2d4   : > { %5253 = vmatpush.bf16.xpose.msra.mxu1 %v5243_v8  ;;  %7385 = vpow2.f32 %v1068_v63 }
 0x2d5   : > { %7387 = vpow2.f32 %v1072_v18  ;;  %v1029_v43 = vpop.xlane.xlu0 %1028  ;;  %v5228_v18 = vsel %vm902_vm0, %v8905_v6, 0 }
 0x2d6   : > { %v2217_v36 = vpop.f32.mrf.mxu3 }
 0x2d8   : > { %v8956_v48 = vpop.eup %7381  ;;  %v1601_v53 = vpop.f32.mrf.mxu1 }
 0x2d9   : > { %v8958_v0 = vpop.eup %7383  ;;  %1098 = vadd.xlane.f32.xlu2 %v8956_v48  ;;  %v8963_v12 = vsel %vm821_vm1, %v1601_v53, -1e+30 }
 0x2da   : > { %1096 = vadd.xlane.f32.xlu1 %v8958_v0  ;;  %1656 = vmax.xlane.f32.xlu0 %v8963_v12  ;;  %v8978_v28 = vpop.eup %7385 }
 0x2db   : > { %7014 = vmatmul.msk.bf16.gmra.mxu3 %vm902_vm0, %v8802_v32  ;;  %v1051_v32 = vsub.f32 %v8677_v46, %v1023_v3  ;;  %v8996_v46 = vsel %vm821_vm1, %v8918_v15, -1e+30  ;;  %v1053_v15 = vsub.f32 %v8694_v2, %v1027_v13  ;;  %v9010_v56 = vpop.eup %7387  ;;  %v5231_v2 = vsel %vm902_vm0, %v8936_v16, 0  ;;  %v1033_v13 = vpop.xlane.xlu2 %1032 }
 0x2dc   : > { %5254 = vmatpush.bf16.xpose.msra.mxu1 %v5240_v20  ;;  %v1054_v16 = vsub.f32 %v8817_v23, %v1029_v43  ;;  %v9050_v23 = vsel %vm821_vm1, %v2217_v36, -1e+30 }
 0x2dd   : > { %v1070_v17 = vmul.f32 1.442695, %v1051_v32  ;;  %v1074_v63 = vmul.f32 1.442695, %v1053_v15  ;;  %v9031_v32 = vsel %vm821_vm1, %v2215_v61, -1e+30  ;;  %v1056_v15 = vsub.f32 %v8733_v55, %v1033_v13 }
 0x2de   : > { %v2220_v8 = vpop.f32.mrf.mxu3 }
 0x2df   : > { %7389 = vpow2.f32 %v1070_v17  ;;  %v1076_v17 = vmul.f32 1.442695, %v1054_v16 }
 0x2e0   : > { %v1604_v22 = vpop.f32.mrf.mxu1  ;;  %7391 = vpow2.f32 %v1074_v63  ;;  %v1080_v63 = vmul.f32 1.442695, %v1056_v15 }
 0x2e1   : > { %v8972_v14 = vsel %vm821_vm1, %v1604_v22, -1e+30 }
 0x2e2   : > { %1658 = vmax.xlane.f32.xlu2 %v8972_v14  ;;  %2263 = vmax.xlane.f32.xlu1 %v8976_v52 }
 0x2e3   : > { %1100 = vadd.xlane.f32.xlu0 %v8978_v28  ;;  %6989 = vmatmul.msk.bf16.gmra.mxu1 %vm902_vm0, %v12861_v33 }
 0x2e4   : > { %5255 = vmatpush.bf16.xpose.msra.mxu1 %v5237_v19  ;;  %v1055_v19 = vsub.f32 %v8722_v25, %v1031_v54  ;;  %v1035_v54 = vpop.xlane.xlu0 %1034 }
 0x2e5   : > { %v9012_v20 = vpop.eup %7389 }
 0x2e6   : > { %v2222_v22 = vpop.f32.mrf.mxu3  ;;  %v9033_v33 = vpop.eup %7391  ;;  %v1078_v61 = vmul.f32 1.442695, %v1055_v19 }
 0x2e7   : > { %v9081_v19 = vsel %vm821_vm1, %v2222_v22, -1e+30 }
 0x2e8   : > { %v1606_v41 = vpop.f32.mrf.mxu1  ;;  %7393 = vpow2.f32 %v1078_v61  ;;  %v12864_v61 = vld [vmem:[#allocation24_spill] sm:$0xff] }
 0x2e9   : > { %v8991_v7 = vsel %vm821_vm1, %v1606_v41, -1e+30  ;;  %7395 = vpow2.f32 %v1076_v17 }
 0x2ea   : > { %1660 = vmax.xlane.f32.xlu1 %v8991_v7  ;;  %2265 = vmax.xlane.f32.xlu2 %v8996_v46  ;;  %7397 = vpow2.f32 %v1080_v63 }
 0x2eb   : > { %2267 = vmax.xlane.f32.xlu0 %v9002_v51  ;;  %7015 = vmatmul.msk.bf16.gmra.mxu3 %vm902_vm0, %v8726_v45  ;;  %v12862_v45 = vld [vmem:[#allocation19_spill] sm:$0xff] }
 0x2ec   : > { %5256 = vmatpush.bf16.xpose.msra.mxu1 %v5234_v49  ;;  %v12863_v49 = vld [vmem:[#allocation26_spill] sm:$0xff] }
 0x2ee   : > { %v2225_v6 = vpop.f32.mrf.mxu3  ;;  %v9062_v36 = vpop.eup %7393 }
 0x2ef   : > { %v9094_v15 = vsel %vm821_vm1, %v2225_v6, -1e+30 }
 0x2f0   : > { %v1609_v53 = vpop.f32.mrf.mxu1 }
 0x2f1   : > { %v9016_v40 = vsel %vm821_vm1, %v1609_v53, -1e+30 }
 0x2f2   : > { %1102 = vadd.xlane.f32.xlu1 %v9012_v20  ;;  %1104 = vadd.xlane.f32.xlu2 %v9010_v56 }
 0x2f3   : > { %1662 = vmax.xlane.f32.xlu0 %v9016_v40  ;;  %6990 = vmatmul.msk.bf16.gmra.mxu1 %vm902_vm0, %v12862_v45  ;;  %v9064_v45 = vpop.eup %7395 }
 0x2f4   : > { %5257 = vmatpush.bf16.xpose.msra.mxu1 %v5231_v2  ;;  %v1037_v2 = vpop.xlane.xlu1 %1036  ;;  %v9083_v16 = vpop.eup %7397 }
 0x2f6   : > { %v2227_v55 = vpop.f32.mrf.mxu3 }
 0x2f8   : > { %v1611_v3 = vpop.f32.mrf.mxu1 }
 0x2f9   : > { %v9027_v26 = vsel %vm821_vm1, %v1611_v3, -1e+30 }
 0x2fa   : > { %1664 = vmax.xlane.f32.xlu2 %v9027_v26  ;;  %2269 = vmax.xlane.f32.xlu1 %v9031_v32 }
 0x2fb   : > { %1106 = vadd.xlane.f32.xlu0 %v9033_v33  ;;  %7016 = vmatmul.msk.bf16.gmra.mxu3 %vm902_vm0, %v8830_v59  ;;  %v9054_v59 = vsel %vm821_vm1, %v2220_v8, -1e+30 }
 0x2fc   : > { %5258 = vmatpush.bf16.xpose.msra.mxu1 %v5228_v18  ;;  %v1058_v18 = vsub.f32 %v8762_v38, %v1037_v2 }
 0x2fe   : > { %v1084_v17 = vmul.f32 1.442695, %v1058_v18  ;;  %v2230_v13 = vpop.f32.mrf.mxu3 }
 0x300   : > { %v1614_v41 = vpop.f32.mrf.mxu1  ;;  %7399 = vpow2.f32 %v1084_v17 }
 0x301   : > { %v9046_v25 = vsel %vm821_vm1, %v1614_v41, -1e+30 }
 0x302   : > { %1666 = vmax.xlane.f32.xlu1 %v9046_v25  ;;  %2271 = vmax.xlane.f32.xlu2 %v9050_v23 }
 0x303   : > { %2273 = vmax.xlane.f32.xlu0 %v9054_v59  ;;  %6991 = vmatmul.msk.bf16.gmra.mxu1 %vm902_vm0, %v12863_v49  ;;  %v1039_v49 = vpop.xlane.xlu2 %1038 }
 0x304   : > { %v1059_v6 = vsub.f32 %v8771_v1, %v1039_v49  ;;  %v1043_v1 = vpop.xlane.xlu1 %1042 }
 0x306   : > { %v9110_v63 = vpop.eup %7399 }
 0x308   : > { %v1616_v53 = vpop.f32.mrf.mxu1 }
 0x309   : > { %v9068_v8 = vsel %vm821_vm1, %v1616_v53, -1e+30  ;;  %v1086_v53 = vmul.f32 1.442695, %v1059_v6 }
 0x30a   : > { %1108 = vadd.xlane.f32.xlu1 %v9064_v45  ;;  %1110 = vadd.xlane.f32.xlu2 %v9062_v36 }
 0x30b   : > { %1668 = vmax.xlane.f32.xlu0 %v9068_v8  ;;  %7017 = vmatmul.msk.bf16.gmra.mxu3 %vm902_vm0, %v8884_v5  ;;  %v1057_v5 = vsub.f32 %v8835_v42, %v1035_v54  ;;  %v9104_v42 = vsel %vm821_vm1, %v2227_v55, -1e+30  ;;  %v1041_v55 = vpop.xlane.xlu0 %1040 }
 0x30c   : > { %v1060_v49 = vsub.f32 %v8847_v62, %v1041_v55 }
 0x30d   : > { %v1082_v41 = vmul.f32 1.442695, %v1057_v5 }
 0x30f   : > { %7401 = vpow2.f32 %v1082_v41 }
 0x310   : > { %v1619_v43 = vpop.f32.mrf.mxu1  ;;  %7403 = vpow2.f32 %v1086_v53  ;;  %v1088_v53 = vmul.f32 1.442695, %v1060_v49 }
 0x311   : > { %v9077_v3 = vsel %vm821_vm1, %v1619_v43, -1e+30  ;;  %v2232_v43 = vpop.f32.mrf.mxu3 }
 0x312   : > { %1670 = vmax.xlane.f32.xlu2 %v9077_v3  ;;  %2275 = vmax.xlane.f32.xlu1 %v9081_v19 }
 0x313   : > { %1112 = vadd.xlane.f32.xlu0 %v9083_v16  ;;  %6992 = vmatmul.msk.bf16.gmra.mxu1 %vm902_vm0, %v12864_v61  ;;  %v9125_v61 = vsel %vm821_vm1, %v2230_v13, -1e+30 }
 0x315   : > { %v9112_v54 = vpop.eup %7401 }
 0x316   : > { %v9131_v41 = vpop.eup %7403 }
 0x318   : > { %v1621_v22 = vpop.f32.mrf.mxu1 }
 0x319   : > { %v9098_v38 = vsel %vm821_vm1, %v1621_v22, -1e+30  ;;  %v1061_v22 = vsub.f32 %v8808_v30, %v1043_v1  ;;  %v2235_v6 = vpop.f32.mrf.mxu3  ;;  %v9146_v30 = vsel %vm821_vm1, %v2232_v43, -1e+30 }
 0x31a   : > { %1672 = vmax.xlane.f32.xlu1 %v9098_v38  ;;  %2277 = vmax.xlane.f32.xlu2 %v9094_v15  ;;  %v9150_v62 = vsel %vm821_vm1, %v2235_v6, -1e+30 }
 0x31b   : > { %2279 = vmax.xlane.f32.xlu0 %v9104_v42  ;;  %7018 = vmatmul.msk.bf16.gmra.mxu3 %vm902_vm0, %v8739_v35  ;;  %v12865_v35 = vld [vmem:[#allocation31_spill] sm:$0xff]  ;;  %v1090_v13 = vmul.f32 1.442695, %v1061_v22  ;;  %12866 = vst [vmem:[#allocation5_spill] sm:$0xff] %v9150_v62 }
 0x31d   : > { %7405 = vpow2.f32 %v1090_v13 }
 0x31e   : > { %7407 = vpow2.f32 %v1088_v53 }
 0x320   : > { %v1624_v2 = vpop.f32.mrf.mxu1 }
 0x321   : > { %v9116_v18 = vsel %vm821_vm1, %v1624_v2, -1e+30  ;;  %v2237_v1 = vpop.f32.mrf.mxu3 }
 0x322   : > { %1114 = vadd.xlane.f32.xlu1 %v9112_v54  ;;  %1116 = vadd.xlane.f32.xlu2 %v9110_v63 }
 0x323   : > { %1674 = vmax.xlane.f32.xlu0 %v9116_v18  ;;  %6993 = vmatmul.msk.bf16.gmra.mxu1 %vm902_vm0, %v12865_v35 }
 0x328   : > { %v1626_v5 = vpop.f32.mrf.mxu1 }
 0x329   : > { %v9129_v17 = vsel %vm821_vm1, %v1626_v5, -1e+30  ;;  %v9158_v5 = vpop.eup %7405 }
 0x32a   : > { %1676 = vmax.xlane.f32.xlu2 %v9129_v17  ;;  %2281 = vmax.xlane.f32.xlu1 %v9125_v61  ;;  %12867 = vst [vmem:[#allocation11_spill] sm:$0xff] %v9158_v5  ;;  %v9160_v6 = vpop.eup %7407 }
 0x32b   : > { %1118 = vadd.xlane.f32.xlu0 %v9131_v41  ;;  %7059 = vmatmul.msk.bf16.vlgmr.msrb.gmra.mxu3 %vm902_vm0, %v8954_v58  ;;  %v1045_v58 = vpop.xlane.xlu2 %1044  ;;  %12868 = vst [vmem:[#allocation14_spill] sm:$0xff] %v9160_v6 }
 0x330   : > { %v1629_v2 = vpop.f32.mrf.mxu1 }
 0x331   : > { %v9142_v35 = vsel %vm821_vm1, %v1629_v2, -1e+30 }
 0x332   : > { %1678 = vmax.xlane.f32.xlu1 %v9142_v35  ;;  %2283 = vmax.xlane.f32.xlu2 %v9146_v30 }
 0x333   : > { %2285 = vmax.xlane.f32.xlu0 %v9150_v62  ;;  %6994 = vmatmul.msk.bf16.gmra.mxu1 %vm902_vm0, %v8679_v60  ;;  %v1062_v60 = vsub.f32 %v8824_v24, %v1045_v58 }
 0x335   : > { %v1651_v55 = vpop.xlane.xlu0 %1650  ;;  %v1092_v4 = vmul.f32 1.442695, %v1062_v60 }
 0x336   : > { %v1682_v43 = vsub.f32 %v8909_v31, %v1651_v55  ;;  %v2240_v55 = vpop.f32.mrf.mxu3 }
 0x338   : > { %v1698_v22 = vmul.f32 1.442695, %v1682_v43  ;;  %v1631_v49 = vpop.f32.mrf.mxu1 }
 0x339   : > { %v9164_v13 = vsel %vm821_vm1, %v1631_v49, -1e+30 }
 0x33a   : > { %12869 = vst [vmem:[#allocation17_spill] sm:$0xff] %v9164_v13  ;;  %7409 = vpow2.f32 %v1698_v22  ;;  %1120 = vadd.xlane.f32.xlu1 %v9160_v6  ;;  %1122 = vadd.xlane.f32.xlu2 %v9158_v5  ;;  %v9179_v5 = vsel %vm821_vm1, %v2237_v1, -1e+30 }
 0x33b   : > { %1680 = vmax.xlane.f32.xlu0 %v9164_v13  ;;  %12872 = vst [vmem:[#allocation15_spill] sm:$0xff] %v9179_v5 }
 0x33d   : > { %v1653_v31 = vpop.xlane.xlu2 %1652  ;;  %v1047_v53 = vpop.xlane.xlu0 %1046 }
 0x33e   : > { %v1683_v2 = vsub.f32 %v8924_v29, %v1653_v31  ;;  %v1063_v24 = vsub.f32 %v8928_v27, %v1047_v53 }
 0x340   : > { %v9171_v43 = vpop.eup %7409  ;;  %v1700_v62 = vmul.f32 1.442695, %v1683_v2  ;;  %v2816_v49 = vpop.f32.mrf.mxu1  ;;  %v1094_v60 = vmul.f32 1.442695, %v1063_v24 }
 0x341   : > { %12870 = vst [vmem:[#allocation25_spill] sm:$0xff] %v9171_v43  ;;  %v9175_v22 = vsel %vm821_vm1, %v2816_v49, -1e+30  ;;  %v2242_v2 = vpop.f32.mrf.mxu3 }
 0x342   : > { %12871 = vst [vmem:[#allocation8_spill] sm:$0xff] %v9175_v22  ;;  %7411 = vpow2.f32 %v1700_v62  ;;  %1730 = vadd.xlane.f32.xlu2 %v9171_v43  ;;  %2287 = vmax.xlane.f32.xlu1 %v9179_v5  ;;  %v9191_v62 = vsel %vm821_vm1, %v2240_v55, -1e+30 }
 0x343   : > { %2872 = vmax.xlane.f32.xlu0 %v9175_v22  ;;  %7035 = vmatmul.msk.bf16.vlgmr.msrb.gmra.mxu1 %vm902_vm0, %v8697_v44  ;;  %7413 = vpow2.f32 %v1092_v4  ;;  %12874 = vst [vmem:[#allocation27_spill] sm:$0xff] %v9191_v62 }
 0x344   : > { %7415 = vpow2.f32 %v1094_v60 }
 0x345   : > { %v1655_v29 = vpop.xlane.xlu1 %1654  ;;  %v2262_v58 = vpop.xlane.xlu0 %2261 }
 0x346   : > { %v1684_v44 = vsub.f32 %v8945_v47, %v1655_v29  ;;  %v9209_v47 = vsel %vm821_vm1, %v2242_v2, -1e+30 }
 0x347   : > { %12878 = vst [vmem:[#allocation28_spill] sm:$0xff] %v9209_v47 }
 0x348   : > { %v9187_v31 = vpop.eup %7411  ;;  %v2818_v1 = vpop.f32.mrf.mxu1  ;;  %v1702_v24 = vmul.f32 1.442695, %v1684_v44 }
 0x349   : > { %12873 = vst [vmem:[#allocation4_spill] sm:$0xff] %v9187_v31  ;;  %v9193_v49 = vpop.eup %7413  ;;  %v9203_v5 = vsel %vm821_vm1, %v2818_v1, -1e+30  ;;  %v3427_v60 = vpop.f32.mrf.mxu3 }
 0x34a   : > { %12875 = vst [vmem:[#allocation29_spill] sm:$0xff] %v9193_v49  ;;  %1732 = vadd.xlane.f32.xlu1 %v9187_v31  ;;  %2289 = vmax.xlane.f32.xlu2 %v9191_v62  ;;  %v9199_v22 = vpop.eup %7415  ;;  %v2293_v31 = vsub.f32 %v8941_v37, %v2262_v58  ;;  %v9220_v2 = vsel %vm821_vm1, %v3427_v60, -1e+30 }
 0x34b   : > { %1124 = vadd.xlane.f32.xlu0 %v9193_v49  ;;  %12876 = vst [vmem:[#allocation23_spill] sm:$0xff] %v9199_v22 }
 0x34c   : > { %v1099_v4 = vpop.xlane.xlu2 %1098  ;;  %12877 = vst [vmem:[#allocation20_spill] sm:$0xff] %v9203_v5 }
 0x34d   : > { %7417 = vrcp.f32 %v1099_v4  ;;  %v1097_v27 = vpop.xlane.xlu1 %1096  ;;  %v1657_v53 = vpop.xlane.xlu0 %1656  ;;  %12879 = vst [vmem:[#allocation18_spill] sm:$0xff] %v9220_v2  ;;  %v1152_v50 = vand.u32 2147483647, %v1099_v4  ;;  %vm1148_vm4 = vweird.f32 %v1099_v4 }
 0x34e   : > { %7419 = vrcp.f32 %v1097_v27  ;;  %v1685_v44 = vsub.f32 %v8963_v12, %v1657_v53  ;;  %v1154_v12 = vand.u32 2147483648, %v1099_v4  ;;  %vm1133_vm5 = vweird.f32 %v1097_v27 }
 0x34f   : > { %7421 = vpow2.f32 %v1702_v24  ;;  %v1139_v24 = vand.u32 2147483648, %v1097_v27  ;;  %vm1153_vm8 = vcmp.eq.f32.partialorder %v1152_v50, 8.507059e+37 }
 0x350   : > { %v2821_v55 = vpop.f32.mrf.mxu1 }
 0x351   : > { %v9227_v60 = vsel %vm821_vm1, %v2821_v55, -1e+30 }
 0x352   : > { %2874 = vmax.xlane.f32.xlu2 %v9203_v5  ;;  %1126 = vadd.xlane.f32.xlu1 %v9199_v22  ;;  %v2309_v22 = vmul.f32 1.442695, %v2293_v31  ;;  %v1137_v31 = vand.u32 2147483647, %v1097_v27 }
 0x353   : > { %v7418_v29 = vpop.eup %7417  ;;  %2291 = vmax.xlane.f32.xlu0 %v9209_v47  ;;  %7036 = vmatmul.msk.bf16.gmra.mxu1 %vm902_vm0, %v8877_v21  ;;  %v1704_v47 = vmul.f32 1.442695, %v1685_v44 }
 0x354   : > { %v7420_v1 = vpop.eup %7419  ;;  %v1144_v37 = vmul.f32 %v7418_v29, %v1099_v4  ;;  %vm1149_vm2 = vweird.f32 %v7418_v29  ;;  %vm1138_vm9 = vcmp.eq.f32.partialorder %v1137_v31, 8.507059e+37 }
 0x355   : > { %v1129_v58 = vmul.f32 %v7420_v1, %v1097_v27  ;;  %v9216_v5 = vpop.xlane.xlu2 %1658  ;;  %v2264_v49 = vpop.xlane.xlu1 %2263  ;;  %vm1134_vm3 = vweird.f32 %v7420_v1  ;;  %vm1150_vm6 = vmor %vm1148_vm4, %vm1149_vm2 }
 0x356   : > { %v1145_v43 = vsub.f32 1.0, %v1144_v37  ;;  %v9222_v62 = vpop.xlane.xlu0 %1100  ;;  %v9229_v37 = vpop.eup %7421  ;;  %v2294_v44 = vsub.f32 %v8976_v52, %v2264_v49  ;;  %vm9238_vm7 = vmor %vm1133_vm5, %vm1134_vm3  ;;  %v1140_v52 = vor.u32 1.1754944e-38, %v1139_v24 }
 0x357   : > { %v1130_v53 = vsub.f32 1.0, %v1129_v58  ;;  %7423 = vrcp.f32 %v9222_v62  ;;  %v1155_v58 = vor.u32 1.1754944e-38, %v1154_v12  ;;  %vm1163_vm11 = vweird.f32 %v9222_v62 }
 0x358   : > { %v1146_v21 = vmul.f32 %v7418_v29, %v1145_v43  ;;  %v2823_v6 = vpop.f32.mrf.mxu1  ;;  %7425 = vpow2.f32 %v2309_v22 }
 0x359   : > { %v1131_v13 = vmul.f32 %v7420_v1, %v1130_v53  ;;  %7427 = vpow2.f32 %v1704_v47 }
 0x35a   : > { %3483 = vmax.xlane.f32.xlu2 %v9220_v2  ;;  %2876 = vmax.xlane.f32.xlu1 %v9227_v60  ;;  %v1147_v43 = vadd.f32 %v7418_v29, %v1146_v21  ;;  %v1167_v2 = vand.u32 2147483647, %v9222_v62 }
 0x35b   : > { %1734 = vadd.xlane.f32.xlu0 %v9229_v37  ;;  %v1132_v55 = vadd.f32 %v7420_v1, %v1131_v13  ;;  %v2311_v13 = vmul.f32 1.442695, %v2294_v44 }
 0x35c   : > { %v1151_v49 = vsel %vm1150_vm6, %v7418_v29, %v1147_v43  ;;  %vm1168_vm13 = vcmp.eq.f32.partialorder %v1167_v2, 8.507059e+37 }
 0x35d   : > { %v7424_v4 = vpop.eup %7423  ;;  %v1661_v53 = vpop.xlane.xlu1 %1660  ;;  %v1136_v27 = vsel %vm9238_vm7, %v7420_v1, %v1132_v55  ;;  %v1156_v47 = vsel %vm1153_vm8, %v1155_v58, %v1151_v49  ;;  %7429 = vpow2.f32 %v2311_v13 }
 0x35e   : > { %v2266_v21 = vpop.xlane.xlu2 %2265  ;;  %v1159_v12 = vmul.f32 %v7424_v4, %v9222_v62  ;;  %v9251_v50 = vpop.xlane.xlu0 %2267  ;;  %v1141_v24 = vsel %vm1138_vm9, %v1140_v52, %v1136_v27  ;;  %v1157_v1 = vmul.f32 %v8956_v48, %v1156_v47  ;;  %v9264_v52 = vsel %vm821_vm1, %v2823_v6, -1e+30 }
 0x35f   : > { %v2295_v29 = vsub.f32 %v8996_v46, %v2266_v21  ;;  %v1142_v43 = vmul.f32 %v8958_v0, %v1141_v24  ;;  %v9255_v31 = vpop.eup %7425  ;;  %v1169_v46 = vand.u32 2147483648, %v9222_v62  ;;  %12882 = vst [vmem:[#allocation21_spill] sm:$0xff] %v9264_v52  ;;  %vm1164_vm10 = vweird.f32 %v7424_v4 }
 0x360   : > { %v1160_v55 = vsub.f32 1.0, %v1159_v12  ;;  %v2826_v22 = vpop.f32.mrf.mxu1  ;;  %v9257_v49 = vpop.eup %7427  ;;  %1369 = vst [vmem:[%s9247_s28 + $0x8] sm:$0xff] %v1157_v1  ;;  %v1686_v0 = vsub.f32 %v8972_v14, %v9216_v5  ;;  %v1687_v21 = vsub.f32 %v8991_v7, %v1661_v53  ;;  %vm1165_vm12 = vmor %vm1163_vm11, %vm1164_vm10 }
 0x361   : > { %v2313_v58 = vmul.f32 1.442695, %v2295_v29  ;;  %1368 = vst [vmem:[%s9247_s28] sm:$0xff] %v1142_v43  ;;  %v1384_v44 = vpack.c.bf16 %v1157_v1, %v1142_v43  ;;  %v1170_v13 = vor.u32 1.1754944e-38, %v1169_v46  ;;  %v3429_v12 = vpop.f32.mrf.mxu3  ;;  %v2296_v46 = vsub.f32 %v9002_v51, %v9251_v50 }
 0x362   : > { %2341 = vadd.xlane.f32.xlu1 %v9255_v31  ;;  %1736 = vadd.xlane.f32.xlu2 %v9257_v49  ;;  %v1161_v48 = vmul.f32 %v7424_v4, %v1160_v55  ;;  %v1706_v7 = vmul.f32 1.442695, %v1686_v0  ;;  %v1708_v62 = vmul.f32 1.442695, %v1687_v21  ;;  %v9293_v1 = vsel %vm821_vm1, %v3429_v12, -1e+30 }
 0x363   : > { %7431 = vpow2.f32 %v2313_v58  ;;  %2878 = vmax.xlane.f32.xlu0 %v9264_v52  ;;  %1448 = vmatmul.bf16.vlgmr.msrb.gmra.mxu0 %v1384_v44  ;;  %v9282_v53 = vpop.eup %7429  ;;  %12883 = vst [vmem:[#allocation13_spill] sm:$0xff] %v9293_v1 }
 0x364   : > { %7037 = vmatmul.msk.bf16.gmra.mxu1 %vm902_vm0, %v8843_v9  ;;  %v1162_v6 = vadd.f32 %v7424_v4, %v1161_v48 }
 0x365   : > { %v9276_v27 = vpop.xlane.xlu1 %1102 }
 0x366   : > { %v9278_v47 = vpop.xlane.xlu2 %1104  ;;  %7433 = vrcp.f32 %v9276_v27  ;;  %v1663_v14 = vpop.xlane.xlu0 %1662  ;;  %v1166_v5 = vsel %vm1165_vm12, %v7424_v4, %v1162_v6  ;;  %v1182_v51 = vand.u32 2147483647, %v9276_v27  ;;  %vm1178_vm15 = vweird.f32 %v9276_v27 }
 0x367   : > { %7435 = vrcp.f32 %v9278_v47  ;;  %v1171_v9 = vsel %vm1168_vm13, %v1170_v13, %v1166_v5  ;;  %v1688_v2 = vsub.f32 %v9016_v40, %v1663_v14  ;;  %v9312_v40 = vsel %vm821_vm1, %v2826_v22, -1e+30 }
 0x368   : > { %v9284_v29 = vpop.f32.mrf.mxu1  ;;  %v9287_v24 = vmul.f32 %v8978_v28, %v1171_v9  ;;  %7437 = vpow2.f32 %v1706_v7  ;;  %12884 = vst [vmem:[#allocation12_spill] sm:$0xff] %v9312_v40  ;;  %v1184_v14 = vand.u32 2147483648, %v9276_v27  ;;  %v1199_v50 = vand.u32 2147483648, %v9278_v47 }
 0x369   : > { %v9289_v43 = vpop.eup %7431  ;;  %7439 = vpow2.f32 %v1708_v62  ;;  %v1710_v6 = vmul.f32 1.442695, %v1688_v2  ;;  %v2315_v62 = vmul.f32 1.442695, %v2296_v46  ;;  %vm1183_vm4 = vcmp.eq.f32.partialorder %v1182_v51, 8.507059e+37 }
 0x36a   : > { %3485 = vmax.xlane.f32.xlu1 %v9293_v1  ;;  %2343 = vadd.xlane.f32.xlu2 %v9282_v53  ;;  %1370 = vst [vmem:[%s9247_s28 + $0x10] sm:$0xff] %v9287_v24  ;;  %vm1193_vm5 = vweird.f32 %v9278_v47 }
 0x36b   : > { %2345 = vadd.xlane.f32.xlu0 %v9289_v43 }
 0x36c   : > { %v7434_v4 = vpop.eup %7433 }
 0x36d   : > { %v7436_v28 = vpop.eup %7435  ;;  %v1174_v55 = vmul.f32 %v7434_v4, %v9276_v27  ;;  %v2270_v44 = vpop.xlane.xlu1 %2269  ;;  %vm1179_vm14 = vweird.f32 %v7434_v4  ;;  %v1200_v27 = vor.u32 1.1754944e-38, %v1199_v50  ;;  %v9340_v50 = vsel %vm821_vm1, %v9284_v29, -1e+30 }
 0x36e   : > { %v9302_v58 = vpop.xlane.xlu2 %1664  ;;  %v1189_v48 = vmul.f32 %v7436_v28, %v9278_v47  ;;  %v9307_v0 = vpop.xlane.xlu0 %1106  ;;  %v2297_v2 = vsub.f32 %v9031_v32, %v2270_v44  ;;  %vm1194_vm2 = vweird.f32 %v7436_v28  ;;  %vm1180_vm3 = vmor %vm1178_vm15, %vm1179_vm14  ;;  %v1185_v32 = vor.u32 1.1754944e-38, %v1184_v14 }
 0x36f   : > { %v1175_v21 = vsub.f32 1.0, %v1174_v55  ;;  %7441 = vrcp.f32 %v9307_v0  ;;  %v9315_v5 = vpop.eup %7437  ;;  %vm1195_vm6 = vmor %vm1193_vm5, %vm1194_vm2  ;;  %vm1208_vm9 = vweird.f32 %v9307_v0 }
 0x370   : > { %v1190_v13 = vsub.f32 1.0, %v1189_v48  ;;  %v2831_v12 = vpop.f32.mrf.mxu1  ;;  %v9319_v9 = vpop.eup %7439  ;;  %7443 = vpow2.f32 %v1710_v6  ;;  %v1197_v48 = vand.u32 2147483647, %v9278_v47  ;;  %v2317_v6 = vmul.f32 1.442695, %v2297_v2 }
 0x371   : > { %v1176_v7 = vmul.f32 %v7434_v4, %v1175_v21  ;;  %7445 = vpow2.f32 %v2315_v62  ;;  %v1212_v62 = vand.u32 2147483647, %v9307_v0 }
 0x372   : > { %1738 = vadd.xlane.f32.xlu1 %v9315_v5  ;;  %2880 = vmax.xlane.f32.xlu2 %v9312_v40  ;;  %v1191_v22 = vmul.f32 %v7436_v28, %v1190_v13  ;;  %vm1198_vm7 = vcmp.eq.f32.partialorder %v1197_v48, 8.507059e+37  ;;  %7447 = vpow2.f32 %v2317_v6 }
 0x373   : > { %1740 = vadd.xlane.f32.xlu0 %v9319_v9  ;;  %v1177_v55 = vadd.f32 %v7434_v4, %v1176_v7  ;;  %vm1213_vm11 = vcmp.eq.f32.partialorder %v1212_v62, 8.507059e+37 }
 0x374   : > { %7038 = vmatmul.msk.bf16.gmra.mxu1 %vm902_vm0, %v8753_v34  ;;  %v1192_v44 = vadd.f32 %v7436_v28, %v1191_v22 }
 0x375   : > { %v7442_v46 = vpop.eup %7441  ;;  %v1667_v21 = vpop.xlane.xlu1 %1666  ;;  %v1181_v40 = vsel %vm1180_vm3, %v7434_v4, %v1177_v55 }
 0x376   : > { %v2272_v1 = vpop.xlane.xlu2 %2271  ;;  %v1204_v13 = vmul.f32 %v7442_v46, %v9307_v0  ;;  %v9333_v52 = vpop.xlane.xlu0 %2273  ;;  %v1186_v34 = vsel %vm1183_vm4, %v1185_v32, %v1181_v40  ;;  %v1196_v22 = vsel %vm1195_vm6, %v7436_v28, %v1192_v44  ;;  %v1214_v40 = vand.u32 2147483648, %v9307_v0 }
 0x377   : > { %v2298_v7 = vsub.f32 %v9050_v23, %v2272_v1  ;;  %v1187_v14 = vmul.f32 %v9012_v20, %v1186_v34  ;;  %v1201_v2 = vsel %vm1198_vm7, %v1200_v27, %v1196_v22  ;;  %v9342_v23 = vpop.eup %7443  ;;  %v9346_v1 = vsel %vm821_vm1, %v2831_v12, -1e+30 }
 0x378   : > { %v1205_v4 = vsub.f32 1.0, %v1204_v13  ;;  %v2833_v47 = vpop.f32.mrf.mxu1  ;;  %v9351_v28 = vmul.f32 %v9010_v56, %v1201_v2  ;;  %vm1209_vm8 = vweird.f32 %v7442_v46  ;;  %v1689_v12 = vsub.f32 %v9027_v26, %v9302_v58  ;;  %v9364_v55 = vpop.eup %7445 }
 0x379   : > { %v2319_v51 = vmul.f32 1.442695, %v2298_v7  ;;  %1371 = vst [vmem:[%s9247_s28 + $0x18] sm:$0xff] %v1187_v14  ;;  %v1385_v20 = vpack.c.bf16 %v1187_v14, %v9287_v24  ;;  %v1690_v56 = vsub.f32 %v9046_v25, %v1667_v21  ;;  %vm1210_vm10 = vmor %vm1208_vm9, %vm1209_vm8  ;;  %v1215_v26 = vor.u32 1.1754944e-38, %v1214_v40  ;;  %v9372_v21 = vpop.eup %7447 }
 0x37a   : > { %2882 = vmax.xlane.f32.xlu1 %v9340_v50  ;;  %1742 = vadd.xlane.f32.xlu2 %v9342_v23  ;;  %v1206_v29 = vmul.f32 %v7442_v46, %v1205_v4  ;;  %1372 = vst [vmem:[%s9247_s28 + $0x20] sm:$0xff] %v9351_v28  ;;  %v1712_v27 = vmul.f32 1.442695, %v1689_v12 }
 0x37b   : > { %7449 = vpow2.f32 %v2319_v51  ;;  %2884 = vmax.xlane.f32.xlu0 %v9346_v1  ;;  %1453 = vmatmul.bf16.gmra.mxu0 %v1385_v20  ;;  %v1714_v0 = vmul.f32 1.442695, %v1690_v56 }
 0x37c   : > { %v1207_v24 = vadd.f32 %v7442_v46, %v1206_v29 }
 0x37d   : > { %v9366_v48 = vpop.xlane.xlu1 %1108 }
 0x37e   : > { %v9368_v32 = vpop.xlane.xlu2 %1110  ;;  %7451 = vrcp.f32 %v9366_v48  ;;  %v1669_v58 = vpop.xlane.xlu0 %1668  ;;  %v1211_v44 = vsel %vm1210_vm10, %v7442_v46, %v1207_v24  ;;  %v1227_v12 = vand.u32 2147483647, %v9366_v48  ;;  %v1229_v56 = vand.u32 2147483648, %v9366_v48 }
 0x37f   : > { %7453 = vrcp.f32 %v9368_v32  ;;  %v1216_v25 = vsel %vm1213_vm11, %v1215_v26, %v1211_v44  ;;  %v1691_v46 = vsub.f32 %v9068_v8, %v1669_v58  ;;  %v2299_v8 = vsub.f32 %v9054_v59, %v9333_v52 }
 0x380   : > { %v9374_v6 = vpop.f32.mrf.mxu1  ;;  %v1217_v13 = vmul.f32 %v9033_v33, %v1216_v25  ;;  %7455 = vpow2.f32 %v1712_v27  ;;  %v1244_v59 = vand.u32 2147483648, %v9368_v32  ;;  %vm1223_vm13 = vweird.f32 %v9366_v48 }
 0x381   : > { %v9377_v7 = vpop.eup %7449  ;;  %7457 = vpow2.f32 %v1714_v0  ;;  %v1716_v40 = vmul.f32 1.442695, %v1691_v46  ;;  %v1242_v27 = vand.u32 2147483647, %v9368_v32  ;;  %v2321_v25 = vmul.f32 1.442695, %v2299_v8 }
 0x382   : > { %2347 = vadd.xlane.f32.xlu1 %v9364_v55  ;;  %2349 = vadd.xlane.f32.xlu2 %v9372_v21  ;;  %1373 = vst [vmem:[%s9247_s28 + $0x28] sm:$0xff] %v1217_v13  ;;  %v1386_v26 = vpack.c.bf16 %v1217_v13, %v9351_v28  ;;  %v1230_v0 = vor.u32 1.1754944e-38, %v1229_v56  ;;  %vm1228_vm2 = vcmp.eq.f32.partialorder %v1227_v12, 8.507059e+37  ;;  %vm1238_vm3 = vweird.f32 %v9368_v32 }
 0x383   : > { %2351 = vadd.xlane.f32.xlu0 %v9377_v7  ;;  %vm1243_vm5 = vcmp.eq.f32.partialorder %v1242_v27, 8.507059e+37 }
 0x384   : > { %v7452_v34 = vpop.eup %7451  ;;  %7039 = vmatmul.msk.bf16.gmra.mxu1 %vm902_vm0, %v8783_v10  ;;  %v9397_v10 = vsel %vm821_vm1, %v2833_v47, -1e+30 }
 0x385   : > { %v7454_v14 = vpop.eup %7453  ;;  %v1219_v33 = vmul.f32 %v7452_v34, %v9366_v48  ;;  %v2276_v4 = vpop.xlane.xlu1 %2275  ;;  %vm1224_vm12 = vweird.f32 %v7452_v34  ;;  %v1245_v48 = vor.u32 1.1754944e-38, %v1244_v59 }
 0x386   : > { %v9387_v22 = vpop.xlane.xlu2 %1670  ;;  %v1234_v51 = vmul.f32 %v7454_v14, %v9368_v32  ;;  %v9390_v2 = vpop.xlane.xlu0 %1112  ;;  %v2300_v44 = vsub.f32 %v9081_v19, %v2276_v4  ;;  %vm1239_vm14 = vweird.f32 %v7454_v14  ;;  %vm1225_vm15 = vmor %vm1223_vm13, %vm1224_vm12 }
 0x387   : > { %v1220_v20 = vsub.f32 1.0, %v1219_v33  ;;  %7459 = vrcp.f32 %v9390_v2  ;;  %v9401_v24 = vpop.eup %7455  ;;  %vm1240_vm4 = vmor %vm1238_vm3, %vm1239_vm14  ;;  %vm1253_vm7 = vweird.f32 %v9390_v2 }
 0x388   : > { %v1235_v29 = vsub.f32 1.0, %v1234_v51  ;;  %v2838_v62 = vpop.f32.mrf.mxu1  ;;  %v9405_v52 = vpop.eup %7457  ;;  %7461 = vpow2.f32 %v1716_v40  ;;  %v2323_v51 = vmul.f32 1.442695, %v2300_v44 }
 0x389   : > { %v1221_v58 = vmul.f32 %v7452_v34, %v1220_v20  ;;  %7463 = vpow2.f32 %v2321_v25 }
 0x38a   : > { %1744 = vadd.xlane.f32.xlu1 %v9401_v24  ;;  %2886 = vmax.xlane.f32.xlu2 %v9397_v10  ;;  %v1236_v47 = vmul.f32 %v7454_v14, %v1235_v29  ;;  %7465 = vpow2.f32 %v2323_v51 }
 0x38b   : > { %1746 = vadd.xlane.f32.xlu0 %v9405_v52  ;;  %1458 = vmatmul.bf16.gmra.mxu0 %v1386_v26  ;;  %v1222_v28 = vadd.f32 %v7452_v34, %v1221_v58 }
 0x38c   : > { %v1237_v19 = vadd.f32 %v7454_v14, %v1236_v47  ;;  %v9433_v47 = vsel %vm821_vm1, %v2838_v62, -1e+30 }
 0x38d   : > { %v7460_v13 = vpop.eup %7459  ;;  %v1673_v46 = vpop.xlane.xlu1 %1672  ;;  %v1226_v4 = vsel %vm1225_vm15, %v7452_v34, %v1222_v28  ;;  %12885 = vst [vmem:[#allocation30_spill] sm:$0xff] %v9433_v47  ;;  %v1692_v28 = vsub.f32 %v9077_v3, %v9387_v22 }
 0x38e   : > { %v2278_v33 = vpop.xlane.xlu2 %2277  ;;  %v1249_v20 = vmul.f32 %v7460_v13, %v9390_v2  ;;  %v9417_v29 = vpop.xlane.xlu0 %2279  ;;  %v1231_v8 = vsel %vm1228_vm2, %v1230_v0, %v1226_v4  ;;  %v1241_v26 = vsel %vm1240_vm4, %v7454_v14, %v1237_v19  ;;  %v1259_v14 = vand.u32 2147483648, %v9390_v2 }
 0x38f   : > { %v2301_v40 = vsub.f32 %v9094_v15, %v2278_v33  ;;  %v1232_v56 = vmul.f32 %v9064_v45, %v1231_v8  ;;  %v1246_v32 = vsel %vm1243_vm5, %v1245_v48, %v1241_v26  ;;  %v9421_v59 = vpop.eup %7461  ;;  %v9426_v15 = vsel %vm821_vm1, %v9374_v6, -1e+30 }
 0x390   : > { %v1250_v34 = vsub.f32 1.0, %v1249_v20  ;;  %v2841_v58 = vpop.f32.mrf.mxu1  ;;  %v1247_v44 = vmul.f32 %v9062_v36, %v1246_v32  ;;  %vm1254_vm6 = vweird.f32 %v7460_v13  ;;  %v1257_v36 = vand.u32 2147483647, %v9390_v2  ;;  %v9451_v0 = vpop.eup %7463 }
 0x391   : > { %v2325_v12 = vmul.f32 1.442695, %v2301_v40  ;;  %1374 = vst [vmem:[%s9247_s28 + $0x30] sm:$0xff] %v1232_v56  ;;  %v1693_v6 = vsub.f32 %v9098_v38, %v1673_v46  ;;  %vm1255_vm8 = vmor %vm1253_vm7, %vm1254_vm6  ;;  %v1260_v22 = vor.u32 1.1754944e-38, %v1259_v14  ;;  %v1718_v19 = vmul.f32 1.442695, %v1692_v28 }
 0x392   : > { %v1251_v45 = vmul.f32 %v7460_v13, %v1250_v34  ;;  %2888 = vmax.xlane.f32.xlu1 %v9426_v15  ;;  %1748 = vadd.xlane.f32.xlu2 %v9421_v59  ;;  %1375 = vst [vmem:[%s9247_s28 + $0x38] sm:$0xff] %v1247_v44  ;;  %vm1258_vm9 = vcmp.eq.f32.partialorder %v1257_v36, 8.507059e+37  ;;  %v1387_v48 = vpack.c.bf16 %v1247_v44, %v1232_v56  ;;  %v9480_v44 = vsel %vm821_vm1, %v2841_v58, -1e+30 }
 0x393   : > { %7467 = vpow2.f32 %v2325_v12  ;;  %2890 = vmax.xlane.f32.xlu0 %v9433_v47  ;;  %v1720_v2 = vmul.f32 1.442695, %v1693_v6  ;;  %v12900_v47 = vld [vmem:[#allocation25_spill] sm:$0xff] }
 0x394   : > { %7040 = vmatmul.msk.bf16.gmra.mxu1 %vm902_vm0, %v8858_v57  ;;  %v1252_v62 = vadd.f32 %v7460_v13, %v1251_v45  ;;  %v9454_v57 = vpop.eup %7465 }
 0x395   : > { %v9446_v27 = vpop.xlane.xlu1 %1114 }
 0x396   : > { %v9448_v25 = vpop.xlane.xlu2 %1116  ;;  %7469 = vrcp.f32 %v9446_v27  ;;  %v1675_v3 = vpop.xlane.xlu0 %1674  ;;  %v1256_v38 = vsel %vm1255_vm8, %v7460_v13, %v1252_v62  ;;  %v1274_v45 = vand.u32 2147483648, %v9446_v27  ;;  %vm1268_vm11 = vweird.f32 %v9446_v27 }
 0x397   : > { %7471 = vrcp.f32 %v9448_v25  ;;  %v1261_v33 = vsel %vm1258_vm9, %v1260_v22, %v1256_v38  ;;  %v1694_v13 = vsub.f32 %v9116_v18, %v1675_v3  ;;  %v2302_v18 = vsub.f32 %v9104_v42, %v9417_v29 }
 0x398   : > { %v9456_v46 = vpop.f32.mrf.mxu1  ;;  %v9461_v51 = vmul.f32 %v9083_v16, %v1261_v33  ;;  %7473 = vpow2.f32 %v1718_v19  ;;  %v1289_v62 = vand.u32 2147483648, %v9448_v25  ;;  %v1272_v3 = vand.u32 2147483647, %v9446_v27 }
 0x399   : > { %v9458_v4 = vpop.eup %7467  ;;  %7475 = vpow2.f32 %v1720_v2  ;;  %v1722_v32 = vmul.f32 1.442695, %v1694_v13  ;;  %v1287_v19 = vand.u32 2147483647, %v9448_v25  ;;  %v2327_v38 = vmul.f32 1.442695, %v2302_v18 }
 0x39a   : > { %2353 = vadd.xlane.f32.xlu1 %v9451_v0  ;;  %2355 = vadd.xlane.f32.xlu2 %v9454_v57  ;;  %1376 = vst [vmem:[%s9247_s28 + $0x40] sm:$0xff] %v9461_v51  ;;  %vm1283_vm14 = vweird.f32 %v9448_v25  ;;  %vm1273_vm15 = vcmp.eq.f32.partialorder %v1272_v3, 8.507059e+37 }
 0x39b   : > { %2357 = vadd.xlane.f32.xlu0 %v9458_v4  ;;  %1463 = vmatmul.bf16.gmra.mxu0 %v1387_v48  ;;  %vm1288_vm3 = vcmp.eq.f32.partialorder %v1287_v19, 8.507059e+37 }
 0x39c   : > { %v7470_v20 = vpop.eup %7469 }
 0x39d   : > { %v7472_v40 = vpop.eup %7471  ;;  %v1264_v8 = vmul.f32 %v7470_v20, %v9446_v27  ;;  %v2282_v16 = vpop.xlane.xlu1 %2281  ;;  %vm1269_vm10 = vweird.f32 %v7470_v20  ;;  %v1275_v27 = vor.u32 1.1754944e-38, %v1274_v45 }
 0x39e   : > { %v9470_v56 = vpop.xlane.xlu2 %1676  ;;  %v1279_v26 = vmul.f32 %v7472_v40, %v9448_v25  ;;  %v9473_v34 = vpop.xlane.xlu0 %1118  ;;  %v2303_v29 = vsub.f32 %v9125_v61, %v2282_v16  ;;  %vm1284_vm12 = vweird.f32 %v7472_v40  ;;  %vm1270_vm13 = vmor %vm1268_vm11, %vm1269_vm10 }
 0x39f   : > { %v1265_v12 = vsub.f32 1.0, %v1264_v8  ;;  %7477 = vrcp.f32 %v9473_v34  ;;  %v9483_v36 = vpop.eup %7473  ;;  %v1290_v8 = vor.u32 1.1754944e-38, %v1289_v62  ;;  %vm1285_vm2 = vmor %vm1283_vm14, %vm1284_vm12  ;;  %vm1298_vm5 = vweird.f32 %v9473_v34 }
 0x3a0   : > { %v1280_v14 = vsub.f32 1.0, %v1279_v26  ;;  %v2846_v28 = vpop.f32.mrf.mxu1  ;;  %v9487_v22 = vpop.eup %7475  ;;  %7479 = vpow2.f32 %v1722_v32  ;;  %v2329_v16 = vmul.f32 1.442695, %v2303_v29  ;;  %v1304_v29 = vand.u32 2147483648, %v9473_v34 }
 0x3a1   : > { %v1266_v6 = vmul.f32 %v7470_v20, %v1265_v12  ;;  %7481 = vpow2.f32 %v2327_v38 }
 0x3a2   : > { %v1281_v42 = vmul.f32 %v7472_v40, %v1280_v14  ;;  %1750 = vadd.xlane.f32.xlu1 %v9483_v36  ;;  %2892 = vmax.xlane.f32.xlu2 %v9480_v44  ;;  %7483 = vpow2.f32 %v2329_v16 }
 0x3a3   : > { %1752 = vadd.xlane.f32.xlu0 %v9487_v22  ;;  %v1267_v58 = vadd.f32 %v7470_v20, %v1266_v6 }
 0x3a4   : > { %7041 = vmatmul.msk.bf16.gmra.mxu1 %vm902_vm0, %v8902_v11  ;;  %v1282_v2 = vadd.f32 %v7472_v40, %v1281_v42 }
 0x3a5   : > { %v7478_v61 = vpop.eup %7477  ;;  %v1679_v33 = vpop.xlane.xlu1 %1678  ;;  %v1271_v13 = vsel %vm1270_vm13, %v7470_v20, %v1267_v58 }
 0x3a6   : > { %v2284_v48 = vpop.xlane.xlu2 %2283  ;;  %v1294_v26 = vmul.f32 %v7478_v61, %v9473_v34  ;;  %v9501_v32 = vpop.xlane.xlu0 %2285  ;;  %v1276_v11 = vsel %vm1273_vm15, %v1275_v27, %v1271_v13  ;;  %v1286_v45 = vsel %vm1285_vm2, %v7472_v40, %v1282_v2  ;;  %v9519_v40 = vsel %vm821_vm1, %v2846_v28, -1e+30 }
 0x3a7   : > { %v2304_v12 = vsub.f32 %v9146_v30, %v2284_v48  ;;  %v1277_v18 = vmul.f32 %v9112_v54, %v1276_v11  ;;  %v1291_v20 = vsel %vm1288_vm3, %v1290_v8, %v1286_v45  ;;  %v9505_v6 = vpop.eup %7479  ;;  %v9510_v30 = vsel %vm821_vm1, %v9456_v46, -1e+30  ;;  %12886 = vst [vmem:[#allocation10_spill] sm:$0xff] %v9519_v40  ;;  %v12888_v8 = vld [vmem:[#allocation17_spill] sm:$0xff]  ;;  %v12889_v11 = vld [vmem:[#allocation22_spill] sm:$0xff] }
 0x3a8   : > { %v1295_v25 = vsub.f32 1.0, %v1294_v26  ;;  %v9515_v3 = vmul.f32 %v9110_v63, %v1291_v20  ;;  %v2848_v42 = vpop.f32.mrf.mxu1  ;;  %v1695_v46 = vsub.f32 %v9129_v17, %v9470_v56  ;;  %v1696_v63 = vsub.f32 %v9142_v35, %v1679_v33  ;;  %v9537_v56 = vpop.eup %7481 }
 0x3a9   : > { %v2331_v14 = vmul.f32 1.442695, %v2304_v12  ;;  %1377 = vst [vmem:[%s9247_s28 + $0x48] sm:$0xff] %v1277_v18  ;;  %v1388_v62 = vpack.c.bf16 %v1277_v18, %v9461_v51  ;;  %vm1299_vm4 = vweird.f32 %v7478_v61  ;;  %v1302_v28 = vand.u32 2147483647, %v9473_v34  ;;  %v9540_v27 = vpop.eup %7483 }
 0x3aa   : > { %v1296_v54 = vmul.f32 %v7478_v61, %v1295_v25  ;;  %2894 = vmax.xlane.f32.xlu1 %v9510_v30  ;;  %1754 = vadd.xlane.f32.xlu2 %v9505_v6  ;;  %1378 = vst [vmem:[%s9247_s28 + $0x50] sm:$0xff] %v9515_v3  ;;  %v1724_v38 = vmul.f32 1.442695, %v1695_v46  ;;  %vm1300_vm6 = vmor %vm1298_vm5, %vm1299_vm4  ;;  %v1305_v35 = vor.u32 1.1754944e-38, %v1304_v29  ;;  %v1726_v2 = vmul.f32 1.442695, %v1696_v63 }
 0x3ab   : > { %7485 = vpow2.f32 %v2331_v14  ;;  %2896 = vmax.xlane.f32.xlu0 %v9519_v40  ;;  %1468 = vmatmul.bf16.gmra.mxu0 %v1388_v62  ;;  %vm1303_vm7 = vcmp.eq.f32.partialorder %v1302_v28, 8.507059e+37  ;;  %v9567_v28 = vsel %vm821_vm1, %v2848_v42, -1e+30 }
 0x3ac   : > { %v1297_v51 = vadd.f32 %v7478_v61, %v1296_v54  ;;  %v12890_v54 = vld [vmem:[#allocation5_spill] sm:$0xff] }
 0x3ad   : > { %v9531_v58 = vpop.xlane.xlu1 %1120  ;;  %v2305_v46 = vsub.f32 %v12890_v54, %v9501_v32 }
 0x3ae   : > { %v9533_v19 = vpop.xlane.xlu2 %1122  ;;  %7487 = vrcp.f32 %v9531_v58  ;;  %v1681_v17 = vpop.xlane.xlu0 %1680  ;;  %v1301_v33 = vsel %vm1300_vm6, %v7478_v61, %v1297_v51  ;;  %vm1313_vm9 = vweird.f32 %v9531_v58 }
 0x3af   : > { %7489 = vrcp.f32 %v9533_v19  ;;  %v1306_v13 = vsel %vm1303_vm7, %v1305_v35, %v1301_v33  ;;  %v1697_v16 = vsub.f32 %v12888_v8, %v1681_v17  ;;  %v1319_v35 = vand.u32 2147483648, %v9531_v58 }
 0x3b0   : > { %v1307_v34 = vmul.f32 %v9131_v41, %v1306_v13  ;;  %7491 = vpow2.f32 %v1724_v38  ;;  %v2851_v12 = vpop.f32.mrf.mxu1  ;;  %v1334_v32 = vand.u32 2147483648, %v9533_v19  ;;  %v1332_v8 = vand.u32 2147483647, %v9533_v19 }
 0x3b1   : > { %v9542_v48 = vpop.eup %7485  ;;  %7493 = vpow2.f32 %v1726_v2  ;;  %v1728_v62 = vmul.f32 1.442695, %v1697_v16  ;;  %v2333_v16 = vmul.f32 1.442695, %v2305_v46  ;;  %vm1328_vm12 = vweird.f32 %v9533_v19 }
 0x3b2   : > { %12887 = vst [vmem:[#allocation6_spill] sm:$0xff] %v9542_v48  ;;  %2359 = vadd.xlane.f32.xlu1 %v9537_v56  ;;  %2361 = vadd.xlane.f32.xlu2 %v9540_v27  ;;  %v1389_v17 = vpack.c.bf16 %v1307_v34, %v9515_v3  ;;  %v1317_v3 = vand.u32 2147483647, %v9531_v58  ;;  %v1320_v54 = vor.u32 1.1754944e-38, %v1319_v35  ;;  %vm1333_vm15 = vcmp.eq.f32.partialorder %v1332_v8, 8.507059e+37 }
 0x3b3   : > { %2363 = vadd.xlane.f32.xlu0 %v9542_v48  ;;  %1379 = vst [vmem:[%s9247_s28 + $0x58] sm:$0xff] %v1307_v34 }
 0x3b4   : > { %v7488_v26 = vpop.eup %7487  ;;  %7042 = vmatmul.msk.bf16.gmra.mxu1 %vm902_vm0, %v12889_v11  ;;  %vm1318_vm13 = vcmp.eq.f32.partialorder %v1317_v3, 8.507059e+37 }
 0x3b5   : > { %v7490_v61 = vpop.eup %7489  ;;  %v1309_v18 = vmul.f32 %v7488_v26, %v9531_v58  ;;  %v9555_v25 = vpop.xlane.xlu1 %2287  ;;  %vm1314_vm8 = vweird.f32 %v7488_v26  ;;  %v9592_v58 = vsel %vm821_vm1, %v2851_v12, -1e+30 }
 0x3b6   : > { %v9553_v45 = vpop.xlane.xlu2 %1730  ;;  %v1324_v41 = vmul.f32 %v7490_v61, %v9533_v19  ;;  %v9559_v14 = vpop.xlane.xlu0 %2872  ;;  %vm9579_vm10 = vmor %vm1313_vm9, %vm1314_vm8  ;;  %vm1329_vm11 = vweird.f32 %v7490_v61 }
 0x3b7   : > { %7495 = vrcp.f32 %v9553_v45  ;;  %v1310_v20 = vsub.f32 1.0, %v1309_v18  ;;  %v9563_v63 = vpop.eup %7491  ;;  %vm1330_vm14 = vmor %vm1328_vm12, %vm1329_vm11  ;;  %vm1767_vm3 = vweird.f32 %v9553_v45 }
 0x3b8   : > { %v1325_v29 = vsub.f32 1.0, %v1324_v41  ;;  %v9570_v38 = vpop.eup %7493  ;;  %7497 = vpow2.f32 %v1728_v62 }
 0x3b9   : > { %v1311_v51 = vmul.f32 %v7488_v26, %v1310_v20  ;;  %12891 = vst [vmem:[#allocation9_spill] sm:$0xff] %v9570_v38 }
 0x3ba   : > { %v1326_v2 = vmul.f32 %v7490_v61, %v1325_v29  ;;  %1756 = vadd.xlane.f32.xlu1 %v9563_v63  ;;  %2898 = vmax.xlane.f32.xlu2 %v9567_v28  ;;  %v2853_v29 = vpop.f32.mrf.mxu1 }
 0x3bb   : > { %1758 = vadd.xlane.f32.xlu0 %v9570_v38  ;;  %1473 = vmatmul.bf16.gmra.mxu0 %v1389_v17  ;;  %v1312_v42 = vadd.f32 %v7488_v26, %v1311_v51  ;;  %v1335_v51 = vor.u32 1.1754944e-38, %v1334_v32  ;;  %v9605_v3 = vsel %vm821_vm1, %v2853_v29, -1e+30  ;;  %v12897_v32 = vld [vmem:[#allocation11_spill] sm:$0xff] }
 0x3bc   : > { %v1327_v34 = vadd.f32 %v7490_v61, %v1326_v2  ;;  %12896 = vst [vmem:[#allocation19_spill] sm:$0xff] %v9605_v3 }
 0x3bd   : > { %v7496_v33 = vpop.eup %7495  ;;  %v9585_v18 = vpop.xlane.xlu1 %1732  ;;  %v1316_v20 = vsel %vm9579_vm10, %v7488_v26, %v1312_v42  ;;  %v1773_v26 = vand.u32 2147483648, %v9553_v45  ;;  %v12895_v42 = vld [vmem:[#allocation14_spill] sm:$0xff] }
 0x3be   : > { %v1763_v11 = vmul.f32 %v7496_v33, %v9553_v45  ;;  %v2290_v41 = vpop.xlane.xlu2 %2289  ;;  %7499 = vrcp.f32 %v9585_v18  ;;  %v9595_v62 = vpop.xlane.xlu0 %1124  ;;  %v1321_v19 = vsel %vm1318_vm13, %v1320_v54, %v1316_v20  ;;  %v1331_v17 = vsel %vm1330_vm14, %v7490_v61, %v1327_v34  ;;  %v12898_v20 = vld [vmem:[#allocation27_spill] sm:$0xff] }
 0x3bf   : > { %7501 = vrcp.f32 %v9595_v62  ;;  %v9600_v12 = vpop.eup %7497  ;;  %v1322_v13 = vmul.f32 %v12895_v42, %v1321_v19  ;;  %v1336_v35 = vsel %vm1333_vm15, %v1335_v51, %v1331_v17  ;;  %vm1768_vm2 = vweird.f32 %v7496_v33  ;;  %v3432_v42 = vpop.f32.mrf.mxu3 }
 0x3c0   : > { %v1764_v46 = vsub.f32 1.0, %v1763_v11  ;;  %12894 = vst [vmem:[#allocation7_spill] sm:$0xff] %v9600_v12  ;;  %v1337_v11 = vmul.f32 %v12897_v32, %v1336_v35  ;;  %v1771_v61 = vand.u32 2147483647, %v9553_v45  ;;  %7503 = vpow2.f32 %v2333_v16  ;;  %vm1769_vm4 = vmor %vm1767_vm3, %vm1768_vm2 }
 0x3c1   : > { %1380 = vst [vmem:[%s9247_s28 + $0x60] sm:$0xff] %v1322_v13  ;;  %v2307_v54 = vsub.f32 %v12898_v20, %v2290_v41  ;;  %v1774_v17 = vor.u32 1.1754944e-38, %v1773_v26  ;;  %v1788_v32 = vand.u32 2147483648, %v9585_v18  ;;  %v1349_v40 = vand.u32 2147483648, %v9595_v62 }
 0x3c2   : > { %v1765_v2 = vmul.f32 %v7496_v33, %v1764_v46  ;;  %2900 = vmax.xlane.f32.xlu1 %v9592_v58  ;;  %1760 = vadd.xlane.f32.xlu2 %v9600_v12  ;;  %v12899_v46 = vld [vmem:[#allocation16_spill] sm:$0xff]  ;;  %1381 = vst [vmem:[%s9247_s28 + $0x68] sm:$0xff] %v1337_v11  ;;  %vm1772_vm5 = vcmp.eq.f32.partialorder %v1771_v61, 8.507059e+37  ;;  %v1390_v12 = vpack.c.bf16 %v1337_v11, %v1322_v13  ;;  %v1786_v38 = vand.u32 2147483647, %v9585_v18 }
 0x3c3   : > { %2902 = vmax.xlane.f32.xlu0 %v9605_v3  ;;  %v9636_v61 = vsel %vm821_vm1, %v3432_v42, -1e+30  ;;  %vm1782_vm8 = vweird.f32 %v9585_v18  ;;  %vm1343_vm9 = vweird.f32 %v9595_v62  ;;  %v1789_v11 = vor.u32 1.1754944e-38, %v1788_v32 }
 0x3c4   : > { %v1766_v34 = vadd.f32 %v7496_v33, %v1765_v2  ;;  %v7500_v8 = vpop.eup %7499  ;;  %7083 = vmatmul.msk.bf16.vlgmr.msra.gmra.mxu1 %vm902_vm0, %v12899_v46  ;;  %v2337_v46 = vmul.f32 1.442695, %v2307_v54  ;;  %12902 = vst [vmem:[#allocation24_spill] sm:$0xff] %v9636_v61  ;;  %v1347_v54 = vand.u32 2147483647, %v9595_v62  ;;  %vm1787_vm11 = vcmp.eq.f32.partialorder %v1786_v38, 8.507059e+37 }
 0x3c5   : > { %v7502_v29 = vpop.eup %7501  ;;  %v1778_v51 = vmul.f32 %v7500_v8, %v9585_v18  ;;  %v9622_v16 = vpop.xlane.xlu1 %1126  ;;  %vm1783_vm6 = vweird.f32 %v7500_v8  ;;  %v1350_v18 = vor.u32 1.1754944e-38, %v1349_v40  ;;  %v12905_v38 = vld [vmem:[#allocation29_spill] sm:$0xff] }
 0x3c6   : > { %v9620_v19 = vpop.xlane.xlu2 %2874  ;;  %v1770_v45 = vsel %vm1769_vm4, %v7496_v33, %v1766_v34  ;;  %v1339_v2 = vmul.f32 %v7502_v29, %v9595_v62  ;;  %7505 = vrcp.f32 %v9622_v16  ;;  %v9626_v41 = vpop.xlane.xlu0 %2291  ;;  %vm1344_vm7 = vweird.f32 %v7502_v29  ;;  %vm1784_vm10 = vmor %vm1782_vm8, %vm1783_vm6 }
 0x3c7   : > { %v1779_v35 = vsub.f32 1.0, %v1778_v51  ;;  %v1775_v20 = vsel %vm1772_vm5, %v1774_v17, %v1770_v45  ;;  %v9631_v26 = vpop.eup %7503  ;;  %7507 = vpow2.f32 %v2337_v46  ;;  %vm1345_vm12 = vmor %vm1343_vm9, %vm1344_vm7  ;;  %vm1348_vm13 = vcmp.eq.f32.partialorder %v1347_v54, 8.507059e+37  ;;  %v12904_v46 = vld [vmem:[#allocation4_spill] sm:$0xff] }
 0x3c8   : > { %v1340_v3 = vsub.f32 1.0, %v1339_v2  ;;  %v1776_v33 = vmul.f32 %v12900_v47, %v1775_v20  ;;  %12901 = vst [vmem:[#allocation26_spill] sm:$0xff] %v9631_v26  ;;  %v1364_v40 = vand.u32 2147483648, %v9622_v16  ;;  %v1362_v54 = vand.u32 2147483647, %v9622_v16 }
 0x3c9   : > { %v1780_v34 = vmul.f32 %v7500_v8, %v1779_v35  ;;  %vm1358_vm15 = vweird.f32 %v9622_v16 }
 0x3ca   : > { %v1341_v51 = vmul.f32 %v7502_v29, %v1340_v3  ;;  %2365 = vadd.xlane.f32.xlu1 %v9631_v26  ;;  %6947 = vst [vmem:[%s9247_s28 + $0x80] sm:$0xff] %v1776_v33  ;;  %vm1363_vm3 = vcmp.eq.f32.partialorder %v1362_v54, 8.507059e+37 }
 0x3cb   : > { %3487 = vmax.xlane.f32.xlu0 %v9636_v61  ;;  %1478 = vmatmul.bf16.gmra.mxu0 %v1390_v12  ;;  %v1781_v47 = vadd.f32 %v7500_v8, %v1780_v34 }
 0x3cc   : > { %v7506_v13 = vpop.eup %7505  ;;  %v1342_v3 = vadd.f32 %v7502_v29, %v1341_v51 }
 0x3cd   : > { %v1354_v45 = vmul.f32 %v7506_v13, %v9622_v16  ;;  %v2877_v2 = vpop.xlane.xlu1 %2876  ;;  %v1785_v42 = vsel %vm1784_vm10, %v7500_v8, %v1781_v47  ;;  %vm1359_vm14 = vweird.f32 %v7506_v13 }
 0x3ce   : > { %v9646_v17 = vpop.xlane.xlu2 %3483  ;;  %v2906_v12 = vsub.f32 %v9227_v60, %v2877_v2  ;;  %v9650_v35 = vpop.xlane.xlu0 %1734  ;;  %v1790_v62 = vsel %vm1787_vm11, %v1789_v11, %v1785_v42  ;;  %v1346_v20 = vsel %vm1345_vm12, %v7502_v29, %v1342_v3  ;;  %vm1360_vm2 = vmor %vm1358_vm15, %vm1359_vm14 }
 0x3cf   : > { %12903 = vst [vmem:[#allocation31_spill] sm:$0xff] %v9646_v17  ;;  %v1355_v32 = vsub.f32 1.0, %v1354_v45  ;;  %7509 = vrcp.f32 %v9650_v35  ;;  %v1791_v34 = vmul.f32 %v12904_v46, %v1790_v62  ;;  %v1351_v51 = vsel %vm1348_vm13, %v1350_v18, %v1346_v20  ;;  %v9657_v2 = vpop.eup %7507  ;;  %v9659_v29 = vpop.f32.mrf.mxu1 }
 0x3d0   : > { %v2924_v8 = vmul.f32 1.442695, %v2906_v12  ;;  %v1352_v47 = vmul.f32 %v12905_v38, %v1351_v51  ;;  %12906 = vst [vmem:[#allocation17_spill] sm:$0xff] %v9657_v2  ;;  %v1365_v18 = vor.u32 1.1754944e-38, %v1364_v40  ;;  %vm1797_vm5 = vweird.f32 %v9650_v35 }
 0x3d1   : > { %v1356_v61 = vmul.f32 %v7506_v13, %v1355_v32  ;;  %6948 = vst [vmem:[%s9247_s28 + $0x88] sm:$0xff] %v1791_v34  ;;  %v2019_v60 = vpack.c.bf16 %v1791_v34, %v1776_v33  ;;  %v12907_v32 = vld [vmem:[#allocation23_spill] sm:$0xff]  ;;  %v7893_v34 = vld [vmem:[#allocation2] sm:$0xff] }
 0x3d2   : > { %1382 = vst [vmem:[%s9247_s28 + $0x70] sm:$0xff] %v1352_v47  ;;  %7511 = vpow2.f32 %v2924_v8 }
 0x3d3   : > { %2369 = vadd.xlane.f32.xlu0 %v9657_v2  ;;  %2059 = vmatmul.bf16.vlgmr.msrb.gmra.mxu2 %v2019_v60  ;;  %v1357_v11 = vadd.f32 %v7506_v13, %v1356_v61 }
 0x3d5   : > { %v7510_v3 = vpop.eup %7509  ;;  %v2342_v45 = vpop.xlane.xlu1 %2341  ;;  %v1361_v42 = vsel %vm1360_vm2, %v7506_v13, %v1357_v11 }
 0x3d6   : > { %v9665_v33 = vpop.xlane.xlu2 %1736  ;;  %v1793_v12 = vmul.f32 %v7510_v3, %v9650_v35  ;;  %7513 = vrcp.f32 %v2342_v45  ;;  %v9668_v62 = vpop.xlane.xlu0 %2878  ;;  %v1366_v16 = vsel %vm1363_vm3, %v1365_v18, %v1361_v42  ;;  %v1801_v42 = vand.u32 2147483647, %v9650_v35 }
 0x3d7   : > { %7515 = vrcp.f32 %v9665_v33  ;;  %v1367_v61 = vmul.f32 %v12907_v32, %v1366_v16  ;;  %v4040_v38 = vpop.f32.mrf.mxu1  ;;  %v1803_v18 = vand.u32 2147483648, %v9650_v35  ;;  %vm1798_vm4 = vweird.f32 %v7510_v3 }
 0x3d8   : > { %v1794_v20 = vsub.f32 1.0, %v1793_v12  ;;  %v9672_v46 = vpop.eup %7511  ;;  %v9693_v32 = vsel %vm821_vm1, %v4040_v38, -1e+30  ;;  %vm1799_vm7 = vmor %vm1797_vm5, %vm1798_vm4  ;;  %v1816_v2 = vand.u32 2147483647, %v9665_v33  ;;  %vm1802_vm8 = vcmp.eq.f32.partialorder %v1801_v42, 8.507059e+37 }
 0x3d9   : > { %12908 = vst [vmem:[#allocation22_spill] sm:$0xff] %v9672_v46  ;;  %v1391_v13 = vpack.c.bf16 %v1367_v61, %v1352_v47  ;;  %v1818_v38 = vand.u32 2147483648, %v9665_v33  ;;  %vm2378_vm9 = vweird.f32 %v2342_v45  ;;  %vm1812_vm13 = vweird.f32 %v9665_v33 }
 0x3da   : > { %4562 = vrot.lane.b32.xlu2 %v7893_v34, %s7946_s24  ;;  %1383 = vst [vmem:[%s9247_s28 + $0x78] sm:$0xff] %v1367_v61  ;;  %v1795_v51 = vmul.f32 %v7510_v3, %v1794_v20  ;;  %v2382_v61 = vand.u32 2147483647, %v2342_v45  ;;  %vm1817_vm14 = vcmp.eq.f32.partialorder %v1816_v2, 8.507059e+37 }
 0x3db   : > { %2956 = vadd.xlane.f32.xlu0 %v9672_v46  ;;  %1483 = vmatmul.bf16.gmra.mxu0 %v1391_v13  ;;  %v2384_v13 = vand.u32 2147483648, %v2342_v45  ;;  %v1804_v46 = vor.u32 1.1754944e-38, %v1803_v18 }
 0x3dc   : > { %v7514_v8 = vpop.eup %7513  ;;  %v1796_v16 = vadd.f32 %v7510_v3, %v1795_v51  ;;  %v7894_v51 = vld [vmem:[#allocation2 + $0x10] sm:$0xff]  ;;  %vm2383_vm12 = vcmp.eq.f32.partialorder %v2382_v61, 8.507059e+37 }
 0x3dd   : > { %v9677_v40 = vpop.eup %7515  ;;  %v2374_v60 = vmul.f32 %v7514_v8, %v2342_v45  ;;  %v9679_v54 = vpop.xlane.xlu1 %3485  ;;  %vm2379_vm6 = vweird.f32 %v7514_v8 }
 0x3de   : > { %12909 = vst [vmem:[#allocation5_spill] sm:$0xff] %v9679_v54  ;;  %v9681_v11 = vpop.xlane.xlu2 %2343  ;;  %v1808_v47 = vmul.f32 %v9677_v40, %v9665_v33  ;;  %v9688_v12 = vpop.xlane.xlu0 %2345  ;;  %vm1813_vm10 = vweird.f32 %v9677_v40  ;;  %vm2380_vm11 = vmor %vm2378_vm9, %vm2379_vm6 }
 0x3df   : > { %7517 = vrcp.f32 %v9681_v11  ;;  %v2375_v20 = vsub.f32 1.0, %v2374_v60  ;;  %v1800_v60 = vsel %vm1799_vm7, %v7510_v3, %v1796_v16  ;;  %vm1814_vm15 = vmor %vm1812_vm13, %vm1813_vm10  ;;  %vm2393_vm3 = vweird.f32 %v9681_v11 }
 0x3e0   : > { %7519 = vrcp.f32 %v9688_v12  ;;  %v1809_v17 = vsub.f32 1.0, %v1808_v47  ;;  %v1805_v35 = vsel %vm1802_vm8, %v1804_v46, %v1800_v60  ;;  %v2385_v47 = vor.u32 1.1754944e-38, %v2384_v13 }
 0x3e1   : > { %v2376_v54 = vmul.f32 %v7514_v8, %v2375_v20  ;;  %v1806_v3 = vmul.f32 %v9229_v37, %v1805_v35  ;;  %v2397_v35 = vand.u32 2147483647, %v9681_v11  ;;  %vm2408_vm6 = vweird.f32 %v9688_v12 }
 0x3e2   : > { %4564 = vrot.lane.b32.xlu2 %v7894_v51, %s7946_s24  ;;  %v1810_v26 = vmul.f32 %v9677_v40, %v1809_v17 }
 0x3e3   : > { %v2377_v48 = vadd.f32 %v7514_v8, %v2376_v54  ;;  %4096 = vmax.xlane.f32.xlu0 %v9693_v32  ;;  %5173 = vrot.lane.b32.xlu1 %v7893_v34, %s7945_s23  ;;  %6949 = vst [vmem:[%s9247_s28 + $0x90] sm:$0xff] %v1806_v3  ;;  %vm2398_vm5 = vcmp.eq.f32.partialorder %v2397_v35, 8.507059e+37 }
 0x3e4   : > { %v1811_v17 = vadd.f32 %v9677_v40, %v1810_v26 }
 0x3e5   : > { %v7518_v18 = vpop.eup %7517  ;;  %v2381_v45 = vsel %vm2380_vm11, %v7514_v8, %v2377_v48  ;;  %v9709_v16 = vpop.xlane.xlu1 %1738  ;;  %v1819_v48 = vor.u32 1.1754944e-38, %v1818_v38  ;;  %v2399_v8 = vand.u32 2147483648, %v9681_v11 }
 0x3e6   : > { %v9706_v42 = vpop.eup %7519  ;;  %v2389_v54 = vmul.f32 %v7518_v18, %v9681_v11  ;;  %v9711_v46 = vpop.xlane.xlu2 %2880  ;;  %v2386_v34 = vsel %vm2383_vm12, %v2385_v47, %v2381_v45  ;;  %7521 = vrcp.f32 %v9709_v16  ;;  %v1815_v2 = vsel %vm1814_vm15, %v9677_v40, %v1811_v17 }
 0x3e7   : > { %v2404_v20 = vmul.f32 %v9706_v42, %v9688_v12  ;;  %v9717_v37 = vpop.xlane.xlu0 %1740  ;;  %v2387_v33 = vmul.f32 %v9255_v31, %v2386_v34  ;;  %v1820_v13 = vsel %vm1817_vm14, %v1819_v48, %v1815_v2  ;;  %vm2394_vm2 = vweird.f32 %v7518_v18 }
 0x3e8   : > { %v2390_v26 = vsub.f32 1.0, %v2389_v54  ;;  %7523 = vrcp.f32 %v9717_v37  ;;  %v1821_v47 = vmul.f32 %v9257_v49, %v1820_v13  ;;  %vm2395_vm4 = vmor %vm2393_vm3, %vm2394_vm2  ;;  %v2400_v17 = vor.u32 1.1754944e-38, %v2399_v8 }
 0x3e9   : > { %v2405_v61 = vsub.f32 1.0, %v2404_v20  ;;  %6971 = vst [vmem:[%s9247_s28 + $0x100] sm:$0xff] %v2387_v33  ;;  %v2414_v54 = vand.u32 2147483648, %v9688_v12  ;;  %v2412_v13 = vand.u32 2147483647, %v9688_v12  ;;  %vm1827_vm7 = vweird.f32 %v9709_v16 }
 0x3ea   : > { %v2391_v60 = vmul.f32 %v7518_v18, %v2390_v26  ;;  %6950 = vst [vmem:[%s9247_s28 + $0x98] sm:$0xff] %v1821_v47  ;;  %v2020_v31 = vpack.c.bf16 %v1821_v47, %v1806_v3  ;;  %vm2409_vm9 = vweird.f32 %v9706_v42  ;;  %v1846_v12 = vand.u32 2147483647, %v9717_v37 }
 0x3eb   : > { %v2406_v45 = vmul.f32 %v9706_v42, %v2405_v61  ;;  %5175 = vrot.lane.b32.xlu1 %v7894_v51, %s7945_s23  ;;  %v2415_v47 = vor.u32 1.1754944e-38, %v2414_v54  ;;  %vm2410_vm10 = vmor %vm2408_vm6, %vm2409_vm9  ;;  %vm2413_vm11 = vcmp.eq.f32.partialorder %v2412_v13, 8.507059e+37  ;;  %vm1842_vm14 = vweird.f32 %v9717_v37 }
 0x3ec   : > { %v2392_v38 = vadd.f32 %v7518_v18, %v2391_v60  ;;  %v9733_v40 = vpop.eup %7521  ;;  %2064 = vmatmul.bf16.gmra.mxu2 %v2020_v31  ;;  %vm1847_vm3 = vcmp.eq.f32.partialorder %v1846_v12, 8.507059e+37 }
 0x3ed   : > { %v1823_v49 = vmul.f32 %v9733_v40, %v9709_v16  ;;  %v2883_v11 = vpop.xlane.xlu1 %2882  ;;  %v2407_v61 = vadd.f32 %v9706_v42, %v2406_v45  ;;  %vm1828_vm8 = vweird.f32 %v9733_v40  ;;  %v1833_v45 = vand.u32 2147483648, %v9709_v16 }
 0x3ee   : > { %v9736_v34 = vpop.eup %7523  ;;  %v2396_v20 = vsel %vm2395_vm4, %v7518_v18, %v2392_v38  ;;  %v9741_v51 = vpop.xlane.xlu2 %1742  ;;  %v2909_v26 = vsub.f32 %v9340_v50, %v2883_v11  ;;  %vm9769_vm12 = vmor %vm1827_vm7, %vm1828_vm8 }
 0x3ef   : > { %v2401_v3 = vsel %vm2398_vm5, %v2400_v17, %v2396_v20  ;;  %v1838_v48 = vmul.f32 %v9736_v34, %v9717_v37  ;;  %7525 = vrcp.f32 %v9741_v51  ;;  %v9747_v18 = vpop.xlane.xlu0 %2884  ;;  %v1824_v2 = vsub.f32 1.0, %v1823_v49 }
 0x3f0   : > { %v2402_v8 = vmul.f32 %v9282_v53, %v2401_v3  ;;  %v2930_v35 = vmul.f32 1.442695, %v2909_v26  ;;  %v1831_v53 = vand.u32 2147483647, %v9709_v16  ;;  %v2411_v54 = vsel %vm2410_vm10, %v9706_v42, %v2407_v61 }
 0x3f1   : > { %v1839_v60 = vsub.f32 1.0, %v1838_v48  ;;  %v1825_v50 = vmul.f32 %v9733_v40, %v1824_v2  ;;  %vm1843_vm13 = vweird.f32 %v9736_v34  ;;  %v2416_v3 = vsel %vm2413_vm11, %v2415_v47, %v2411_v54  ;;  %v12912_v48 = vld [vmem:[#allocation15_spill] sm:$0xff] }
 0x3f2   : > { %6972 = vst [vmem:[%s9247_s28 + $0x108] sm:$0xff] %v2402_v8  ;;  %v2630_v38 = vpack.c.bf16 %v2402_v8, %v2387_v33  ;;  %7527 = vpow2.f32 %v2930_v35  ;;  %v1848_v33 = vand.u32 2147483648, %v9717_v37  ;;  %v2306_v42 = vsub.f32 %v12912_v48, %v9555_v25  ;;  %vm1844_vm2 = vmor %vm1842_vm14, %vm1843_vm13 }
 0x3f3   : > { %v1840_v31 = vmul.f32 %v9736_v34, %v1839_v60  ;;  %v1826_v17 = vadd.f32 %v9733_v40, %v1825_v50  ;;  %v9788_v61 = vmul.f32 %v9289_v43, %v2416_v3  ;;  %v1834_v60 = vor.u32 1.1754944e-38, %v1833_v45  ;;  %v12915_v3 = vld [vmem:[#allocation28_spill] sm:$0xff] }
 0x3f4   : > { %2670 = vmatmul.bf16.vlgmr.msra.gmra.mxu0 %v2630_v38  ;;  %vm1832_vm15 = vcmp.eq.f32.partialorder %v1831_v53, 8.507059e+37  ;;  %v1849_v35 = vor.u32 1.1754944e-38, %v1848_v33  ;;  %v2335_v37 = vmul.f32 1.442695, %v2306_v42  ;;  %v12913_v38 = vld [vmem:[#allocation8_spill] sm:$0xff]  ;;  %v1863_v33 = vand.u32 2147483648, %v9741_v51 }
 0x3f5   : > { %v9765_v20 = vpop.eup %7525  ;;  %v1841_v11 = vadd.f32 %v9736_v34, %v1840_v31  ;;  %v9780_v2 = vpop.xlane.xlu1 %2347  ;;  %v1830_v8 = vsel %vm9769_vm12, %v9733_v40, %v1826_v17  ;;  %6973 = vst [vmem:[%s9247_s28 + $0x110] sm:$0xff] %v9788_v61  ;;  %v2904_v50 = vsub.f32 %v12913_v38, %v9559_v14  ;;  %v1861_v49 = vand.u32 2147483647, %v9741_v51 }
 0x3f6   : > { %v1853_v26 = vmul.f32 %v9765_v20, %v9741_v51  ;;  %v9782_v16 = vpop.xlane.xlu2 %2349  ;;  %7529 = vrcp.f32 %v9780_v2  ;;  %v1835_v40 = vsel %vm1832_vm15, %v1834_v60, %v1830_v8  ;;  %vm1858_vm4 = vweird.f32 %v9765_v20 }
 0x3f7   : > { %v9791_v13 = vpop.xlane.xlu0 %2351  ;;  %7531 = vrcp.f32 %v9782_v16  ;;  %v1845_v47 = vsel %vm1844_vm2, %v9736_v34, %v1841_v11  ;;  %v1836_v53 = vmul.f32 %v9315_v5, %v1835_v40  ;;  %v12914_v34 = vld [vmem:[#allocation20_spill] sm:$0xff]  ;;  %vm1857_vm5 = vweird.f32 %v9741_v51 }
 0x3f8   : > { %v1854_v25 = vsub.f32 1.0, %v1853_v26  ;;  %v9799_v43 = vpop.eup %7527  ;;  %7533 = vrcp.f32 %v9791_v13  ;;  %v1850_v45 = vsel %vm1847_vm3, %v1849_v35, %v1845_v47  ;;  %v2905_v54 = vsub.f32 %v12914_v34, %v9620_v19  ;;  %vm9829_vm6 = vmor %vm1857_vm5, %vm1858_vm4 }
 0x3f9   : > { %2962 = vadd.xlane.f32.xlu0 %v9799_v43  ;;  %v1851_v31 = vmul.f32 %v9319_v9, %v1850_v45  ;;  %6951 = vst [vmem:[%s9247_s28 + $0xa0] sm:$0xff] %v1836_v53  ;;  %7535 = vpow2.f32 %v2335_v37  ;;  %v2920_v12 = vmul.f32 1.442695, %v2904_v50  ;;  %v2308_v48 = vsub.f32 %v12915_v3, %v9626_v41  ;;  %v12918_v37 = vld [vmem:[#allocation21_spill] sm:$0xff] }
 0x3fa   : > { %v1855_v17 = vmul.f32 %v9765_v20, %v1854_v25  ;;  %v1864_v35 = vor.u32 1.1754944e-38, %v1863_v33  ;;  %v2922_v40 = vmul.f32 1.442695, %v2905_v54  ;;  %vm1862_vm7 = vcmp.eq.f32.partialorder %v1861_v49, 8.507059e+37 }
 0x3fb   : > { %6952 = vst [vmem:[%s9247_s28 + $0xa8] sm:$0xff] %v1851_v31  ;;  %v2021_v11 = vpack.c.bf16 %v1851_v31, %v1836_v53  ;;  %v2907_v38 = vsub.f32 %v12918_v37, %v9668_v62  ;;  %v2427_v33 = vand.u32 2147483647, %v9780_v2  ;;  %v9855_v54 = vmul.f32 1.442695, %v2308_v48 }
 0x3fc   : > { %v7530_v14 = vpop.eup %7529  ;;  %v1856_v5 = vadd.f32 %v9765_v20, %v1855_v17  ;;  %v2429_v17 = vand.u32 2147483648, %v9780_v2  ;;  %vm2423_vm9 = vweird.f32 %v9780_v2  ;;  %vm2438_vm10 = vweird.f32 %v9782_v16 }
 0x3fd   : > { %v9818_v9 = vpop.eup %7531  ;;  %v2419_v42 = vmul.f32 %v7530_v14, %v9780_v2  ;;  %v9823_v19 = vpop.xlane.xlu1 %1744  ;;  %2069 = vmatmul.bf16.gmra.mxu2 %v2021_v11  ;;  %vm2424_vm8 = vweird.f32 %v7530_v14  ;;  %v2444_v3 = vand.u32 2147483648, %v9782_v16  ;;  %vm2428_vm12 = vcmp.eq.f32.partialorder %v2427_v33, 8.507059e+37 }
 0x3fe   : > { %v9825_v26 = vpop.xlane.xlu2 %2886  ;;  %v9833_v51 = vpop.eup %7533  ;;  %v2434_v60 = vmul.f32 %v9818_v9, %v9782_v16  ;;  %7537 = vrcp.f32 %v9823_v19  ;;  %v1860_v25 = vsel %vm9829_vm6, %v9765_v20, %v1856_v5  ;;  %v9863_v5 = vmul.f32 1.442695, %v2907_v38  ;;  %vm2425_vm11 = vmor %vm2423_vm9, %vm2424_vm8 }
 0x3ff   : > { %v9838_v41 = vpop.xlane.xlu0 %1746  ;;  %v2420_v47 = vsub.f32 1.0, %v2419_v42  ;;  %v2449_v53 = vmul.f32 %v9833_v51, %v9791_v13  ;;  %v1865_v45 = vsel %vm1862_vm7, %v1864_v35, %v1860_v25  ;;  %v9853_v34 = vpop.eup %7535  ;;  %vm2439_vm13 = vweird.f32 %v9818_v9 }
 0x400   : > { %7539 = vrcp.f32 %v9838_v41  ;;  %v2435_v50 = vsub.f32 1.0, %v2434_v60  ;;  %v9850_v20 = vmul.f32 %v9342_v23, %v1865_v45  ;;  %v2430_v60 = vor.u32 1.1754944e-38, %v2429_v17  ;;  %vm2440_vm2 = vmor %vm2438_vm10, %vm2439_vm13 }
 0x401   : > { %v2421_v31 = vmul.f32 %v7530_v14, %v2420_v47  ;;  %7541 = vpow2.f32 %v2920_v12  ;;  %v2450_v23 = vsub.f32 1.0, %v2449_v53  ;;  %vm2453_vm14 = vweird.f32 %v9791_v13 }
 0x402   : > { %v2436_v62 = vmul.f32 %v9818_v9, %v2435_v50  ;;  %6953 = vst [vmem:[%s9247_s28 + $0xb0] sm:$0xff] %v9850_v20  ;;  %7543 = vpow2.f32 %v2922_v40  ;;  %v2442_v40 = vand.u32 2147483647, %v9782_v16  ;;  %v2445_v33 = vor.u32 1.1754944e-38, %v2444_v3 }
 0x403   : > { %v2422_v49 = vadd.f32 %v7530_v14, %v2421_v31  ;;  %v2459_v31 = vand.u32 2147483648, %v9791_v13  ;;  %vm1872_vm4 = vweird.f32 %v9823_v19  ;;  %v1876_v3 = vand.u32 2147483647, %v9823_v19 }
 0x404   : > { %v9861_v11 = vpop.eup %7537  ;;  %v2437_v38 = vadd.f32 %v9818_v9, %v2436_v62  ;;  %vm2443_vm3 = vcmp.eq.f32.partialorder %v2442_v40, 8.507059e+37  ;;  %vm2454_vm6 = vweird.f32 %v9833_v51  ;;  %v2457_v40 = vand.u32 2147483647, %v9791_v13 }
 0x405   : > { %v1868_v2 = vmul.f32 %v9861_v11, %v9823_v19  ;;  %v9872_v48 = vpop.xlane.xlu1 %2888  ;;  %v2426_v8 = vsel %vm2425_vm11, %v7530_v14, %v2422_v49  ;;  %v2451_v14 = vmul.f32 %v9833_v51, %v2450_v23  ;;  %vm1873_vm15 = vweird.f32 %v9861_v11  ;;  %vm2455_vm9 = vmor %vm2453_vm14, %vm2454_vm6 }
 0x406   : > { %v9867_v12 = vpop.eup %7539  ;;  %v9874_v42 = vpop.xlane.xlu2 %1748  ;;  %v2431_v37 = vsel %vm2428_vm12, %v2430_v60, %v2426_v8  ;;  %v1878_v23 = vand.u32 2147483648, %v9823_v19  ;;  %v2441_v8 = vsel %vm2440_vm2, %v9818_v9, %v2437_v38  ;;  %vm9911_vm5 = vmor %vm1872_vm4, %vm1873_vm15  ;;  %v9920_v9 = vld [vmem:[#allocation2 + $0x48] sm:$0xff]  ;;  %vm1877_vm8 = vcmp.eq.f32.partialorder %v1876_v3, 8.507059e+37 }
 0x407   : > { %v1883_v25 = vmul.f32 %v9867_v12, %v9838_v41  ;;  %7545 = vrcp.f32 %v9874_v42  ;;  %v9879_v35 = vpop.xlane.xlu0 %2890  ;;  %v1869_v47 = vsub.f32 1.0, %v1868_v2  ;;  %v9884_v50 = vpop.eup %7541  ;;  %v2432_v45 = vmul.f32 %v9364_v55, %v2431_v37 }
 0x408   : > { %v9892_v49 = vpop.eup %7543  ;;  %v2446_v16 = vsel %vm2443_vm3, %v2445_v33, %v2441_v8  ;;  %vm1888_vm7 = vweird.f32 %v9867_v12  ;;  %vm1887_vm10 = vweird.f32 %v9838_v41  ;;  %vm2458_vm11 = vcmp.eq.f32.partialorder %v2457_v40, 8.507059e+37 }
 0x409   : > { %v1884_v53 = vsub.f32 1.0, %v1883_v25  ;;  %v1870_v17 = vmul.f32 %v9861_v11, %v1869_v47  ;;  %6974 = vst [vmem:[%s9247_s28 + $0x118] sm:$0xff] %v2432_v45  ;;  %v2631_v2 = vpack.c.bf16 %v2432_v45, %v9788_v61  ;;  %v2452_v25 = vadd.f32 %v9833_v51, %v2451_v14  ;;  %vm9951_vm12 = vmor %vm1887_vm10, %vm1888_vm7 }
 0x40a   : > { %v9932_v14 = vmul.f32 %v9372_v21, %v2446_v16  ;;  %v1891_v61 = vand.u32 2147483647, %v9838_v41  ;;  %v1908_v40 = vand.u32 2147483648, %v9874_v42  ;;  %vm1902_vm15 = vweird.f32 %v9874_v42 }
 0x40b   : > { %v1885_v62 = vmul.f32 %v9867_v12, %v1884_v53  ;;  %2367 = vadd.xlane.f32.xlu2 %v9853_v34  ;;  %v1871_v55 = vadd.f32 %v9861_v11, %v1870_v17  ;;  %2675 = vmatmul.bf16.gmra.mxu0 %v2631_v2  ;;  %v2460_v53 = vor.u32 1.1754944e-38, %v2459_v31  ;;  %v1879_v17 = vor.u32 1.1754944e-38, %v1878_v23 }
 0x40c   : > { %v1893_v2 = vand.u32 2147483648, %v9838_v41  ;;  %6975 = vst [vmem:[%s9247_s28 + $0x120] sm:$0xff] %v9932_v14  ;;  %vm1892_vm13 = vcmp.eq.f32.partialorder %v1891_v61, 8.507059e+37 }
 0x40d   : > { %v9907_v60 = vpop.eup %7545  ;;  %4566 = vrot.lane.b32.xlu0 %v9920_v9, %s7946_s24  ;;  %v9924_v47 = vpop.xlane.xlu1 %2353  ;;  %v1875_v38 = vsel %vm9911_vm5, %v9861_v11, %v1871_v55  ;;  %v1886_v33 = vadd.f32 %v9867_v12, %v1885_v62  ;;  %v2456_v11 = vsel %vm2455_vm9, %v9833_v51, %v2452_v25 }
 0x40e   : > { %v1898_v19 = vmul.f32 %v9907_v60, %v9874_v42  ;;  %v9926_v37 = vpop.xlane.xlu2 %2355  ;;  %7547 = vrcp.f32 %v9924_v47  ;;  %v1880_v21 = vsel %vm1877_vm8, %v1879_v17, %v1875_v38  ;;  %v2461_v23 = vsel %vm2458_vm11, %v2460_v53, %v2456_v11 }
 0x40f   : > { %v9935_v45 = vpop.xlane.xlu0 %2357  ;;  %7549 = vrcp.f32 %v9926_v37  ;;  %v1881_v62 = vmul.f32 %v9401_v24, %v1880_v21  ;;  %v2462_v13 = vmul.f32 %v9377_v7, %v2461_v23  ;;  %v1890_v3 = vsel %vm9951_vm12, %v9867_v12, %v1886_v33  ;;  %v12923_v7 = vld [vmem:[#allocation12_spill] sm:$0xff] }
 0x410   : > { %v1899_v8 = vsub.f32 1.0, %v1898_v19  ;;  %7551 = vpow2.f32 %v9855_v54  ;;  %v1894_v51 = vor.u32 1.1754944e-38, %v1893_v2  ;;  %v2908_v25 = vsub.f32 %v12923_v7, %v9711_v46 }
 0x411   : > { %6954 = vst [vmem:[%s9247_s28 + $0xb8] sm:$0xff] %v1881_v62  ;;  %v2022_v24 = vpack.c.bf16 %v1881_v62, %v9850_v20  ;;  %7553 = vpow2.f32 %v9863_v5  ;;  %vm1903_vm14 = vweird.f32 %v9907_v60  ;;  %v1906_v53 = vand.u32 2147483647, %v9874_v42 }
 0x412   : > { %v1900_v31 = vmul.f32 %v9907_v60, %v1899_v8  ;;  %6976 = vst [vmem:[%s9247_s28 + $0x128] sm:$0xff] %v2462_v13  ;;  %7555 = vrcp.f32 %v9935_v45  ;;  %v1895_v5 = vsel %vm1892_vm13, %v1894_v51, %v1890_v3  ;;  %vm1904_vm2 = vmor %vm1902_vm15, %vm1903_vm14  ;;  %v1909_v11 = vor.u32 1.1754944e-38, %v1908_v40  ;;  %v3434_v51 = vpop.f32.mrf.mxu3 }
 0x413   : > { %2952 = vadd.xlane.f32.xlu2 %v9884_v50  ;;  %2074 = vmatmul.bf16.gmra.mxu2 %v2022_v24  ;;  %v9992_v33 = vmul.f32 %v9405_v52, %v1895_v5  ;;  %v2928_v62 = vmul.f32 1.442695, %v2908_v25  ;;  %v2632_v23 = vpack.c.bf16 %v2462_v13, %v9932_v14  ;;  %vm1907_vm3 = vcmp.eq.f32.partialorder %v1906_v53, 8.507059e+37 }
 0x414   : > { %v9964_v16 = vpop.eup %7547  ;;  %v1901_v46 = vadd.f32 %v9907_v60, %v1900_v31  ;;  %v2910_v52 = vsub.f32 %v9346_v1, %v9747_v18  ;;  %v2474_v3 = vand.u32 2147483648, %v9924_v47  ;;  %v2472_v13 = vand.u32 2147483647, %v9924_v47 }
 0x415   : > { %v9971_v41 = vpop.eup %7549  ;;  %v2464_v54 = vmul.f32 %v9964_v16, %v9924_v47  ;;  %v9976_v20 = vpop.xlane.xlu1 %1750  ;;  %2954 = vadd.xlane.f32.xlu1 %v9892_v49  ;;  %6955 = vst [vmem:[%s9247_s28 + $0xc0] sm:$0xff] %v9992_v33  ;;  %vm2469_vm4 = vweird.f32 %v9964_v16  ;;  %vm2468_vm5 = vweird.f32 %v9924_v47  ;;  %vm2483_vm9 = vweird.f32 %v9926_v37 }
 0x416   : > { %v9978_v12 = vpop.xlane.xlu2 %2892  ;;  %v2479_v19 = vmul.f32 %v9971_v41, %v9926_v37  ;;  %7557 = vrcp.f32 %v9976_v20  ;;  %v9994_v2 = vpop.eup %7551  ;;  %v1905_v55 = vsel %vm1904_vm2, %v9907_v60, %v1901_v46  ;;  %v10033_v46 = vsel %vm821_vm1, %v3434_v51, -1e+30  ;;  %vm2470_vm6 = vmor %vm2468_vm5, %vm2469_vm4 }
 0x417   : > { %v9985_v38 = vpop.xlane.xlu0 %1752  ;;  %v2465_v17 = vsub.f32 1.0, %v2464_v54  ;;  %v9997_v31 = vpop.eup %7553  ;;  %v1910_v61 = vsel %vm1907_vm3, %v1909_v11, %v1905_v55  ;;  %v2932_v53 = vmul.f32 1.442695, %v2910_v52  ;;  %vm2473_vm7 = vcmp.eq.f32.partialorder %v2472_v13, 8.507059e+37 }
 0x418   : > { %7559 = vrcp.f32 %v9985_v38  ;;  %v2480_v21 = vsub.f32 1.0, %v2479_v19  ;;  %v10003_v42 = vpop.eup %7555  ;;  %v1911_v60 = vmul.f32 %v9421_v59, %v1910_v61  ;;  %v2475_v19 = vor.u32 1.1754944e-38, %v2474_v3 }
 0x419   : > { %v2466_v8 = vmul.f32 %v9964_v16, %v2465_v17  ;;  %7561 = vpow2.f32 %v2928_v62  ;;  %v2494_v17 = vmul.f32 %v10003_v42, %v9935_v45  ;;  %vm2484_vm8 = vweird.f32 %v9971_v41 }
 0x41a   : > { %v2481_v1 = vmul.f32 %v9971_v41, %v2480_v21  ;;  %6956 = vst [vmem:[%s9247_s28 + $0xc8] sm:$0xff] %v1911_v60  ;;  %v2911_v62 = vsub.f32 %v9397_v10, %v9825_v26  ;;  %v2487_v3 = vand.u32 2147483647, %v9926_v37  ;;  %v1923_v10 = vand.u32 2147483648, %v9976_v20  ;;  %vm10055_vm10 = vmor %vm2483_vm9, %vm2484_vm8 }
 0x41b   : > { %2958 = vadd.xlane.f32.xlu2 %v9997_v31  ;;  %2680 = vmatmul.bf16.gmra.mxu0 %v2632_v23  ;;  %v2467_v14 = vadd.f32 %v9964_v16, %v2466_v8  ;;  %v2489_v23 = vand.u32 2147483648, %v9926_v37  ;;  %v2495_v51 = vsub.f32 1.0, %v2494_v17  ;;  %vm1917_vm12 = vweird.f32 %v9976_v20 }
 0x41c   : > { %v10009_v24 = vpop.eup %7557  ;;  %v2482_v11 = vadd.f32 %v9971_v41, %v2481_v1  ;;  %vm2488_vm13 = vcmp.eq.f32.partialorder %v2487_v3, 8.507059e+37  ;;  %vm1932_vm3 = vweird.f32 %v9985_v38  ;;  %vm2499_vm5 = vweird.f32 %v10003_v42 }
 0x41d   : > { %v1913_v18 = vmul.f32 %v10009_v24, %v9976_v20  ;;  %v10020_v25 = vpop.xlane.xlu1 %2894  ;;  %2371 = vadd.xlane.f32.xlu1 %v9994_v2  ;;  %v2471_v47 = vsel %vm2470_vm6, %v9964_v16, %v2467_v14  ;;  %v2023_v16 = vpack.c.bf16 %v1911_v60, %v9992_v33  ;;  %vm1918_vm11 = vweird.f32 %v10009_v24 }
 0x41e   : > { %v10015_v7 = vpop.eup %7559  ;;  %v10022_v40 = vpop.xlane.xlu2 %1754  ;;  %v2476_v21 = vsel %vm2473_vm7, %v2475_v19, %v2471_v47  ;;  %v2486_v37 = vsel %vm10055_vm10, %v9971_v41, %v2482_v11  ;;  %v1921_v60 = vand.u32 2147483647, %v9976_v20  ;;  %vm1919_vm14 = vmor %vm1917_vm12, %vm1918_vm11  ;;  %v2912_v41 = vsub.f32 %v9426_v15, %v9872_v48 }
 0x41f   : > { %v1928_v59 = vmul.f32 %v10015_v7, %v9985_v38  ;;  %v10028_v54 = vpop.xlane.xlu0 %2896  ;;  %v1914_v5 = vsub.f32 1.0, %v1913_v18  ;;  %v2477_v52 = vmul.f32 %v9451_v0, %v2476_v21  ;;  %7563 = vrcp.f32 %v10022_v40  ;;  %v10052_v61 = vpop.eup %7561 }
 0x420   : > { %7565 = vpow2.f32 %v2932_v53  ;;  %v2490_v18 = vor.u32 1.1754944e-38, %v2489_v23  ;;  %v1924_v53 = vor.u32 1.1754944e-38, %v1923_v10  ;;  %v2496_v47 = vmul.f32 %v10003_v42, %v2495_v51  ;;  %v4043_v23 = vpop.f32.mrf.mxu1 }
 0x421   : > { %v1915_v8 = vmul.f32 %v10009_v24, %v1914_v5  ;;  %v1929_v55 = vsub.f32 1.0, %v1928_v59  ;;  %6977 = vst [vmem:[%s9247_s28 + $0x130] sm:$0xff] %v2477_v52  ;;  %v10079_v59 = vsel %vm821_vm1, %v9659_v29, -1e+30  ;;  %v2934_v5 = vmul.f32 1.442695, %v2911_v62 }
 0x422   : > { %v2491_v20 = vsel %vm2488_vm13, %v2490_v18, %v2486_v37  ;;  %v1938_v29 = vand.u32 2147483648, %v9985_v38  ;;  %vm1922_vm15 = vcmp.eq.f32.partialorder %v1921_v60, 8.507059e+37  ;;  %vm1933_vm2 = vweird.f32 %v10015_v7 }
 0x423   : > { %3489 = vmax.xlane.f32.xlu2 %v10033_v46  ;;  %v1916_v0 = vadd.f32 %v10009_v24, %v1915_v8  ;;  %2079 = vmatmul.bf16.gmra.mxu2 %v2023_v16  ;;  %v1930_v13 = vmul.f32 %v10015_v7, %v1929_v55  ;;  %v2492_v8 = vmul.f32 %v9454_v57, %v2491_v20  ;;  %v1936_v57 = vand.u32 2147483647, %v9985_v38  ;;  %vm10109_vm4 = vmor %vm1932_vm3, %vm1933_vm2 }
 0x424   : > { %v2936_v55 = vmul.f32 1.442695, %v2912_v41  ;;  %v2915_v16 = vsub.f32 %v9510_v30, %v10020_v25  ;;  %v2497_v51 = vadd.f32 %v10003_v42, %v2496_v47  ;;  %v2502_v60 = vand.u32 2147483647, %v9935_v45 }
 0x425   : > { %v10062_v14 = vpop.xlane.xlu1 %2359  ;;  %2960 = vadd.xlane.f32.xlu1 %v10052_v61  ;;  %v1920_v19 = vsel %vm1919_vm14, %v10009_v24, %v1916_v0  ;;  %v10086_v17 = vpop.eup %7563  ;;  %v1931_v15 = vadd.f32 %v10015_v7, %v1930_v13  ;;  %6978 = vst [vmem:[%s9247_s28 + $0x138] sm:$0xff] %v2492_v8  ;;  %v2633_v48 = vpack.c.bf16 %v2492_v8, %v2477_v52  ;;  %v1939_v0 = vor.u32 1.1754944e-38, %v1938_v29 }
 0x426   : > { %v10064_v33 = vpop.xlane.xlu2 %2361  ;;  %7567 = vrcp.f32 %v10062_v14  ;;  %v10091_v21 = vpop.eup %7565  ;;  %v1925_v11 = vsel %vm1922_vm15, %v1924_v53, %v1920_v19  ;;  %v1943_v3 = vmul.f32 %v10086_v17, %v10022_v40  ;;  %vm1937_vm6 = vcmp.eq.f32.partialorder %v1936_v57, 8.507059e+37 }
 0x427   : > { %v10074_v1 = vpop.xlane.xlu0 %2363  ;;  %7569 = vrcp.f32 %v10064_v33  ;;  %v10100_v24 = vmul.f32 %v9483_v36, %v1925_v11  ;;  %v2504_v36 = vand.u32 2147483648, %v9935_v45  ;;  %v1935_v30 = vsel %vm10109_vm4, %v10015_v7, %v1931_v15  ;;  %v10156_v8 = vpop.f32.mrf.mxu0 }
 0x428   : > { %7571 = vpow2.f32 %v2934_v5  ;;  %v10137_v7 = vsel %vm821_vm1, %v4043_v23, -1e+30  ;;  %vm2498_vm7 = vweird.f32 %v9935_v45  ;;  %v1940_v18 = vsel %vm1937_vm6, %v1939_v0, %v1935_v30  ;;  %12930 = vst [vmem:[#allocation14_spill] sm:$0xff] %v10156_v8 }
 0x429   : > { %7573 = vrcp.f32 %v10074_v1  ;;  %6957 = vst [vmem:[%s9247_s28 + $0xd0] sm:$0xff] %v10100_v24  ;;  %v2914_v5 = vsub.f32 %v9480_v44, %v9978_v12  ;;  %v1944_v41 = vsub.f32 1.0, %v1943_v3  ;;  %vm10144_vm8 = vmor %vm2498_vm7, %vm2499_vm5  ;;  %v2942_v47 = vmul.f32 1.442695, %v2915_v16 }
 0x42a   : > { %v1941_v29 = vmul.f32 %v9487_v22, %v1940_v18  ;;  %v2501_v45 = vsel %vm10144_vm8, %v10003_v42, %v2497_v51  ;;  %v2505_v44 = vor.u32 1.1754944e-38, %v2504_v36  ;;  %vm2513_vm9 = vweird.f32 %v10062_v14 }
 0x42b   : > { %2964 = vadd.xlane.f32.xlu2 %v10091_v21  ;;  %2685 = vmatmul.bf16.gmra.mxu0 %v2633_v48  ;;  %v2519_v11 = vand.u32 2147483648, %v10062_v14  ;;  %vm2503_vm10 = vcmp.eq.f32.partialorder %v2502_v60, 8.507059e+37  ;;  %v1945_v23 = vmul.f32 %v10086_v17, %v1944_v41  ;;  %vm1947_vm12 = vweird.f32 %v10022_v40 }
 0x42c   : > { %v10103_v62 = vpop.eup %7567  ;;  %6958 = vst [vmem:[%s9247_s28 + $0xd8] sm:$0xff] %v1941_v29  ;;  %v2024_v22 = vpack.c.bf16 %v1941_v29, %v10100_v24  ;;  %v2506_v57 = vsel %vm2503_vm10, %v2505_v44, %v2501_v45  ;;  %v2517_v24 = vand.u32 2147483647, %v10062_v14  ;;  %vm1948_vm2 = vweird.f32 %v10086_v17 }
 0x42d   : > { %v2509_v38 = vmul.f32 %v10103_v62, %v10062_v14  ;;  %v10117_v52 = vpop.xlane.xlu1 %1756  ;;  %4094 = vmax.xlane.f32.xlu1 %v10079_v59  ;;  %v10133_v13 = vpop.eup %7569  ;;  %vm2514_vm11 = vweird.f32 %v10103_v62  ;;  %v2507_v10 = vmul.f32 %v9458_v4, %v2506_v57  ;;  %v1953_v14 = vand.u32 2147483648, %v10022_v40  ;;  %vm10212_vm3 = vmor %vm1947_vm12, %vm1948_vm2 }
 0x42e   : > { %v10119_v26 = vpop.xlane.xlu2 %2898  ;;  %7575 = vrcp.f32 %v10117_v52  ;;  %v10148_v53 = vpop.eup %7571  ;;  %v2524_v15 = vmul.f32 %v10133_v13, %v10064_v33  ;;  %vm10184_vm13 = vmor %vm2513_vm9, %vm2514_vm11  ;;  %vm1962_vm14 = vweird.f32 %v10117_v52  ;;  %vm2518_vm15 = vcmp.eq.f32.partialorder %v2517_v24, 8.507059e+37 }
 0x42f   : > { %v10128_v25 = vpop.xlane.xlu0 %1758  ;;  %v2510_v37 = vsub.f32 1.0, %v2509_v38  ;;  %7577 = vpow2.f32 %v2936_v55  ;;  %v10154_v12 = vpop.eup %7573  ;;  %v2940_v38 = vmul.f32 1.442695, %v2914_v5  ;;  %6979 = vst [vmem:[%s9247_s28 + $0x140] sm:$0xff] %v2507_v10  ;;  %v2520_v5 = vor.u32 1.1754944e-38, %v2519_v11 }
 0x430   : > { %7579 = vrcp.f32 %v10128_v25  ;;  %v2539_v30 = vmul.f32 %v10154_v12, %v10074_v1  ;;  %v2525_v51 = vsub.f32 1.0, %v2524_v15  ;;  %v2917_v29 = vsub.f32 %v9567_v28, %v10119_v26 }
 0x431   : > { %v2511_v20 = vmul.f32 %v10103_v62, %v2510_v37  ;;  %v1951_v28 = vand.u32 2147483647, %v10022_v40  ;;  %v1954_v26 = vor.u32 1.1754944e-38, %v1953_v14  ;;  %v1966_v40 = vand.u32 2147483647, %v10117_v52 }
 0x432   : > { %v2540_v19 = vsub.f32 1.0, %v2539_v30  ;;  %v2526_v45 = vmul.f32 %v10133_v13, %v2525_v51  ;;  %vm2528_vm5 = vweird.f32 %v10064_v33  ;;  %vm2529_vm9 = vweird.f32 %v10133_v13 }
 0x433   : > { %v2512_v42 = vadd.f32 %v10103_v62, %v2511_v20  ;;  %2084 = vmatmul.bf16.gmra.mxu2 %v2024_v22  ;;  %v1968_v20 = vand.u32 2147483648, %v10117_v52  ;;  %vm1952_vm6 = vcmp.eq.f32.partialorder %v1951_v28, 8.507059e+37  ;;  %vm1967_vm8 = vcmp.eq.f32.partialorder %v1966_v40, 8.507059e+37  ;;  %vm10255_vm10 = vmor %vm2528_vm5, %vm2529_vm9 }
 0x434   : > { %v10162_v48 = vpop.eup %7575  ;;  %v2541_v0 = vmul.f32 %v10154_v12, %v2540_v19  ;;  %vm2543_vm11 = vweird.f32 %v10074_v1  ;;  %vm2544_vm12 = vweird.f32 %v10154_v12 }
 0x435   : > { %v1958_v55 = vmul.f32 %v10162_v48, %v10117_v52  ;;  %v2901_v16 = vpop.xlane.xlu1 %2900  ;;  %2966 = vadd.xlane.f32.xlu1 %v10148_v53  ;;  %v10176_v36 = vpop.eup %7577  ;;  %v2516_v18 = vsel %vm10184_vm13, %v10103_v62, %v2512_v42  ;;  %vm1963_vm4 = vweird.f32 %v10162_v48 }
 0x436   : > { %v10171_v3 = vpop.xlane.xlu2 %1760  ;;  %v10188_v4 = vpop.eup %7579  ;;  %v2918_v60 = vsub.f32 %v9592_v58, %v2901_v16  ;;  %v1946_v58 = vadd.f32 %v10086_v17, %v1945_v23  ;;  %vm10237_vm7 = vmor %vm1962_vm14, %vm1963_vm4 }
 0x437   : > { %7581 = vrcp.f32 %v10171_v3  ;;  %v1959_v37 = vsub.f32 1.0, %v1958_v55  ;;  %2968 = vadd.xlane.f32.xlu0 %v10176_v36  ;;  %v1973_v62 = vmul.f32 %v10188_v4, %v10128_v25  ;;  %v10219_v42 = vpop.f32.mrf.mxu0  ;;  %vm2545_vm14 = vmor %vm2543_vm11, %vm2544_vm12 }
 0x438   : > { %7583 = vpow2.f32 %v2942_v47  ;;  %v2521_v47 = vsel %vm2518_vm15, %v2520_v5, %v2516_v18  ;;  %v2948_v44 = vmul.f32 1.442695, %v2918_v60  ;;  %12935 = vst [vmem:[#allocation11_spill] sm:$0xff] %v10219_v42  ;;  %v1950_v16 = vsel %vm10212_vm3, %v10086_v17, %v1946_v58 }
 0x439   : > { %v1960_v41 = vmul.f32 %v10162_v48, %v1959_v37  ;;  %v2522_v11 = vmul.f32 %v9537_v56, %v2521_v47  ;;  %7585 = vpow2.f32 %v2940_v38  ;;  %v1974_v30 = vsub.f32 1.0, %v1973_v62 }
 0x43a   : > { %v2534_v17 = vand.u32 2147483648, %v10064_v33  ;;  %v1955_v38 = vsel %vm1952_vm6, %v1954_v26, %v1950_v16  ;;  %7587 = vpow2.f32 %v2948_v44  ;;  %v1969_v37 = vor.u32 1.1754944e-38, %v1968_v20 }
 0x43b   : > { %v1961_v57 = vadd.f32 %v10162_v48, %v1960_v41  ;;  %6980 = vst [vmem:[%s9247_s28 + $0x148] sm:$0xff] %v2522_v11  ;;  %v2634_v23 = vpack.c.bf16 %v2522_v11, %v2507_v10  ;;  %v1956_v52 = vmul.f32 %v9505_v6, %v1955_v38  ;;  %v2527_v60 = vadd.f32 %v10133_v13, %v2526_v45 }
 0x43c   : > { %v2946_v18 = vmul.f32 1.442695, %v2917_v29  ;;  %v2549_v5 = vand.u32 2147483648, %v10074_v1  ;;  %v1975_v41 = vmul.f32 %v10188_v4, %v1974_v30  ;;  %v2532_v6 = vand.u32 2147483647, %v10064_v33 }
 0x43d   : > { %v10208_v15 = vpop.eup %7581  ;;  %4098 = vmax.xlane.f32.xlu1 %v10137_v7  ;;  %2690 = vmatmul.bf16.gmra.mxu0 %v2634_v23  ;;  %v1965_v51 = vsel %vm10237_vm7, %v10162_v48, %v1961_v57  ;;  %6959 = vst [vmem:[%s9247_s28 + $0xe0] sm:$0xff] %v1956_v52  ;;  %v1983_v20 = vand.u32 2147483648, %v10128_v25  ;;  %v2531_v29 = vsel %vm10255_vm10, %v10133_v13, %v2527_v60  ;;  %v2535_v47 = vor.u32 1.1754944e-38, %v2534_v17  ;;  %v10285_v57 = vpop.xlane.xlu0 %2902 }
 0x43e   : > { %v1988_v56 = vmul.f32 %v10208_v15, %v10171_v3  ;;  %v4563_v55 = vpop.permute.xlu2 %4562  ;;  %v10229_v24 = vpop.eup %7583  ;;  %v1970_v58 = vsel %vm1967_vm8, %v1969_v37, %v1965_v51  ;;  %v2542_v45 = vadd.f32 %v10154_v12, %v2541_v0  ;;  %v2547_v33 = vand.u32 2147483647, %v10074_v1  ;;  %v12942_v0 = vld [vmem:[#allocation9_spill] sm:$0xff] }
 0x43f   : > { %7060 = vmatmul.msk.bf16.gmra.mxu3 %vm902_vm0, %v4563_v55  ;;  %2974 = vadd.xlane.f32.xlu0 %v10229_v24  ;;  %v1971_v19 = vmul.f32 %v9563_v63, %v1970_v58  ;;  %v10268_v62 = vpop.eup %7585  ;;  %v10273_v44 = vpop.f32.mrf.mxu0  ;;  %7589 = vpow2.f32 %v2946_v18  ;;  %vm2533_vm13 = vcmp.eq.f32.partialorder %v2532_v6, 8.507059e+37  ;;  %v2550_v28 = vor.u32 1.1754944e-38, %v2549_v5  ;;  %v12941_v55 = vld [vmem:[#allocation6_spill] sm:$0xff]  ;;  %v12946_v58 = vld [vmem:[#allocation7_spill] sm:$0xff] }
 0x440   : > { %v1989_v14 = vsub.f32 1.0, %v1988_v56  ;;  %12940 = vst [vmem:[#allocation27_spill] sm:$0xff] %v10273_v44  ;;  %v10280_v13 = vpop.eup %7587  ;;  %v2536_v11 = vsel %vm2533_vm13, %v2535_v47, %v2531_v29  ;;  %v2546_v22 = vsel %vm2545_vm14, %v10154_v12, %v2542_v45  ;;  %v1976_v26 = vadd.f32 %v10188_v4, %v1975_v41  ;;  %v12947_v29 = vld [vmem:[#allocation30_spill] sm:$0xff] }
 0x441   : > { %6960 = vst [vmem:[%s9247_s28 + $0xe8] sm:$0xff] %v1971_v19  ;;  %v2025_v63 = vpack.c.bf16 %v1971_v19, %v1956_v52  ;;  %vm1977_vm15 = vweird.f32 %v10128_v25  ;;  %vm2548_vm2 = vcmp.eq.f32.partialorder %v2547_v33, 8.507059e+37  ;;  %v2537_v1 = vmul.f32 %v9540_v27, %v2536_v11  ;;  %v4045_v27 = vpop.f32.mrf.mxu1  ;;  %v2366_v52 = vpop.xlane.xlu1 %2365  ;;  %v7896_v33 = vld [vmem:[#allocation2 + $0x28] sm:$0xff] }
 0x442   : > { %v2551_v56 = vsel %vm2548_vm2, %v2550_v28, %v2546_v22  ;;  %vm1978_vm3 = vweird.f32 %v10188_v4  ;;  %v1981_v12 = vand.u32 2147483647, %v10128_v25  ;;  %v1998_v23 = vand.u32 2147483648, %v10171_v3  ;;  %v7897_v28 = vld [vmem:[#allocation2 + $0x60] sm:$0xff] }
 0x443   : > { %5177 = vrot.lane.b32.xlu2 %v9920_v9, %s7945_s23  ;;  %v1990_v9 = vmul.f32 %v10208_v15, %v1989_v14  ;;  %2089 = vmatmul.bf16.gmra.mxu2 %v2025_v63  ;;  %v2552_v16 = vmul.f32 %v12941_v55, %v2551_v56  ;;  %vm1979_vm4 = vmor %vm1977_vm15, %vm1978_vm3  ;;  %v1984_v40 = vor.u32 1.1754944e-38, %v1983_v20  ;;  %6981 = vst [vmem:[%s9247_s28 + $0x150] sm:$0xff] %v2537_v1  ;;  %vm1992_vm6 = vweird.f32 %v10171_v3 }
 0x444   : > { %v1980_v30 = vsel %vm1979_vm4, %v10188_v4, %v1976_v26  ;;  %vm1982_vm5 = vcmp.eq.f32.partialorder %v1981_v12, 8.507059e+37  ;;  %vm1993_vm7 = vweird.f32 %v10208_v15  ;;  %v1996_v4 = vand.u32 2147483647, %v10171_v3 }
 0x445   : > { %2972 = vadd.xlane.f32.xlu1 %v10268_v62  ;;  %v1991_v10 = vadd.f32 %v10208_v15, %v1990_v9  ;;  %v10296_v17 = vpop.eup %7589  ;;  %6982 = vst [vmem:[%s9247_s28 + $0x158] sm:$0xff] %v2552_v16  ;;  %v1985_v25 = vsel %vm1982_vm5, %v1984_v40, %v1980_v30  ;;  %vm10302_vm8 = vmor %vm1992_vm6, %vm1993_vm7  ;;  %v2635_v60 = vpack.c.bf16 %v2552_v16, %v2537_v1  ;;  %v1999_v14 = vor.u32 1.1754944e-38, %v1998_v23  ;;  %v10321_v6 = vpop.xlane.xlu0 %3487  ;;  %v12948_v9 = vld [vmem:[#allocation10_spill] sm:$0xff] }
 0x446   : > { %v1986_v38 = vmul.f32 %v12942_v0, %v1985_v25  ;;  %v4565_v37 = vpop.permute.xlu2 %4564  ;;  %v10314_v5 = vsel %vm821_vm1, %v4045_v27, -1e+30  ;;  %vm1997_vm9 = vcmp.eq.f32.partialorder %v1996_v4, 8.507059e+37  ;;  %v2913_v47 = vsub.f32 %v12947_v29, %v9879_v35 }
 0x447   : > { %2980 = vadd.xlane.f32.xlu0 %v10280_v13  ;;  %v1995_v18 = vsel %vm10302_vm8, %v10208_v15, %v1991_v10  ;;  %v10317_v3 = vpop.f32.mrf.mxu0  ;;  %v2916_v63 = vsub.f32 %v12948_v9, %v10028_v54  ;;  %v2564_v40 = vand.u32 2147483648, %v2366_v52  ;;  %vm2558_vm10 = vweird.f32 %v2366_v52 }
 0x448   : > { %6961 = vst [vmem:[%s9247_s28 + $0xf0] sm:$0xff] %v1986_v38  ;;  %v2000_v41 = vsel %vm1997_vm9, %v1999_v14, %v1995_v18  ;;  %v2938_v45 = vmul.f32 1.442695, %v2913_v47  ;;  %v2562_v27 = vand.u32 2147483647, %v2366_v52  ;;  %v12949_v18 = vld [vmem:[#allocation26_spill] sm:$0xff] }
 0x449   : > { %12945 = vst [vmem:[#allocation16_spill] sm:$0xff] %v10317_v3  ;;  %v2001_v48 = vmul.f32 %v12946_v58, %v2000_v41  ;;  %v2944_v26 = vmul.f32 1.442695, %v2916_v63  ;;  %v2565_v25 = vor.u32 1.1754944e-38, %v2564_v40  ;;  %v10351_v51 = vpop.f32.mrf.mxu1 }
 0x44a   : > { %7591 = vpow2.f32 %v2938_v45  ;;  %vm2563_vm13 = vcmp.eq.f32.partialorder %v2562_v27, 8.507059e+37 }
 0x44b   : > { %6962 = vst [vmem:[%s9247_s28 + $0xf8] sm:$0xff] %v2001_v48  ;;  %v2026_v15 = vpack.c.bf16 %v2001_v48, %v1986_v38  ;;  %7593 = vrcp.f32 %v2366_v52  ;;  %v10363_v48 = vpop.f32.mrf.mxu3 }
 0x44c   : > { %7595 = vpow2.f32 %v2944_v26 }
 0x44d   : > { %2978 = vadd.xlane.f32.xlu1 %v10296_v17  ;;  %2695 = vmatmul.bf16.gmra.mxu0 %v2635_v60  ;;  %v10325_v19 = vpop.xlane.xlu0 %2369 }
 0x44e   : > { %7597 = vrcp.f32 %v10325_v19  ;;  %vm2588_vm3 = vweird.f32 %v10325_v19  ;;  %v2592_v27 = vand.u32 2147483647, %v10325_v19 }
 0x44f   : > { %7061 = vmatmul.msk.bf16.gmra.mxu3 %vm902_vm0, %v4565_v37  ;;  %4100 = vmax.xlane.f32.xlu0 %v10314_v5  ;;  %v10369_v47 = vpop.f32.mrf.mxu0 }
 0x450   : > { %v10336_v1 = vpop.eup %7591  ;;  %12950 = vst [vmem:[#allocation25_spill] sm:$0xff] %v10369_v47  ;;  %vm2593_vm7 = vcmp.eq.f32.partialorder %v2592_v27, 8.507059e+37 }
 0x451   : > { %v7594_v35 = vpop.eup %7593  ;;  %v4050_v63 = vpop.f32.mrf.mxu1 }
 0x452   : > { %v2554_v54 = vmul.f32 %v7594_v35, %v2366_v52  ;;  %v10342_v12 = vpop.eup %7595  ;;  %vm2559_vm11 = vweird.f32 %v7594_v35 }
 0x453   : > { %2094 = vmatmul.bf16.gmra.mxu2 %v2026_v15  ;;  %vm2560_vm12 = vmor %vm2558_vm10, %vm2559_vm11 }
 0x454   : > { %v2555_v23 = vsub.f32 1.0, %v2554_v54  ;;  %v10348_v30 = vpop.eup %7597  ;;  %v2594_v54 = vand.u32 2147483648, %v10325_v19 }
 0x455   : > { %v5174_v20 = vpop.permute.xlu1 %5173  ;;  %v10332_v11 = vpop.xlane.xlu0 %2956  ;;  %v2584_v4 = vmul.f32 %v10348_v30, %v10325_v19  ;;  %vm2589_vm2 = vweird.f32 %v10348_v30 }
 0x456   : > { %7084 = vmatmul.msk.bf16.gmra.mxu1 %vm902_vm0, %v5174_v20  ;;  %v2556_v16 = vmul.f32 %v7594_v35, %v2555_v23  ;;  %7599 = vrcp.f32 %v10332_v11  ;;  %vm10391_vm6 = vmor %vm2588_vm3, %vm2589_vm2  ;;  %v3025_v27 = vand.u32 2147483648, %v10332_v11  ;;  %vm3019_vm3 = vweird.f32 %v10332_v11 }
 0x457   : > { %v2585_v52 = vsub.f32 1.0, %v2584_v4 }
 0x458   : > { %v2557_v10 = vadd.f32 %v7594_v35, %v2556_v16  ;;  %v10383_v16 = vsel %vm821_vm1, %v4050_v63, -1e+30 }
 0x459   : > { %v2586_v29 = vmul.f32 %v10348_v30, %v2585_v52 }
 0x45a   : > { %v2561_v38 = vsel %vm2560_vm12, %v7594_v35, %v2557_v10 }
 0x45b   : > { %v2566_v60 = vsel %vm2563_vm13, %v2565_v25, %v2561_v38  ;;  %v2587_v23 = vadd.f32 %v10348_v30, %v2586_v29 }
 0x45c   : > { %v10357_v14 = vmul.f32 %v12949_v18, %v2566_v60  ;;  %v10361_v41 = vpop.eup %7599 }
 0x45d   : > { %v5176_v22 = vpop.permute.xlu1 %5175  ;;  %v10340_v56 = vpop.xlane.xlu0 %4096  ;;  %v3015_v45 = vmul.f32 %v10361_v41, %v10332_v11  ;;  %v2591_v19 = vsel %vm10391_vm6, %v10348_v30, %v2587_v23  ;;  %vm3020_vm2 = vweird.f32 %v10361_v41 }
 0x45e   : > { %6983 = vst [vmem:[%s9247_s28 + $0x160] sm:$0xff] %v10357_v14 }
 0x463   : > { %4570 = vrot.lane.b32.xlu0 %v7896_v33, %s7946_s24 }
 0x466   : > { %7085 = vmatmul.msk.bf16.gmra.mxu1 %vm902_vm0, %v5176_v22  ;;  %4568 = vrot.lane.b32.xlu1 %v7897_v28, %s7946_s24 }
 0x46b   : > { %5181 = vrot.lane.b32.xlu0 %v7896_v33, %s7945_s23 }
 0x46c   : > { %2970 = vadd.xlane.f32.xlu2 %v10336_v1  ;;  %v10346_v55 = vpop.xlane.xlu0 %2962 }
 0x474   : > { %2976 = vadd.xlane.f32.xlu2 %v10342_v12 }
 0x47e   : > { %v2368_v0 = vpop.xlane.xlu2 %2367 }
 0x47f   : > { %7601 = vrcp.f32 %v2368_v0  ;;  %v4567_v37 = vpop.permute.xlu0 %4566  ;;  %v2579_v22 = vand.u32 2147483648, %v2368_v0  ;;  %v2577_v26 = vand.u32 2147483647, %v2368_v0  ;;  %vm2573_vm15 = vweird.f32 %v2368_v0 }
 0x480   : > { %7062 = vmatmul.msk.bf16.gmra.mxu3 %vm902_vm0, %v4567_v37 }
 0x481   : > { %vm2578_vm5 = vcmp.eq.f32.partialorder %v2577_v26, 8.507059e+37  ;;  %v2580_v38 = vor.u32 1.1754944e-38, %v2579_v22 }
 0x485   : > { %v7602_v58 = vpop.eup %7601 }
 0x486   : > { %v2569_v15 = vmul.f32 %v7602_v58, %v2368_v0  ;;  %v10365_v20 = vpop.xlane.xlu2 %2952  ;;  %vm2574_vm14 = vweird.f32 %v7602_v58  ;;  %v3016_v0 = vsub.f32 1.0, %v3015_v45  ;;  %v2595_v45 = vor.u32 1.1754944e-38, %v2594_v54  ;;  %v10414_v54 = vpop.f32.mrf.mxu0 }
 0x487   : > { %7603 = vrcp.f32 %v10365_v20  ;;  %vm10385_vm4 = vmor %vm2573_vm15, %vm2574_vm14  ;;  %v2993_v37 = vand.u32 2147483647, %v10365_v20  ;;  %12955 = vst [vmem:[#allocation4_spill] sm:$0xff] %v10414_v54  ;;  %vm2989_vm9 = vweird.f32 %v10365_v20 }
 0x488   : > { %v2570_v33 = vsub.f32 1.0, %v2569_v15  ;;  %v10373_v9 = vpop.xlane.xlu1 %2954  ;;  %v2995_v15 = vand.u32 2147483648, %v10365_v20  ;;  %v2596_v23 = vsel %vm2593_vm7, %v2595_v45, %v2591_v19 }
 0x489   : > { %7605 = vrcp.f32 %v10373_v9  ;;  %v3008_v30 = vand.u32 2147483647, %v10373_v9  ;;  %vm2994_vm12 = vcmp.eq.f32.partialorder %v2993_v37, 8.507059e+37  ;;  %vm3004_vm13 = vweird.f32 %v10373_v9 }
 0x48a   : > { %v2571_v35 = vmul.f32 %v7602_v58, %v2570_v33  ;;  %7607 = vrcp.f32 %v10346_v55  ;;  %v3439_v33 = vpop.f32.mrf.mxu3 }
 0x48b   : > { %vm10434_vm14 = vcmp.eq.f32.partialorder %v3008_v30, 8.507059e+37  ;;  %v3023_v30 = vand.u32 2147483647, %v10332_v11 }
 0x48c   : > { %5179 = vrot.lane.b32.xlu2 %v7897_v28, %s7945_s23  ;;  %v2572_v40 = vadd.f32 %v7602_v58, %v2571_v35  ;;  %v3010_v35 = vand.u32 2147483648, %v10373_v9 }
 0x48d   : > { %v7604_v25 = vpop.eup %7603 }
 0x48e   : > { %v2985_v28 = vmul.f32 %v7604_v25, %v10365_v20  ;;  %v10397_v60 = vpop.xlane.xlu2 %2958  ;;  %v2576_v18 = vsel %vm10385_vm4, %v7602_v58, %v2572_v40  ;;  %vm2990_vm8 = vweird.f32 %v7604_v25  ;;  %vm3021_vm4 = vmor %vm3019_vm3, %vm3020_vm2  ;;  %vm3064_vm3 = vweird.f32 %v10346_v55 }
 0x48f   : > { %v7606_v52 = vpop.eup %7605  ;;  %7609 = vrcp.f32 %v10397_v60  ;;  %v2581_v29 = vsel %vm2578_vm5, %v2580_v38, %v2576_v18  ;;  %v12956_v18 = vld [vmem:[#allocation17_spill] sm:$0xff]  ;;  %vm2991_vm11 = vmor %vm2989_vm9, %vm2990_vm8  ;;  %vm3024_vm5 = vcmp.eq.f32.partialorder %v3023_v30, 8.507059e+37  ;;  %vm3034_vm7 = vweird.f32 %v10397_v60  ;;  %v12960_v30 = vld [vmem:[#allocation22_spill] sm:$0xff] }
 0x490   : > { %v2986_v63 = vsub.f32 1.0, %v2985_v28  ;;  %v3000_v22 = vmul.f32 %v7606_v52, %v10373_v9  ;;  %4104 = vmax.xlane.f32.xlu1 %v10383_v16  ;;  %v10408_v26 = vpop.xlane.xlu1 %2371  ;;  %v2582_v58 = vmul.f32 %v9853_v34, %v2581_v29  ;;  %v10418_v4 = vpop.eup %7607  ;;  %v3017_v34 = vmul.f32 %v10361_v41, %v3016_v0 }
 0x491   : > { %7611 = vrcp.f32 %v10408_v26  ;;  %v10424_v28 = vsel %vm821_vm1, %v3439_v33, -1e+30  ;;  %v10427_v19 = vmul.f32 %v12956_v18, %v2596_v23  ;;  %vm3005_vm10 = vweird.f32 %v7606_v52 }
 0x492   : > { %v2987_v40 = vmul.f32 %v7604_v25, %v2986_v63  ;;  %v3001_v10 = vsub.f32 1.0, %v3000_v22  ;;  %6984 = vst [vmem:[%s9247_s28 + $0x168] sm:$0xff] %v2582_v58  ;;  %v2636_v38 = vpack.c.bf16 %v2582_v58, %v10357_v14  ;;  %v2996_v0 = vor.u32 1.1754944e-38, %v2995_v15  ;;  %vm3006_vm15 = vmor %vm3004_vm13, %vm3005_vm10 }
 0x493   : > { %6985 = vst [vmem:[%s9247_s28 + $0x170] sm:$0xff] %v10427_v19  ;;  %v3011_v22 = vor.u32 1.1754944e-38, %v3010_v35  ;;  %v3018_v9 = vadd.f32 %v10361_v41, %v3017_v34  ;;  %v3060_v18 = vmul.f32 %v10418_v4, %v10346_v55  ;;  %v2607_v11 = vand.u32 2147483647, %v10408_v26 }
 0x494   : > { %v2988_v29 = vadd.f32 %v7604_v25, %v2987_v40  ;;  %v3002_v45 = vmul.f32 %v7606_v52, %v3001_v10  ;;  %2700 = vmatmul.bf16.gmra.mxu0 %v2636_v38  ;;  %v3026_v33 = vor.u32 1.1754944e-38, %v3025_v27  ;;  %vm2603_vm9 = vweird.f32 %v10408_v26 }
 0x495   : > { %v10430_v14 = vpop.eup %7609  ;;  %3493 = vmax.xlane.f32.xlu0 %v10424_v28  ;;  %vm3065_vm2 = vweird.f32 %v10418_v4 }
 0x496   : > { %v2992_v20 = vsel %vm2991_vm11, %v7604_v25, %v2988_v29  ;;  %v3003_v63 = vadd.f32 %v7606_v52, %v3002_v45  ;;  %v3030_v58 = vmul.f32 %v10430_v14, %v10397_v60  ;;  %v10443_v23 = vpop.xlane.xlu2 %3489  ;;  %vm3035_vm8 = vweird.f32 %v10430_v14 }
 0x497   : > { %v7612_v37 = vpop.eup %7611  ;;  %v2997_v15 = vsel %vm2994_vm12, %v2996_v0, %v2992_v20  ;;  %v2609_v0 = vand.u32 2147483648, %v10408_v26  ;;  %v10467_v20 = vpop.f32.mrf.mxu0  ;;  %vm10480_vm10 = vmor %vm3034_vm7, %vm3035_vm8  ;;  %vm2608_vm12 = vcmp.eq.f32.partialorder %v2607_v11, 8.507059e+37 }
 0x498   : > { %v3007_v40 = vsel %vm3006_vm15, %v7606_v52, %v3003_v63  ;;  %v3031_v25 = vsub.f32 1.0, %v3030_v58  ;;  %v2599_v35 = vmul.f32 %v7612_v37, %v10408_v26  ;;  %v10450_v10 = vpop.xlane.xlu1 %2960  ;;  %v2998_v38 = vmul.f32 %v9884_v50, %v2997_v15  ;;  %12959 = vst [vmem:[#allocation29_spill] sm:$0xff] %v10467_v20 }
 0x499   : > { %v3012_v34 = vsel %vm10434_vm14, %v3011_v22, %v3007_v40  ;;  %7613 = vrcp.f32 %v10450_v10  ;;  %v3040_v52 = vand.u32 2147483648, %v10397_v60  ;;  %vm2604_vm6 = vweird.f32 %v7612_v37 }
 0x49a   : > { %v3032_v29 = vmul.f32 %v10430_v14, %v3031_v25  ;;  %v2600_v45 = vsub.f32 1.0, %v2599_v35  ;;  %6995 = vst [vmem:[%s9247_s28 + $0x180] sm:$0xff] %v2998_v38  ;;  %v3013_v50 = vmul.f32 %v9892_v49, %v3012_v34  ;;  %v3022_v22 = vsel %vm3021_vm4, %v10361_v41, %v3018_v9  ;;  %vm2605_vm11 = vmor %vm2603_vm9, %vm2604_vm6 }
 0x49b   : > { %v3027_v49 = vsel %vm3024_vm5, %v3026_v33, %v3022_v22  ;;  %v3038_v9 = vand.u32 2147483647, %v10397_v60  ;;  %v2610_v34 = vor.u32 1.1754944e-38, %v2609_v0  ;;  %vm3049_vm15 = vweird.f32 %v10450_v10  ;;  %vm3066_vm5 = vmor %vm3064_vm3, %vm3065_vm2 }
 0x49c   : > { %v2601_v63 = vmul.f32 %v7612_v37, %v2600_v45  ;;  %v3033_v58 = vadd.f32 %v10430_v14, %v3032_v29  ;;  %6996 = vst [vmem:[%s9247_s28 + $0x188] sm:$0xff] %v3013_v50  ;;  %v3241_v15 = vpack.c.bf16 %v3013_v50, %v2998_v38  ;;  %v10478_v25 = vmul.f32 %v12960_v30, %v3027_v49 }
 0x49d   : > { %v3061_v38 = vsub.f32 1.0, %v3060_v18  ;;  %v3041_v29 = vor.u32 1.1754944e-38, %v3040_v52  ;;  %vm3039_vm13 = vcmp.eq.f32.partialorder %v3038_v9, 8.507059e+37  ;;  %v3070_v49 = vand.u32 2147483648, %v10346_v55 }
 0x49e   : > { %v10475_v40 = vpop.xlane.xlu2 %2964  ;;  %v2602_v27 = vadd.f32 %v7612_v37, %v2601_v63  ;;  %3281 = vmatmul.bf16.vlgmr.msra.gmra.mxu2 %v3241_v15  ;;  %v3037_v26 = vsel %vm10480_vm10, %v10430_v14, %v3033_v58  ;;  %6997 = vst [vmem:[%s9247_s28 + $0x190] sm:$0xff] %v10478_v25 }
 0x49f   : > { %v7614_v35 = vpop.eup %7613  ;;  %v3042_v18 = vsel %vm3039_vm13, %v3041_v29, %v3037_v26  ;;  %7615 = vrcp.f32 %v10475_v40  ;;  %v3062_v52 = vmul.f32 %v10418_v4, %v3061_v38  ;;  %v10503_v15 = vpop.f32.mrf.mxu0  ;;  %v3068_v38 = vand.u32 2147483647, %v10346_v55 }
 0x4a0   : > { %v3045_v45 = vmul.f32 %v7614_v35, %v10450_v10  ;;  %v10490_v50 = vpop.xlane.xlu1 %4094  ;;  %v2606_v33 = vsel %vm2605_vm11, %v7612_v37, %v2602_v27  ;;  %v3043_v14 = vmul.f32 %v9997_v31, %v3042_v18  ;;  %v12963_v37 = vld [vmem:[#allocation19_spill] sm:$0xff]  ;;  %12964 = vst [vmem:[#allocation23_spill] sm:$0xff] %v10503_v15  ;;  %v3055_v27 = vand.u32 2147483648, %v10450_v10 }
 0x4a1   : > { %v2611_v60 = vsel %vm2608_vm12, %v2610_v34, %v2606_v33  ;;  %v2919_v11 = vsub.f32 %v12963_v37, %v10285_v57  ;;  %vm3050_vm14 = vweird.f32 %v7614_v35  ;;  %v3053_v31 = vand.u32 2147483647, %v10450_v10  ;;  %v10521_v34 = vld [vmem:[#allocation2 + $0x40] sm:$0xff]  ;;  %v7899_v10 = vld [vmem:[#allocation2 + $0x8] sm:$0xff]  ;;  %v10536_v37 = vld [vmem:[#allocation2 + $0xb8] sm:$0xff] }
 0x4a2   : > { %v3046_v63 = vsub.f32 1.0, %v3045_v45  ;;  %v2612_v0 = vmul.f32 %v9994_v2, %v2611_v60  ;;  %6998 = vst [vmem:[%s9247_s28 + $0x198] sm:$0xff] %v3043_v14  ;;  %vm10515_vm4 = vmor %vm3049_vm15, %vm3050_vm14  ;;  %v3056_v45 = vor.u32 1.1754944e-38, %v3055_v27  ;;  %v3071_v55 = vor.u32 1.1754944e-38, %v3070_v49 }
 0x4a3   : > { %v2950_v29 = vmul.f32 1.442695, %v2919_v11  ;;  %vm3054_vm6 = vcmp.eq.f32.partialorder %v3053_v31, 8.507059e+37  ;;  %vm3069_vm7 = vcmp.eq.f32.partialorder %v3068_v38, 8.507059e+37  ;;  %v3085_v11 = vand.u32 2147483648, %v10475_v40  ;;  %v10548_v31 = vld [vmem:[#allocation2 + $0x20] sm:$0xff] }
 0x4a4   : > { %v3047_v22 = vmul.f32 %v7614_v35, %v3046_v63  ;;  %6986 = vst [vmem:[%s9247_s28 + $0x178] sm:$0xff] %v2612_v0  ;;  %v2637_v58 = vpack.c.bf16 %v2612_v0, %v10427_v19  ;;  %v3063_v19 = vadd.f32 %v10418_v4, %v3062_v52  ;;  %v3242_v0 = vpack.c.bf16 %v3043_v14, %v10478_v25 }
 0x4a5   : > { %v7616_v57 = vpop.eup %7615  ;;  %vm3079_vm8 = vweird.f32 %v10475_v40  ;;  %v3083_v27 = vand.u32 2147483647, %v10475_v40  ;;  %v3086_v9 = vor.u32 1.1754944e-38, %v3085_v11 }
 0x4a6   : > { %v5178_v30 = vpop.permute.xlu2 %5177  ;;  %2705 = vmatmul.bf16.gmra.mxu0 %v2637_v58  ;;  %v3048_v2 = vadd.f32 %v7614_v35, %v3047_v22  ;;  %v3067_v33 = vsel %vm3066_vm5, %v10418_v4, %v3063_v19  ;;  %v3075_v60 = vmul.f32 %v7616_v57, %v10475_v40  ;;  %vm3080_vm9 = vweird.f32 %v7616_v57 }
 0x4a7   : > { %7086 = vmatmul.msk.bf16.gmra.mxu1 %vm902_vm0, %v5178_v30  ;;  %v3072_v63 = vsel %vm3069_vm7, %v3071_v55, %v3067_v33  ;;  %vm3081_vm10 = vmor %vm3079_vm8, %vm3080_vm9  ;;  %vm3084_vm13 = vcmp.eq.f32.partialorder %v3083_v27, 8.507059e+37 }
 0x4a8   : > { %v10513_v41 = vpop.xlane.xlu1 %2966  ;;  %v3052_v26 = vsel %vm10515_vm4, %v7614_v35, %v3048_v2  ;;  %v3073_v35 = vmul.f32 %v9799_v43, %v3072_v63  ;;  %v3076_v58 = vsub.f32 1.0, %v3075_v60 }
 0x4a9   : > { %7617 = vrcp.f32 %v10513_v41  ;;  %4572 = vrot.lane.b32.xlu0 %v10521_v34, %s7946_s24  ;;  %4485 = vrot.lane.b32.xlu1 %v7899_v10, %s7944_s17  ;;  %v3057_v18 = vsel %vm3054_vm6, %v3056_v45, %v3052_v26  ;;  %v3100_v2 = vand.u32 2147483648, %v10513_v41  ;;  %vm3094_vm12 = vweird.f32 %v10513_v41 }
 0x4aa   : > { %v3058_v52 = vmul.f32 %v10052_v61, %v3057_v18  ;;  %7619 = vpow2.f32 %v2950_v29  ;;  %7000 = vst [vmem:[%s9247_s28 + $0x1a8] sm:$0xff] %v3073_v35  ;;  %v3077_v14 = vmul.f32 %v7616_v57, %v3076_v58  ;;  %v3098_v38 = vand.u32 2147483647, %v10513_v41 }
 0x4ab   : > { %v10557_v26 = vsel %vm821_vm1, %v10351_v51, -1e+30  ;;  %v3101_v55 = vor.u32 1.1754944e-38, %v3100_v2  ;;  %v10569_v51 = vsel %vm821_vm1, %v10363_v48, -1e+30  ;;  %v4127_v48 = vsub.f32 %v9693_v32, %v10340_v56 }
 0x4ac   : > { %6999 = vst [vmem:[%s9247_s28 + $0x1a0] sm:$0xff] %v3058_v52  ;;  %v3078_v49 = vadd.f32 %v7616_v57, %v3077_v14  ;;  %v3243_v33 = vpack.c.bf16 %v3073_v35, %v3058_v52  ;;  %vm3099_vm15 = vcmp.eq.f32.partialorder %v3098_v38, 8.507059e+37  ;;  %v10576_v35 = vpop.f32.mrf.mxu1 }
 0x4ad   : > { %v4144_v56 = vmul.f32 1.442695, %v4127_v48 }
 0x4ae   : > { %3286 = vmatmul.bf16.gmra.mxu2 %v3242_v0  ;;  %v3082_v19 = vsel %vm3081_vm10, %v7616_v57, %v3078_v49 }
 0x4af   : > { %v7618_v22 = vpop.eup %7617  ;;  %v3087_v40 = vsel %vm3084_vm13, %v3086_v9, %v3082_v19 }
 0x4b0   : > { %v3090_v4 = vmul.f32 %v7618_v22, %v10513_v41  ;;  %v10541_v61 = vpop.eup %7619  ;;  %vm3095_vm11 = vweird.f32 %v7618_v22  ;;  %v10559_v29 = vpop.xlane.xlu1 %4098  ;;  %v3088_v57 = vmul.f32 %v10091_v21, %v3087_v40 }
 0x4b1   : > { %4481 = vrot.lane.b32.xlu0 %v10536_v37, %s7944_s17  ;;  %3874 = vrot.lane.b32.xlu1 %v7899_v10, %s7940_s13  ;;  %v2969_v10 = vpop.xlane.xlu0 %2968  ;;  %vm3096_vm14 = vmor %vm3094_vm12, %vm3095_vm11 }
 0x4b2   : > { %v3091_v25 = vsub.f32 1.0, %v3090_v4  ;;  %7621 = vrcp.f32 %v2969_v10  ;;  %7001 = vst [vmem:[%s9247_s28 + $0x1b0] sm:$0xff] %v3088_v57  ;;  %vm3109_vm2 = vweird.f32 %v2969_v10  ;;  %v3113_v14 = vand.u32 2147483647, %v2969_v10 }
 0x4b4   : > { %v3092_v43 = vmul.f32 %v7618_v22, %v3091_v25  ;;  %vm3114_vm5 = vcmp.eq.f32.partialorder %v3113_v14, 8.507059e+37  ;;  %v4055_v32 = vpop.f32.mrf.mxu1 }
 0x4b5   : > { %2982 = vadd.xlane.f32.xlu2 %v10541_v61 }
 0x4b6   : > { %v3093_v30 = vadd.f32 %v7618_v22, %v3092_v43  ;;  %v4126_v43 = vsub.f32 %v10079_v59, %v10490_v50  ;;  %v10598_v59 = vsel %vm821_vm1, %v4055_v32, -1e+30 }
 0x4b8   : > { %v3097_v45 = vsel %vm3096_vm14, %v7618_v22, %v3093_v30  ;;  %v7622_v18 = vpop.eup %7621  ;;  %v10572_v21 = vpop.xlane.xlu1 %2972  ;;  %v4142_v19 = vmul.f32 1.442695, %v4126_v43 }
 0x4b9   : > { %3872 = vrot.lane.b32.xlu0 %v10548_v31, %s7940_s13  ;;  %v3102_v41 = vsel %vm3099_vm15, %v3101_v55, %v3097_v45  ;;  %v3105_v63 = vmul.f32 %v7622_v18, %v2969_v10  ;;  %v10574_v52 = vpop.xlane.xlu0 %2974  ;;  %7623 = vrcp.f32 %v10572_v21  ;;  %vm3110_vm3 = vweird.f32 %v7622_v18 }
 0x4ba   : > { %v3103_v60 = vmul.f32 %v10148_v53, %v3102_v41  ;;  %v3115_v53 = vand.u32 2147483648, %v2969_v10  ;;  %vm3111_vm4 = vmor %vm3109_vm2, %vm3110_vm3  ;;  %7625 = vrcp.f32 %v10574_v52  ;;  %v12967_v10 = vld [vmem:[#allocation5_spill] sm:$0xff]  ;;  %vm3154_vm6 = vweird.f32 %v10574_v52 }
 0x4bb   : > { %v3106_v0 = vsub.f32 1.0, %v3105_v63  ;;  %7627 = vpow2.f32 %v4144_v56  ;;  %v3145_v43 = vand.u32 2147483648, %v10572_v21  ;;  %vm3139_vm7 = vweird.f32 %v10572_v21 }
 0x4bc   : > { %7002 = vst [vmem:[%s9247_s28 + $0x1b8] sm:$0xff] %v3103_v60  ;;  %v3244_v22 = vpack.c.bf16 %v3103_v60, %v3088_v57  ;;  %v3116_v11 = vor.u32 1.1754944e-38, %v3115_v53  ;;  %7629 = vpow2.f32 %v4142_v19  ;;  %v10626_v53 = vpop.f32.mrf.mxu2 }
 0x4bd   : > { %4102 = vmax.xlane.f32.xlu2 %v10557_v26  ;;  %v3107_v58 = vmul.f32 %v7622_v18, %v3106_v0  ;;  %12969 = vst [vmem:[#allocation15_spill] sm:$0xff] %v10626_v53 }
 0x4be   : > { %3291 = vmatmul.bf16.gmra.mxu2 %v3243_v33 }
 0x4bf   : > { %v3108_v25 = vadd.f32 %v7622_v18, %v3107_v58  ;;  %v10591_v38 = vpop.eup %7623 }
 0x4c0   : > { %v10578_v4 = vpop.xlane.xlu1 %2978  ;;  %v10600_v50 = vpop.eup %7625  ;;  %v3135_v57 = vmul.f32 %v10591_v38, %v10572_v21  ;;  %vm3140_vm9 = vweird.f32 %v10591_v38 }
 0x4c1   : > { %v3112_v49 = vsel %vm3111_vm4, %v7622_v18, %v3108_v25  ;;  %v10586_v27 = vpop.xlane.xlu0 %2980  ;;  %v3150_v45 = vmul.f32 %v10600_v50, %v10574_v52  ;;  %7631 = vrcp.f32 %v10578_v4  ;;  %v10617_v18 = vpop.eup %7627  ;;  %vm3141_vm10 = vmor %vm3139_vm7, %vm3140_vm9  ;;  %vm3155_vm11 = vweird.f32 %v10600_v50 }
 0x4c2   : > { %v3117_v30 = vsel %vm3114_vm5, %v3116_v11, %v3112_v49  ;;  %v3136_v41 = vsub.f32 1.0, %v3135_v57  ;;  %v10619_v63 = vpop.eup %7629  ;;  %v3160_v11 = vand.u32 2147483648, %v10574_v52  ;;  %vm3156_vm13 = vmor %vm3154_vm6, %vm3155_vm11  ;;  %vm3184_vm6 = vweird.f32 %v10578_v4 }
 0x4c3   : > { %v10589_v2 = vmul.f32 %v10176_v36, %v3117_v30  ;;  %v12968_v36 = vld [vmem:[#allocation13_spill] sm:$0xff]  ;;  %v3151_v0 = vsub.f32 1.0, %v3150_v45  ;;  %v3146_v45 = vor.u32 1.1754944e-38, %v3145_v43 }
 0x4c4   : > { %v3516_v40 = vsub.f32 %v12968_v36, %v12967_v10  ;;  %v3137_v58 = vmul.f32 %v10591_v38, %v3136_v41  ;;  %v3158_v41 = vand.u32 2147483647, %v10574_v52 }
 0x4c5   : > { %3491 = vmax.xlane.f32.xlu2 %v10569_v51  ;;  %7003 = vst [vmem:[%s9247_s28 + $0x1c0] sm:$0xff] %v10589_v2  ;;  %v3152_v14 = vmul.f32 %v10600_v50, %v3151_v0 }
 0x4c6   : > { %v3533_v55 = vmul.f32 1.442695, %v3516_v40  ;;  %v3138_v10 = vadd.f32 %v10591_v38, %v3137_v58  ;;  %v3143_v40 = vand.u32 2147483647, %v10572_v21  ;;  %v3161_v21 = vor.u32 1.1754944e-38, %v3160_v11 }
 0x4c7   : > { %vm3159_vm14 = vcmp.eq.f32.partialorder %v3158_v41, 8.507059e+37 }
 0x4c8   : > { %vm3144_vm12 = vcmp.eq.f32.partialorder %v3143_v40, 8.507059e+37 }
 0x4c9   : > { %v10614_v60 = vpop.xlane.xlu0 %4100 }
 0x4ce   : > { %3296 = vmatmul.bf16.gmra.mxu2 %v3244_v22  ;;  %v3442_v22 = vpop.f32.mrf.mxu3 }
 0x4cf   : > { %v10630_v25 = vsel %vm821_vm1, %v3442_v22, -1e+30  ;;  %v3142_v22 = vsel %vm3141_vm10, %v10591_v38, %v3138_v10 }
 0x4d0   : > { %v3147_v43 = vsel %vm3144_vm12, %v3146_v45, %v3142_v22 }
 0x4d5   : > { %v4571_v56 = vpop.permute.xlu0 %4570 }
 0x4d6   : > { %v3444_v38 = vpop.f32.mrf.mxu3 }
 0x4d7   : > { %v10678_v41 = vsel %vm821_vm1, %v3444_v38, -1e+30 }
 0x4d8   : > { %v4569_v9 = vpop.permute.xlu1 %4568 }
 0x4d9   : > { %7063 = vmatmul.msk.bf16.gmra.mxu3 %vm902_vm0, %v4569_v9 }
 0x4db   : > { %4108 = vmax.xlane.f32.xlu1 %v10598_v59 }
 0x4dd   : > { %4483 = vrot.lane.b32.xlu2 %v10548_v31, %s7944_s17  ;;  %v10623_v31 = vpop.eup %7631 }
 0x4de   : > { %v3180_v49 = vmul.f32 %v10623_v31, %v10578_v4 }
 0x4df   : > { %v10612_v33 = vpop.xlane.xlu2 %2970 }
 0x4e0   : > { %7633 = vrcp.f32 %v10612_v33  ;;  %v3130_v19 = vand.u32 2147483648, %v10612_v33  ;;  %v3128_v9 = vand.u32 2147483647, %v10612_v33  ;;  %v3181_v58 = vsub.f32 1.0, %v3180_v49  ;;  %v10666_v49 = vpop.f32.mrf.mxu2 }
 0x4e1   : > { %7635 = vpow2.f32 %v3533_v55  ;;  %v3153_v55 = vadd.f32 %v10600_v50, %v3152_v14  ;;  %vm3124_vm15 = vweird.f32 %v10612_v33  ;;  %12970 = vst [vmem:[#allocation8_spill] sm:$0xff] %v10666_v49 }
 0x4e2   : > { %v3131_v52 = vor.u32 1.1754944e-38, %v3130_v19  ;;  %vm3129_vm3 = vcmp.eq.f32.partialorder %v3128_v9, 8.507059e+37 }
 0x4e3   : > { %4174 = vadd.xlane.f32.xlu1 %v10619_v63  ;;  %4176 = vadd.xlane.f32.xlu0 %v10617_v18  ;;  %v3157_v14 = vsel %vm3156_vm13, %v10600_v50, %v3153_v55  ;;  %vm3199_vm13 = vweird.f32 %v10586_v27 }
 0x4e6   : > { %v7634_v48 = vpop.eup %7633 }
 0x4e7   : > { %v3120_v30 = vmul.f32 %v7634_v48, %v10612_v33  ;;  %v10640_v32 = vpop.xlane.xlu2 %2976  ;;  %vm3125_vm8 = vweird.f32 %v7634_v48  ;;  %v10649_v57 = vpop.eup %7635 }
 0x4e8   : > { %7637 = vrcp.f32 %v10640_v32  ;;  %vm3126_vm2 = vmor %vm3124_vm15, %vm3125_vm8  ;;  %v3175_v55 = vand.u32 2147483648, %v10640_v32  ;;  %vm3169_vm4 = vweird.f32 %v10640_v32  ;;  %vm3185_vm8 = vweird.f32 %v10623_v31 }
 0x4e9   : > { %v3121_v36 = vsub.f32 1.0, %v3120_v30  ;;  %7064 = vmatmul.msk.bf16.gmra.mxu3 %vm902_vm0, %v4571_v56  ;;  %v3148_v56 = vmul.f32 %v10268_v62, %v3147_v43  ;;  %v3182_v62 = vmul.f32 %v10623_v31, %v3181_v58  ;;  %7639 = vrcp.f32 %v10586_v27  ;;  %vm3186_vm9 = vmor %vm3184_vm6, %vm3185_vm8  ;;  %v10690_v43 = vpop.f32.mrf.mxu2 }
 0x4eb   : > { %v3122_v0 = vmul.f32 %v7634_v48, %v3121_v36  ;;  %3495 = vmax.xlane.f32.xlu1 %v10630_v25  ;;  %3565 = vadd.xlane.f32.xlu0 %v10649_v57  ;;  %v3162_v36 = vsel %vm3159_vm14, %v3161_v21, %v3157_v14  ;;  %7005 = vst [vmem:[%s9247_s28 + $0x1d0] sm:$0xff] %v3148_v56  ;;  %v3188_v21 = vand.u32 2147483647, %v10578_v4 }
 0x4ec   : > { %v3163_v11 = vmul.f32 %v10229_v24, %v3162_v36  ;;  %v3190_v24 = vand.u32 2147483648, %v10578_v4 }
 0x4ed   : > { %v3123_v30 = vadd.f32 %v7634_v48, %v3122_v0  ;;  %v3173_v0 = vand.u32 2147483647, %v10640_v32  ;;  %vm3189_vm11 = vcmp.eq.f32.partialorder %v3188_v21, 8.507059e+37 }
 0x4ee   : > { %v7638_v8 = vpop.eup %7637  ;;  %7006 = vst [vmem:[%s9247_s28 + $0x1d8] sm:$0xff] %v3163_v11  ;;  %v3191_v58 = vor.u32 1.1754944e-38, %v3190_v24 }
 0x4ef   : > { %v3165_v50 = vmul.f32 %v7638_v8, %v10640_v32  ;;  %v5180_v10 = vpop.permute.xlu2 %5179  ;;  %v3127_v40 = vsel %vm3126_vm2, %v7634_v48, %v3123_v30  ;;  %vm3170_vm5 = vweird.f32 %v7638_v8  ;;  %vm3174_vm10 = vcmp.eq.f32.partialorder %v3173_v0, 8.507059e+37  ;;  %v7640_v4 = vpop.eup %7639 }
 0x4f0   : > { %7087 = vmatmul.msk.bf16.gmra.mxu1 %vm902_vm0, %v5180_v10  ;;  %v3132_v33 = vsel %vm3129_vm3, %v3131_v52, %v3127_v40  ;;  %vm3171_vm7 = vmor %vm3169_vm4, %vm3170_vm5  ;;  %v5182_v10 = vpop.permute.xlu0 %5181  ;;  %v7902_v40 = vld [vmem:[#allocation2 + $0x80] sm:$0xff]  ;;  %vm3200_vm12 = vweird.f32 %v7640_v4 }
 0x4f1   : > { %v3166_v45 = vsub.f32 1.0, %v3165_v50  ;;  %v3133_v19 = vmul.f32 %v10336_v1, %v3132_v33  ;;  %v3183_v1 = vadd.f32 %v10623_v31, %v3182_v62  ;;  %v3195_v50 = vmul.f32 %v7640_v4, %v10586_v27  ;;  %vm3201_vm14 = vmor %vm3199_vm13, %vm3200_vm12 }
 0x4f2   : > { %v3246_v62 = vpack.c.bf16 %v3163_v11, %v3148_v56  ;;  %v3205_v33 = vand.u32 2147483648, %v10586_v27 }
 0x4f3   : > { %v3167_v48 = vmul.f32 %v7638_v8, %v3166_v45  ;;  %3497 = vmax.xlane.f32.xlu1 %v10678_v41  ;;  %7004 = vst [vmem:[%s9247_s28 + $0x1c8] sm:$0xff] %v3133_v19  ;;  %v3245_v9 = vpack.c.bf16 %v3133_v19, %v10589_v2  ;;  %v3176_v2 = vor.u32 1.1754944e-38, %v3175_v55  ;;  %v3187_v14 = vsel %vm3186_vm9, %v10623_v31, %v3183_v1  ;;  %v7903_v1 = vld [vmem:[#allocation2 + $0x58] sm:$0xff] }
 0x4f4   : > { %v3192_v36 = vsel %vm3189_vm11, %v3191_v58, %v3187_v14  ;;  %v3196_v31 = vsub.f32 1.0, %v3195_v50  ;;  %v3203_v45 = vand.u32 2147483647, %v10586_v27 }
 0x4f5   : > { %3301 = vmatmul.bf16.gmra.mxu2 %v3245_v9  ;;  %v3168_v22 = vadd.f32 %v7638_v8, %v3167_v48  ;;  %v3193_v52 = vmul.f32 %v10296_v17, %v3192_v36  ;;  %v3447_v36 = vpop.f32.mrf.mxu3 }
 0x4f6   : > { %v3197_v17 = vmul.f32 %v7640_v4, %v3196_v31  ;;  %vm3204_vm15 = vcmp.eq.f32.partialorder %v3203_v45, 8.507059e+37 }
 0x4f7   : > { %v3172_v32 = vsel %vm3171_vm7, %v7638_v8, %v3168_v22  ;;  %7008 = vst [vmem:[%s9247_s28 + $0x1e8] sm:$0xff] %v3193_v52  ;;  %v10700_v8 = vpop.f32.mrf.mxu2 }
 0x4f8   : > { %v3177_v30 = vsel %vm3174_vm10, %v3176_v2, %v3172_v32  ;;  %v3198_v56 = vadd.f32 %v7640_v4, %v3197_v17  ;;  %v7904_v2 = vld [vmem:[#allocation2 + $0x30] sm:$0xff] }
 0x4f9   : > { %v3178_v38 = vmul.f32 %v10342_v12, %v3177_v30  ;;  %v10705_v12 = vsel %vm821_vm1, %v10576_v35, -1e+30  ;;  %v3206_v35 = vor.u32 1.1754944e-38, %v3205_v33 }
 0x4fa   : > { %v3202_v11 = vsel %vm3201_vm14, %v7640_v4, %v3198_v56  ;;  %v10740_v4 = vsel %vm821_vm1, %v3447_v36, -1e+30 }
 0x4fb   : > { %7007 = vst [vmem:[%s9247_s28 + $0x1e0] sm:$0xff] %v3178_v38  ;;  %v3207_v24 = vsel %vm3204_vm15, %v3206_v35, %v3202_v11  ;;  %v3247_v0 = vpack.c.bf16 %v3193_v52, %v3178_v38  ;;  %v7905_v52 = vld [vmem:[#allocation2 + $0x78] sm:$0xff] }
 0x4fc   : > { %v3208_v55 = vmul.f32 %v10280_v13, %v3207_v24 }
 0x4fd   : > { %v3449_v45 = vpop.f32.mrf.mxu3 }
 0x4fe   : > { %7009 = vst [vmem:[%s9247_s28 + $0x1f0] sm:$0xff] %v3208_v55  ;;  %v10752_v24 = vsel %vm821_vm1, %v3449_v45, -1e+30  ;;  %v7907_v45 = vld [vmem:[#allocation2 + $0x68] sm:$0xff] }
 0x4ff   : > { %3868 = vrot.lane.b32.xlu0 %v7902_v40, %s7940_s13  ;;  %v10710_v19 = vpop.f32.mrf.mxu2 }
 0x500   : > { %7088 = vmatmul.msk.bf16.gmra.mxu1 %vm902_vm0, %v5182_v10  ;;  %12971 = vst [vmem:[#allocation20_spill] sm:$0xff] %v10710_v19 }
 0x503   : > { %v10717_v48 = vpop.xlane.xlu1 %4104 }
 0x505   : > { %3306 = vmatmul.bf16.gmra.mxu2 %v3246_v62 }
 0x506   : > { %4106 = vmax.xlane.f32.xlu2 %v10705_v12 }
 0x507   : > { %v10722_v27 = vpop.f32.mrf.mxu2 }
 0x508   : > { %v10719_v9 = vpop.xlane.xlu0 %3493  ;;  %12972 = vst [vmem:[#allocation28_spill] sm:$0xff] %v10722_v27 }
 0x50c   : > { %3870 = vrot.lane.b32.xlu1 %v10536_v37, %s7940_s13  ;;  %v10724_v37 = vpop.f32.mrf.mxu1 }
 0x50f   : > { %v10745_v62 = vpop.f32.mrf.mxu2 }
 0x510   : > { %12973 = vst [vmem:[#allocation21_spill] sm:$0xff] %v10745_v62 }
 0x514   : > { %4477 = vrot.lane.b32.xlu1 %v7903_v1, %s7944_s17  ;;  %v4060_v32 = vpop.f32.mrf.mxu1 }
 0x515   : > { %3311 = vmatmul.bf16.gmra.mxu2 %v3247_v0  ;;  %v10734_v14 = vsel %vm821_vm1, %v4060_v32, -1e+30  ;;  %v12975_v32 = vld [vmem:[#allocation31_spill] sm:$0xff] }
 0x51b   : > { %v4486_v22 = vpop.permute.xlu1 %4485  ;;  %v4573_v21 = vpop.permute.xlu0 %4572 }
 0x51c   : > { %4475 = vrot.lane.b32.xlu1 %v7904_v2, %s7944_s17  ;;  %4495 = vmatpush.bf16.msrb.mxu2 %v4486_v22 }
 0x51d   : > { %7065 = vmatmul.msk.bf16.gmra.mxu3 %vm902_vm0, %v4573_v21 }
 0x51e   : > { %5183 = vrot.lane.b32.xlu2 %v10521_v34, %s7945_s23 }
 0x523   : > { %v3875_v13 = vpop.permute.xlu1 %3874  ;;  %v4482_v58 = vpop.permute.xlu0 %4481 }
 0x524   : > { %3866 = vrot.lane.b32.xlu1 %v7903_v1, %s7940_s13  ;;  %3884 = vmatpush.bf16.msrb.mxu0 %v3875_v13  ;;  %v10758_v13 = vpop.f32.mrf.mxu2 }
 0x525   : > { %12974 = vst [vmem:[#allocation12_spill] sm:$0xff] %v10758_v13 }
 0x526   : > { %4479 = vrot.lane.b32.xlu2 %v7902_v40, %s7944_s17 }
 0x528   : > { %v2983_v30 = vpop.xlane.xlu2 %2982 }
 0x529   : > { %7641 = vrcp.f32 %v2983_v30  ;;  %4112 = vmax.xlane.f32.xlu0 %v10734_v14  ;;  %v3220_v31 = vand.u32 2147483648, %v2983_v30  ;;  %v3218_v33 = vand.u32 2147483647, %v2983_v30  ;;  %vm3214_vm3 = vweird.f32 %v2983_v30 }
 0x52b   : > { %v3873_v38 = vpop.permute.xlu0 %3872  ;;  %v3221_v35 = vor.u32 1.1754944e-38, %v3220_v31  ;;  %vm3219_vm5 = vcmp.eq.f32.partialorder %v3218_v33, 8.507059e+37 }
 0x52c   : > { %4574 = vrot.lane.b32.xlu1 %v7905_v52, %s7946_s24  ;;  %3885 = vmatpush.bf16.msrb.mxu0 %v3873_v38 }
 0x52f   : > { %v7642_v34 = vpop.eup %7641 }
 0x530   : > { %v3210_v50 = vmul.f32 %v7642_v34, %v2983_v30  ;;  %v10742_v10 = vpop.xlane.xlu2 %4102  ;;  %vm3215_vm2 = vweird.f32 %v7642_v34  ;;  %v12976_v30 = vld [vmem:[#allocation18_spill] sm:$0xff] }
 0x531   : > { %3499 = vmax.xlane.f32.xlu0 %v10740_v4  ;;  %vm3216_vm4 = vmor %vm3214_vm3, %vm3215_vm2  ;;  %v3515_v36 = vsub.f32 %v12976_v30, %v12975_v32 }
 0x532   : > { %v3211_v40 = vsub.f32 1.0, %v3210_v50 }
 0x534   : > { %v3212_v17 = vmul.f32 %v7642_v34, %v3211_v40  ;;  %5185 = vrot.lane.b32.xlu1 %v7905_v52, %s7945_s23  ;;  %v3531_v52 = vmul.f32 1.442695, %v3515_v36 }
 0x536   : > { %v3213_v56 = vadd.f32 %v7642_v34, %v3212_v17  ;;  %7643 = vpow2.f32 %v3531_v52  ;;  %v10780_v17 = vpop.f32.mrf.mxu1 }
 0x538   : > { %v10748_v11 = vpop.xlane.xlu2 %3491  ;;  %v3217_v0 = vsel %vm3216_vm4, %v7642_v34, %v3213_v56  ;;  %v7906_v34 = vld [vmem:[#allocation2 + $0xa8] sm:$0xff] }
 0x539   : > { %3501 = vmax.xlane.f32.xlu0 %v10752_v24  ;;  %v3222_v1 = vsel %vm3219_vm5, %v3221_v35, %v3217_v0  ;;  %v10789_v35 = vpop.f32.mrf.mxu3 }
 0x53a   : > { %v3223_v22 = vmul.f32 %v10541_v61, %v3222_v1  ;;  %v10770_v61 = vsel %vm821_vm1, %v10724_v37, -1e+30 }
 0x53c   : > { %3864 = vrot.lane.b32.xlu1 %v7904_v2, %s7940_s13  ;;  %7010 = vst [vmem:[%s9247_s28 + $0x1f8] sm:$0xff] %v3223_v22  ;;  %v3248_v21 = vpack.c.bf16 %v3223_v22, %v3208_v55  ;;  %v10763_v50 = vpop.eup %7643  ;;  %v4128_v55 = vsub.f32 %v10137_v7, %v10559_v29 }
 0x53e   : > { %3316 = vmatmul.bf16.gmra.mxu2 %v3248_v21  ;;  %v4065_v7 = vpop.f32.mrf.mxu1 }
 0x53f   : > { %v10795_v22 = vsel %vm821_vm1, %v4065_v7, -1e+30 }
 0x540   : > { %v4484_v38 = vpop.permute.xlu2 %4483 }
 0x541   : > { %4496 = vmatpush.bf16.msrb.mxu2 %v4484_v38  ;;  %v10801_v52 = vpop.f32.mrf.mxu3 }
 0x545   : > { %4497 = vmatpush.bf16.msrb.mxu2 %v4482_v58  ;;  %v4146_v58 = vmul.f32 1.442695, %v4128_v55 }
 0x546   : > { %v4068_v1 = vpop.f32.mrf.mxu1 }
 0x547   : > { %7645 = vpow2.f32 %v4146_v58 }
 0x54d   : > { %4471 = vrot.lane.b32.xlu0 %v7906_v34, %s7944_s17  ;;  %v10777_v31 = vpop.eup %7645 }
 0x54e   : > { %v4109_v2 = vpop.xlane.xlu1 %4108  ;;  %v10807_v58 = vpop.f32.mrf.mxu1 }
 0x54f   : > { %3563 = vadd.xlane.f32.xlu2 %v10763_v50  ;;  %v4133_v32 = vsub.f32 %v10598_v59, %v4109_v2  ;;  %v4129_v2 = vsub.f32 %v10314_v5, %v10614_v60  ;;  %v12977_v60 = vld [vmem:[#allocation24_spill] sm:$0xff] }
 0x551   : > { %v4156_v38 = vmul.f32 1.442695, %v4133_v32 }
 0x553   : > { %7647 = vpow2.f32 %v4156_v38 }
 0x555   : > { %3860 = vrot.lane.b32.xlu0 %v7906_v34, %s7940_s13  ;;  %v10805_v34 = vsel %vm821_vm1, %v4068_v1, -1e+30  ;;  %v4148_v1 = vmul.f32 1.442695, %v4129_v2 }
 0x556   : > { %v10775_v40 = vpop.xlane.xlu1 %4174  ;;  %v10783_v37 = vpop.xlane.xlu0 %4176 }
 0x557   : > { %4110 = vmax.xlane.f32.xlu2 %v10770_v61  ;;  %7649 = vrcp.f32 %v10775_v40  ;;  %v10822_v5 = vpop.f32.mrf.mxu1  ;;  %vm4211_vm8 = vweird.f32 %v10775_v40  ;;  %vm4226_vm10 = vweird.f32 %v10783_v37 }
 0x558   : > { %7651 = vrcp.f32 %v10783_v37 }
 0x55e   : > { %v3496_v33 = vpop.xlane.xlu1 %3495  ;;  %v10791_v0 = vpop.xlane.xlu0 %3565 }
 0x55f   : > { %v3521_v59 = vsub.f32 %v10630_v25, %v3496_v33  ;;  %v3517_v33 = vsub.f32 %v12977_v60, %v10321_v6  ;;  %v3518_v6 = vsub.f32 %v10033_v46, %v10443_v23  ;;  %v4075_v53 = vpop.f32.mrf.mxu1  ;;  %vm3615_vm15 = vweird.f32 %v10791_v0 }
 0x561   : > { %v3543_v7 = vmul.f32 1.442695, %v3521_v59  ;;  %v3535_v38 = vmul.f32 1.442695, %v3517_v33  ;;  %v3537_v49 = vmul.f32 1.442695, %v3518_v6 }
 0x562   : > { %v4232_v6 = vand.u32 2147483648, %v10783_v37 }
 0x563   : > { %7653 = vpow2.f32 %v3543_v7 }
 0x564   : > { %7655 = vpow2.f32 %v4148_v1  ;;  %v4130_v1 = vsub.f32 %v10557_v26, %v10742_v10  ;;  %v10855_v10 = vsel %vm821_vm1, %v4075_v53, -1e+30  ;;  %v4233_v44 = vor.u32 1.1754944e-38, %v4232_v6 }
 0x565   : > { %7657 = vrcp.f32 %v10791_v0 }
 0x566   : > { %4178 = vadd.xlane.f32.xlu1 %v10777_v31  ;;  %v10785_v29 = vpop.xlane.xlu1 %3497  ;;  %7659 = vpow2.f32 %v3535_v38  ;;  %v4150_v20 = vmul.f32 1.442695, %v4130_v1 }
 0x567   : > { %7661 = vpow2.f32 %v3537_v49  ;;  %v4217_v49 = vand.u32 2147483648, %v10775_v40 }
 0x568   : > { %7663 = vpow2.f32 %v4150_v20 }
 0x569   : > { %v4218_v54 = vor.u32 1.1754944e-38, %v4217_v49 }
 0x56f   : > { %4473 = vrot.lane.b32.xlu2 %v7907_v45, %s7944_s17 }
 0x571   : > { %v3869_v36 = vpop.permute.xlu0 %3868 }
 0x579   : > { %v10787_v56 = vpop.xlane.xlu2 %4106 }
 0x57a   : > { %v4132_v20 = vsub.f32 %v10705_v12, %v10787_v56 }
 0x57c   : > { %v4154_v3 = vmul.f32 1.442695, %v4132_v20 }
 0x57e   : > { %v3871_v21 = vpop.permute.xlu1 %3870  ;;  %7665 = vpow2.f32 %v4154_v3 }
 0x57f   : > { %3862 = vrot.lane.b32.xlu1 %v7907_v45, %s7940_s13  ;;  %4116 = vmax.xlane.f32.xlu0 %v10795_v22 }
 0x580   : > { %3886 = vmatpush.bf16.msrb.mxu0 %v3871_v21  ;;  %v10815_v21 = vpop.eup %7647 }
 0x581   : > { %v5184_v30 = vpop.permute.xlu2 %5183  ;;  %v10820_v25 = vpop.eup %7649 }
 0x582   : > { %7089 = vmatmul.msk.bf16.gmra.mxu1 %vm902_vm0, %v5184_v30  ;;  %v10817_v30 = vpop.f32.mrf.mxu3  ;;  %vm4212_vm6 = vweird.f32 %v10820_v25 }
 0x583   : > { %vm10871_vm9 = vmor %vm4211_vm8, %vm4212_vm6 }
 0x584   : > { %3887 = vmatpush.bf16.msrb.mxu0 %v3869_v36  ;;  %v10826_v36 = vpop.eup %7651 }
 0x585   : > { %v4222_v59 = vmul.f32 %v10826_v36, %v10783_v37  ;;  %v10833_v2 = vpop.eup %7653  ;;  %vm4227_vm7 = vweird.f32 %v10826_v36 }
 0x586   : > { %v4478_v55 = vpop.permute.xlu1 %4477  ;;  %v10835_v7 = vpop.eup %7655  ;;  %vm10878_vm11 = vmor %vm4226_vm10, %vm4227_vm7 }
 0x587   : > { %4118 = vmax.xlane.f32.xlu0 %v10805_v34  ;;  %v4223_v33 = vsub.f32 1.0, %v4222_v59  ;;  %v10845_v42 = vpop.eup %7657 }
 0x588   : > { %v3611_v26 = vmul.f32 %v10845_v42, %v10791_v0  ;;  %vm3616_vm14 = vweird.f32 %v10845_v42 }
 0x589   : > { %v4480_v45 = vpop.permute.xlu2 %4479  ;;  %v4224_v23 = vmul.f32 %v10826_v36, %v4223_v33  ;;  %v4215_v33 = vand.u32 2147483647, %v10775_v40  ;;  %vm3617_vm2 = vmor %vm3615_vm15, %vm3616_vm14 }
 0x58a   : > { %4498 = vmatpush.bf16.msrb.mxu2 %v4480_v45  ;;  %v3612_v53 = vsub.f32 1.0, %v3611_v26 }
 0x58b   : > { %vm4216_vm12 = vcmp.eq.f32.partialorder %v4215_v33, 8.507059e+37 }
 0x58c   : > { %v3613_v56 = vmul.f32 %v10845_v42, %v3612_v53  ;;  %v3621_v53 = vand.u32 2147483648, %v10791_v0 }
 0x58e   : > { %v4476_v32 = vpop.permute.xlu1 %4475  ;;  %4499 = vmatpush.bf16.msrb.mxu2 %v4478_v55  ;;  %v4207_v55 = vmul.f32 %v10820_v25, %v10775_v40  ;;  %v3622_v3 = vor.u32 1.1754944e-38, %v3621_v53 }
 0x58f   : > { %4188 = vadd.xlane.f32.xlu0 %v10815_v21 }
 0x590   : > { %v4208_v60 = vsub.f32 1.0, %v4207_v55  ;;  %v10857_v55 = vpop.eup %7659 }
 0x592   : > { %4500 = vmatpush.bf16.msrb.mxu2 %v4476_v32  ;;  %v10843_v32 = vpop.f32.mrf.mxu3  ;;  %v4209_v46 = vmul.f32 %v10820_v25, %v4208_v60 }
 0x593   : > { %v10945_v60 = vsel %vm821_vm1, %v10843_v32, -1e+30  ;;  %v3519_v32 = vsub.f32 %v10569_v51, %v10748_v11  ;;  %v3520_v11 = vsub.f32 %v10424_v28, %v10719_v9 }
 0x594   : > { %v4210_v59 = vadd.f32 %v10820_v25, %v4209_v46  ;;  %v4230_v46 = vand.u32 2147483647, %v10783_v37 }
 0x596   : > { %v3867_v45 = vpop.permute.xlu1 %3866  ;;  %v4214_v12 = vsel %vm10871_vm9, %v10820_v25, %v4210_v59  ;;  %vm4231_vm13 = vcmp.eq.f32.partialorder %v4230_v46, 8.507059e+37  ;;  %v4131_v25 = vsub.f32 %v10383_v16, %v10717_v48  ;;  %v10953_v46 = vsel %vm821_vm1, %v10789_v35, -1e+30 }
 0x597   : > { %3575 = vadd.xlane.f32.xlu0 %v10833_v2  ;;  %3888 = vmatpush.bf16.msrb.mxu0 %v3867_v45  ;;  %v4225_v45 = vadd.f32 %v10826_v36, %v4224_v23  ;;  %v10958_v23 = vsel %vm821_vm1, %v10822_v5, -1e+30  ;;  %v3539_v35 = vmul.f32 1.442695, %v3519_v32  ;;  %v10969_v5 = vsel %vm821_vm1, %v10801_v52, -1e+30 }
 0x598   : > { %4180 = vadd.xlane.f32.xlu2 %v10835_v7 }
 0x599   : > { %v4229_v40 = vsel %vm10878_vm11, %v10826_v36, %v4225_v45  ;;  %v4219_v36 = vsel %vm4216_vm12, %v4218_v54, %v4214_v12  ;;  %v3614_v45 = vadd.f32 %v10845_v42, %v3613_v56  ;;  %v4152_v54 = vmul.f32 1.442695, %v4131_v25  ;;  %v10977_v56 = vpop.f32.mrf.mxu1 }
 0x59a   : > { %v3462_v1 = vpop.f32.mrf.mxu3  ;;  %v4234_v59 = vsel %vm4231_vm13, %v4233_v44, %v4229_v40  ;;  %v10911_v16 = vmul.f32 %v10619_v63, %v4219_v36  ;;  %v10925_v63 = vsel %vm821_vm1, %v10780_v17, -1e+30  ;;  %v3541_v36 = vmul.f32 1.442695, %v3520_v11 }
 0x59b   : > { %v10897_v37 = vsel %vm821_vm1, %v3462_v1, -1e+30  ;;  %v10914_v44 = vmul.f32 %v10617_v18, %v4234_v59  ;;  %v3618_v49 = vsel %vm3617_vm2, %v10845_v42, %v3614_v45  ;;  %7667 = vpow2.f32 %v4152_v54 }
 0x59c   : > { %v10847_v15 = vpop.xlane.xlu0 %4112  ;;  %7043 = vst [vmem:[%s9247_s28 + $0x280] sm:$0xff] %v10911_v16 }
 0x59d   : > { %7044 = vst [vmem:[%s9247_s28 + $0x288] sm:$0xff] %v10914_v44 }
 0x59e   : > { %v4575_v38 = vpop.permute.xlu1 %4574 }
 0x59f   : > { %4124 = vmax.xlane.f32.xlu0 %v10855_v10  ;;  %7066 = vmatmul.msk.bf16.gmra.mxu3 %vm902_vm0, %v4575_v38  ;;  %v10884_v38 = vpop.eup %7661 }
 0x5a0   : > { %3567 = vadd.xlane.f32.xlu2 %v10857_v55  ;;  %v10893_v47 = vpop.eup %7663 }
 0x5a4   : > { %v10882_v26 = vpop.xlane.xlu0 %3499 }
 0x5a6   : > { %v5186_v13 = vpop.permute.xlu1 %5185 }
 0x5a7   : > { %3511 = vmax.xlane.f32.xlu0 %v10897_v37  ;;  %7090 = vmatmul.msk.bf16.gmra.mxu1 %vm902_vm0, %v5186_v13  ;;  %v3619_v13 = vand.u32 2147483647, %v10791_v0  ;;  %v10927_v0 = vpop.eup %7665 }
 0x5a8   : > { %3569 = vadd.xlane.f32.xlu2 %v10884_v38  ;;  %v10936_v1 = vpop.eup %7667 }
 0x5a9   : > { %4182 = vadd.xlane.f32.xlu1 %v10893_v47  ;;  %vm3620_vm3 = vcmp.eq.f32.partialorder %v3619_v13, 8.507059e+37  ;;  %v10983_v13 = vpop.f32.mrf.mxu2 }
 0x5aa   : > { %v3623_v42 = vsel %vm3620_vm3, %v3622_v3, %v3618_v49  ;;  %12982 = vst [vmem:[#allocation6_spill] sm:$0xff] %v10983_v13  ;;  %v3464_v49 = vpop.f32.mrf.mxu3  ;;  %v5262_v3 = vpop.f32.mrf.mxu1 }
 0x5ac   : > { %v3502_v48 = vpop.xlane.xlu0 %3501 }
 0x5ad   : > { %v3524_v6 = vsub.f32 %v10752_v24, %v3502_v48  ;;  %v10932_v24 = vmul.f32 %v10649_v57, %v3623_v42  ;;  %v4135_v57 = vsub.f32 %v10734_v14, %v10847_v15  ;;  %v3523_v15 = vsub.f32 %v10740_v4, %v10882_v26 }
 0x5ae   : > { %v3865_v20 = vpop.permute.xlu1 %3864 }
 0x5af   : > { %v3549_v18 = vmul.f32 1.442695, %v3524_v6  ;;  %3889 = vmatpush.bf16.msrb.mxu0 %v3865_v20  ;;  %7020 = vst [vmem:[%s9247_s28 + $0x208] sm:$0xff] %v10932_v24  ;;  %v4160_v33 = vmul.f32 1.442695, %v4135_v57 }
 0x5b0   : > { %4114 = vmax.xlane.f32.xlu2 %v10925_v63  ;;  %v3547_v12 = vmul.f32 1.442695, %v3523_v15  ;;  %v10991_v57 = vsel %vm821_vm1, %v5262_v3, -1e+30 }
 0x5b1   : > { %7669 = vpow2.f32 %v3549_v18  ;;  %4186 = vadd.xlane.f32.xlu1 %v10927_v0  ;;  %v10998_v15 = vpop.f32.mrf.mxu2 }
 0x5b2   : > { %7671 = vpow2.f32 %v4160_v33  ;;  %v4463_v33 = vpack.c.bf16 %v10914_v44, %v10911_v16  ;;  %12983 = vst [vmem:[#allocation9_spill] sm:$0xff] %v10998_v15 }
 0x5b7   : > { %v10938_v17 = vpop.eup %7669 }
 0x5b8   : > { %4184 = vadd.xlane.f32.xlu2 %v10936_v1  ;;  %3581 = vadd.xlane.f32.xlu0 %v10938_v17  ;;  %v10971_v40 = vpop.eup %7671 }
 0x5b9   : > { %3509 = vmax.xlane.f32.xlu1 %v10945_v60  ;;  %v11014_v16 = vpop.f32.mrf.mxu2 }
 0x5ba   : > { %12984 = vst [vmem:[#allocation7_spill] sm:$0xff] %v11014_v16 }
 0x5bf   : > { %v4472_v18 = vpop.permute.xlu0 %4471 }
 0x5c0   : > { %3503 = vmax.xlane.f32.xlu2 %v10953_v46 }
 0x5c1   : > { %4122 = vmax.xlane.f32.xlu1 %v10958_v23 }
 0x5c2   : > { %v3564_v14 = vpop.xlane.xlu2 %3563 }
 0x5c3   : > { %7673 = vrcp.f32 %v3564_v14  ;;  %v3606_v45 = vand.u32 2147483648, %v3564_v14  ;;  %vm3600_vm5 = vweird.f32 %v3564_v14  ;;  %v3604_v9 = vand.u32 2147483647, %v3564_v14 }
 0x5c4   : > { %7675 = vpow2.f32 %v3539_v35  ;;  %v11004_v35 = vsel %vm821_vm1, %v10807_v58, -1e+30 }
 0x5c5   : > { %7677 = vpow2.f32 %v3547_v12  ;;  %v3607_v6 = vor.u32 1.1754944e-38, %v3606_v45  ;;  %vm3605_vm7 = vcmp.eq.f32.partialorder %v3604_v9, 8.507059e+37 }
 0x5c6   : > { %7679 = vpow2.f32 %v3541_v36 }
 0x5c8   : > { %3505 = vmax.xlane.f32.xlu2 %v10969_v5 }
 0x5c9   : > { %v7674_v51 = vpop.eup %7673  ;;  %4192 = vadd.xlane.f32.xlu1 %v10971_v40 }
 0x5ca   : > { %v3596_v4 = vmul.f32 %v7674_v51, %v3564_v14  ;;  %v4111_v26 = vpop.xlane.xlu2 %4110  ;;  %vm3601_vm4 = vweird.f32 %v7674_v51  ;;  %v10979_v59 = vpop.eup %7675 }
 0x5cb   : > { %v10981_v53 = vpop.eup %7677  ;;  %vm3602_vm6 = vmor %vm3600_vm5, %vm3601_vm4  ;;  %v4649_v14 = vpop.f32.mrf.mxu3  ;;  %v4134_v58 = vsub.f32 %v10770_v61, %v4111_v26 }
 0x5cc   : > { %v3597_v25 = vsub.f32 1.0, %v3596_v4  ;;  %v10987_v42 = vpop.eup %7679  ;;  %v11008_v12 = vsel %vm821_vm1, %v4649_v14, -1e+30 }
 0x5cd   : > { %v4158_v4 = vmul.f32 1.442695, %v4134_v58 }
 0x5ce   : > { %v3598_v52 = vmul.f32 %v7674_v51, %v3597_v25 }
 0x5d0   : > { %v3599_v28 = vadd.f32 %v7674_v51, %v3598_v52  ;;  %3571 = vadd.xlane.f32.xlu2 %v10979_v59 }
 0x5d1   : > { %3579 = vadd.xlane.f32.xlu1 %v10981_v53 }
 0x5d2   : > { %v3603_v54 = vsel %vm3602_vm6, %v7674_v51, %v3599_v28  ;;  %v4474_v48 = vpop.permute.xlu2 %4473  ;;  %v11019_v51 = vsel %vm821_vm1, %v10817_v30, -1e+30  ;;  %v3861_v30 = vpop.permute.xlu0 %3860 }
 0x5d3   : > { %4501 = vmatpush.bf16.msrb.mxu2 %v4474_v48  ;;  %v3608_v20 = vsel %vm3605_vm7, %v3607_v6, %v3603_v54  ;;  %v11040_v48 = vsel %vm821_vm1, %v3464_v49, -1e+30 }
 0x5d4   : > { %v3609_v32 = vmul.f32 %v10763_v50, %v3608_v20  ;;  %v3522_v50 = vsub.f32 %v10678_v41, %v10785_v29  ;;  %v11025_v41 = vpop.f32.mrf.mxu0  ;;  %v11027_v29 = vpop.f32.mrf.mxu2 }
 0x5d5   : > { %12985 = vst [vmem:[#allocation30_spill] sm:$0xff] %v11025_v41 }
 0x5d6   : > { %7019 = vst [vmem:[%s9247_s28 + $0x200] sm:$0xff] %v3609_v32  ;;  %v3545_v44 = vmul.f32 1.442695, %v3522_v50  ;;  %v3852_v61 = vpack.c.bf16 %v10932_v24, %v3609_v32  ;;  %v11049_v32 = vsel %vm821_vm1, %v10977_v56, -1e+30 }
 0x5d7   : > { %4502 = vmatpush.bf16.msrb.mxu2 %v4472_v18  ;;  %12986 = vst [vmem:[#allocation10_spill] sm:$0xff] %v11027_v29 }
 0x5d8   : > { %3573 = vadd.xlane.f32.xlu2 %v10987_v42  ;;  %7681 = vpow2.f32 %v3545_v44 }
 0x5d9   : > { %5318 = vmax.xlane.f32.xlu1 %v10991_v57  ;;  %v4179_v11 = vpop.xlane.xlu1 %4178  ;;  %7683 = vpow2.f32 %v4158_v4 }
 0x5da   : > { %4503 = vmatmul.bf16.vlgmr.msrb.gmra.mxu2 %v4463_v33  ;;  %7685 = vrcp.f32 %v4179_v11  ;;  %v4247_v18 = vand.u32 2147483648, %v4179_v11  ;;  %vm4241_vm8 = vweird.f32 %v4179_v11  ;;  %v4245_v14 = vand.u32 2147483647, %v4179_v11 }
 0x5dc   : > { %v11034_v45 = vpop.f32.mrf.mxu0  ;;  %v11036_v28 = vpop.f32.mrf.mxu2  ;;  %vm4246_vm11 = vcmp.eq.f32.partialorder %v4245_v14, 8.507059e+37 }
 0x5dd   : > { %12987 = vst [vmem:[#allocation26_spill] sm:$0xff] %v11034_v45 }
 0x5de   : > { %v11023_v25 = vpop.eup %7681  ;;  %12988 = vst [vmem:[#allocation17_spill] sm:$0xff] %v11036_v28 }
 0x5df   : > { %v11030_v52 = vpop.eup %7683 }
 0x5e0   : > { %4120 = vmax.xlane.f32.xlu2 %v11004_v35  ;;  %v7686_v26 = vpop.eup %7685 }
 0x5e1   : > { %4705 = vmax.xlane.f32.xlu1 %v11008_v12  ;;  %v4237_v9 = vmul.f32 %v7686_v26, %v4179_v11  ;;  %vm4242_vm9 = vweird.f32 %v7686_v26 }
 0x5e2   : > { %vm4243_vm10 = vmor %vm4241_vm8, %vm4242_vm9 }
 0x5e3   : > { %v4238_v6 = vsub.f32 1.0, %v4237_v9 }
 0x5e4   : > { %v11044_v24 = vpop.f32.mrf.mxu2 }
 0x5e5   : > { %12989 = vst [vmem:[#allocation22_spill] sm:$0xff] %v11044_v24  ;;  %v4239_v20 = vmul.f32 %v7686_v26, %v4238_v6 }
 0x5e7   : > { %v4240_v49 = vadd.f32 %v7686_v26, %v4239_v20 }
 0x5e8   : > { %3507 = vmax.xlane.f32.xlu2 %v11019_v51 }
 0x5e9   : > { %v4244_v50 = vsel %vm4243_vm10, %v7686_v26, %v4240_v49 }
 0x5ec   : > { %v11052_v4 = vpop.f32.mrf.mxu2 }
 0x5ed   : > { %12990 = vst [vmem:[#allocation19_spill] sm:$0xff] %v11052_v4 }
 0x5f0   : > { %3577 = vadd.xlane.f32.xlu2 %v11023_v25 }
 0x5f1   : > { %v3863_v36 = vpop.permute.xlu1 %3862 }
 0x5f2   : > { %3890 = vmatpush.bf16.msrb.mxu0 %v3863_v36  ;;  %v4117_v54 = vpop.xlane.xlu0 %4116 }
 0x5f3   : > { %v4137_v3 = vsub.f32 %v10795_v22, %v4117_v54  ;;  %v4248_v22 = vor.u32 1.1754944e-38, %v4247_v18 }
 0x5f4   : > { %v11059_v26 = vpop.f32.mrf.mxu2 }
 0x5f5   : > { %v4164_v33 = vmul.f32 1.442695, %v4137_v3  ;;  %v4249_v58 = vsel %vm4246_vm11, %v4248_v22, %v4244_v50  ;;  %12991 = vst [vmem:[#allocation5_spill] sm:$0xff] %v11059_v26  ;;  %v4651_v26 = vpop.f32.mrf.mxu3 }
 0x5f6   : > { %3891 = vmatpush.bf16.msrb.mxu0 %v3861_v30  ;;  %v4250_v56 = vmul.f32 %v10777_v31, %v4249_v58 }
 0x5f7   : > { %7687 = vpow2.f32 %v4164_v33 }
 0x5f8   : > { %4190 = vadd.xlane.f32.xlu2 %v11030_v52  ;;  %7045 = vst [vmem:[%s9247_s28 + $0x290] sm:$0xff] %v4250_v56 }
 0x5f9   : > { %3892 = vmatmul.bf16.vlgmr.msrb.gmra.mxu0 %v3852_v61 }
 0x5fa   : > { %v11061_v6 = vpop.xlane.xlu0 %4118 }
 0x5fd   : > { %v11055_v36 = vpop.eup %7687 }
 0x600   : > { %3513 = vmax.xlane.f32.xlu2 %v11040_v48 }
 0x608   : > { %5316 = vmax.xlane.f32.xlu2 %v11049_v32 }
 0x60b   : > { %v4181_v44 = vpop.xlane.xlu2 %4180 }
 0x60c   : > { %7689 = vrcp.f32 %v4181_v44  ;;  %v4262_v54 = vand.u32 2147483648, %v4181_v44  ;;  %v4260_v20 = vand.u32 2147483647, %v4181_v44  ;;  %vm4256_vm13 = vweird.f32 %v4181_v44 }
 0x60e   : > { %v4263_v33 = vor.u32 1.1754944e-38, %v4262_v54  ;;  %vm4261_vm15 = vcmp.eq.f32.partialorder %v4260_v20, 8.507059e+37  ;;  %v11072_v54 = vpop.f32.mrf.mxu2  ;;  %v11075_v20 = vpop.xlane.xlu0 %4188 }
 0x60f   : > { %12993 = vst [vmem:[#allocation31_spill] sm:$0xff] %v11072_v54 }
 0x610   : > { %4196 = vadd.xlane.f32.xlu2 %v11055_v36 }
 0x612   : > { %v7690_v30 = vpop.eup %7689 }
 0x613   : > { %v4252_v61 = vmul.f32 %v7690_v30, %v4181_v44  ;;  %v3568_v11 = vpop.xlane.xlu2 %3567  ;;  %vm4257_vm12 = vweird.f32 %v7690_v30 }
 0x614   : > { %7691 = vrcp.f32 %v3568_v11  ;;  %vm4258_vm14 = vmor %vm4256_vm13, %vm4257_vm12  ;;  %v3636_v44 = vand.u32 2147483648, %v3568_v11  ;;  %v3634_v45 = vand.u32 2147483647, %v3568_v11  ;;  %vm3630_vm3 = vweird.f32 %v3568_v11 }
 0x615   : > { %v4253_v9 = vsub.f32 1.0, %v4252_v61 }
 0x616   : > { %vm3635_vm5 = vcmp.eq.f32.partialorder %v3634_v45, 8.507059e+37 }
 0x617   : > { %v4254_v3 = vmul.f32 %v7690_v30, %v4253_v9  ;;  %v11069_v9 = vpop.f32.mrf.mxu0 }
 0x618   : > { %12992 = vst [vmem:[#allocation13_spill] sm:$0xff] %v11069_v9 }
 0x619   : > { %v4255_v31 = vadd.f32 %v7690_v30, %v4254_v3 }
 0x61a   : > { %v7692_v18 = vpop.eup %7691 }
 0x61b   : > { %v3626_v49 = vmul.f32 %v7692_v18, %v3568_v11  ;;  %v11063_v14 = vpop.xlane.xlu2 %3569  ;;  %v4259_v22 = vsel %vm4258_vm14, %v7690_v30, %v4255_v31  ;;  %vm3631_vm2 = vweird.f32 %v7692_v18  ;;  %vm4316_vm14 = vweird.f32 %v11075_v20 }
 0x61c   : > { %7693 = vrcp.f32 %v11063_v14  ;;  %v11066_v50 = vpop.xlane.xlu1 %4182  ;;  %v4264_v58 = vsel %vm4261_vm15, %v4263_v33, %v4259_v22  ;;  %vm3632_vm4 = vmor %vm3630_vm3, %vm3631_vm2  ;;  %vm3645_vm7 = vweird.f32 %v11063_v14 }
 0x61d   : > { %v3627_v61 = vsub.f32 1.0, %v3626_v49  ;;  %7695 = vrcp.f32 %v11066_v50  ;;  %v4265_v3 = vmul.f32 %v10835_v7, %v4264_v58  ;;  %v3637_v49 = vor.u32 1.1754944e-38, %v3636_v44 }
 0x61e   : > { %7697 = vrcp.f32 %v11075_v20  ;;  %vm4271_vm10 = vweird.f32 %v11066_v50 }
 0x61f   : > { %v3628_v41 = vmul.f32 %v7692_v18, %v3627_v61  ;;  %7046 = vst [vmem:[%s9247_s28 + $0x298] sm:$0xff] %v4265_v3  ;;  %v4464_v30 = vpack.c.bf16 %v4265_v3, %v4250_v56  ;;  %v11085_v45 = vpop.f32.mrf.mxu0 }
 0x620   : > { %12994 = vst [vmem:[#allocation18_spill] sm:$0xff] %v11085_v45 }
 0x621   : > { %v3629_v31 = vadd.f32 %v7692_v18, %v3628_v41  ;;  %4508 = vmatmul.bf16.gmra.mxu2 %v4464_v30 }
 0x622   : > { %v7694_v33 = vpop.eup %7693 }
 0x623   : > { %v7696_v22 = vpop.eup %7695  ;;  %v3641_v9 = vmul.f32 %v7694_v33, %v11063_v14  ;;  %v4115_v4 = vpop.xlane.xlu2 %4114  ;;  %v3633_v7 = vsel %vm3632_vm4, %v7692_v18, %v3629_v31  ;;  %vm3646_vm6 = vweird.f32 %v7694_v33  ;;  %v3651_v18 = vand.u32 2147483648, %v11063_v14 }
 0x624   : > { %v4267_v58 = vmul.f32 %v7696_v22, %v11066_v50  ;;  %v4136_v56 = vsub.f32 %v10925_v63, %v4115_v4  ;;  %v11081_v61 = vpop.xlane.xlu1 %4186  ;;  %v3638_v41 = vsel %vm3635_vm5, %v3637_v49, %v3633_v7  ;;  %v11089_v63 = vpop.f32.mrf.mxu2  ;;  %vm3647_vm8 = vmor %vm3645_vm7, %vm3646_vm6  ;;  %vm4272_vm9 = vweird.f32 %v7696_v22 }
 0x625   : > { %v3642_v11 = vsub.f32 1.0, %v3641_v9  ;;  %7699 = vrcp.f32 %v11081_v61  ;;  %v3639_v30 = vmul.f32 %v10857_v55, %v3638_v41  ;;  %12995 = vst [vmem:[#allocation24_spill] sm:$0xff] %v11089_v63  ;;  %v3649_v9 = vand.u32 2147483647, %v11063_v14  ;;  %v11093_v49 = vpop.eup %7697  ;;  %vm4273_vm12 = vmor %vm4271_vm10, %vm4272_vm9 }
 0x626   : > { %v4268_v44 = vsub.f32 1.0, %v4267_v58  ;;  %v4162_v3 = vmul.f32 1.442695, %v4136_v56  ;;  %v4277_v55 = vand.u32 2147483648, %v11066_v50  ;;  %v3652_v14 = vor.u32 1.1754944e-38, %v3651_v18 }
 0x627   : > { %v3643_v54 = vmul.f32 %v7694_v33, %v3642_v11  ;;  %7021 = vst [vmem:[%s9247_s28 + $0x210] sm:$0xff] %v3639_v30  ;;  %v4275_v11 = vand.u32 2147483647, %v11066_v50  ;;  %vm3650_vm11 = vcmp.eq.f32.partialorder %v3649_v9, 8.507059e+37  ;;  %vm4301_vm15 = vweird.f32 %v11081_v61 }
 0x628   : > { %v4269_v31 = vmul.f32 %v7696_v22, %v4268_v44  ;;  %7701 = vpow2.f32 %v4162_v3 }
 0x629   : > { %v3644_v4 = vadd.f32 %v7694_v33, %v3643_v54  ;;  %v4312_v54 = vmul.f32 %v11093_v49, %v11075_v20  ;;  %vm4276_vm13 = vcmp.eq.f32.partialorder %v4275_v11, 8.507059e+37 }
 0x62a   : > { %v4270_v41 = vadd.f32 %v7696_v22, %v4269_v31  ;;  %v4278_v31 = vor.u32 1.1754944e-38, %v4277_v55 }
 0x62b   : > { %v11096_v7 = vpop.eup %7699  ;;  %v11098_v58 = vpop.xlane.xlu2 %4184  ;;  %v3648_v56 = vsel %vm3647_vm8, %v7694_v33, %v3644_v4  ;;  %v4313_v28 = vsub.f32 1.0, %v4312_v54  ;;  %vm4317_vm8 = vweird.f32 %v11093_v49 }
 0x62c   : > { %v4297_v44 = vmul.f32 %v11096_v7, %v11081_v61  ;;  %7703 = vrcp.f32 %v11098_v58  ;;  %v3653_v33 = vsel %vm3650_vm11, %v3652_v14, %v3648_v56  ;;  %v4274_v63 = vsel %vm4273_vm12, %v7696_v22, %v4270_v41  ;;  %v11115_v56 = vpop.f32.mrf.mxu0  ;;  %v11117_v55 = vpop.f32.mrf.mxu2  ;;  %vm11156_vm10 = vmor %vm4316_vm14, %vm4317_vm8 }
 0x62d   : > { %v3654_v45 = vmul.f32 %v10884_v38, %v3653_v33  ;;  %v4279_v18 = vsel %vm4276_vm13, %v4278_v31, %v4274_v63  ;;  %12996 = vst [vmem:[#allocation32_spill] sm:$0xff] %v11115_v56  ;;  %v11133_v11 = vpop.xlane.xlu1 %3509  ;;  %vm4302_vm3 = vweird.f32 %v11096_v7  ;;  %vm4286_vm4 = vweird.f32 %v11098_v58 }
 0x62e   : > { %v11107_v3 = vpop.eup %7701  ;;  %v4298_v4 = vsub.f32 1.0, %v4297_v44  ;;  %v11113_v50 = vmul.f32 %v10893_v47, %v4279_v18  ;;  %12997 = vst [vmem:[#allocation33_spill] sm:$0xff] %v11117_v55  ;;  %v4314_v47 = vmul.f32 %v11093_v49, %v4313_v28  ;;  %vm11141_vm5 = vmor %vm4301_vm15, %vm4302_vm3  ;;  %v4305_v31 = vand.u32 2147483647, %v11081_v61 }
 0x62f   : > { %4194 = vadd.xlane.f32.xlu0 %v11107_v3  ;;  %7022 = vst [vmem:[%s9247_s28 + $0x218] sm:$0xff] %v3654_v45  ;;  %v3853_v24 = vpack.c.bf16 %v3654_v45, %v3639_v30  ;;  %v11126_v30 = vsel %vm821_vm1, %v4651_v26, -1e+30  ;;  %v4307_v45 = vand.u32 2147483648, %v11081_v61  ;;  %v4322_v26 = vand.u32 2147483648, %v11075_v20 }
 0x630   : > { %v4299_v44 = vmul.f32 %v11096_v7, %v4298_v4  ;;  %7047 = vst [vmem:[%s9247_s28 + $0x2a0] sm:$0xff] %v11113_v50  ;;  %v5265_v4 = vpop.f32.mrf.mxu1  ;;  %vm4306_vm7 = vcmp.eq.f32.partialorder %v4305_v31, 8.507059e+37 }
 0x631   : > { %3897 = vmatmul.bf16.gmra.mxu0 %v3853_v24  ;;  %v4292_v24 = vand.u32 2147483648, %v11098_v58  ;;  %v4323_v33 = vor.u32 1.1754944e-38, %v4322_v26 }
 0x632   : > { %v7704_v9 = vpop.eup %7703  ;;  %v4300_v28 = vadd.f32 %v11096_v7, %v4299_v44  ;;  %v4308_v44 = vor.u32 1.1754944e-38, %v4307_v45 }
 0x633   : > { %v4282_v38 = vmul.f32 %v7704_v9, %v11098_v58  ;;  %v3504_v22 = vpop.xlane.xlu2 %3503  ;;  %vm4287_vm2 = vweird.f32 %v7704_v9 }
 0x634   : > { %v3525_v63 = vsub.f32 %v10953_v46, %v3504_v22  ;;  %v4290_v46 = vand.u32 2147483647, %v11098_v58  ;;  %v4315_v22 = vadd.f32 %v11093_v49, %v4314_v47  ;;  %vm4288_vm6 = vmor %vm4286_vm4, %vm4287_vm2  ;;  %v4293_v58 = vor.u32 1.1754944e-38, %v4292_v24  ;;  %v11160_v47 = vpop.f32.mrf.mxu0 }
 0x635   : > { %v4283_v41 = vsub.f32 1.0, %v4282_v38  ;;  %v4304_v38 = vsel %vm11141_vm5, %v11096_v7, %v4300_v28  ;;  %13002 = vst [vmem:[#allocation34_spill] sm:$0xff] %v11160_v47  ;;  %v4123_v26 = vpop.xlane.xlu1 %4122 }
 0x636   : > { %v3551_v14 = vmul.f32 1.442695, %v3525_v63  ;;  %v11150_v63 = vpop.xlane.xlu0 %3575  ;;  %vm4291_vm9 = vcmp.eq.f32.partialorder %v4290_v46, 8.507059e+37  ;;  %v11169_v46 = vpop.f32.mrf.mxu2 }
 0x637   : > { %v4284_v54 = vmul.f32 %v7704_v9, %v4283_v41  ;;  %4707 = vmax.xlane.f32.xlu0 %v11126_v30  ;;  %v4320_v41 = vand.u32 2147483647, %v11075_v20  ;;  %13003 = vst [vmem:[#allocation35_spill] sm:$0xff] %v11169_v46  ;;  %vm3690_vm3 = vweird.f32 %v11150_v63 }
 0x638   : > { %7705 = vpow2.f32 %v3551_v14 }
 0x639   : > { %v4285_v18 = vadd.f32 %v7704_v9, %v4284_v54  ;;  %v4309_v54 = vsel %vm4306_vm7, %v4308_v44, %v4304_v38  ;;  %vm4321_vm11 = vcmp.eq.f32.partialorder %v4320_v41, 8.507059e+37  ;;  %v5267_v38 = vpop.f32.mrf.mxu1  ;;  %v4654_v41 = vpop.f32.mrf.mxu3 }
 0x63a   : > { %v11164_v28 = vmul.f32 %v10927_v0, %v4309_v54 }
 0x63b   : > { %v3506_v14 = vpop.xlane.xlu2 %3505  ;;  %v4289_v61 = vsel %vm4288_vm6, %v7704_v9, %v4285_v18  ;;  %v4319_v9 = vsel %vm11156_vm10, %v11093_v49, %v4315_v22  ;;  %v11176_v18 = vsel %vm821_vm1, %v5265_v4, -1e+30  ;;  %v4138_v49 = vsub.f32 %v10805_v34, %v11061_v6 }
 0x63c   : > { %v3526_v45 = vsub.f32 %v10969_v5, %v3506_v14  ;;  %v4294_v24 = vsel %vm4291_vm9, %v4293_v58, %v4289_v61  ;;  %7049 = vst [vmem:[%s9247_s28 + $0x2b0] sm:$0xff] %v11164_v28  ;;  %v11193_v14 = vpop.f32.mrf.mxu0  ;;  %v11197_v34 = vsel %vm821_vm1, %v5267_v38, -1e+30  ;;  %v3528_v6 = vsub.f32 %v10945_v60, %v11133_v11 }
 0x63d   : > { %v4295_v20 = vmul.f32 %v10936_v1, %v4294_v24  ;;  %v4324_v1 = vsel %vm4321_vm11, %v4323_v33, %v4319_v9  ;;  %v4166_v22 = vmul.f32 1.442695, %v4138_v49  ;;  %13004 = vst [vmem:[#allocation36_spill] sm:$0xff] %v11193_v14  ;;  %v11207_v7 = vpop.xlane.xlu1 %4192  ;;  %v11219_v60 = vsel %vm821_vm1, %v4654_v41, -1e+30 }
 0x63e   : > { %v11172_v31 = vpop.eup %7705  ;;  %v3553_v5 = vmul.f32 1.442695, %v3526_v45  ;;  %v4325_v4 = vmul.f32 %v10815_v21, %v4324_v1  ;;  %v11189_v58 = vpop.xlane.xlu0 %4124  ;;  %v3557_v9 = vmul.f32 1.442695, %v3528_v6  ;;  %vm4346_vm10 = vweird.f32 %v11207_v7 }
 0x63f   : > { %5320 = vmax.xlane.f32.xlu0 %v11176_v18  ;;  %3583 = vadd.xlane.f32.xlu2 %v11172_v31  ;;  %7048 = vst [vmem:[%s9247_s28 + $0x2a8] sm:$0xff] %v4295_v20  ;;  %v4465_v0 = vpack.c.bf16 %v4295_v20, %v11113_v50  ;;  %v11199_v21 = vpop.f32.mrf.mxu2 }
 0x640   : > { %7707 = vpow2.f32 %v3553_v5  ;;  %7050 = vst [vmem:[%s9247_s28 + $0x2b8] sm:$0xff] %v4325_v4 }
 0x641   : > { %4513 = vmatmul.bf16.gmra.mxu2 %v4465_v0  ;;  %7709 = vrcp.f32 %v11150_v63  ;;  %13005 = vst [vmem:[#allocation37_spill] sm:$0xff] %v11199_v21  ;;  %v4140_v0 = vsub.f32 %v10958_v23, %v4123_v26  ;;  %v4656_v49 = vpop.f32.mrf.mxu3 }
 0x643   : > { %v3572_v44 = vpop.xlane.xlu2 %3571  ;;  %v4170_v47 = vmul.f32 1.442695, %v4140_v0 }
 0x644   : > { %7711 = vrcp.f32 %v3572_v44  ;;  %v3666_v1 = vand.u32 2147483648, %v3572_v44  ;;  %v3664_v6 = vand.u32 2147483647, %v3572_v44  ;;  %vm3660_vm13 = vweird.f32 %v3572_v44 }
 0x645   : > { %7713 = vpow2.f32 %v4166_v22  ;;  %v4466_v22 = vpack.c.bf16 %v4325_v4, %v11164_v28 }
 0x646   : > { %v11191_v50 = vpop.eup %7707  ;;  %v11221_v11 = vpop.xlane.xlu0 %3511  ;;  %vm3665_vm15 = vcmp.eq.f32.partialorder %v3664_v6, 8.507059e+37  ;;  %v4141_v6 = vsub.f32 %v10855_v10, %v11189_v58 }
 0x647   : > { %3585 = vadd.xlane.f32.xlu1 %v11191_v50  ;;  %5322 = vmax.xlane.f32.xlu2 %v11197_v34  ;;  %v11205_v61 = vpop.eup %7709  ;;  %v11229_v41 = vpop.f32.mrf.mxu2 }
 0x648   : > { %v3686_v20 = vmul.f32 %v11205_v61, %v11150_v63  ;;  %13007 = vst [vmem:[#allocation39_spill] sm:$0xff] %v11229_v41  ;;  %vm3691_vm6 = vweird.f32 %v11205_v61  ;;  %v4172_v13 = vmul.f32 1.442695, %v4141_v6 }
 0x649   : > { %vm11271_vm7 = vmor %vm3690_vm3, %vm3691_vm6 }
 0x64a   : > { %v7712_v54 = vpop.eup %7711  ;;  %v3687_v14 = vsub.f32 1.0, %v3686_v20  ;;  %v11238_v20 = vsel %vm821_vm1, %v4656_v49, -1e+30 }
 0x64b   : > { %v3656_v45 = vmul.f32 %v7712_v54, %v3572_v44  ;;  %v11209_v24 = vpop.xlane.xlu2 %3573  ;;  %v11215_v5 = vpop.eup %7713  ;;  %vm3661_vm12 = vweird.f32 %v7712_v54 }
 0x64c   : > { %7715 = vrcp.f32 %v11209_v24  ;;  %vm3662_vm14 = vmor %vm3660_vm13, %vm3661_vm12  ;;  %v3688_v29 = vmul.f32 %v11205_v61, %v3687_v14  ;;  %v3696_v14 = vand.u32 2147483648, %v11150_v63  ;;  %vm3675_vm4 = vweird.f32 %v11209_v24 }
 0x64d   : > { %7717 = vrcp.f32 %v11207_v7  ;;  %v3657_v33 = vsub.f32 1.0, %v3656_v45  ;;  %v11227_v45 = vpop.f32.mrf.mxu0 }
 0x64e   : > { %13006 = vst [vmem:[#allocation38_spill] sm:$0xff] %v11227_v45  ;;  %7719 = vpow2.f32 %v3557_v9  ;;  %v11243_v0 = vpop.xlane.xlu0 %3581 }
 0x64f   : > { %v3658_v38 = vmul.f32 %v7712_v54, %v3657_v33  ;;  %4709 = vmax.xlane.f32.xlu2 %v11219_v60  ;;  %4198 = vadd.xlane.f32.xlu1 %v11215_v5  ;;  %v3667_v33 = vor.u32 1.1754944e-38, %v3666_v1  ;;  %7721 = vpow2.f32 %v4170_v47  ;;  %v11262_v47 = vpop.xlane.xlu1 %3579 }
 0x651   : > { %4518 = vmatmul.bf16.gmra.mxu2 %v4466_v22  ;;  %v3659_v23 = vadd.f32 %v7712_v54, %v3658_v38 }
 0x652   : > { %v7716_v26 = vpop.eup %7715 }
 0x653   : > { %v11231_v56 = vpop.eup %7717  ;;  %v3671_v16 = vmul.f32 %v7716_v26, %v11209_v24  ;;  %v4121_v28 = vpop.xlane.xlu2 %4120  ;;  %v3663_v4 = vsel %vm3662_vm14, %v7712_v54, %v3659_v23  ;;  %vm3676_vm2 = vweird.f32 %v7716_v26 }
 0x654   : > { %v4139_v45 = vsub.f32 %v11004_v35, %v4121_v28  ;;  %v3668_v9 = vsel %vm3665_vm15, %v3667_v33, %v3663_v4  ;;  %v11241_v38 = vpop.eup %7719  ;;  %v4342_v54 = vmul.f32 %v11231_v56, %v11207_v7  ;;  %v3681_v35 = vand.u32 2147483648, %v11209_v24  ;;  %vm11265_vm5 = vmor %vm3675_vm4, %vm3676_vm2 }
 0x655   : > { %v3672_v44 = vsub.f32 1.0, %v3671_v16  ;;  %v3669_v1 = vmul.f32 %v10979_v59, %v3668_v9  ;;  %v3679_v59 = vand.u32 2147483647, %v11209_v24  ;;  %v11253_v49 = vpop.f32.mrf.mxu0  ;;  %v3689_v28 = vadd.f32 %v11205_v61, %v3688_v29  ;;  %v11276_v9 = vpop.f32.mrf.mxu2 }
 0x656   : > { %v4168_v22 = vmul.f32 1.442695, %v4139_v45  ;;  %13008 = vst [vmem:[#allocation40_spill] sm:$0xff] %v11253_v49  ;;  %v11259_v45 = vpop.f32.mrf.mxu3  ;;  %v4343_v10 = vsub.f32 1.0, %v4342_v54  ;;  %v3682_v58 = vor.u32 1.1754944e-38, %v3681_v35  ;;  %v5270_v54 = vpop.f32.mrf.mxu1  ;;  %vm4347_vm11 = vweird.f32 %v11231_v56 }
 0x657   : > { %v3673_v16 = vmul.f32 %v7716_v26, %v3672_v44  ;;  %3589 = vadd.xlane.f32.xlu2 %v11241_v38  ;;  %4711 = vmax.xlane.f32.xlu1 %v11238_v20  ;;  %7023 = vst [vmem:[%s9247_s28 + $0x220] sm:$0xff] %v3669_v1  ;;  %v3694_v4 = vand.u32 2147483647, %v11150_v63  ;;  %vm3680_vm8 = vcmp.eq.f32.partialorder %v3679_v59, 8.507059e+37  ;;  %v3693_v29 = vsel %vm11271_vm7, %v11205_v61, %v3689_v28  ;;  %v11285_v63 = vpop.eup %7721  ;;  %vm4348_vm12 = vmor %vm4346_vm10, %vm4347_vm11 }
 0x658   : > { %7723 = vpow2.f32 %v4168_v22  ;;  %13013 = vst [vmem:[#allocation41_spill] sm:$0xff] %v11276_v9  ;;  %v4344_v28 = vmul.f32 %v11231_v56, %v4343_v10  ;;  %vm3735_vm2 = vweird.f32 %v11243_v0 }
 0x659   : > { %7725 = vrcp.f32 %v11243_v0  ;;  %v3674_v23 = vadd.f32 %v7716_v26, %v3673_v16  ;;  %v3697_v16 = vor.u32 1.1754944e-38, %v3696_v14  ;;  %vm3695_vm9 = vcmp.eq.f32.partialorder %v3694_v4, 8.507059e+37 }
 0x65a   : > { %7727 = vrcp.f32 %v11262_v47  ;;  %v4345_v4 = vadd.f32 %v11231_v56, %v4344_v28 }
 0x65b   : > { %v3508_v44 = vpop.xlane.xlu2 %3507  ;;  %v3678_v22 = vsel %vm11265_vm5, %v7716_v26, %v3674_v23  ;;  %v3698_v59 = vsel %vm3695_vm9, %v3697_v16, %v3693_v29  ;;  %vm3720_vm5 = vweird.f32 %v11262_v47 }
 0x65c   : > { %v3527_v35 = vsub.f32 %v11019_v51, %v3508_v44  ;;  %v3683_v49 = vsel %vm3680_vm8, %v3682_v58, %v3678_v22  ;;  %v11291_v61 = vmul.f32 %v10833_v2, %v3698_v59  ;;  %v11297_v51 = vsel %vm821_vm1, %v5270_v54, -1e+30 }
 0x65d   : > { %v3684_v26 = vmul.f32 %v10987_v42, %v3683_v49  ;;  %v4352_v49 = vand.u32 2147483648, %v11207_v7  ;;  %v3529_v2 = vsub.f32 %v10897_v37, %v11221_v11  ;;  %v11311_v10 = vpop.f32.mrf.mxu0  ;;  %v11319_v11 = vpop.f32.mrf.mxu2  ;;  %v4349_v29 = vsel %vm4348_vm12, %v11231_v56, %v4345_v4 }
 0x65e   : > { %v11288_v23 = vpop.eup %7723  ;;  %v3555_v33 = vmul.f32 1.442695, %v3527_v35  ;;  %7025 = vst [vmem:[%s9247_s28 + $0x230] sm:$0xff] %v11291_v61  ;;  %v5272_v56 = vpop.f32.mrf.mxu1 }
 0x65f   : > { %v11293_v14 = vpop.eup %7725  ;;  %4200 = vadd.xlane.f32.xlu0 %v11288_v23  ;;  %4202 = vadd.xlane.f32.xlu2 %v11285_v63  ;;  %7024 = vst [vmem:[%s9247_s28 + $0x228] sm:$0xff] %v3684_v26  ;;  %v3854_v42 = vpack.c.bf16 %v3684_v26, %v3669_v1  ;;  %v4661_v1 = vpop.f32.mrf.mxu3  ;;  %v4353_v37 = vor.u32 1.1754944e-38, %v4352_v49  ;;  %v3559_v44 = vmul.f32 1.442695, %v3529_v2 }
 0x660   : > { %7729 = vpow2.f32 %v3555_v33  ;;  %5324 = vmax.xlane.f32.xlu1 %v11297_v51  ;;  %v11309_v6 = vpop.eup %7727  ;;  %13014 = vst [vmem:[#allocation42_spill] sm:$0xff] %v11311_v10  ;;  %v3731_v58 = vmul.f32 %v11293_v14, %v11243_v0  ;;  %v11328_v35 = vsel %vm821_vm1, %v4661_v1, -1e+30  ;;  %v11347_v1 = vsel %vm821_vm1, %v5272_v56, -1e+30 }
 0x661   : > { %7731 = vpow2.f32 %v4172_v13  ;;  %3902 = vmatmul.bf16.gmra.mxu0 %v3854_v42  ;;  %v4350_v13 = vand.u32 2147483647, %v11207_v7  ;;  %13015 = vst [vmem:[#allocation43_spill] sm:$0xff] %v11319_v11  ;;  %v3716_v22 = vmul.f32 %v11309_v6, %v11262_v47  ;;  %vm3736_vm14 = vweird.f32 %v11293_v14 }
 0x662   : > { %v3732_v54 = vsub.f32 1.0, %v3731_v58  ;;  %v3726_v56 = vand.u32 2147483648, %v11262_v47  ;;  %vm11362_vm3 = vmor %vm3735_vm2, %vm3736_vm14  ;;  %vm3721_vm8 = vweird.f32 %v11309_v6 }
 0x663   : > { %v3578_v24 = vpop.xlane.xlu2 %3577  ;;  %vm4351_vm13 = vcmp.eq.f32.partialorder %v4350_v13, 8.507059e+37  ;;  %v3717_v33 = vsub.f32 1.0, %v3716_v22  ;;  %v3741_v13 = vand.u32 2147483648, %v11243_v0  ;;  %vm3722_vm10 = vmor %vm3720_vm5, %vm3721_vm8 }
 0x664   : > { %7733 = vrcp.f32 %v3578_v24  ;;  %v4354_v7 = vsel %vm4351_vm13, %v4353_v37, %v4349_v29  ;;  %v3733_v42 = vmul.f32 %v11293_v14, %v3732_v54  ;;  %v3711_v29 = vand.u32 2147483648, %v3578_v24 }
 0x665   : > { %v11335_v59 = vmul.f32 %v10971_v40, %v4354_v7  ;;  %7735 = vpow2.f32 %v3559_v44  ;;  %v11341_v49 = vpop.f32.mrf.mxu0  ;;  %v3739_v40 = vand.u32 2147483647, %v11243_v0  ;;  %v11351_v4 = vpop.f32.mrf.mxu2  ;;  %v3718_v37 = vmul.f32 %v11309_v6, %v3717_v33 }
 0x666   : > { %v11324_v16 = vpop.eup %7729  ;;  %13016 = vst [vmem:[#allocation44_spill] sm:$0xff] %v11351_v4  ;;  %v3734_v22 = vadd.f32 %v11293_v14, %v3733_v42  ;;  %v3709_v54 = vand.u32 2147483647, %v3578_v24  ;;  %vm3705_vm6 = vweird.f32 %v3578_v24  ;;  %v3742_v15 = vor.u32 1.1754944e-38, %v3741_v13 }
 0x667   : > { %v11330_v26 = vpop.eup %7731  ;;  %3587 = vadd.xlane.f32.xlu0 %v11324_v16  ;;  %4715 = vmax.xlane.f32.xlu2 %v11328_v35  ;;  %7052 = vst [vmem:[%s9247_s28 + $0x2c8] sm:$0xff] %v11335_v59  ;;  %vm11366_vm4 = vcmp.eq.f32.partialorder %v3739_v40, 8.507059e+37  ;;  %v3712_v9 = vor.u32 1.1754944e-38, %v3711_v29  ;;  %v3727_v21 = vor.u32 1.1754944e-38, %v3726_v56 }
 0x668   : > { %4204 = vadd.xlane.f32.xlu1 %v11330_v26  ;;  %vm3710_vm9 = vcmp.eq.f32.partialorder %v3709_v54, 8.507059e+37 }
 0x66a   : > { %v7734_v28 = vpop.eup %7733 }
 0x66b   : > { %v3701_v2 = vmul.f32 %v7734_v28, %v3578_v24  ;;  %v11343_v58 = vpop.xlane.xlu2 %4190  ;;  %vm3706_vm15 = vweird.f32 %v7734_v28  ;;  %v11357_v7 = vpop.eup %7735  ;;  %v3738_v24 = vsel %vm11362_vm3, %v11293_v14, %v3734_v22 }
 0x66c   : > { %7737 = vrcp.f32 %v11343_v58  ;;  %vm11372_vm7 = vmor %vm3705_vm6, %vm3706_vm15  ;;  %v3743_v13 = vsel %vm11366_vm4, %v3742_v15, %v3738_v24  ;;  %vm4331_vm13 = vweird.f32 %v11343_v58 }
 0x66d   : > { %v3702_v44 = vsub.f32 1.0, %v3701_v2  ;;  %v3719_v2 = vadd.f32 %v11309_v6, %v3718_v37  ;;  %v11389_v29 = vpop.f32.mrf.mxu0 }
 0x66f   : > { %v3703_v10 = vmul.f32 %v7734_v28, %v3702_v44  ;;  %5326 = vmax.xlane.f32.xlu0 %v11347_v1  ;;  %v3724_v44 = vand.u32 2147483647, %v11262_v47  ;;  %v3723_v37 = vsel %vm3722_vm10, %v11309_v6, %v3719_v2  ;;  %v11396_v6 = vsel %vm821_vm1, %v11259_v45, -1e+30 }
 0x670   : > { %3591 = vadd.xlane.f32.xlu1 %v11357_v7 }
 0x671   : > { %v3704_v42 = vadd.f32 %v7734_v28, %v3703_v10  ;;  %vm3725_vm11 = vcmp.eq.f32.partialorder %v3724_v44, 8.507059e+37 }
 0x672   : > { %v7738_v40 = vpop.eup %7737  ;;  %v3728_v22 = vsel %vm3725_vm11, %v3727_v21, %v3723_v37 }
 0x673   : > { %v4327_v10 = vmul.f32 %v7738_v40, %v11343_v58  ;;  %v3514_v62 = vpop.xlane.xlu2 %3513  ;;  %v3708_v11 = vsel %vm11372_vm7, %v7734_v28, %v3704_v42  ;;  %v3744_v28 = vmul.f32 %v10938_v17, %v3743_v13  ;;  %v3729_v15 = vmul.f32 %v10981_v53, %v3728_v22  ;;  %v7908_v42 = vld [vmem:[#allocation2 + $0x8] sm:$0xff] }
 0x674   : > { %v3530_v47 = vsub.f32 %v11040_v48, %v3514_v62  ;;  %v3713_v41 = vsel %vm3710_vm9, %v3712_v9, %v3708_v11  ;;  %v4337_v62 = vand.u32 2147483648, %v11343_v58  ;;  %v11400_v9 = vpop.f32.mrf.mxu2  ;;  %vm4332_vm12 = vweird.f32 %v7738_v40 }
 0x675   : > { %v4328_v14 = vsub.f32 1.0, %v4327_v10  ;;  %v3714_v4 = vmul.f32 %v11023_v25, %v3713_v41  ;;  %13023 = vst [vmem:[#allocation45_spill] sm:$0xff] %v11400_v9  ;;  %v4335_v25 = vand.u32 2147483647, %v11343_v58  ;;  %vm4333_vm14 = vmor %vm4331_vm13, %vm4332_vm12  ;;  %v3856_v44 = vpack.c.bf16 %v3744_v28, %v3729_v15 }
 0x676   : > { %v3561_v48 = vmul.f32 1.442695, %v3530_v47  ;;  %7027 = vst [vmem:[%s9247_s28 + $0x240] sm:$0xff] %v3729_v15  ;;  %v4338_v53 = vor.u32 1.1754944e-38, %v4337_v62  ;;  %v11427_v47 = vld [vmem:[#allocation2 + $0xb8] sm:$0xff]  ;;  %v5319_v15 = vpop.xlane.xlu1 %5318 }
 0x677   : > { %v4329_v11 = vmul.f32 %v7738_v40, %v4328_v14  ;;  %4713 = vmax.xlane.f32.xlu0 %v11396_v6  ;;  %7026 = vst [vmem:[%s9247_s28 + $0x238] sm:$0xff] %v3714_v4  ;;  %v3855_v17 = vpack.c.bf16 %v3714_v4, %v11291_v61  ;;  %vm4336_vm15 = vcmp.eq.f32.partialorder %v4335_v25, 8.507059e+37  ;;  %v11414_v61 = vpop.f32.mrf.mxu0 }
 0x678   : > { %7739 = vpow2.f32 %v3561_v48  ;;  %7028 = vst [vmem:[%s9247_s28 + $0x248] sm:$0xff] %v3744_v28 }
 0x679   : > { %v4330_v21 = vadd.f32 %v7738_v40, %v4329_v11  ;;  %3907 = vmatmul.bf16.gmra.mxu0 %v3855_v17  ;;  %13024 = vst [vmem:[#allocation46_spill] sm:$0xff] %v11414_v61 }
 0x67b   : > { %v11409_v41 = vpop.xlane.xlu2 %5316  ;;  %v4334_v45 = vsel %vm4333_vm14, %v7738_v40, %v4330_v21  ;;  %v5349_v21 = vsub.f32 %v10991_v57, %v5319_v15  ;;  %v4664_v57 = vpop.f32.mrf.mxu3 }
 0x67c   : > { %v4339_v54 = vsel %vm4336_vm15, %v4338_v53, %v4334_v45  ;;  %v11420_v0 = vpop.f32.mrf.mxu2 }
 0x67d   : > { %v4340_v56 = vmul.f32 %v11030_v52, %v4339_v54  ;;  %13025 = vst [vmem:[#allocation47_spill] sm:$0xff] %v11420_v0  ;;  %v7909_v52 = vld [vmem:[#allocation2 + $0x20] sm:$0xff] }
 0x67e   : > { %v11412_v33 = vpop.eup %7739 }
 0x67f   : > { %3593 = vadd.xlane.f32.xlu0 %v11412_v33  ;;  %5707 = vrot.lane.b32.xlu2 %v7908_v42, %s7945_s23  ;;  %7051 = vst [vmem:[%s9247_s28 + $0x2c0] sm:$0xff] %v4340_v56  ;;  %v4467_v58 = vpack.c.bf16 %v11335_v59, %v4340_v56  ;;  %v11422_v40 = vpop.f32.mrf.mxu0  ;;  %v5275_v56 = vpop.f32.mrf.mxu1 }
 0x680   : > { %13026 = vst [vmem:[#allocation48_spill] sm:$0xff] %v11422_v40 }
 0x681   : > { %4523 = vmatmul.bf16.gmra.mxu2 %v4467_v58 }
 0x683   : > { %v4197_v2 = vpop.xlane.xlu2 %4196 }
 0x684   : > { %7741 = vrcp.f32 %v4197_v2  ;;  %v11425_v24 = vpop.f32.mrf.mxu2  ;;  %v4382_v22 = vand.u32 2147483648, %v4197_v2  ;;  %v4380_v62 = vand.u32 2147483647, %v4197_v2  ;;  %vm4376_vm3 = vweird.f32 %v4197_v2 }
 0x685   : > { %13027 = vst [vmem:[#allocation49_spill] sm:$0xff] %v11425_v24 }
 0x686   : > { %v4383_v25 = vor.u32 1.1754944e-38, %v4382_v22  ;;  %vm4381_vm5 = vcmp.eq.f32.partialorder %v4380_v62, 8.507059e+37 }
 0x687   : > { %v11431_v59 = vpop.f32.mrf.mxu0 }
 0x688   : > { %13028 = vst [vmem:[#allocation50_spill] sm:$0xff] %v11431_v59 }
 0x689   : > { %5705 = vrot.lane.b32.xlu1 %v7909_v52, %s7945_s23  ;;  %3912 = vmatmul.bf16.gmra.mxu0 %v3856_v44 }
 0x68a   : > { %v7742_v10 = vpop.eup %7741 }
 0x68b   : > { %v4372_v37 = vmul.f32 %v7742_v10, %v4197_v2  ;;  %vm4377_vm2 = vweird.f32 %v7742_v10  ;;  %v11448_v2 = vsel %vm821_vm1, %v5275_v56, -1e+30  ;;  %v4666_v56 = vpop.f32.mrf.mxu3 }
 0x68c   : > { %v11434_v14 = vpop.f32.mrf.mxu2  ;;  %vm4378_vm4 = vmor %vm4376_vm3, %vm4377_vm2 }
 0x68d   : > { %v4373_v13 = vsub.f32 1.0, %v4372_v37  ;;  %13029 = vst [vmem:[#allocation51_spill] sm:$0xff] %v11434_v14 }
 0x68f   : > { %v4374_v4 = vmul.f32 %v7742_v10, %v4373_v13  ;;  %v11437_v48 = vpop.f32.mrf.mxu0 }
 0x690   : > { %13030 = vst [vmem:[#allocation52_spill] sm:$0xff] %v11437_v48 }
 0x691   : > { %5703 = vrot.lane.b32.xlu1 %v11427_v47, %s7945_s23  ;;  %v4375_v28 = vadd.f32 %v7742_v10, %v4374_v4 }
 0x693   : > { %5096 = vrot.lane.b32.xlu0 %v7908_v42, %s7946_s24  ;;  %v4379_v17 = vsel %vm4378_vm4, %v7742_v10, %v4375_v28  ;;  %v5366_v42 = vmul.f32 1.442695, %v5349_v21 }
 0x694   : > { %v11439_v11 = vpop.f32.mrf.mxu2  ;;  %v4384_v53 = vsel %vm4381_vm5, %v4383_v25, %v4379_v17  ;;  %v4706_v25 = vpop.xlane.xlu1 %4705 }
 0x695   : > { %13031 = vst [vmem:[#allocation53_spill] sm:$0xff] %v11439_v11  ;;  %v4385_v54 = vmul.f32 %v11055_v36, %v4384_v53 }
 0x697   : > { %7054 = vst [vmem:[%s9247_s28 + $0x2d8] sm:$0xff] %v4385_v54  ;;  %v11444_v58 = vpop.f32.mrf.mxu0 }
 0x698   : > { %13032 = vst [vmem:[#allocation54_spill] sm:$0xff] %v11444_v58 }
 0x699   : > { %5094 = vrot.lane.b32.xlu1 %v7909_v52, %s7946_s24 }
 0x69c   : > { %v11450_v44 = vpop.f32.mrf.mxu2 }
 0x69d   : > { %13033 = vst [vmem:[#allocation55_spill] sm:$0xff] %v11450_v44 }
 0x69f   : > { %v11456_v62 = vpop.f32.mrf.mxu0 }
 0x6a0   : > { %13034 = vst [vmem:[#allocation56_spill] sm:$0xff] %v11456_v62 }
 0x6a2   : > { %v4195_v45 = vpop.xlane.xlu0 %4194 }
 0x6a3   : > { %7743 = vrcp.f32 %v4195_v45  ;;  %v4367_v13 = vand.u32 2147483648, %v4195_v45  ;;  %v4365_v22 = vand.u32 2147483647, %v4195_v45  ;;  %vm4361_vm7 = vweird.f32 %v4195_v45 }
 0x6a4   : > { %7745 = vpow2.f32 %v5366_v42  ;;  %v11458_v15 = vpop.f32.mrf.mxu2  ;;  %v5348_v42 = vsub.f32 %v11049_v32, %v11409_v41 }
 0x6a5   : > { %13035 = vst [vmem:[#allocation57_spill] sm:$0xff] %v11458_v15  ;;  %v4368_v17 = vor.u32 1.1754944e-38, %v4367_v13  ;;  %vm4366_vm9 = vcmp.eq.f32.partialorder %v4365_v22, 8.507059e+37 }
 0x6a6   : > { %v5364_v44 = vmul.f32 1.442695, %v5348_v42 }
 0x6a7   : > { %v11473_v41 = vpop.f32.mrf.mxu0 }
 0x6a8   : > { %5328 = vmax.xlane.f32.xlu2 %v11448_v2  ;;  %13037 = vst [vmem:[#allocation59_spill] sm:$0xff] %v11473_v41 }
 0x6a9   : > { %v7744_v52 = vpop.eup %7743 }
 0x6aa   : > { %v4357_v10 = vmul.f32 %v7744_v52, %v4195_v45  ;;  %vm4362_vm6 = vweird.f32 %v7744_v52  ;;  %v11453_v4 = vpop.eup %7745  ;;  %v4708_v42 = vpop.xlane.xlu0 %4707 }
 0x6ab   : > { %vm4363_vm8 = vmor %vm4361_vm7, %vm4362_vm6 }
 0x6ac   : > { %v4358_v37 = vsub.f32 1.0, %v4357_v10  ;;  %v11469_v22 = vpop.f32.mrf.mxu2 }
 0x6ad   : > { %13036 = vst [vmem:[#allocation58_spill] sm:$0xff] %v11469_v22 }
 0x6ae   : > { %v4359_v36 = vmul.f32 %v7744_v52, %v4358_v37  ;;  %v11465_v37 = vsel %vm821_vm1, %v4666_v56, -1e+30 }
 0x6af   : > { %v11502_v41 = vpop.f32.mrf.mxu0 }
 0x6b0   : > { %v4360_v28 = vadd.f32 %v7744_v52, %v4359_v36  ;;  %5398 = vadd.xlane.f32.xlu2 %v11453_v4  ;;  %13041 = vst [vmem:[#allocation61_spill] sm:$0xff] %v11502_v41 }
 0x6b2   : > { %v3584_v21 = vpop.xlane.xlu2 %3583  ;;  %v4364_v53 = vsel %vm4363_vm8, %v7744_v52, %v4360_v28  ;;  %v5277_v52 = vpop.f32.mrf.mxu1 }
 0x6b3   : > { %7747 = vrcp.f32 %v3584_v21  ;;  %v4369_v10 = vsel %vm4366_vm9, %v4368_v17, %v4364_v53  ;;  %v3756_v56 = vand.u32 2147483648, %v3584_v21  ;;  %vm3750_vm11 = vweird.f32 %v3584_v21 }
 0x6b4   : > { %v4370_v45 = vmul.f32 %v11107_v3, %v4369_v10  ;;  %v11477_v3 = vsel %vm821_vm1, %v5277_v52, -1e+30  ;;  %v3754_v10 = vand.u32 2147483647, %v3584_v21 }
 0x6b6   : > { %7053 = vst [vmem:[%s9247_s28 + $0x2d0] sm:$0xff] %v4370_v45  ;;  %v4468_v36 = vpack.c.bf16 %v4385_v54, %v4370_v45  ;;  %v4737_v54 = vsub.f32 %v11008_v12, %v4706_v25  ;;  %v3757_v12 = vor.u32 1.1754944e-38, %v3756_v56  ;;  %vm3755_vm13 = vcmp.eq.f32.partialorder %v3754_v10, 8.507059e+37 }
 0x6b8   : > { %4719 = vmax.xlane.f32.xlu2 %v11465_v37  ;;  %4528 = vmatmul.bf16.gmra.mxu2 %v4468_v36  ;;  %v4753_v45 = vmul.f32 1.442695, %v4737_v54  ;;  %v11495_v54 = vsel %vm821_vm1, %v4664_v57, -1e+30 }
 0x6b9   : > { %v7748_v13 = vpop.eup %7747 }
 0x6ba   : > { %v3746_v28 = vmul.f32 %v7748_v13, %v3584_v21  ;;  %v3586_v15 = vpop.xlane.xlu1 %3585  ;;  %v11471_v32 = vpop.xlane.xlu2 %5322  ;;  %vm3751_vm10 = vweird.f32 %v7748_v13 }
 0x6bb   : > { %7749 = vrcp.f32 %v3586_v15  ;;  %vm11481_vm12 = vmor %vm3750_vm11, %vm3751_vm10  ;;  %v11499_v21 = vpop.f32.mrf.mxu2  ;;  %v3769_v10 = vand.u32 2147483647, %v3586_v15  ;;  %vm3765_vm15 = vweird.f32 %v3586_v15 }
 0x6bc   : > { %7751 = vpow2.f32 %v5364_v44  ;;  %v3747_v17 = vsub.f32 1.0, %v3746_v28  ;;  %13040 = vst [vmem:[#allocation60_spill] sm:$0xff] %v11499_v21  ;;  %v11507_v21 = vpop.xlane.xlu0 %5320 }
 0x6bd   : > { %5330 = vmax.xlane.f32.xlu0 %v11477_v3  ;;  %vm3770_vm3 = vcmp.eq.f32.partialorder %v3769_v10, 8.507059e+37 }
 0x6be   : > { %v3748_v53 = vmul.f32 %v7748_v13, %v3747_v17 }
 0x6c0   : > { %v3749_v36 = vadd.f32 %v7748_v13, %v3748_v53  ;;  %v4738_v53 = vsub.f32 %v11126_v30, %v4708_v42 }
 0x6c1   : > { %v7750_v22 = vpop.eup %7749 }
 0x6c2   : > { %v11485_v52 = vpop.eup %7751  ;;  %v3761_v44 = vmul.f32 %v7750_v22, %v3586_v15  ;;  %v11487_v25 = vpop.xlane.xlu2 %4709  ;;  %v3753_v17 = vsel %vm11481_vm12, %v7748_v13, %v3749_v36  ;;  %v3771_v13 = vand.u32 2147483648, %v3586_v15  ;;  %vm3766_vm14 = vweird.f32 %v7750_v22 }
 0x6c3   : > { %v11489_v28 = vpop.xlane.xlu1 %4198  ;;  %5396 = vadd.xlane.f32.xlu1 %v11485_v52  ;;  %v3758_v11 = vsel %vm3755_vm13, %v3757_v12, %v3753_v17  ;;  %v4755_v36 = vmul.f32 1.442695, %v4738_v53  ;;  %vm3767_vm2 = vmor %vm3765_vm15, %vm3766_vm14  ;;  %v11518_v15 = vpop.f32.mrf.mxu2 }
 0x6c4   : > { %7753 = vrcp.f32 %v11489_v28  ;;  %v3762_v56 = vsub.f32 1.0, %v3761_v44  ;;  %v3759_v14 = vmul.f32 %v11172_v31, %v3758_v11  ;;  %v3772_v44 = vor.u32 1.1754944e-38, %v3771_v13 }
 0x6c5   : > { %7755 = vpow2.f32 %v4753_v45  ;;  %4717 = vmax.xlane.f32.xlu0 %v11495_v54  ;;  %v4397_v10 = vand.u32 2147483648, %v11489_v28  ;;  %vm4391_vm5 = vweird.f32 %v11489_v28 }
 0x6c6   : > { %v3763_v57 = vmul.f32 %v7750_v22, %v3762_v56  ;;  %7029 = vst [vmem:[%s9247_s28 + $0x250] sm:$0xff] %v3759_v14  ;;  %v11520_v56 = vpop.f32.mrf.mxu0 }
 0x6c7   : > { %13042 = vst [vmem:[#allocation62_spill] sm:$0xff] %v11520_v56 }
 0x6c8   : > { %v3764_v45 = vadd.f32 %v7750_v22, %v3763_v57 }
 0x6ca   : > { %v7754_v0 = vpop.eup %7753  ;;  %v11512_v12 = vpop.xlane.xlu2 %3589  ;;  %v3768_v11 = vsel %vm3767_vm2, %v7750_v22, %v3764_v45 }
 0x6cb   : > { %v11509_v30 = vpop.eup %7755  ;;  %v4387_v42 = vmul.f32 %v7754_v0, %v11489_v28  ;;  %v11514_v31 = vpop.xlane.xlu1 %4711  ;;  %7757 = vrcp.f32 %v11512_v12  ;;  %v3773_v53 = vsel %vm3770_vm3, %v3772_v44, %v3768_v11  ;;  %vm4392_vm4 = vweird.f32 %v7754_v0 }
 0x6cc   : > { %4785 = vadd.xlane.f32.xlu1 %v11509_v30  ;;  %7759 = vpow2.f32 %v4755_v36  ;;  %v3774_v57 = vmul.f32 %v11191_v50, %v3773_v53  ;;  %vm4393_vm6 = vmor %vm4391_vm5, %vm4392_vm4  ;;  %v11544_v11 = vpop.f32.mrf.mxu2  ;;  %vm3795_vm9 = vweird.f32 %v11512_v12 }
 0x6cd   : > { %v4388_v17 = vsub.f32 1.0, %v4387_v42 }
 0x6ce   : > { %7030 = vst [vmem:[%s9247_s28 + $0x258] sm:$0xff] %v3774_v57  ;;  %v3857_v24 = vpack.c.bf16 %v3774_v57, %v3759_v14  ;;  %v11547_v53 = vpop.f32.mrf.mxu0  ;;  %v7911_v57 = vld [vmem:[#allocation2 + $0x58] sm:$0xff] }
 0x6cf   : > { %v4389_v41 = vmul.f32 %v7754_v0, %v4388_v17  ;;  %v4398_v17 = vor.u32 1.1754944e-38, %v4397_v10  ;;  %13043 = vst [vmem:[#allocation63_spill] sm:$0xff] %v11547_v53 }
 0x6d0   : > { %5092 = vrot.lane.b32.xlu2 %v11427_v47, %s7946_s24  ;;  %3917 = vmatmul.bf16.gmra.mxu0 %v3857_v24  ;;  %v4395_v24 = vand.u32 2147483647, %v11489_v28  ;;  %v11552_v28 = vld [vmem:[#allocation2 + $0x80] sm:$0xff] }
 0x6d1   : > { %v11526_v22 = vpop.eup %7757  ;;  %v4390_v50 = vadd.f32 %v7754_v0, %v4389_v41 }
 0x6d2   : > { %v11528_v13 = vpop.eup %7759  ;;  %v3791_v36 = vmul.f32 %v11526_v22, %v11512_v12  ;;  %v11533_v45 = vpop.xlane.xlu2 %4202  ;;  %vm4396_vm7 = vcmp.eq.f32.partialorder %v4395_v24, 8.507059e+37  ;;  %vm3796_vm8 = vweird.f32 %v11526_v22 }
 0x6d3   : > { %v11535_v42 = vpop.xlane.xlu0 %4200  ;;  %7761 = vrcp.f32 %v11533_v45  ;;  %v11538_v14 = vpop.xlane.xlu1 %5324  ;;  %v4394_v41 = vsel %vm4393_vm6, %v7754_v0, %v4390_v50  ;;  %vm11577_vm10 = vmor %vm3795_vm9, %vm3796_vm8  ;;  %vm4421_vm12 = vweird.f32 %v11533_v45 }
 0x6d4   : > { %4787 = vadd.xlane.f32.xlu1 %v11528_v13  ;;  %v3792_v47 = vsub.f32 1.0, %v3791_v36  ;;  %7763 = vrcp.f32 %v11535_v42  ;;  %v4399_v56 = vsel %vm4396_vm7, %v4398_v17, %v4394_v41  ;;  %v3801_v41 = vand.u32 2147483648, %v11512_v12  ;;  %v11581_v9 = vpop.f32.mrf.mxu2 }
 0x6d5   : > { %v11557_v36 = vmul.f32 %v11215_v5, %v4399_v56  ;;  %v3799_v5 = vand.u32 2147483647, %v11512_v12  ;;  %13046 = vst [vmem:[#allocation64_spill] sm:$0xff] %v11581_v9  ;;  %v4425_v12 = vand.u32 2147483647, %v11533_v45  ;;  %vm4406_vm2 = vweird.f32 %v11535_v42 }
 0x6d6   : > { %v3793_v44 = vmul.f32 %v11526_v22, %v3792_v47  ;;  %v11587_v40 = vpop.f32.mrf.mxu0  ;;  %v3802_v61 = vor.u32 1.1754944e-38, %v3801_v41  ;;  %v4410_v46 = vand.u32 2147483647, %v11535_v42 }
 0x6d7   : > { %7055 = vst [vmem:[%s9247_s28 + $0x2e0] sm:$0xff] %v11557_v36  ;;  %vm3800_vm11 = vcmp.eq.f32.partialorder %v3799_v5, 8.507059e+37  ;;  %vm11608_vm15 = vcmp.eq.f32.partialorder %v4425_v12, 8.507059e+37 }
 0x6d8   : > { %5088 = vrot.lane.b32.xlu2 %v7911_v57, %s7946_s24  ;;  %v3794_v10 = vadd.f32 %v11526_v22, %v3793_v44  ;;  %13047 = vst [vmem:[#allocation65_spill] sm:$0xff] %v11587_v40  ;;  %vm4411_vm4 = vcmp.eq.f32.partialorder %v4410_v46, 8.507059e+37 }
 0x6d9   : > { %v11550_v58 = vpop.eup %7761  ;;  %5701 = vrot.lane.b32.xlu0 %v11552_v28, %s7945_s23 }
 0x6da   : > { %v7764_v0 = vpop.eup %7763  ;;  %v4417_v50 = vmul.f32 %v11550_v58, %v11533_v45  ;;  %v11563_v24 = vpop.xlane.xlu2 %4715  ;;  %v3798_v48 = vsel %vm11577_vm10, %v11526_v22, %v3794_v10  ;;  %vm4422_vm14 = vweird.f32 %v11550_v58 }
 0x6db   : > { %v11565_v47 = vpop.xlane.xlu0 %3587  ;;  %v4402_v17 = vmul.f32 %v7764_v0, %v11535_v42  ;;  %v11569_v53 = vpop.xlane.xlu1 %4204  ;;  %vm4407_vm13 = vweird.f32 %v7764_v0  ;;  %v3803_v22 = vsel %vm3800_vm11, %v3802_v61, %v3798_v48  ;;  %vm11625_vm5 = vmor %vm4421_vm12, %vm4422_vm14 }
 0x6dc   : > { %7765 = vrcp.f32 %v11565_v47  ;;  %v4418_v56 = vsub.f32 1.0, %v4417_v50  ;;  %v4427_v50 = vand.u32 2147483648, %v11533_v45  ;;  %v11606_v40 = vmul.f32 %v11241_v38, %v3803_v22  ;;  %vm4408_vm3 = vmor %vm4406_vm2, %vm4407_vm13  ;;  %v11640_v27 = vpop.f32.mrf.mxu2 }
 0x6dd   : > { %7767 = vrcp.f32 %v11569_v53  ;;  %v4403_v62 = vsub.f32 1.0, %v4402_v17  ;;  %v4412_v17 = vand.u32 2147483648, %v11535_v42  ;;  %v4440_v12 = vand.u32 2147483647, %v11569_v53 }
 0x6de   : > { %v4419_v59 = vmul.f32 %v11550_v58, %v4418_v56  ;;  %v4428_v61 = vor.u32 1.1754944e-38, %v4427_v50  ;;  %7032 = vst [vmem:[%s9247_s28 + $0x268] sm:$0xff] %v11606_v40  ;;  %v3786_v50 = vand.u32 2147483648, %v11565_v47  ;;  %vm3780_vm7 = vweird.f32 %v11565_v47 }
 0x6df   : > { %v4404_v55 = vmul.f32 %v7764_v0, %v4403_v62  ;;  %vm4436_vm10 = vweird.f32 %v11569_v53  ;;  %vm4441_vm13 = vcmp.eq.f32.partialorder %v4440_v12, 8.507059e+37 }
 0x6e0   : > { %v4420_v41 = vadd.f32 %v11550_v58, %v4419_v59 }
 0x6e1   : > { %v4405_v56 = vadd.f32 %v7764_v0, %v4404_v55  ;;  %5699 = vrot.lane.b32.xlu0 %v7911_v57, %s7945_s23  ;;  %v4413_v57 = vor.u32 1.1754944e-38, %v4412_v17 }
 0x6e2   : > { %v11593_v9 = vpop.eup %7765  ;;  %v5708_v5 = vpop.permute.xlu2 %5707 }
 0x6e3   : > { %v11597_v10 = vpop.eup %7767  ;;  %v3776_v62 = vmul.f32 %v11593_v9, %v11565_v47  ;;  %v11603_v44 = vpop.xlane.xlu0 %5326  ;;  %5717 = vmatpush.bf16.msra.mxu2 %v5708_v5  ;;  %v4409_v46 = vsel %vm4408_vm3, %v7764_v0, %v4405_v56  ;;  %vm3781_vm6 = vweird.f32 %v11593_v9  ;;  %v4442_v5 = vand.u32 2147483648, %v11569_v53 }
 0x6e4   : > { %v4432_v59 = vmul.f32 %v11597_v10, %v11569_v53  ;;  %v11615_v48 = vpop.xlane.xlu1 %3591  ;;  %v4414_v22 = vsel %vm4411_vm4, %v4413_v57, %v4409_v46  ;;  %vm4437_vm8 = vweird.f32 %v11597_v10  ;;  %v11647_v56 = vpop.f32.mrf.mxu0  ;;  %vm11650_vm9 = vmor %vm3780_vm7, %vm3781_vm6 }
 0x6e5   : > { %v3777_v19 = vsub.f32 1.0, %v3776_v62  ;;  %7769 = vrcp.f32 %v11615_v48  ;;  %v4424_v62 = vsel %vm11625_vm5, %v11550_v58, %v4420_v41  ;;  %v4415_v0 = vmul.f32 %v11288_v23, %v4414_v22  ;;  %13052 = vst [vmem:[#allocation66_spill] sm:$0xff] %v11647_v56  ;;  %vm4438_vm11 = vmor %vm4436_vm10, %vm4437_vm8 }
 0x6e6   : > { %v4433_v42 = vsub.f32 1.0, %v4432_v59  ;;  %v3784_v59 = vand.u32 2147483647, %v11565_v47  ;;  %v4429_v58 = vsel %vm11608_vm15, %v4428_v61, %v4424_v62  ;;  %v7913_v47 = vld [vmem:[#allocation2 + $0x30] sm:$0xff]  ;;  %v3787_v23 = vor.u32 1.1754944e-38, %v3786_v50 }
 0x6e7   : > { %v3778_v17 = vmul.f32 %v11593_v9, %v3777_v19  ;;  %v4430_v38 = vmul.f32 %v11285_v63, %v4429_v58  ;;  %7056 = vst [vmem:[%s9247_s28 + $0x2e8] sm:$0xff] %v4415_v0  ;;  %v4469_v55 = vpack.c.bf16 %v4415_v0, %v11557_v36  ;;  %v3814_v12 = vand.u32 2147483647, %v11615_v48 }
 0x6e8   : > { %v4434_v45 = vmul.f32 %v11597_v10, %v4433_v42  ;;  %vm3785_vm12 = vcmp.eq.f32.partialorder %v3784_v59, 8.507059e+37  ;;  %vm3810_vm15 = vweird.f32 %v11615_v48 }
 0x6e9   : > { %v3779_v19 = vadd.f32 %v11593_v9, %v3778_v17  ;;  %5697 = vrot.lane.b32.xlu0 %v7913_v47, %s7945_s23  ;;  %v4443_v17 = vor.u32 1.1754944e-38, %v4442_v5  ;;  %7057 = vst [vmem:[%s9247_s28 + $0x2f0] sm:$0xff] %v4430_v38  ;;  %4533 = vmatmul.bf16.gmra.mxu2 %v4469_v55  ;;  %v3816_v5 = vand.u32 2147483648, %v11615_v48  ;;  %vm3815_vm3 = vcmp.eq.f32.partialorder %v3814_v12, 8.507059e+37 }
 0x6ea   : > { %v4435_v41 = vadd.f32 %v11597_v10, %v4434_v45 }
 0x6eb   : > { %v7770_v42 = vpop.eup %7769  ;;  %v11659_v61 = vpop.xlane.xlu0 %4713  ;;  %v3783_v46 = vsel %vm11650_vm9, %v11593_v9, %v3779_v19  ;;  %v3817_v0 = vor.u32 1.1754944e-38, %v3816_v5 }
 0x6ec   : > { %v3806_v63 = vmul.f32 %v7770_v42, %v11615_v48  ;;  %v3788_v53 = vsel %vm3785_vm12, %v3787_v23, %v3783_v46  ;;  %v4439_v36 = vsel %vm4438_vm11, %v11597_v10, %v4435_v41  ;;  %vm3811_vm14 = vweird.f32 %v7770_v42  ;;  %v11680_v19 = vpop.f32.mrf.mxu2 }
 0x6ed   : > { %5090 = vrot.lane.b32.xlu1 %v11552_v28, %s7946_s24  ;;  %v3789_v9 = vmul.f32 %v11324_v16, %v3788_v53  ;;  %v4444_v22 = vsel %vm4441_vm13, %v4443_v17, %v4439_v36  ;;  %v11678_v28 = vpop.f32.mrf.mxu0  ;;  %vm3812_vm2 = vmor %vm3810_vm15, %vm3811_vm14 }
 0x6ee   : > { %v3807_v50 = vsub.f32 1.0, %v3806_v63  ;;  %v4445_v62 = vmul.f32 %v11330_v26, %v4444_v22  ;;  %13055 = vst [vmem:[#allocation67_spill] sm:$0xff] %v11678_v28  ;;  %v5280_v26 = vpop.f32.mrf.mxu1 }
 0x6ef   : > { %7031 = vst [vmem:[%s9247_s28 + $0x260] sm:$0xff] %v3789_v9  ;;  %v3858_v59 = vpack.c.bf16 %v11606_v40, %v3789_v9  ;;  %v11683_v40 = vld [vmem:[#allocation2 + $0x68] sm:$0xff] }
 0x6f0   : > { %v3808_v45 = vmul.f32 %v7770_v42, %v3807_v50  ;;  %7058 = vst [vmem:[%s9247_s28 + $0x2f8] sm:$0xff] %v4445_v62  ;;  %v4470_v46 = vpack.c.bf16 %v4445_v62, %v4430_v38 }
 0x6f1   : > { %3922 = vmatmul.bf16.gmra.mxu0 %v3858_v59 }
 0x6f2   : > { %v3809_v10 = vadd.f32 %v7770_v42, %v3808_v45 }
 0x6f3   : > { %v3594_v16 = vpop.xlane.xlu0 %3593 }
 0x6f4   : > { %7771 = vrcp.f32 %v3594_v16  ;;  %v3813_v58 = vsel %vm3812_vm2, %v7770_v42, %v3809_v10  ;;  %v11691_v63 = vpop.f32.mrf.mxu2  ;;  %v3831_v50 = vand.u32 2147483648, %v3594_v16  ;;  %v3829_v9 = vand.u32 2147483647, %v3594_v16  ;;  %v4669_v10 = vpop.f32.mrf.mxu3 }
 0x6f5   : > { %5695 = vrot.lane.b32.xlu1 %v11683_v40, %s7945_s23  ;;  %v3818_v41 = vsel %vm3815_vm3, %v3817_v0, %v3813_v58  ;;  %v11689_v17 = vpop.f32.mrf.mxu0  ;;  %vm3825_vm5 = vweird.f32 %v3594_v16 }
 0x6f6   : > { %v3819_v57 = vmul.f32 %v11357_v7, %v3818_v41  ;;  %13056 = vst [vmem:[#allocation68_spill] sm:$0xff] %v11689_v17  ;;  %v5282_v36 = vpop.f32.mrf.mxu1  ;;  %v3832_v22 = vor.u32 1.1754944e-38, %v3831_v50  ;;  %vm3830_vm7 = vcmp.eq.f32.partialorder %v3829_v9, 8.507059e+37 }
 0x6f7   : > { %v11696_v7 = vsel %vm821_vm1, %v5282_v36, -1e+30 }
 0x6f8   : > { %7033 = vst [vmem:[%s9247_s28 + $0x270] sm:$0xff] %v3819_v57 }
 0x6f9   : > { %4538 = vmatmul.bf16.gmra.mxu2 %v4470_v46 }
 0x6fa   : > { %v7772_v23 = vpop.eup %7771 }
 0x6fb   : > { %v3821_v55 = vmul.f32 %v7772_v23, %v3594_v16  ;;  %v5706_v48 = vpop.permute.xlu1 %5705  ;;  %vm3826_vm4 = vweird.f32 %v7772_v23  ;;  %v11705_v16 = vsel %vm821_vm1, %v4669_v10, -1e+30 }
 0x6fc   : > { %5718 = vmatpush.bf16.msra.mxu2 %v5706_v48  ;;  %vm3827_vm6 = vmor %vm3825_vm5, %vm3826_vm4 }
 0x6fd   : > { %v3822_v53 = vsub.f32 1.0, %v3821_v55  ;;  %5086 = vrot.lane.b32.xlu1 %v7913_v47, %s7946_s24  ;;  %v11699_v5 = vpop.f32.mrf.mxu0  ;;  %v5351_v55 = vsub.f32 %v11197_v34, %v11471_v32  ;;  %v5350_v32 = vsub.f32 %v11176_v18, %v11507_v21 }
 0x6ff   : > { %v3823_v42 = vmul.f32 %v7772_v23, %v3822_v53  ;;  %v5370_v36 = vmul.f32 1.442695, %v5351_v55 }
 0x701   : > { %v3824_v38 = vadd.f32 %v7772_v23, %v3823_v42  ;;  %5334 = vmax.xlane.f32.xlu2 %v11696_v7  ;;  %v11720_v42 = vsel %vm821_vm1, %v5280_v26, -1e+30  ;;  %7773 = vpow2.f32 %v5370_v36  ;;  %v4739_v26 = vsub.f32 %v11219_v60, %v11487_v25 }
 0x703   : > { %v3828_v62 = vsel %vm3827_vm6, %v7772_v23, %v3824_v38  ;;  %v5704_v47 = vpop.permute.xlu1 %5703  ;;  %v5368_v38 = vmul.f32 1.442695, %v5350_v32  ;;  %v4757_v21 = vmul.f32 1.442695, %v4739_v26  ;;  %v5285_v32 = vpop.f32.mrf.mxu1 }
 0x704   : > { %v3833_v45 = vsel %vm3830_vm7, %v3832_v22, %v3828_v62  ;;  %5719 = vmatpush.bf16.msra.mxu2 %v5704_v47  ;;  %v4524_v59 = vpop.f32.mrf.mxu2  ;;  %v4671_v62 = vpop.f32.mrf.mxu3 }
 0x705   : > { %v3834_v12 = vmul.f32 %v11412_v33, %v3833_v45  ;;  %v5097_v0 = vpop.permute.xlu0 %5096  ;;  %v4552_v41 = vpack.c.bf16 %v4524_v59, %v4524_v59  ;;  %v11710_v48 = vpop.f32.mrf.mxu0  ;;  %7775 = vpow2.f32 %v5368_v38  ;;  %v7915_v45 = vld [vmem:[#allocation2 + $0xa8] sm:$0xff]  ;;  %v11739_v18 = vsel %vm821_vm1, %v4671_v62, -1e+30 }
 0x706   : > { %5106 = vmatpush.bf16.msra.mxu0 %v5097_v0 }
 0x707   : > { %7034 = vst [vmem:[%s9247_s28 + $0x278] sm:$0xff] %v3834_v12  ;;  %v3859_v58 = vpack.c.bf16 %v3834_v12, %v3819_v57  ;;  %v11712_v53 = vunpack.c.l.b16 %v4552_v41  ;;  %v11727_v9 = vpop.eup %7773 }
 0x709   : > { %3927 = vmatmul.bf16.gmra.mxu0 %v3859_v58  ;;  %4721 = vmax.xlane.f32.xlu2 %v11705_v16  ;;  %13057 = vst [vmem:[#allocation69_spill] sm:$0xff] %v11712_v53 }
 0x70b   : > { %v5095_v23 = vpop.permute.xlu1 %5094  ;;  %v11742_v12 = vpop.eup %7775 }
 0x70c   : > { %5107 = vmatpush.bf16.msra.mxu0 %v5095_v23  ;;  %v4526_v46 = vpop.f32.mrf.mxu2  ;;  %v5352_v23 = vsub.f32 %v11297_v51, %v11538_v14  ;;  %v11758_v51 = vsel %vm821_vm1, %v5285_v32, -1e+30 }
 0x70d   : > { %v4553_v33 = vpack.c.bf16 %v4526_v46, %v4526_v46  ;;  %v11723_v34 = vpop.f32.mrf.mxu0 }
 0x70e   : > { %v5372_v38 = vmul.f32 1.442695, %v5352_v23 }
 0x70f   : > { %v11714_v57 = vunpack.c.l.b16 %v4553_v33 }
 0x711   : > { %13058 = vst [vmem:[#allocation70_spill] sm:$0xff] %v11714_v57 }
 0x713   : > { %5332 = vmax.xlane.f32.xlu0 %v11720_v42 }
 0x715   : > { %v11734_v47 = vpop.f32.mrf.mxu0 }
 0x71b   : > { %5402 = vadd.xlane.f32.xlu0 %v11727_v9  ;;  %v11730_v22 = vpop.xlane.xlu2 %5328 }
 0x71d   : > { %v11745_v60 = vpop.f32.mrf.mxu0 }
 0x71e   : > { %13059 = vst [vmem:[#allocation71_spill] sm:$0xff] %v11745_v60 }
 0x721   : > { %5693 = vrot.lane.b32.xlu2 %v7915_v45, %s7945_s23 }
 0x723   : > { %4723 = vmax.xlane.f32.xlu0 %v11739_v18  ;;  %v5399_v59 = vpop.xlane.xlu2 %5398 }
 0x724   : > { %7777 = vrcp.f32 %v5399_v59  ;;  %v5454_v55 = vand.u32 2147483648, %v5399_v59  ;;  %v5452_v33 = vand.u32 2147483647, %v5399_v59  ;;  %vm5448_vm9 = vweird.f32 %v5399_v59 }
 0x725   : > { %7779 = vpow2.f32 %v4757_v21  ;;  %v11754_v62 = vpop.f32.mrf.mxu0 }
 0x726   : > { %v5455_v26 = vor.u32 1.1754944e-38, %v5454_v55  ;;  %vm5453_vm11 = vcmp.eq.f32.partialorder %v5452_v33, 8.507059e+37  ;;  %7781 = vpow2.f32 %v5372_v38 }
 0x727   : > { %5400 = vadd.xlane.f32.xlu1 %v11742_v12 }
 0x72a   : > { %v7778_v25 = vpop.eup %7777 }
 0x72b   : > { %v5444_v10 = vmul.f32 %v7778_v25, %v5399_v59  ;;  %v11747_v0 = vpop.xlane.xlu2 %4719  ;;  %v11749_v58 = vpop.eup %7779  ;;  %vm5449_vm8 = vweird.f32 %v7778_v25  ;;  %v5353_v59 = vsub.f32 %v11347_v1, %v11603_v44 }
 0x72c   : > { %vm5450_vm10 = vmor %vm5448_vm9, %vm5449_vm8 }
 0x72d   : > { %v5445_v41 = vsub.f32 1.0, %v5444_v10  ;;  %v5374_v23 = vmul.f32 1.442695, %v5353_v59  ;;  %v11776_v55 = vpop.f32.mrf.mxu0 }
 0x72e   : > { %13060 = vst [vmem:[#allocation72_spill] sm:$0xff] %v11776_v55 }
 0x72f   : > { %4789 = vadd.xlane.f32.xlu1 %v11749_v58  ;;  %v5446_v46 = vmul.f32 %v7778_v25, %v5445_v41 }
 0x731   : > { %v5447_v36 = vadd.f32 %v7778_v25, %v5446_v46 }
 0x733   : > { %v5451_v21 = vsel %vm5450_vm10, %v7778_v25, %v5447_v36  ;;  %v5093_v10 = vpop.permute.xlu2 %5092  ;;  %v11770_v25 = vpop.xlane.xlu0 %5330 }
 0x734   : > { %v5456_v50 = vsel %vm5453_vm11, %v5455_v26, %v5451_v21  ;;  %5108 = vmatpush.bf16.msra.mxu0 %v5093_v10 }
 0x735   : > { %v11761_v14 = vmul.f32 %v11453_v4, %v5456_v50  ;;  %v4740_v4 = vsub.f32 %v11238_v20, %v11514_v31  ;;  %v11774_v50 = vpop.eup %7781  ;;  %v4741_v20 = vsub.f32 %v11396_v6, %v11659_v61  ;;  %v11786_v17 = vpop.f32.mrf.mxu0 }
 0x736   : > { %v5397_v41 = vpop.xlane.xlu1 %5396  ;;  %13061 = vst [vmem:[#allocation73_spill] sm:$0xff] %v11786_v17 }
 0x737   : > { %5336 = vmax.xlane.f32.xlu1 %v11758_v51  ;;  %7092 = vst [vmem:[%s9247_s28 + $0x388] sm:$0xff] %v11761_v14  ;;  %7783 = vrcp.f32 %v5397_v41  ;;  %5084 = vrot.lane.b32.xlu0 %v11683_v40, %s7946_s24  ;;  %v4759_v36 = vmul.f32 1.442695, %v4740_v4  ;;  %v5439_v32 = vand.u32 2147483648, %v5397_v41  ;;  %v5437_v38 = vand.u32 2147483647, %v5397_v41 }
 0x738   : > { %7785 = vpow2.f32 %v5374_v23  ;;  %vm5433_vm13 = vweird.f32 %v5397_v41  ;;  %v4761_v28 = vmul.f32 1.442695, %v4741_v20 }
 0x739   : > { %vm5438_vm15 = vcmp.eq.f32.partialorder %v5437_v38, 8.507059e+37 }
 0x73b   : > { %v4529_v1 = vpop.f32.mrf.mxu2  ;;  %v11782_v26 = vpop.xlane.xlu0 %4717 }
 0x73c   : > { %v4554_v21 = vpack.c.bf16 %v4529_v1, %v4529_v1 }
 0x73d   : > { %v7784_v44 = vpop.eup %7783 }
 0x73e   : > { %v5429_v46 = vmul.f32 %v7784_v44, %v5397_v41  ;;  %vm5434_vm12 = vweird.f32 %v7784_v44  ;;  %v11784_v10 = vpop.eup %7785  ;;  %v4674_v41 = vpop.f32.mrf.mxu3 }
 0x73f   : > { %v4786_v33 = vpop.xlane.xlu1 %4785  ;;  %5404 = vadd.xlane.f32.xlu1 %v11774_v50  ;;  %5082 = vrot.lane.b32.xlu0 %v7915_v45, %s7946_s24  ;;  %vm5435_vm14 = vmor %vm5433_vm13, %vm5434_vm12  ;;  %v5440_v45 = vor.u32 1.1754944e-38, %v5439_v32 }
 0x740   : > { %7787 = vrcp.f32 %v4786_v33  ;;  %v5430_v40 = vsub.f32 1.0, %v5429_v46  ;;  %v4828_v38 = vand.u32 2147483648, %v4786_v33  ;;  %vm4822_vm3 = vweird.f32 %v4786_v33 }
 0x741   : > { %7789 = vpow2.f32 %v4759_v36 }
 0x742   : > { %v5431_v31 = vmul.f32 %v7784_v44, %v5430_v40  ;;  %v11789_v40 = vunpack.c.l.b16 %v4554_v21 }
 0x743   : > { %v4531_v23 = vpop.f32.mrf.mxu2 }
 0x744   : > { %v5432_v59 = vadd.f32 %v7784_v44, %v5431_v31  ;;  %v4555_v46 = vpack.c.bf16 %v4531_v23, %v4531_v23  ;;  %13062 = vst [vmem:[#allocation74_spill] sm:$0xff] %v11789_v40 }
 0x746   : > { %v7788_v4 = vpop.eup %7787  ;;  %v5436_v6 = vsel %vm5435_vm14, %v7784_v44, %v5432_v59  ;;  %v11791_v31 = vunpack.c.l.b16 %v4555_v46  ;;  %v11798_v44 = vpop.f32.mrf.mxu1 }
 0x747   : > { %v4818_v61 = vmul.f32 %v7788_v4, %v4786_v33  ;;  %v4788_v36 = vpop.xlane.xlu1 %4787  ;;  %5406 = vadd.xlane.f32.xlu1 %v11784_v10  ;;  %v5441_v1 = vsel %vm5438_vm15, %v5440_v45, %v5436_v6  ;;  %v11796_v23 = vpop.eup %7789  ;;  %vm4823_vm2 = vweird.f32 %v7788_v4  ;;  %v4826_v45 = vand.u32 2147483647, %v4786_v33 }
 0x748   : > { %13063 = vst [vmem:[#allocation75_spill] sm:$0xff] %v11791_v31  ;;  %7791 = vrcp.f32 %v4788_v36  ;;  %v11794_v32 = vmul.f32 %v11485_v52, %v5441_v1  ;;  %vm4824_vm4 = vmor %vm4822_vm3, %vm4823_vm2  ;;  %v4829_v1 = vor.u32 1.1754944e-38, %v4828_v38  ;;  %v4843_v31 = vand.u32 2147483648, %v4788_v36  ;;  %v4676_v53 = vpop.f32.mrf.mxu3 }
 0x749   : > { %v4819_v20 = vsub.f32 1.0, %v4818_v61  ;;  %7793 = vpow2.f32 %v4761_v28  ;;  %v11807_v61 = vsel %vm821_vm1, %v4674_v41, -1e+30  ;;  %vm4827_vm5 = vcmp.eq.f32.partialorder %v4826_v45, 8.507059e+37 }
 0x74a   : > { %7091 = vst [vmem:[%s9247_s28 + $0x380] sm:$0xff] %v11794_v32  ;;  %4791 = vadd.xlane.f32.xlu2 %v11796_v23  ;;  %vm4837_vm7 = vweird.f32 %v4788_v36  ;;  %v4844_v45 = vor.u32 1.1754944e-38, %v4843_v31 }
 0x74b   : > { %v4820_v21 = vmul.f32 %v7788_v4, %v4819_v20  ;;  %v5702_v46 = vpop.permute.xlu0 %5701  ;;  %v4742_v20 = vsub.f32 %v11328_v35, %v11563_v24  ;;  %v4841_v24 = vand.u32 2147483647, %v4788_v36 }
 0x74c   : > { %5720 = vmatpush.bf16.msra.mxu2 %v5702_v46 }
 0x74d   : > { %v4821_v52 = vadd.f32 %v7788_v4, %v4820_v21  ;;  %v3918_v40 = vpop.f32.mrf.mxu0  ;;  %v4763_v38 = vmul.f32 1.442695, %v4742_v20  ;;  %vm4842_vm9 = vcmp.eq.f32.partialorder %v4841_v24, 8.507059e+37 }
 0x74e   : > { %v7792_v6 = vpop.eup %7791  ;;  %v5290_v41 = vpop.f32.mrf.mxu1 }
 0x74f   : > { %v4825_v59 = vsel %vm4824_vm4, %v7788_v4, %v4821_v52  ;;  %v4833_v56 = vmul.f32 %v7792_v6, %v4788_v36  ;;  %4725 = vmax.xlane.f32.xlu1 %v11807_v61  ;;  %v11815_v46 = vpop.eup %7793  ;;  %vm4838_vm6 = vweird.f32 %v7792_v6  ;;  %v5355_v4 = vsub.f32 %v11477_v3, %v11770_v25 }
 0x750   : > { %v4830_v28 = vsel %vm4827_vm5, %v4829_v1, %v4825_v59  ;;  %vm4839_vm8 = vmor %vm4837_vm7, %vm4838_vm6  ;;  %v3943_v52 = vpack.c.bf16 %v3918_v40, %v3918_v40  ;;  %7795 = vpow2.f32 %v4763_v38  ;;  %v5354_v3 = vsub.f32 %v11448_v2, %v11730_v22 }
 0x751   : > { %v11813_v33 = vmul.f32 %v11509_v30, %v4830_v28  ;;  %v4834_v21 = vsub.f32 1.0, %v4833_v56  ;;  %v11824_v56 = vsel %vm821_vm1, %v4676_v53, -1e+30  ;;  %v5378_v25 = vmul.f32 1.442695, %v5355_v4  ;;  %v4679_v4 = vpop.f32.mrf.mxu3 }
 0x752   : > { %4793 = vadd.xlane.f32.xlu2 %v11815_v46  ;;  %v11834_v53 = vsel %vm821_vm1, %v5290_v41, -1e+30  ;;  %v11836_v40 = vunpack.c.l.b16 %v3943_v52  ;;  %v5376_v2 = vmul.f32 1.442695, %v5354_v3  ;;  %v4743_v22 = vsub.f32 %v11495_v54, %v11782_v26 }
 0x753   : > { %7067 = vst [vmem:[%s9247_s28 + $0x300] sm:$0xff] %v11813_v33  ;;  %v4835_v35 = vmul.f32 %v7792_v6, %v4834_v21  ;;  %v5700_v59 = vpop.permute.xlu0 %5699  ;;  %7797 = vpow2.f32 %v5378_v25  ;;  %v11859_v52 = vsel %vm821_vm1, %v11798_v44, -1e+30 }
 0x754   : > { %5721 = vmatpush.bf16.msra.mxu2 %v5700_v59  ;;  %13064 = vst [vmem:[#allocation76_spill] sm:$0xff] %v11836_v40  ;;  %7799 = vpow2.f32 %v5376_v2  ;;  %v4765_v24 = vmul.f32 1.442695, %v4743_v22 }
 0x755   : > { %v4836_v30 = vadd.f32 %v7792_v6, %v4835_v35  ;;  %v3920_v20 = vpop.f32.mrf.mxu0 }
 0x756   : > { %v3944_v28 = vpack.c.bf16 %v3920_v20, %v3920_v20  ;;  %v11847_v41 = vpop.eup %7795  ;;  %7801 = vpow2.f32 %v4765_v24 }
 0x757   : > { %v4840_v1 = vsel %vm4839_vm8, %v7792_v6, %v4836_v30  ;;  %4727 = vmax.xlane.f32.xlu1 %v11824_v56  ;;  %v5292_v6 = vpop.f32.mrf.mxu1  ;;  %v5089_v30 = vpop.permute.xlu2 %5088 }
 0x758   : > { %v4845_v36 = vsel %vm4842_vm9, %v4844_v45, %v4840_v1  ;;  %v11838_v31 = vunpack.c.l.b16 %v3944_v28  ;;  %v11872_v44 = vsel %vm821_vm1, %v5292_v6, -1e+30 }
 0x759   : > { %v11830_v21 = vmul.f32 %v11528_v13, %v4845_v36  ;;  %v11850_v59 = vpop.eup %7797  ;;  %v4681_v20 = vpop.f32.mrf.mxu3 }
 0x75a   : > { %13065 = vst [vmem:[#allocation77_spill] sm:$0xff] %v11838_v31  ;;  %5340 = vmax.xlane.f32.xlu2 %v11834_v53  ;;  %v11853_v26 = vpop.eup %7799  ;;  %v11867_v3 = vsel %vm821_vm1, %v4681_v20, -1e+30 }
 0x75b   : > { %7068 = vst [vmem:[%s9247_s28 + $0x308] sm:$0xff] %v11830_v21  ;;  %v5698_v38 = vpop.permute.xlu0 %5697 }
 0x75c   : > { %5722 = vmatpush.bf16.msra.mxu2 %v5698_v38  ;;  %v11861_v1 = vpop.eup %7801  ;;  %v4744_v38 = vsub.f32 %v11465_v37, %v11747_v0  ;;  %v11890_v37 = vsel %vm821_vm1, %v4679_v4, -1e+30 }
 0x75e   : > { %v4767_v20 = vmul.f32 1.442695, %v4744_v38 }
 0x75f   : > { %v5091_v35 = vpop.permute.xlu1 %5090  ;;  %4795 = vadd.xlane.f32.xlu1 %v11847_v41  ;;  %v5295_v54 = vpop.f32.mrf.mxu1 }
 0x760   : > { %5109 = vmatpush.bf16.msra.mxu0 %v5091_v35  ;;  %v11884_v24 = vsel %vm821_vm1, %v5295_v54, -1e+30 }
 0x762   : > { %5410 = vadd.xlane.f32.xlu2 %v11850_v59 }
 0x764   : > { %5110 = vmatpush.bf16.msra.mxu0 %v5089_v30 }
 0x767   : > { %v5696_v45 = vpop.permute.xlu1 %5695  ;;  %5408 = vadd.xlane.f32.xlu1 %v11853_v26  ;;  %v5297_v25 = vpop.f32.mrf.mxu1 }
 0x768   : > { %5723 = vmatpush.bf16.msra.mxu2 %v5696_v45  ;;  %v11876_v22 = vsel %vm821_vm1, %v5297_v25, -1e+30  ;;  %v4684_v45 = vpop.f32.mrf.mxu3 }
 0x769   : > { %5338 = vmax.xlane.f32.xlu0 %v11859_v52  ;;  %v11894_v54 = vsel %vm821_vm1, %v4684_v45, -1e+30 }
 0x76a   : > { %4797 = vadd.xlane.f32.xlu2 %v11861_v1 }
 0x76c   : > { %v4534_v2 = vpop.f32.mrf.mxu2 }
 0x76e   : > { %v3923_v28 = vpop.f32.mrf.mxu0 }
 0x76f   : > { %v5087_v36 = vpop.permute.xlu1 %5086  ;;  %4731 = vmax.xlane.f32.xlu1 %v11867_v3  ;;  %v3945_v30 = vpack.c.bf16 %v3923_v28, %v3923_v28 }
 0x770   : > { %5111 = vmatpush.bf16.msra.mxu0 %v5087_v36  ;;  %v4556_v36 = vpack.c.bf16 %v4534_v2, %v4534_v2 }
 0x771   : > { %5342 = vmax.xlane.f32.xlu0 %v11872_v44  ;;  %v11896_v28 = vunpack.c.l.b16 %v3945_v30 }
 0x772   : > { %5346 = vmax.xlane.f32.xlu2 %v11876_v22  ;;  %v11901_v2 = vunpack.c.l.b16 %v4556_v36  ;;  %v5685_v36 = vpack.c.bf16 %v11761_v14, %v11794_v32 }
 0x773   : > { %13066 = vst [vmem:[#allocation78_spill] sm:$0xff] %v11896_v28 }
 0x774   : > { %v5335_v35 = vpop.xlane.xlu2 %5334  ;;  %v4536_v13 = vpop.f32.mrf.mxu2  ;;  %13068 = vst [vmem:[#allocation80_spill] sm:$0xff] %v11901_v2 }
 0x775   : > { %v5357_v6 = vsub.f32 %v11696_v7, %v5335_v35  ;;  %v4557_v0 = vpack.c.bf16 %v4536_v13, %v4536_v13 }
 0x776   : > { %v3925_v25 = vpop.f32.mrf.mxu0 }
 0x777   : > { %5344 = vmax.xlane.f32.xlu1 %v11884_v24  ;;  %v5382_v40 = vmul.f32 1.442695, %v5357_v6  ;;  %v3946_v31 = vpack.c.bf16 %v3925_v25, %v3925_v25  ;;  %v11903_v38 = vunpack.c.l.b16 %v4557_v0 }
 0x779   : > { %7803 = vpow2.f32 %v5382_v40  ;;  %v11898_v7 = vunpack.c.l.b16 %v3946_v31  ;;  %4729 = vmax.xlane.f32.xlu0 %v11890_v37  ;;  %13069 = vst [vmem:[#allocation81_spill] sm:$0xff] %v11903_v38 }
 0x77a   : > { %7805 = vpow2.f32 %v4767_v20  ;;  %4733 = vmax.xlane.f32.xlu2 %v11894_v54 }
 0x77b   : > { %13067 = vst [vmem:[#allocation79_spill] sm:$0xff] %v11898_v7 }
 0x77c   : > { %v4722_v35 = vpop.xlane.xlu2 %4721 }
 0x77d   : > { %v4745_v40 = vsub.f32 %v11705_v16, %v4722_v35 }
 0x77f   : > { %v11911_v31 = vpop.eup %7803  ;;  %v4769_v30 = vmul.f32 1.442695, %v4745_v40 }
 0x780   : > { %v11913_v6 = vpop.eup %7805  ;;  %5414 = vadd.xlane.f32.xlu1 %v11911_v31 }
 0x781   : > { %7807 = vpow2.f32 %v4769_v30  ;;  %4799 = vadd.xlane.f32.xlu0 %v11913_v6 }
 0x784   : > { %v5694_v45 = vpop.permute.xlu2 %5693 }
 0x785   : > { %5724 = vmatpush.bf16.msra.mxu2 %v5694_v45  ;;  %v4686_v45 = vpop.f32.mrf.mxu3 }
 0x786   : > { %v5333_v20 = vpop.xlane.xlu0 %5332 }
 0x787   : > { %v11919_v25 = vpop.eup %7807  ;;  %v5356_v16 = vsub.f32 %v11720_v42, %v5333_v20  ;;  %v11929_v42 = vsel %vm821_vm1, %v4686_v45, -1e+30 }
 0x788   : > { %4801 = vadd.xlane.f32.xlu1 %v11919_v25  ;;  %5725 = vmatmul.bf16.vlgmr.msra.gmra.mxu2 %v5685_v36 }
 0x789   : > { %v5380_v0 = vmul.f32 1.442695, %v5356_v16 }
 0x78b   : > { %7809 = vpow2.f32 %v5380_v0 }
 0x78e   : > { %v5403_v35 = vpop.xlane.xlu0 %5402 }
 0x78f   : > { %7811 = vrcp.f32 %v5403_v35  ;;  %v5484_v20 = vand.u32 2147483648, %v5403_v35  ;;  %v5482_v2 = vand.u32 2147483647, %v5403_v35  ;;  %vm5478_vm11 = vweird.f32 %v5403_v35 }
 0x791   : > { %v11923_v40 = vpop.eup %7809  ;;  %vm5483_vm13 = vcmp.eq.f32.partialorder %v5482_v2, 8.507059e+37 }
 0x792   : > { %5412 = vadd.xlane.f32.xlu0 %v11923_v40 }
 0x795   : > { %v7812_v30 = vpop.eup %7811 }
 0x796   : > { %v5474_v4 = vmul.f32 %v7812_v30, %v5403_v35  ;;  %v4724_v13 = vpop.xlane.xlu0 %4723  ;;  %vm5479_vm10 = vweird.f32 %v7812_v30 }
 0x797   : > { %v4746_v14 = vsub.f32 %v11739_v18, %v4724_v13  ;;  %vm5480_vm12 = vmor %vm5478_vm11, %vm5479_vm10  ;;  %v5485_v18 = vor.u32 1.1754944e-38, %v5484_v20 }
 0x798   : > { %v5475_v32 = vsub.f32 1.0, %v5474_v4 }
 0x799   : > { %v4771_v36 = vmul.f32 1.442695, %v4746_v14 }
 0x79a   : > { %v5401_v16 = vpop.xlane.xlu1 %5400  ;;  %v5476_v0 = vmul.f32 %v7812_v30, %v5475_v32  ;;  %4735 = vmax.xlane.f32.xlu0 %v11929_v42 }
 0x79b   : > { %7813 = vrcp.f32 %v5401_v16  ;;  %v5469_v57 = vand.u32 2147483648, %v5401_v16  ;;  %v5467_v35 = vand.u32 2147483647, %v5401_v16  ;;  %vm5463_vm14 = vweird.f32 %v5401_v16 }
 0x79c   : > { %7815 = vpow2.f32 %v4771_v36  ;;  %v5477_v38 = vadd.f32 %v7812_v30, %v5476_v0 }
 0x79d   : > { %v5470_v2 = vor.u32 1.1754944e-38, %v5469_v57  ;;  %vm5468_vm2 = vcmp.eq.f32.partialorder %v5467_v35, 8.507059e+37  ;;  %v5074_v57 = vpack.c.bf16 %v11830_v21, %v11813_v33 }
 0x79e   : > { %v5481_v13 = vsel %vm5480_vm12, %v7812_v30, %v5477_v38 }
 0x79f   : > { %v5486_v39 = vsel %vm5483_vm13, %v5485_v18, %v5481_v13 }
 0x7a0   : > { %v5487_v45 = vmul.f32 %v11727_v9, %v5486_v39 }
 0x7a1   : > { %v7814_v4 = vpop.eup %7813 }
 0x7a2   : > { %v11933_v14 = vpop.eup %7815  ;;  %v5459_v32 = vmul.f32 %v7814_v4, %v5401_v16  ;;  %v4790_v28 = vpop.xlane.xlu1 %4789  ;;  %7094 = vst [vmem:[%s9247_s28 + $0x398] sm:$0xff] %v5487_v45  ;;  %vm5464_vm1 = vweird.f32 %v7814_v4 }
 0x7a3   : > { %4803 = vadd.xlane.f32.xlu2 %v11933_v14  ;;  %7817 = vrcp.f32 %v4790_v28  ;;  %vm5465_vm15 = vmor %vm5463_vm14, %vm5464_vm1  ;;  %vm4852_vm5 = vweird.f32 %v4790_v28 }
 0x7a4   : > { %v5460_v7 = vsub.f32 1.0, %v5459_v32 }
 0x7a6   : > { %v5461_v36 = vmul.f32 %v7814_v4, %v5460_v7 }
 0x7a8   : > { %v5462_v20 = vadd.f32 %v7814_v4, %v5461_v36 }
 0x7a9   : > { %v5085_v38 = vpop.permute.xlu0 %5084  ;;  %v7818_v7 = vpop.eup %7817 }
 0x7aa   : > { %v5337_v9 = vpop.xlane.xlu1 %5336  ;;  %v5466_v30 = vsel %vm5465_vm15, %v7814_v4, %v5462_v20  ;;  %5112 = vmatpush.bf16.msra.mxu0 %v5085_v38  ;;  %v4848_v16 = vmul.f32 %v7818_v7, %v4790_v28  ;;  %vm4853_vm3 = vweird.f32 %v7818_v7 }
 0x7ab   : > { %v5358_v0 = vsub.f32 %v11758_v51, %v5337_v9  ;;  %v5471_v18 = vsel %vm5468_vm2, %v5470_v2, %v5466_v30  ;;  %v4858_v2 = vand.u32 2147483648, %v4790_v28  ;;  %v4856_v30 = vand.u32 2147483647, %v4790_v28  ;;  %vm4854_vm6 = vmor %vm4852_vm5, %vm4853_vm3 }
 0x7ac   : > { %v5472_v13 = vmul.f32 %v11742_v12, %v5471_v18  ;;  %v4849_v51 = vsub.f32 1.0, %v4848_v16 }
 0x7ad   : > { %v5384_v39 = vmul.f32 1.442695, %v5358_v0  ;;  %v4859_v18 = vor.u32 1.1754944e-38, %v4858_v2  ;;  %vm4857_vm8 = vcmp.eq.f32.partialorder %v4856_v30, 8.507059e+37 }
 0x7ae   : > { %7093 = vst [vmem:[%s9247_s28 + $0x390] sm:$0xff] %v5472_v13  ;;  %v5686_v32 = vpack.c.bf16 %v5487_v45, %v5472_v13  ;;  %v4850_v35 = vmul.f32 %v7818_v7, %v4849_v51 }
 0x7af   : > { %7819 = vpow2.f32 %v5384_v39 }
 0x7b0   : > { %5730 = vmatmul.bf16.gmra.mxu2 %v5686_v32  ;;  %v4851_v38 = vadd.f32 %v7818_v7, %v4850_v35 }
 0x7b1   : > { %v5083_v55 = vpop.permute.xlu0 %5082 }
 0x7b2   : > { %v5405_v36 = vpop.xlane.xlu1 %5404  ;;  %5113 = vmatpush.bf16.msra.mxu0 %v5083_v55  ;;  %v4855_v16 = vsel %vm4854_vm6, %v7818_v7, %v4851_v38 }
 0x7b3   : > { %7821 = vrcp.f32 %v5405_v36  ;;  %v5499_v55 = vand.u32 2147483648, %v5405_v36  ;;  %v5497_v33 = vand.u32 2147483647, %v5405_v36  ;;  %vm5493_vm7 = vweird.f32 %v5405_v36 }
 0x7b5   : > { %v11942_v4 = vpop.eup %7819  ;;  %5114 = vmatmul.bf16.vlgmr.msra.gmra.mxu0 %v5074_v57  ;;  %v5500_v32 = vor.u32 1.1754944e-38, %v5499_v55  ;;  %vm5498_vm10 = vcmp.eq.f32.partialorder %v5497_v33, 8.507059e+37 }
 0x7b6   : > { %5416 = vadd.xlane.f32.xlu0 %v11942_v4 }
 0x7b9   : > { %v7822_v12 = vpop.eup %7821 }
 0x7ba   : > { %v5489_v20 = vmul.f32 %v7822_v12, %v5405_v36  ;;  %v5407_v45 = vpop.xlane.xlu1 %5406  ;;  %vm5494_vm4 = vweird.f32 %v7822_v12 }
 0x7bb   : > { %7823 = vrcp.f32 %v5407_v45  ;;  %vm5495_vm9 = vmor %vm5493_vm7, %vm5494_vm4  ;;  %v5512_v30 = vand.u32 2147483647, %v5407_v45  ;;  %v5514_v60 = vand.u32 2147483648, %v5407_v45  ;;  %vm5508_vm12 = vweird.f32 %v5407_v45 }
 0x7bc   : > { %v5490_v9 = vsub.f32 1.0, %v5489_v20  ;;  %v4860_v20 = vsel %vm4857_vm8, %v4859_v18, %v4855_v16 }
 0x7bd   : > { %v4792_v21 = vpop.xlane.xlu2 %4791  ;;  %v4861_v17 = vmul.f32 %v11749_v58, %v4860_v20  ;;  %vm5513_vm1 = vcmp.eq.f32.partialorder %v5512_v30, 8.507059e+37  ;;  %v5515_v58 = vor.u32 1.1754944e-38, %v5514_v60 }
 0x7be   : > { %v5491_v0 = vmul.f32 %v7822_v12, %v5490_v9  ;;  %7825 = vrcp.f32 %v4792_v21  ;;  %v4871_v16 = vand.u32 2147483647, %v4792_v21  ;;  %vm4867_vm15 = vweird.f32 %v4792_v21 }
 0x7bf   : > { %7069 = vst [vmem:[%s9247_s28 + $0x310] sm:$0xff] %v4861_v17 }
 0x7c0   : > { %v5492_v13 = vadd.f32 %v7822_v12, %v5491_v0  ;;  %vm4872_vm3 = vcmp.eq.f32.partialorder %v4871_v16, 8.507059e+37 }
 0x7c1   : > { %v7824_v39 = vpop.eup %7823 }
 0x7c2   : > { %v5504_v57 = vmul.f32 %v7824_v39, %v5407_v45  ;;  %v4726_v51 = vpop.xlane.xlu1 %4725  ;;  %v5496_v35 = vsel %vm5495_vm9, %v7822_v12, %v5492_v13  ;;  %vm5509_vm11 = vweird.f32 %v7824_v39 }
 0x7c3   : > { %v4747_v9 = vsub.f32 %v11807_v61, %v4726_v51  ;;  %v5501_v28 = vsel %vm5498_vm10, %v5500_v32, %v5496_v35  ;;  %vm5510_vm13 = vmor %vm5508_vm12, %vm5509_vm11 }
 0x7c4   : > { %v5505_v2 = vsub.f32 1.0, %v5504_v57  ;;  %v5502_v36 = vmul.f32 %v11774_v50, %v5501_v28  ;;  %v7826_v0 = vpop.eup %7825  ;;  %v4873_v50 = vand.u32 2147483648, %v4792_v21 }
 0x7c5   : > { %v4773_v55 = vmul.f32 1.442695, %v4747_v9  ;;  %v4863_v38 = vmul.f32 %v7826_v0, %v4792_v21  ;;  %v4794_v33 = vpop.xlane.xlu2 %4793  ;;  %vm4868_vm14 = vweird.f32 %v7826_v0 }
 0x7c6   : > { %v5506_v7 = vmul.f32 %v7824_v39, %v5505_v2  ;;  %7095 = vst [vmem:[%s9247_s28 + $0x3a0] sm:$0xff] %v5502_v36  ;;  %vm4869_vm2 = vmor %vm4867_vm15, %vm4868_vm14  ;;  %v4874_v60 = vor.u32 1.1754944e-38, %v4873_v50  ;;  %vm4882_vm5 = vweird.f32 %v4794_v33 }
 0x7c7   : > { %7827 = vpow2.f32 %v4773_v55  ;;  %v4864_v61 = vsub.f32 1.0, %v4863_v38 }
 0x7c8   : > { %v5507_v12 = vadd.f32 %v7824_v39, %v5506_v7  ;;  %7829 = vrcp.f32 %v4794_v33 }
 0x7c9   : > { %v4865_v18 = vmul.f32 %v7826_v0, %v4864_v61  ;;  %v4886_v61 = vand.u32 2147483647, %v4794_v33 }
 0x7ca   : > { %v4728_v13 = vpop.xlane.xlu1 %4727  ;;  %v5511_v32 = vsel %vm5510_vm13, %v7824_v39, %v5507_v12  ;;  %v4888_v12 = vand.u32 2147483648, %v4794_v33 }
 0x7cb   : > { %v4748_v57 = vsub.f32 %v11824_v56, %v4728_v13  ;;  %v5516_v51 = vsel %vm5513_vm1, %v5515_v58, %v5511_v32  ;;  %v4866_v35 = vadd.f32 %v7826_v0, %v4865_v18  ;;  %vm4887_vm7 = vcmp.eq.f32.partialorder %v4886_v61, 8.507059e+37 }
 0x7cc   : > { %v5517_v20 = vmul.f32 %v11784_v10, %v5516_v51  ;;  %v4889_v50 = vor.u32 1.1754944e-38, %v4888_v12 }
 0x7cd   : > { %v11952_v45 = vpop.eup %7827  ;;  %v4775_v9 = vmul.f32 1.442695, %v4748_v57  ;;  %v5341_v2 = vpop.xlane.xlu2 %5340  ;;  %v4870_v30 = vsel %vm4869_vm2, %v7826_v0, %v4866_v35 }
 0x7ce   : > { %v7830_v28 = vpop.eup %7829  ;;  %4805 = vadd.xlane.f32.xlu2 %v11952_v45  ;;  %7096 = vst [vmem:[%s9247_s28 + $0x3a8] sm:$0xff] %v5517_v20  ;;  %v5687_v39 = vpack.c.bf16 %v5517_v20, %v5502_v36  ;;  %v4875_v21 = vsel %vm4872_vm3, %v4874_v60, %v4870_v30 }
 0x7cf   : > { %v4878_v56 = vmul.f32 %v7830_v28, %v4794_v33  ;;  %7831 = vpow2.f32 %v4775_v9  ;;  %v4876_v10 = vmul.f32 %v11796_v23, %v4875_v21  ;;  %vm4883_vm4 = vweird.f32 %v7830_v28 }
 0x7d0   : > { %5735 = vmatmul.bf16.gmra.mxu2 %v5687_v39  ;;  %vm4884_vm6 = vmor %vm4882_vm5, %vm4883_vm4  ;;  %v5360_v33 = vsub.f32 %v11834_v53, %v5341_v2 }
 0x7d1   : > { %v4879_v55 = vsub.f32 1.0, %v4878_v56  ;;  %7070 = vst [vmem:[%s9247_s28 + $0x318] sm:$0xff] %v4876_v10  ;;  %v5075_v58 = vpack.c.bf16 %v4876_v10, %v4861_v17 }
 0x7d2   : > { %v4796_v7 = vpop.xlane.xlu1 %4795 }
 0x7d3   : > { %v4880_v38 = vmul.f32 %v7830_v28, %v4879_v55  ;;  %7833 = vrcp.f32 %v4796_v7  ;;  %5119 = vmatmul.bf16.gmra.mxu0 %v5075_v58  ;;  %v4901_v9 = vand.u32 2147483647, %v4796_v7  ;;  %v4903_v60 = vand.u32 2147483648, %v4796_v7 }
 0x7d4   : > { %vm4897_vm9 = vweird.f32 %v4796_v7 }
 0x7d5   : > { %v11958_v18 = vpop.eup %7831  ;;  %v4881_v36 = vadd.f32 %v7830_v28, %v4880_v38  ;;  %v5411_v0 = vpop.xlane.xlu2 %5410  ;;  %vm4902_vm11 = vcmp.eq.f32.partialorder %v4901_v9, 8.507059e+37  ;;  %v4904_v38 = vor.u32 1.1754944e-38, %v4903_v60 }
 0x7d6   : > { %4807 = vadd.xlane.f32.xlu0 %v11958_v18  ;;  %7835 = vrcp.f32 %v5411_v0  ;;  %v5544_v53 = vand.u32 2147483648, %v5411_v0  ;;  %vm5538_vm13 = vweird.f32 %v5411_v0 }
 0x7d7   : > { %v4885_v23 = vsel %vm4884_vm6, %v7830_v28, %v4881_v36  ;;  %v5542_v36 = vand.u32 2147483647, %v5411_v0 }
 0x7d8   : > { %v4890_v13 = vsel %vm4887_vm7, %v4889_v50, %v4885_v23 }
 0x7d9   : > { %v7834_v32 = vpop.eup %7833  ;;  %v4891_v17 = vmul.f32 %v11815_v46, %v4890_v13  ;;  %v5388_v46 = vmul.f32 1.442695, %v5360_v33  ;;  %vm5543_vm15 = vcmp.eq.f32.partialorder %v5542_v36, 8.507059e+37 }
 0x7da   : > { %v11961_v16 = vpop.xlane.xlu1 %5408  ;;  %v4893_v57 = vmul.f32 %v7834_v32, %v4796_v7  ;;  %vm4898_vm8 = vweird.f32 %v7834_v32  ;;  %v5545_v7 = vor.u32 1.1754944e-38, %v5544_v53 }
 0x7db   : > { %7837 = vrcp.f32 %v11961_v16  ;;  %7071 = vst [vmem:[%s9247_s28 + $0x320] sm:$0xff] %v4891_v17  ;;  %vm4899_vm10 = vmor %vm4897_vm9, %vm4898_vm8  ;;  %v5527_v33 = vand.u32 2147483647, %v11961_v16  ;;  %vm5523_vm2 = vweird.f32 %v11961_v16 }
 0x7dc   : > { %v7836_v51 = vpop.eup %7835  ;;  %v4894_v35 = vsub.f32 1.0, %v4893_v57  ;;  %v5339_v20 = vpop.xlane.xlu0 %5338 }
 0x7dd   : > { %v5534_v39 = vmul.f32 %v7836_v51, %v5411_v0  ;;  %v11967_v30 = vpop.xlane.xlu2 %4797  ;;  %v5359_v56 = vsub.f32 %v11859_v52, %v5339_v20  ;;  %vm5539_vm12 = vweird.f32 %v7836_v51  ;;  %vm5528_vm4 = vcmp.eq.f32.partialorder %v5527_v33, 8.507059e+37 }
 0x7de   : > { %v4895_v28 = vmul.f32 %v7834_v32, %v4894_v35  ;;  %7839 = vrcp.f32 %v11967_v30  ;;  %v5529_v35 = vand.u32 2147483648, %v11961_v16  ;;  %vm5540_vm1 = vmor %vm5538_vm13, %vm5539_vm12  ;;  %vm4912_vm6 = vweird.f32 %v11967_v30 }
 0x7df   : > { %v5535_v21 = vsub.f32 1.0, %v5534_v39  ;;  %v5386_v2 = vmul.f32 1.442695, %v5359_v56 }
 0x7e0   : > { %v4896_v10 = vadd.f32 %v7834_v32, %v4895_v28 }
 0x7e1   : > { %v7838_v55 = vpop.eup %7837  ;;  %v5536_v12 = vmul.f32 %v7836_v51, %v5535_v21  ;;  %7841 = vpow2.f32 %v5386_v2 }
 0x7e2   : > { %v5519_v61 = vmul.f32 %v7838_v55, %v11961_v16  ;;  %v4732_v58 = vpop.xlane.xlu1 %4731  ;;  %v4900_v52 = vsel %vm4899_vm10, %v7834_v32, %v4896_v10  ;;  %vm5524_vm14 = vweird.f32 %v7838_v55 }
 0x7e3   : > { %v5537_v50 = vadd.f32 %v7836_v51, %v5536_v12  ;;  %v4905_v13 = vsel %vm4902_vm11, %v4904_v38, %v4900_v52  ;;  %vm5525_vm3 = vmor %vm5523_vm2, %vm5524_vm14  ;;  %v5530_v38 = vor.u32 1.1754944e-38, %v5529_v35 }
 0x7e4   : > { %v5520_v23 = vsub.f32 1.0, %v5519_v61  ;;  %v11972_v57 = vpop.eup %7839  ;;  %v5343_v20 = vpop.xlane.xlu0 %5342  ;;  %v4906_v9 = vmul.f32 %v11847_v41, %v4905_v13 }
 0x7e5   : > { %v4908_v32 = vmul.f32 %v11972_v57, %v11967_v30  ;;  %v5361_v0 = vsub.f32 %v11872_v44, %v5343_v20  ;;  %v5347_v39 = vpop.xlane.xlu2 %5346  ;;  %v5541_v56 = vsel %vm5540_vm1, %v7836_v51, %v5537_v50  ;;  %vm4913_vm5 = vweird.f32 %v11972_v57 }
 0x7e6   : > { %v5521_v60 = vmul.f32 %v7838_v55, %v5520_v23  ;;  %7072 = vst [vmem:[%s9247_s28 + $0x328] sm:$0xff] %v4906_v9  ;;  %v5076_v28 = vpack.c.bf16 %v4906_v9, %v4891_v17  ;;  %v5546_v41 = vsel %vm5543_vm15, %v5545_v7, %v5541_v56  ;;  %v4750_v17 = vsub.f32 %v11867_v3, %v4732_v58  ;;  %vm4914_vm7 = vmor %vm4912_vm6, %vm4913_vm5 }
 0x7e7   : > { %v4909_v10 = vsub.f32 1.0, %v4908_v32  ;;  %v5390_v53 = vmul.f32 1.442695, %v5361_v0  ;;  %v11982_v2 = vpop.eup %7841  ;;  %v5547_v12 = vmul.f32 %v11850_v59, %v5546_v41  ;;  %v5363_v58 = vsub.f32 %v11876_v22, %v5347_v39 }
 0x7e8   : > { %v5522_v21 = vadd.f32 %v7838_v55, %v5521_v60  ;;  %5124 = vmatmul.bf16.gmra.mxu0 %v5076_v28  ;;  %5418 = vadd.xlane.f32.xlu1 %v11982_v2  ;;  %v4779_v7 = vmul.f32 1.442695, %v4750_v17 }
 0x7e9   : > { %7843 = vpow2.f32 %v5390_v53  ;;  %7098 = vst [vmem:[%s9247_s28 + $0x3b8] sm:$0xff] %v5547_v12  ;;  %v4910_v36 = vmul.f32 %v11972_v57, %v4909_v10  ;;  %v5394_v0 = vmul.f32 1.442695, %v5363_v58 }
 0x7ea   : > { %v5345_v44 = vpop.xlane.xlu1 %5344  ;;  %v5526_v16 = vsel %vm5525_vm3, %v7838_v55, %v5522_v21  ;;  %7845 = vpow2.f32 %v5388_v46 }
 0x7eb   : > { %v5362_v51 = vsub.f32 %v11884_v24, %v5345_v44  ;;  %v5531_v61 = vsel %vm5528_vm4, %v5530_v38, %v5526_v16  ;;  %v4911_v46 = vadd.f32 %v11972_v57, %v4910_v36 }
 0x7ec   : > { %v5532_v52 = vmul.f32 %v11853_v26, %v5531_v61  ;;  %v4730_v59 = vpop.xlane.xlu0 %4729  ;;  %v4918_v26 = vand.u32 2147483648, %v11967_v30 }
 0x7ed   : > { %v5392_v50 = vmul.f32 1.442695, %v5362_v51  ;;  %v4749_v23 = vsub.f32 %v11890_v37, %v4730_v59  ;;  %v4734_v24 = vpop.xlane.xlu2 %4733  ;;  %v4916_v37 = vand.u32 2147483647, %v11967_v30  ;;  %v4915_v9 = vsel %vm4914_vm7, %v11972_v57, %v4911_v46 }
 0x7ee   : > { %7097 = vst [vmem:[%s9247_s28 + $0x3b0] sm:$0xff] %v5532_v52  ;;  %v5688_v13 = vpack.c.bf16 %v5547_v12, %v5532_v52  ;;  %v4751_v35 = vsub.f32 %v11894_v54, %v4734_v24  ;;  %v4919_v60 = vor.u32 1.1754944e-38, %v4918_v26  ;;  %v12016_v54 = vpop.f32.mrf.mxu2 }
 0x7ef   : > { %v11993_v33 = vpop.eup %7843  ;;  %v4777_v3 = vmul.f32 1.442695, %v4749_v23  ;;  %7847 = vpow2.f32 %v5392_v50  ;;  %vm4917_vm8 = vcmp.eq.f32.partialorder %v4916_v37, 8.507059e+37 }
 0x7f0   : > { %5740 = vmatmul.bf16.gmra.mxu2 %v5688_v13  ;;  %v11997_v55 = vpop.eup %7845  ;;  %5422 = vadd.xlane.f32.xlu2 %v11993_v33  ;;  %v4781_v22 = vmul.f32 1.442695, %v4751_v35  ;;  %v4920_v39 = vsel %vm4917_vm8, %v4919_v60, %v4915_v9  ;;  %v2103_v9 = vpack.c.bf16 %v10700_v8, %v10700_v8  ;;  %v2713_v8 = vpack.c.bf16 %v11341_v49, %v11341_v49 }
 0x7f1   : > { %7849 = vpow2.f32 %v4777_v3  ;;  %5420 = vadd.xlane.f32.xlu1 %v11997_v55  ;;  %v4921_v56 = vmul.f32 %v11861_v1, %v4920_v39 }
 0x7f2   : > { %7851 = vpow2.f32 %v4779_v7  ;;  %v5841_v39 = vunpack.c.l.b16 %v2103_v9 }
 0x7f3   : > { %v5415_v20 = vpop.xlane.xlu1 %5414  ;;  %7073 = vst [vmem:[%s9247_s28 + $0x330] sm:$0xff] %v4921_v56 }
 0x7f4   : > { %7853 = vrcp.f32 %v5415_v20  ;;  %v4800_v32 = vpop.xlane.xlu0 %4799  ;;  %v5574_v12 = vand.u32 2147483648, %v5415_v20  ;;  %v5572_v51 = vand.u32 2147483647, %v5415_v20  ;;  %vm5568_vm11 = vweird.f32 %v5415_v20 }
 0x7f5   : > { %7855 = vrcp.f32 %v4800_v32  ;;  %v12007_v30 = vpop.eup %7847  ;;  %v4933_v61 = vand.u32 2147483648, %v4800_v32  ;;  %v4931_v50 = vand.u32 2147483647, %v4800_v32  ;;  %vm4927_vm13 = vweird.f32 %v4800_v32 }
 0x7f6   : > { %7857 = vpow2.f32 %v5394_v0  ;;  %v5575_v23 = vor.u32 1.1754944e-38, %v5574_v12  ;;  %v12029_v7 = vpop.f32.mrf.mxu2  ;;  %vm5573_vm1 = vcmp.eq.f32.partialorder %v5572_v51, 8.507059e+37  ;;  %v2102_v0 = vpack.c.bf16 %v10690_v43, %v10690_v43 }
 0x7f7   : > { %v12009_v28 = vpop.eup %7849  ;;  %7859 = vpow2.f32 %v4781_v22  ;;  %v4934_v46 = vor.u32 1.1754944e-38, %v4933_v61  ;;  %vm4932_vm15 = vcmp.eq.f32.partialorder %v4931_v50, 8.507059e+37  ;;  %v3936_v61 = vpack.c.bf16 %v11710_v48, %v11710_v48 }
 0x7f8   : > { %v12012_v21 = vpop.eup %7851  ;;  %5424 = vadd.xlane.f32.xlu2 %v12007_v30  ;;  %4809 = vadd.xlane.f32.xlu0 %v12009_v28  ;;  %v3935_v48 = vpack.c.bf16 %v11699_v5, %v11699_v5 }
 0x7f9   : > { %4811 = vadd.xlane.f32.xlu1 %v12012_v21 }
 0x7fa   : > { %v7854_v57 = vpop.eup %7853 }
 0x7fb   : > { %v7856_v10 = vpop.eup %7855  ;;  %v5564_v53 = vmul.f32 %v7854_v57, %v5415_v20  ;;  %v12020_v41 = vpop.xlane.xlu1 %4801  ;;  %vm5569_vm9 = vweird.f32 %v7854_v57 }
 0x7fc   : > { %v4923_v38 = vmul.f32 %v7856_v10, %v4800_v32  ;;  %7861 = vrcp.f32 %v12020_v41  ;;  %v12023_v16 = vpop.eup %7857  ;;  %vm4928_vm10 = vweird.f32 %v7856_v10  ;;  %vm5570_vm12 = vmor %vm5568_vm11, %vm5569_vm9  ;;  %v4948_v49 = vand.u32 2147483648, %v12020_v41 }
 0x7fd   : > { %v5565_v1 = vsub.f32 1.0, %v5564_v53  ;;  %v12025_v36 = vpop.eup %7859  ;;  %vm4929_vm14 = vmor %vm4927_vm13, %vm4928_vm10  ;;  %v2714_v53 = vpack.c.bf16 %v11389_v29, %v11389_v29  ;;  %vm4942_vm6 = vweird.f32 %v12020_v41 }
 0x7fe   : > { %v4924_v44 = vsub.f32 1.0, %v4923_v38  ;;  %v5840_v38 = vunpack.c.l.b16 %v2102_v0 }
 0x7ff   : > { %v5566_v17 = vmul.f32 %v7854_v57, %v5565_v1  ;;  %v5897_v51 = vunpack.c.l.b16 %v2714_v53 }
 0x800   : > { %v4925_v52 = vmul.f32 %v7856_v10, %v4924_v44  ;;  %5426 = vadd.xlane.f32.xlu0 %v12023_v16  ;;  %v5855_v44 = vpack.c.b16 %v5841_v39, %v5840_v38  ;;  %v4547_v39 = vpack.c.bf16 %v11544_v11, %v11544_v11  ;;  %v4546_v11 = vpack.c.bf16 %v11518_v15, %v11518_v15  ;;  %v12093_v15 = vpop.f32.mrf.mxu0 }
 0x801   : > { %v5567_v59 = vadd.f32 %v7854_v57, %v5566_v17  ;;  %4813 = vadd.xlane.f32.xlu1 %v12025_v36  ;;  %v5896_v17 = vunpack.c.l.b16 %v2713_v8 }
 0x802   : > { %v4926_v13 = vadd.f32 %v7856_v10, %v4925_v52  ;;  %v12031_v24 = vpop.eup %7861 }
 0x803   : > { %v5571_v3 = vsel %vm5570_vm12, %v7854_v57, %v5567_v59  ;;  %v4938_v60 = vmul.f32 %v12031_v24, %v12020_v41  ;;  %v4946_v59 = vand.u32 2147483647, %v12020_v41  ;;  %vm4943_vm3 = vweird.f32 %v12031_v24 }
 0x804   : > { %v4930_v26 = vsel %vm4929_vm14, %v7856_v10, %v4926_v13  ;;  %v5576_v37 = vsel %vm5573_vm1, %v5575_v23, %v5571_v3  ;;  %vm4944_vm7 = vmor %vm4942_vm6, %vm4943_vm3 }
 0x805   : > { %v5413_v58 = vpop.xlane.xlu0 %5412  ;;  %v4935_v35 = vsel %vm4932_vm15, %v4934_v46, %v4930_v26  ;;  %v12034_v20 = vmul.f32 %v11911_v31, %v5576_v37  ;;  %v4939_v57 = vsub.f32 1.0, %v4938_v60  ;;  %v5911_v26 = vpack.c.b16 %v5897_v51, %v5896_v17  ;;  %v13072_v17 = vld [vmem:[#allocation28_spill] sm:$0xff] }
 0x806   : > { %7863 = vrcp.f32 %v5413_v58  ;;  %v4936_v32 = vmul.f32 %v11913_v6, %v4935_v35  ;;  %v5559_v29 = vand.u32 2147483648, %v5413_v58  ;;  %v5557_v23 = vand.u32 2147483647, %v5413_v58 }
 0x807   : > { %7100 = vst [vmem:[%s9247_s28 + $0x3c8] sm:$0xff] %v12034_v20  ;;  %v4940_v43 = vmul.f32 %v12031_v24, %v4939_v57  ;;  %vm5553_vm4 = vweird.f32 %v5413_v58  ;;  %v6009_v37 = vunpack.c.l.b16 %v3936_v61  ;;  %v4949_v60 = vor.u32 1.1754944e-38, %v4948_v49 }
 0x808   : > { %7074 = vst [vmem:[%s9247_s28 + $0x338] sm:$0xff] %v4936_v32  ;;  %v5077_v22 = vpack.c.bf16 %v4936_v32, %v4921_v56  ;;  %v5560_v32 = vor.u32 1.1754944e-38, %v5559_v29  ;;  %vm5558_vm8 = vcmp.eq.f32.partialorder %v5557_v23, 8.507059e+37  ;;  %vm4947_vm9 = vcmp.eq.f32.partialorder %v4946_v59, 8.507059e+37 }
 0x809   : > { %v3938_v35 = vpack.c.bf16 %v11734_v47, %v11734_v47 }
 0x80a   : > { %5129 = vmatmul.bf16.gmra.mxu0 %v5077_v22 }
 0x80b   : > { %v5726_v31 = vpop.f32.mrf.mxu2 }
 0x80c   : > { %v7864_v10 = vpop.eup %7863  ;;  %v5766_v13 = vpack.c.bf16 %v5726_v31, %v5726_v31 }
 0x80d   : > { %v5549_v6 = vmul.f32 %v7864_v10, %v5413_v58  ;;  %v4736_v1 = vpop.xlane.xlu0 %4735  ;;  %vm5554_vm2 = vweird.f32 %v7864_v10 }
 0x80e   : > { %v4752_v12 = vsub.f32 %v11929_v42, %v4736_v1  ;;  %v4941_v42 = vadd.f32 %v12031_v24, %v4940_v43  ;;  %vm12060_vm5 = vmor %vm5553_vm4, %vm5554_vm2  ;;  %v12070_v5 = vunpack.c.l.b16 %v5766_v13  ;;  %v6064_v43 = vunpack.c.l.b16 %v4546_v11 }
 0x80f   : > { %v5550_v56 = vsub.f32 1.0, %v5549_v6 }
 0x810   : > { %v4783_v52 = vmul.f32 1.442695, %v4752_v12  ;;  %v4945_v57 = vsel %vm4944_vm7, %v12031_v24, %v4941_v42 }
 0x811   : > { %v5551_v50 = vmul.f32 %v7864_v10, %v5550_v56  ;;  %v4950_v38 = vsel %vm4947_vm9, %v4949_v60, %v4945_v57 }
 0x812   : > { %7865 = vpow2.f32 %v4783_v52  ;;  %v4951_v6 = vmul.f32 %v11919_v25, %v4950_v38  ;;  %v2105_v25 = vpack.c.bf16 %v13072_v17, %v13072_v17  ;;  %v13076_v17 = vld [vmem:[#allocation39_spill] sm:$0xff] }
 0x813   : > { %v5552_v46 = vadd.f32 %v7864_v10, %v5551_v50  ;;  %v5728_v3 = vpop.f32.mrf.mxu2 }
 0x814   : > { %v5767_v9 = vpack.c.bf16 %v5728_v3, %v5728_v3  ;;  %5864 = vrot.lane.b32.xlu0 %v5855_v44, %s7945_s23  ;;  %7075 = vst [vmem:[%s9247_s28 + $0x340] sm:$0xff] %v4951_v6  ;;  %v6065_v44 = vunpack.c.l.b16 %v4547_v39  ;;  %v5843_v59 = vunpack.c.l.b16 %v2105_v25  ;;  %v13074_v3 = vld [vmem:[#allocation35_spill] sm:$0xff]  ;;  %v3327_v25 = vpack.c.bf16 %v13076_v17, %v13076_v17 }
 0x815   : > { %v5556_v58 = vsel %vm12060_vm5, %v7864_v10, %v5552_v46  ;;  %v6008_v10 = vunpack.c.l.b16 %v3935_v48 }
 0x816   : > { %v4804_v0 = vpop.xlane.xlu2 %4803  ;;  %v12072_v22 = vunpack.c.l.b16 %v5767_v9  ;;  %v5561_v41 = vsel %vm5558_vm8, %v5560_v32, %v5556_v58  ;;  %v6079_v51 = vpack.c.b16 %v6065_v44, %v6064_v43  ;;  %v13075_v9 = vld [vmem:[#allocation33_spill] sm:$0xff]  ;;  %v3937_v32 = vpack.c.bf16 %v11723_v34, %v11723_v34 }
 0x817   : > { %7867 = vrcp.f32 %v4804_v0  ;;  %v5562_v53 = vmul.f32 %v11923_v40, %v5561_v41  ;;  %v6023_v1 = vpack.c.b16 %v6009_v37, %v6008_v10  ;;  %v4963_v61 = vand.u32 2147483648, %v4804_v0 }
 0x818   : > { %v12077_v31 = vpop.eup %7865  ;;  %v4961_v49 = vand.u32 2147483647, %v4804_v0  ;;  %vm4957_vm11 = vweird.f32 %v4804_v0  ;;  %v3324_v60 = vpack.c.bf16 %v13075_v9, %v13075_v9  ;;  %v6011_v41 = vunpack.c.l.b16 %v3938_v35 }
 0x819   : > { %4815 = vadd.xlane.f32.xlu2 %v12077_v31  ;;  %7099 = vst [vmem:[%s9247_s28 + $0x3c0] sm:$0xff] %v5562_v53  ;;  %v5689_v24 = vpack.c.bf16 %v12034_v20, %v5562_v53  ;;  %v13073_v20 = vld [vmem:[#allocation20_spill] sm:$0xff]  ;;  %v4964_v23 = vor.u32 1.1754944e-38, %v4963_v61  ;;  %v6010_v57 = vunpack.c.l.b16 %v3937_v32 }
 0x81a   : > { %5920 = vrot.lane.b32.xlu1 %v5911_v26, %s7946_s24  ;;  %v2104_v50 = vpack.c.bf16 %v13073_v20, %v13073_v20  ;;  %vm4962_vm13 = vcmp.eq.f32.partialorder %v4961_v49, 8.507059e+37  ;;  %v3325_v26 = vpack.c.bf16 %v13074_v3, %v13074_v3  ;;  %v13077_v20 = vld [vmem:[#allocation37_spill] sm:$0xff] }
 0x81b   : > { %5745 = vmatmul.bf16.gmra.mxu2 %v5689_v24  ;;  %v6024_v53 = vpack.c.b16 %v6011_v41, %v6010_v57 }
 0x81c   : > { %6032 = vrot.lane.b32.xlu0 %v6023_v1, %s7940_s13  ;;  %v5842_v42 = vunpack.c.l.b16 %v2104_v50  ;;  %v5953_v39 = vunpack.c.l.b16 %v3325_v26  ;;  %v3326_v50 = vpack.c.bf16 %v13077_v20, %v13077_v20 }
 0x81d   : > { %v7868_v12 = vpop.eup %7867 }
 0x81e   : > { %v4953_v40 = vmul.f32 %v7868_v12, %v4804_v0  ;;  %vm4958_vm10 = vweird.f32 %v7868_v12  ;;  %v5856_v37 = vpack.c.b16 %v5843_v59, %v5842_v42  ;;  %v12108_v0 = vpop.f32.mrf.mxu0  ;;  %v5954_v59 = vunpack.c.l.b16 %v3326_v50 }
 0x81f   : > { %vm4959_vm12 = vmor %vm4957_vm11, %vm4958_vm10 }
 0x820   : > { %v4954_v56 = vsub.f32 1.0, %v4953_v40 }
 0x822   : > { %v4955_v52 = vmul.f32 %v7868_v12, %v4954_v56  ;;  %6088 = vrot.lane.b32.xlu1 %v6079_v51, %s7943_s16 }
 0x824   : > { %v4956_v29 = vadd.f32 %v7868_v12, %v4955_v52 }
 0x826   : > { %v4960_v13 = vsel %vm4959_vm12, %v7868_v12, %v4956_v29  ;;  %v5955_v29 = vunpack.c.l.b16 %v3327_v25 }
 0x827   : > { %v4965_v46 = vsel %vm4962_vm13, %v4964_v23, %v4960_v13 }
 0x828   : > { %v4966_v48 = vmul.f32 %v11933_v14, %v4965_v46  ;;  %v5952_v14 = vunpack.c.l.b16 %v3324_v60  ;;  %v5968_v13 = vpack.c.b16 %v5955_v29, %v5954_v59 }
 0x829   : > { %v5417_v52 = vpop.xlane.xlu0 %5416 }
 0x82a   : > { %7076 = vst [vmem:[%s9247_s28 + $0x348] sm:$0xff] %v4966_v48  ;;  %5866 = vrot.lane.b32.xlu1 %v5856_v37, %s7945_s23  ;;  %v5078_v58 = vpack.c.bf16 %v4966_v48, %v4951_v6  ;;  %v5967_v10 = vpack.c.b16 %v5953_v39, %v5952_v14  ;;  %vm5583_vm8 = vweird.f32 %v5417_v52 }
 0x82c   : > { %5134 = vmatmul.bf16.gmra.mxu0 %v5078_v58 }
 0x831   : > { %5976 = vrot.lane.b32.xlu2 %v5967_v10, %s7944_s17 }
 0x832   : > { %6034 = vrot.lane.b32.xlu1 %v6024_v53, %s7940_s13  ;;  %v5115_v38 = vpop.f32.mrf.mxu0 }
 0x833   : > { %v5731_v47 = vpop.f32.mrf.mxu2  ;;  %v5155_v34 = vpack.c.bf16 %v5115_v38, %v5115_v38 }
 0x834   : > { %v5768_v11 = vpack.c.bf16 %v5731_v47, %v5731_v47 }
 0x835   : > { %v12113_v40 = vunpack.c.l.b16 %v5155_v34 }
 0x836   : > { %v6176_v6 = vunpack.c.l.b16 %v5768_v11 }
 0x83a   : > { %v5117_v24 = vpop.f32.mrf.mxu0 }
 0x83b   : > { %v5733_v1 = vpop.f32.mrf.mxu2  ;;  %v5156_v44 = vpack.c.bf16 %v5117_v24, %v5117_v24 }
 0x83c   : > { %v5769_v12 = vpack.c.bf16 %v5733_v1, %v5733_v1 }
 0x83d   : > { %v12115_v56 = vunpack.c.l.b16 %v5156_v44  ;;  %v5587_v44 = vand.u32 2147483647, %v5417_v52 }
 0x83e   : > { %v6177_v43 = vunpack.c.l.b16 %v5769_v12 }
 0x83f   : > { %vm12140_vm10 = vcmp.eq.f32.partialorder %v5587_v44, 8.507059e+37  ;;  %v13088_v44 = vld [vmem:[#allocation52_spill] sm:$0xff] }
 0x840   : > { %v6191_v51 = vpack.c.b16 %v6177_v43, %v6176_v6  ;;  %v5589_v6 = vand.u32 2147483648, %v5417_v52 }
 0x841   : > { %v4806_v49 = vpop.xlane.xlu2 %4805 }
 0x842   : > { %7869 = vrcp.f32 %v4806_v49  ;;  %6200 = vrot.lane.b32.xlu2 %v6191_v51, %s7942_s15  ;;  %v4978_v48 = vand.u32 2147483648, %v4806_v49  ;;  %v4976_v9 = vand.u32 2147483647, %v4806_v49  ;;  %vm4972_vm14 = vweird.f32 %v4806_v49 }
 0x843   : > { %7871 = vrcp.f32 %v5417_v52 }
 0x844   : > { %v4979_v58 = vor.u32 1.1754944e-38, %v4978_v48  ;;  %vm4977_vm2 = vcmp.eq.f32.partialorder %v4976_v9, 8.507059e+37 }
 0x848   : > { %v7870_v23 = vpop.eup %7869 }
 0x849   : > { %v4968_v42 = vmul.f32 %v7870_v23, %v4806_v49  ;;  %v4808_v46 = vpop.xlane.xlu0 %4807  ;;  %v12124_v3 = vpop.eup %7871  ;;  %vm4973_vm1 = vweird.f32 %v7870_v23 }
 0x84a   : > { %7873 = vrcp.f32 %v4808_v46  ;;  %5978 = vrot.lane.b32.xlu2 %v5968_v13, %s7944_s17  ;;  %v5579_v37 = vmul.f32 %v12124_v3, %v5417_v52  ;;  %vm4974_vm15 = vmor %vm4972_vm14, %vm4973_vm1  ;;  %v4993_v11 = vand.u32 2147483648, %v4808_v46  ;;  %v4991_v24 = vand.u32 2147483647, %v4808_v46 }
 0x84b   : > { %v4969_v26 = vsub.f32 1.0, %v4968_v42  ;;  %vm4987_vm4 = vweird.f32 %v4808_v46  ;;  %vm5584_vm5 = vweird.f32 %v12124_v3 }
 0x84c   : > { %v5580_v39 = vsub.f32 1.0, %v5579_v37  ;;  %v4994_v43 = vor.u32 1.1754944e-38, %v4993_v11  ;;  %vm4992_vm7 = vcmp.eq.f32.partialorder %v4991_v24, 8.507059e+37  ;;  %vm12136_vm9 = vmor %vm5583_vm8, %vm5584_vm5  ;;  %v13086_v11 = vld [vmem:[#allocation12_spill] sm:$0xff] }
 0x84d   : > { %v4970_v35 = vmul.f32 %v7870_v23, %v4969_v26 }
 0x84e   : > { %v5581_v34 = vmul.f32 %v12124_v3, %v5580_v39 }
 0x84f   : > { %v4971_v60 = vadd.f32 %v7870_v23, %v4970_v35 }
 0x850   : > { %v7874_v32 = vpop.eup %7873  ;;  %v5120_v53 = vpop.f32.mrf.mxu0  ;;  %v5582_v17 = vadd.f32 %v12124_v3, %v5581_v34  ;;  %v2107_v34 = vpack.c.bf16 %v13086_v11, %v13086_v11 }
 0x851   : > { %v4983_v41 = vmul.f32 %v7874_v32, %v4808_v46  ;;  %v4975_v14 = vsel %vm4974_vm15, %v7870_v23, %v4971_v60  ;;  %vm4988_vm3 = vweird.f32 %v7874_v32  ;;  %v5590_v46 = vor.u32 1.1754944e-38, %v5589_v6  ;;  %v13082_v60 = vld [vmem:[#allocation46_spill] sm:$0xff] }
 0x852   : > { %v4980_v57 = vsel %vm4977_vm2, %v4979_v58, %v4975_v14  ;;  %vm4989_vm6 = vmor %vm4987_vm4, %vm4988_vm3  ;;  %v13083_v58 = vld [vmem:[#allocation48_spill] sm:$0xff]  ;;  %v13084_v14 = vld [vmem:[#allocation43_spill] sm:$0xff]  ;;  %v4549_v6 = vpack.c.bf16 %v11640_v27, %v11640_v27  ;;  %v4550_v27 = vpack.c.bf16 %v11680_v19, %v11680_v19 }
 0x853   : > { %v4984_v10 = vsub.f32 1.0, %v4983_v41  ;;  %v5736_v47 = vpop.f32.mrf.mxu2  ;;  %v4981_v38 = vmul.f32 %v11952_v45, %v4980_v57  ;;  %v5157_v45 = vpack.c.bf16 %v5120_v53, %v5120_v53  ;;  %v2716_v39 = vpack.c.bf16 %v13083_v58, %v13083_v58 }
 0x854   : > { %v5770_v51 = vpack.c.bf16 %v5736_v47, %v5736_v47  ;;  %v3329_v57 = vpack.c.bf16 %v13084_v14, %v13084_v14  ;;  %v13085_v47 = vld [vmem:[#allocation21_spill] sm:$0xff] }
 0x855   : > { %v4985_v1 = vmul.f32 %v7874_v32, %v4984_v10  ;;  %7077 = vst [vmem:[%s9247_s28 + $0x350] sm:$0xff] %v4981_v38  ;;  %v6120_v26 = vunpack.c.l.b16 %v5157_v45  ;;  %v5899_v45 = vunpack.c.l.b16 %v2716_v39 }
 0x856   : > { %v6178_v37 = vunpack.c.l.b16 %v5770_v51 }
 0x857   : > { %v4986_v12 = vadd.f32 %v7874_v32, %v4985_v1  ;;  %v13087_v1 = vld [vmem:[#allocation41_spill] sm:$0xff] }
 0x858   : > { %v5122_v20 = vpop.f32.mrf.mxu0  ;;  %v3328_v24 = vpack.c.bf16 %v13087_v1, %v13087_v1 }
 0x859   : > { %v4990_v25 = vsel %vm4989_vm6, %v7874_v32, %v4986_v12  ;;  %v5158_v13 = vpack.c.bf16 %v5122_v20, %v5122_v20  ;;  %v2715_v32 = vpack.c.bf16 %v13082_v60, %v13082_v60  ;;  %v3940_v20 = vpack.c.bf16 %v11754_v62, %v11754_v62 }
 0x85a   : > { %v4995_v49 = vsel %vm4992_vm7, %v4994_v43, %v4990_v25  ;;  %v4551_v43 = vpack.c.bf16 %v11691_v63, %v11691_v63  ;;  %v13089_v25 = vld [vmem:[#allocation50_spill] sm:$0xff] }
 0x85b   : > { %v5738_v50 = vpop.f32.mrf.mxu2  ;;  %v4996_v29 = vmul.f32 %v11958_v18, %v4995_v49  ;;  %v12144_v48 = vpop.xlane.xlu1 %5418  ;;  %v5586_v18 = vsel %vm12136_vm9, %v12124_v3, %v5582_v17  ;;  %v6121_v35 = vunpack.c.l.b16 %v5158_v13  ;;  %v5898_v12 = vunpack.c.l.b16 %v2715_v32 }
 0x85c   : > { %v5771_v42 = vpack.c.bf16 %v5738_v50, %v5738_v50  ;;  %7875 = vrcp.f32 %v12144_v48  ;;  %v5591_v41 = vsel %vm12140_vm10, %v5590_v46, %v5586_v18  ;;  %v2717_v51 = vpack.c.bf16 %v13089_v25, %v13089_v25  ;;  %v13091_v46 = vld [vmem:[#allocation71_spill] sm:$0xff] }
 0x85d   : > { %7078 = vst [vmem:[%s9247_s28 + $0x358] sm:$0xff] %v4996_v29  ;;  %v5079_v52 = vpack.c.bf16 %v4996_v29, %v4981_v38  ;;  %v6135_v3 = vpack.c.b16 %v6121_v35, %v6120_v26  ;;  %v12160_v53 = vmul.f32 %v11942_v4, %v5591_v41  ;;  %v2106_v38 = vpack.c.bf16 %v13085_v47, %v13085_v47  ;;  %v13090_v29 = vld [vmem:[#allocation64_spill] sm:$0xff] }
 0x85e   : > { %v6179_v9 = vunpack.c.l.b16 %v5771_v42  ;;  %v2718_v4 = vpack.c.bf16 %v13088_v44, %v13088_v44  ;;  %v5957_v49 = vunpack.c.l.b16 %v3329_v57  ;;  %v4548_v59 = vpack.c.bf16 %v13090_v29, %v13090_v29  ;;  %v13092_v57 = vld [vmem:[#allocation9_spill] sm:$0xff] }
 0x85f   : > { %5139 = vmatmul.bf16.gmra.mxu0 %v5079_v52  ;;  %6144 = vrot.lane.b32.xlu0 %v6135_v3, %s7941_s14  ;;  %7101 = vst [vmem:[%s9247_s28 + $0x3d0] sm:$0xff] %v12160_v53  ;;  %v12195_v13 = vunpack.c.l.b16 %v2107_v34  ;;  %v5956_v42 = vunpack.c.l.b16 %v3328_v24  ;;  %v3939_v62 = vpack.c.bf16 %v13091_v46, %v13091_v46  ;;  %v6067_v18 = vunpack.c.l.b16 %v4549_v6 }
 0x860   : > { %v6192_v10 = vpack.c.b16 %v6179_v9, %v6178_v37  ;;  %v12200_v52 = vunpack.c.l.b16 %v2718_v4  ;;  %v12202_v19 = vunpack.c.l.b16 %v4551_v43  ;;  %v12204_v35 = vunpack.c.l.b16 %v2106_v38 }
 0x861   : > { %v5912_v9 = vpack.c.b16 %v5899_v45, %v5898_v12  ;;  %v5969_v60 = vpack.c.b16 %v5957_v49, %v5956_v42  ;;  %v12206_v32 = vunpack.c.l.b16 %v3940_v20  ;;  %v12208_v58 = vunpack.c.l.b16 %v2717_v51 }
 0x862   : > { %6202 = vrot.lane.b32.xlu1 %v6192_v10, %s7942_s15  ;;  %v12178_v17 = vpop.eup %7875  ;;  %v6066_v39 = vunpack.c.l.b16 %v4548_v59  ;;  %v12210_v41 = vunpack.c.l.b16 %v4550_v27  ;;  %v5857_v14 = vpack.c.b16 %v12195_v13, %v12204_v35  ;;  %v12216_v10 = vunpack.c.l.b16 %v3939_v62 }
 0x863   : > { %v12184_v50 = vpop.xlane.xlu2 %5422  ;;  %v5594_v63 = vmul.f32 %v12178_v17, %v12144_v48  ;;  %v5602_v44 = vand.u32 2147483647, %v12144_v48  ;;  %v5604_v4 = vand.u32 2147483648, %v12144_v48  ;;  %vm5598_vm11 = vweird.f32 %v12144_v48 }
 0x864   : > { %v12192_v23 = vpop.xlane.xlu1 %5420  ;;  %7877 = vrcp.f32 %v12184_v50  ;;  %v6080_v11 = vpack.c.b16 %v6067_v18, %v6066_v39  ;;  %vm5599_vm12 = vweird.f32 %v12178_v17  ;;  %v5634_v29 = vand.u32 2147483648, %v12184_v50 }
 0x865   : > { %v5125_v26 = vpop.f32.mrf.mxu0  ;;  %7879 = vrcp.f32 %v12192_v23  ;;  %v5595_v37 = vsub.f32 1.0, %v5594_v63  ;;  %v5619_v20 = vand.u32 2147483648, %v12192_v23  ;;  %v5617_v42 = vand.u32 2147483647, %v12192_v23  ;;  %vm12262_vm14 = vmor %vm5598_vm11, %vm5599_vm12 }
 0x866   : > { %v5159_v25 = vpack.c.bf16 %v5125_v26, %v5125_v26  ;;  %vm12251_vm13 = vcmp.eq.f32.partialorder %v5602_v44, 8.507059e+37  ;;  %v5605_v26 = vor.u32 1.1754944e-38, %v5604_v4  ;;  %vm5613_vm1 = vweird.f32 %v12192_v23 }
 0x867   : > { %5922 = vrot.lane.b32.xlu0 %v5912_v9, %s7946_s24  ;;  %v5596_v1 = vmul.f32 %v12178_v17, %v5595_v37  ;;  %v5632_v9 = vand.u32 2147483647, %v12184_v50  ;;  %vm5628_vm15 = vweird.f32 %v12184_v50  ;;  %v12270_v44 = vor.u32 1.1754944e-38, %v5634_v29 }
 0x868   : > { %v6122_v37 = vunpack.c.l.b16 %v5159_v25  ;;  %vm12277_vm3 = vcmp.eq.f32.partialorder %v5617_v42, 8.507059e+37 }
 0x869   : > { %v5597_v27 = vadd.f32 %v12178_v17, %v5596_v1  ;;  %v12266_v1 = vor.u32 1.1754944e-38, %v5619_v20  ;;  %vm12294_vm5 = vcmp.eq.f32.partialorder %v5632_v9, 8.507059e+37 }
 0x86a   : > { %5980 = vrot.lane.b32.xlu1 %v5969_v60, %s7944_s17  ;;  %v12220_v47 = vpop.eup %7877 }
 0x86b   : > { %v12227_v24 = vpop.eup %7879  ;;  %v5624_v6 = vmul.f32 %v12220_v47, %v12184_v50  ;;  %v12235_v43 = vpop.xlane.xlu2 %5424  ;;  %vm5629_vm2 = vweird.f32 %v12220_v47  ;;  %v5601_v29 = vsel %vm12262_vm14, %v12178_v17, %v5597_v27 }
 0x86c   : > { %v12237_v45 = vpop.xlane.xlu0 %4809  ;;  %v5609_v51 = vmul.f32 %v12227_v24, %v12192_v23  ;;  %v12242_v49 = vpop.xlane.xlu1 %4811  ;;  %7881 = vrcp.f32 %v12235_v43  ;;  %vm5614_vm4 = vweird.f32 %v12227_v24  ;;  %v5649_v42 = vand.u32 2147483648, %v12235_v43 }
 0x86d   : > { %v5127_v59 = vpop.f32.mrf.mxu0  ;;  %7883 = vrcp.f32 %v12242_v49  ;;  %v5625_v18 = vsub.f32 1.0, %v5624_v6  ;;  %v5021_v4 = vand.u32 2147483647, %v12242_v49  ;;  %v5023_v20 = vand.u32 2147483648, %v12242_v49  ;;  %vm12332_vm10 = vmor %vm5613_vm1, %vm5614_vm4 }
 0x86e   : > { %v5610_v63 = vsub.f32 1.0, %v5609_v51  ;;  %v5160_v46 = vpack.c.bf16 %v5127_v59, %v5127_v59  ;;  %7885 = vrcp.f32 %v12237_v45  ;;  %vm5017_vm6 = vweird.f32 %v12242_v49  ;;  %vm12355_vm1 = vmor %vm5628_vm15, %vm5629_vm2 }
 0x86f   : > { %6090 = vrot.lane.b32.xlu0 %v6080_v11, %s7943_s16  ;;  %v5626_v11 = vmul.f32 %v12220_v47, %v5625_v18  ;;  %v5647_v17 = vand.u32 2147483647, %v12235_v43  ;;  %v5606_v27 = vsel %vm12251_vm13, %v5605_v26, %v5601_v29  ;;  %vm12307_vm7 = vcmp.eq.f32.partialorder %v5021_v4, 8.507059e+37 }
 0x870   : > { %v6123_v60 = vunpack.c.l.b16 %v5160_v46  ;;  %v5611_v48 = vmul.f32 %v12227_v24, %v5610_v63  ;;  %v5006_v61 = vand.u32 2147483647, %v12237_v45  ;;  %v5607_v3 = vmul.f32 %v11982_v2, %v5606_v27 }
 0x871   : > { %v5627_v4 = vadd.f32 %v12220_v47, %v5626_v11  ;;  %vm5643_vm8 = vweird.f32 %v12235_v43  ;;  %v12320_v12 = vor.u32 1.1754944e-38, %v5649_v42  ;;  %vm5002_vm9 = vweird.f32 %v12237_v45 }
 0x872   : > { %v12274_v6 = vpop.eup %7881  ;;  %v6136_v51 = vpack.c.b16 %v6123_v60, %v6122_v37  ;;  %v5612_v62 = vadd.f32 %v12227_v24, %v5611_v48  ;;  %7102 = vst [vmem:[%s9247_s28 + $0x3d8] sm:$0xff] %v5607_v3  ;;  %v5690_v2 = vpack.c.bf16 %v5607_v3, %v12160_v53  ;;  %vm12339_vm13 = vcmp.eq.f32.partialorder %v5647_v17, 8.507059e+37 }
 0x873   : > { %v12282_v59 = vpop.f32.mrf.mxu2  ;;  %v12287_v46 = vpop.eup %7883  ;;  %v5639_v63 = vmul.f32 %v12274_v6, %v12235_v43  ;;  %vm5644_vm12 = vweird.f32 %v12274_v6  ;;  %vm12343_vm14 = vcmp.eq.f32.partialorder %v5006_v61, 8.507059e+37  ;;  %v5631_v35 = vsel %vm12355_vm1, %v12220_v47, %v5627_v4 }
 0x874   : > { %v5013_v60 = vmul.f32 %v12287_v46, %v12242_v49  ;;  %6146 = vrot.lane.b32.xlu2 %v6136_v51, %s7941_s14  ;;  %v12305_v18 = vpop.xlane.xlu1 %4813  ;;  %v7886_v39 = vpop.eup %7885  ;;  %v5024_v51 = vor.u32 1.1754944e-38, %v5023_v20  ;;  %vm5018_vm11 = vweird.f32 %v12287_v46  ;;  %5750 = vmatmul.bf16.gmra.mxu2 %v5690_v2  ;;  %v5616_v11 = vsel %vm12332_vm10, %v12227_v24, %v5612_v62 }
 0x875   : > { %v5640_v8 = vsub.f32 1.0, %v5639_v63  ;;  %7887 = vrcp.f32 %v12305_v18  ;;  %v12314_v34 = vpop.xlane.xlu0 %5426  ;;  %v4998_v29 = vmul.f32 %v7886_v39, %v12237_v45  ;;  %v5008_v63 = vand.u32 2147483648, %v12237_v45  ;;  %vm12375_vm15 = vmor %vm5017_vm6, %vm5018_vm11 }
 0x876   : > { %v5014_v26 = vsub.f32 1.0, %v5013_v60  ;;  %7889 = vrcp.f32 %v12314_v34  ;;  %vm5003_vm4 = vweird.f32 %v7886_v39  ;;  %v5772_v13 = vpack.c.bf16 %v12282_v59, %v12282_v59 }
 0x877   : > { %v4999_v38 = vsub.f32 1.0, %v4998_v29  ;;  %v5641_v20 = vmul.f32 %v12274_v6, %v5640_v8  ;;  %5868 = vrot.lane.b32.xlu0 %v5857_v14, %s7945_s23  ;;  %v5009_v60 = vor.u32 1.1754944e-38, %v5008_v63  ;;  %v5621_v50 = vsel %vm12277_vm3, %v12266_v1, %v5616_v11  ;;  %vm5004_vm3 = vmor %vm5002_vm9, %vm5003_vm4  ;;  %v13119_v8 = vld [vmem:[#allocation6_spill] sm:$0xff] }
 0x878   : > { %v5015_v27 = vmul.f32 %v12287_v46, %v5014_v26  ;;  %vm5032_vm2 = vweird.f32 %v12305_v18  ;;  %v5038_v25 = vand.u32 2147483648, %v12305_v18  ;;  %v13113_v47 = vpack.c.b16 %v12200_v52, %v12208_v58 }
 0x879   : > { %v5000_v61 = vmul.f32 %v7886_v39, %v4999_v38  ;;  %v5642_v49 = vadd.f32 %v12274_v6, %v5641_v20  ;;  %v5622_v17 = vmul.f32 %v11997_v55, %v5621_v50  ;;  %v5636_v62 = vsel %vm12294_vm5, %v12270_v44, %v5631_v35  ;;  %vm12409_vm5 = vmor %vm5643_vm8, %vm5644_vm12  ;;  %v13122_v50 = vld [vmem:[#allocation45_spill] sm:$0xff] }
 0x87a   : > { %v5016_v23 = vadd.f32 %v12287_v46, %v5015_v27  ;;  %v5637_v45 = vmul.f32 %v11993_v33, %v5636_v62  ;;  %v5036_v4 = vand.u32 2147483647, %v12305_v18  ;;  %v5039_v9 = vor.u32 1.1754944e-38, %v5038_v25 }
 0x87b   : > { %v7888_v42 = vpop.eup %7887  ;;  %v5001_v38 = vadd.f32 %v7886_v39, %v5000_v61  ;;  %v5743_v1 = vpop.f32.mrf.mxu2  ;;  %7103 = vst [vmem:[%s9247_s28 + $0x3e0] sm:$0xff] %v5622_v17  ;;  %v5662_v2 = vand.u32 2147483647, %v12314_v34  ;;  %v13116_v43 = vpack.c.b16 %v12206_v32, %v12216_v10  ;;  %v5646_v27 = vsel %vm12409_vm5, %v12274_v6, %v5642_v49 }
 0x87c   : > { %v5028_v24 = vmul.f32 %v7888_v42, %v12305_v18  ;;  %5924 = vrot.lane.b32.xlu2 %v13113_v47, %s7946_s24  ;;  %v5020_v59 = vsel %vm12375_vm15, %v12287_v46, %v5016_v23  ;;  %v7890_v52 = vpop.eup %7889  ;;  %v5773_v46 = vpack.c.bf16 %v5743_v1, %v5743_v1  ;;  %vm5033_vm6 = vweird.f32 %v7888_v42  ;;  %7104 = vst [vmem:[%s9247_s28 + $0x3e8] sm:$0xff] %v5637_v45  ;;  %v13124_v47 = vld [vmem:[#allocation73_spill] sm:$0xff] }
 0x87d   : > { %v5005_v26 = vsel %vm5004_vm3, %v7886_v39, %v5001_v38  ;;  %v5025_v29 = vsel %vm12307_vm7, %v5024_v51, %v5020_v59  ;;  %v5654_v63 = vmul.f32 %v7890_v52, %v12314_v34  ;;  %v5651_v20 = vsel %vm12339_vm13, %v12320_v12, %v5646_v27  ;;  %vm12431_vm7 = vmor %vm5032_vm2, %vm5033_vm6  ;;  %v13127_v27 = vld [vmem:[#allocation54_spill] sm:$0xff] }
 0x87e   : > { %v5029_v58 = vsub.f32 1.0, %v5028_v24  ;;  %v5010_v55 = vsel %vm12343_vm14, %v5009_v60, %v5005_v26  ;;  %v5026_v39 = vmul.f32 %v12012_v21, %v5025_v29  ;;  %vm5659_vm8 = vweird.f32 %v7890_v52 }
 0x87f   : > { %v5011_v33 = vmul.f32 %v12009_v28, %v5010_v55  ;;  %v5655_v51 = vsub.f32 1.0, %v5654_v63  ;;  %6036 = vrot.lane.b32.xlu0 %v13116_v43, %s7940_s13  ;;  %v5664_v28 = vand.u32 2147483648, %v12314_v34  ;;  %v6181_v10 = vunpack.c.l.b16 %v5773_v46  ;;  %v7199_v43 = vld [vmem:[%s12766_s2 + $0x38] sm:$0xff] }
 0x880   : > { %v5030_v37 = vmul.f32 %v7888_v42, %v5029_v58  ;;  %7080 = vst [vmem:[%s9247_s28 + $0x368] sm:$0xff] %v5026_v39  ;;  %v12437_v6 = vmul.f32 %v12007_v30, %v5651_v20  ;;  %v2108_v23 = vpack.c.bf16 %v13119_v8, %v13119_v8  ;;  %vm5037_vm9 = vcmp.eq.f32.partialorder %v5036_v4, 8.507059e+37  ;;  %7341 = vmatpush.bf16.msra.mxu3 %v7199_v43 }
 0x881   : > { %7079 = vst [vmem:[%s9247_s28 + $0x360] sm:$0xff] %v5011_v33  ;;  %v5080_v21 = vpack.c.bf16 %v5026_v39, %v5011_v33  ;;  %v5656_v32 = vmul.f32 %v7890_v52, %v5655_v51  ;;  %v13120_v12 = vpack.c.b16 %v12202_v19, %v12210_v41  ;;  %v6180_v53 = vunpack.c.l.b16 %v5772_v13  ;;  %v13126_v39 = vld [vmem:[#allocation56_spill] sm:$0xff]  ;;  %6430 = vmatpush.bf16.msrb.mxu0 %v7199_v43  ;;  %v13136_v43 = vld [vmem:[#allocation77_spill] sm:$0xff] }
 0x882   : > { %v5031_v48 = vadd.f32 %v7888_v42, %v5030_v37  ;;  %vm5658_vm10 = vweird.f32 %v12314_v34  ;;  %7105 = vst [vmem:[%s9247_s28 + $0x3f0] sm:$0xff] %v12437_v6  ;;  %v13121_v11 = vpack.c.bf16 %v13092_v57, %v13092_v57  ;;  %v3331_v35 = vpack.c.bf16 %v13122_v50, %v13122_v50  ;;  %v13123_v57 = vld [vmem:[#allocation44_spill] sm:$0xff] }
 0x883   : > { %5144 = vmatmul.bf16.gmra.mxu0 %v5080_v21  ;;  %v5657_v61 = vadd.f32 %v7890_v52, %v5656_v32  ;;  %vm5660_vm11 = vmor %vm5658_vm10, %vm5659_vm8  ;;  %v5665_v19 = vor.u32 1.1754944e-38, %v5664_v28  ;;  %vm5663_vm12 = vcmp.eq.f32.partialorder %v5662_v2, 8.507059e+37  ;;  %v5691_v34 = vpack.c.bf16 %v5637_v45, %v5622_v17  ;;  %v13125_v17 = vld [vmem:[#allocation72_spill] sm:$0xff]  ;;  %v7198_v32 = vld [vmem:[%s12766_s2 + $0x30] sm:$0xff] }
 0x884   : > { %6092 = vrot.lane.b32.xlu2 %v13120_v12, %s7943_s16  ;;  %v5035_v18 = vsel %vm12431_vm7, %v7888_v42, %v5031_v48  ;;  %v5847_v60 = vunpack.c.l.b16 %v13121_v11  ;;  %v6193_v42 = vpack.c.b16 %v6181_v10, %v6180_v53  ;;  %v5846_v14 = vunpack.c.l.b16 %v2108_v23  ;;  %7342 = vmatpush.bf16.msra.mxu3 %v7198_v32  ;;  %v7196_v50 = vld [vmem:[%s12766_s2 + $0x20] sm:$0xff] }
 0x885   : > { %v5040_v30 = vsel %vm5037_vm9, %v5039_v9, %v5035_v18  ;;  %v5661_v13 = vsel %vm5660_vm11, %v7890_v52, %v5657_v61  ;;  %v3330_v25 = vpack.c.bf16 %v13123_v57, %v13123_v57  ;;  %5755 = vmatmul.bf16.gmra.mxu2 %v5691_v34  ;;  %v3942_v49 = vpack.c.bf16 %v13124_v47, %v13124_v47  ;;  %v7197_v18 = vld [vmem:[%s12766_s2 + $0x28] sm:$0xff]  ;;  %v13129_v34 = vld [vmem:[#allocation7_spill] sm:$0xff] }
 0x886   : > { %v12457_v41 = vmul.f32 %v12025_v36, %v5040_v30  ;;  %v5666_v24 = vsel %vm5663_vm12, %v5665_v19, %v5661_v13  ;;  %v5858_v36 = vpack.c.b16 %v5847_v60, %v5846_v14  ;;  %v5959_v59 = vunpack.c.l.b16 %v3331_v35  ;;  %6431 = vmatpush.bf16.msrb.mxu0 %v7198_v32  ;;  %v7195_v35 = vld [vmem:[%s12766_s2 + $0x18] sm:$0xff]  ;;  %v13130_v13 = vld [vmem:[#allocation70_spill] sm:$0xff]  ;;  %v13131_v14 = vld [vmem:[#allocation69_spill] sm:$0xff] }
 0x887   : > { %v5130_v38 = vpop.f32.mrf.mxu0  ;;  %6204 = vrot.lane.b32.xlu0 %v6193_v42, %s7942_s15  ;;  %v5667_v1 = vmul.f32 %v12023_v16, %v5666_v24  ;;  %v3941_v62 = vpack.c.bf16 %v13125_v17, %v13125_v17  ;;  %v5958_v58 = vunpack.c.l.b16 %v3330_v25  ;;  %v6015_v26 = vunpack.c.l.b16 %v3942_v49  ;;  %v7194_v25 = vld [vmem:[%s12766_s2 + $0x10] sm:$0xff]  ;;  %v13133_v17 = vld [vmem:[#allocation49_spill] sm:$0xff] }
 0x888   : > { %7081 = vst [vmem:[%s9247_s28 + $0x370] sm:$0xff] %v12457_v41  ;;  %v5161_v45 = vpack.c.bf16 %v5130_v38, %v5130_v38  ;;  %v2720_v9 = vpack.c.bf16 %v13126_v39, %v13126_v39  ;;  %v2719_v48 = vpack.c.bf16 %v13127_v27, %v13127_v27  ;;  %7343 = vmatpush.bf16.msra.mxu3 %v7197_v18  ;;  %v13137_v27 = vld [vmem:[#allocation76_spill] sm:$0xff]  ;;  %vm6238_vm15 = vcmask 261120  }
 0x889   : > { %7106 = vst [vmem:[%s9247_s28 + $0x3f8] sm:$0xff] %v5667_v1  ;;  %v5970_v29 = vpack.c.b16 %v5959_v59, %v5958_v58  ;;  %v6014_v4 = vunpack.c.l.b16 %v3941_v62  ;;  %v5692_v21 = vpack.c.bf16 %v5667_v1, %v12437_v6  ;;  %v13132_v38 = vpack.c.b16 %v13130_v13, %v13131_v14 }
 0x88a   : > { %v6124_v44 = vunpack.c.l.b16 %v5161_v45  ;;  %v5903_v10 = vunpack.c.l.b16 %v2720_v9  ;;  %v5902_v23 = vunpack.c.l.b16 %v2719_v48  ;;  %6432 = vmatpush.bf16.msrb.mxu0 %v7197_v18  ;;  %v3333_v62 = vpack.c.bf16 %v13133_v17, %v13133_v17  ;;  %v7193_v45 = vld [vmem:[%s12766_s2 + $0x8] sm:$0xff] }
 0x88b   : > { %v6026_v46 = vpack.c.b16 %v6015_v26, %v6014_v4  ;;  %v13134_v26 = vld [vmem:[#allocation47_spill] sm:$0xff]  ;;  %v13135_v9 = vld [vmem:[#allocation61_spill] sm:$0xff]  ;;  %v13138_v48 = vpack.c.b16 %v13136_v43, %v13137_v27  ;;  %vm6255_vm2 = vcmask 392192   ;;  %vm6272_vm3 = vcmask 523264  }
 0x88c   : > { %5870 = vrot.lane.b32.xlu2 %v5858_v36, %s7945_s23  ;;  %v4816_v52 = vpop.xlane.xlu2 %4815  ;;  %v5914_v53 = vpack.c.b16 %v5903_v10, %v5902_v23  ;;  %7344 = vmatpush.bf16.msra.mxu3 %v7196_v50  ;;  %v5961_v4 = vunpack.c.l.b16 %v3333_v62  ;;  %v5921_v10 = vpop.permute.xlu1 %5920  ;;  %vm6289_vm5 = vcmask 654336   ;;  %vm6306_vm6 = vcmask 785408  }
 0x88d   : > { %7891 = vrcp.f32 %v4816_v52  ;;  %v5053_v28 = vand.u32 2147483648, %v4816_v52  ;;  %v5051_v3 = vand.u32 2147483647, %v4816_v52  ;;  %vm5047_vm14 = vweird.f32 %v4816_v52 }
 0x88e   : > { %6433 = vmatpush.bf16.msrb.mxu0 %v7196_v50  ;;  %vm6323_vm7 = vcmask 916480  }
 0x88f   : > { %v5132_v63 = vpop.f32.mrf.mxu0  ;;  %5982 = vrot.lane.b32.xlu0 %v5970_v29, %s7944_s17  ;;  %v5054_v12 = vor.u32 1.1754944e-38, %v5053_v28  ;;  %vm5052_vm4 = vcmp.eq.f32.partialorder %v5051_v3, 8.507059e+37  ;;  %v3332_v29 = vpack.c.bf16 %v13134_v26, %v13134_v26  ;;  %v13139_v28 = vld [vmem:[#allocation59_spill] sm:$0xff] }
 0x890   : > { %v5162_v16 = vpack.c.bf16 %v5132_v63, %v5132_v63  ;;  %7345 = vmatpush.bf16.msra.mxu3 %v7195_v35 }
 0x892   : > { %v6125_v37 = vunpack.c.l.b16 %v5162_v16  ;;  %6434 = vmatpush.bf16.msrb.mxu0 %v7195_v35  ;;  %v7192_v16 = vld [vmem:[%s12766_s2] sm:$0xff] }
 0x893   : > { %v7892_v55 = vpop.eup %7891 }
 0x894   : > { %v5043_v33 = vmul.f32 %v7892_v55, %v4816_v52  ;;  %6038 = vrot.lane.b32.xlu2 %v6026_v46, %s7940_s13  ;;  %v6137_v51 = vpack.c.b16 %v6125_v37, %v6124_v44  ;;  %vm5048_vm13 = vweird.f32 %v7892_v55  ;;  %7346 = vmatpush.bf16.msra.mxu3 %v7194_v25  ;;  %v5977_v35 = vpop.permute.xlu2 %5976 }
 0x895   : > { %5760 = vmatmul.bf16.gmra.mxu2 %v5692_v21  ;;  %vm5049_vm1 = vmor %vm5047_vm14, %vm5048_vm13  ;;  %v2721_v21 = vpack.c.bf16 %v13139_v28, %v13139_v28 }
 0x896   : > { %v5044_v2 = vsub.f32 1.0, %v5043_v33  ;;  %6148 = vrot.lane.b32.xlu1 %v6137_v51, %s7941_s14  ;;  %6435 = vmatpush.bf16.msrb.mxu0 %v7194_v25  ;;  %v2722_v51 = vpack.c.bf16 %v13135_v9, %v13135_v9 }
 0x897   : > { %v5904_v3 = vunpack.c.l.b16 %v2721_v21 }
 0x898   : > { %v5045_v20 = vmul.f32 %v7892_v55, %v5044_v2  ;;  %7347 = vmatpush.bf16.msra.mxu3 %v7193_v45 }
 0x89a   : > { %v5046_v8 = vadd.f32 %v7892_v55, %v5045_v20  ;;  %6436 = vmatpush.bf16.msrb.mxu0 %v7193_v45  ;;  %v5905_v20 = vunpack.c.l.b16 %v2722_v51 }
 0x89c   : > { %v5050_v6 = vsel %vm5049_vm1, %v7892_v55, %v5046_v8  ;;  %v5960_v55 = vunpack.c.l.b16 %v3332_v29  ;;  %7348 = vmatpush.bf16.msra.mxu3 %v7192_v16  ;;  %v5915_v32 = vpack.c.b16 %v5905_v20, %v5904_v3  ;;  %v13140_v8 = vld [vmem:[#allocation16_spill] sm:$0xff] }
 0x89d   : > { %v5055_v61 = vsel %vm5052_vm4, %v5054_v12, %v5050_v6  ;;  %v1492_v23 = vpack.c.bf16 %v13140_v8, %v13140_v8  ;;  %v5865_v12 = vpop.permute.xlu0 %5864  ;;  %v13141_v6 = vld [vmem:[#allocation27_spill] sm:$0xff] }
 0x89e   : > { %v5056_v30 = vmul.f32 %v12077_v31, %v5055_v61  ;;  %5926 = vrot.lane.b32.xlu1 %v5914_v53, %s7946_s24  ;;  %v5746_v11 = vpop.f32.mrf.mxu2  ;;  %v13128_v31 = vld [vmem:[#allocation10_spill] sm:$0xff]  ;;  %v5971_v37 = vpack.c.b16 %v5961_v4, %v5960_v55  ;;  %6437 = vmatpush.bf16.msrb.mxu0 %v7192_v16  ;;  %v1491_v18 = vpack.c.bf16 %v13141_v6, %v13141_v6  ;;  %v13149_v16 = vld [vmem:[#allocation79_spill] sm:$0xff] }
 0x89f   : > { %v2111_v19 = vpack.c.bf16 %v13128_v31, %v13128_v31  ;;  %v5774_v42 = vpack.c.bf16 %v5746_v11, %v5746_v11  ;;  %v5801_v53 = vunpack.c.l.b16 %v1492_v23  ;;  %v13142_v61 = vld [vmem:[#allocation22_spill] sm:$0xff]  ;;  %v13144_v31 = vld [vmem:[#allocation75_spill] sm:$0xff] }
 0x8a0   : > { %7082 = vst [vmem:[%s9247_s28 + $0x378] sm:$0xff] %v5056_v30  ;;  %v5081_v60 = vpack.c.bf16 %v5056_v30, %v12457_v41  ;;  %v2110_v41 = vpack.c.bf16 %v13129_v34, %v13129_v34  ;;  %v2113_v30 = vpack.c.bf16 %v13142_v61, %v13142_v61  ;;  %v5800_v11 = vunpack.c.l.b16 %v1491_v18  ;;  %v13152_v18 = vld [vmem:[#allocation63_spill] sm:$0xff] }
 0x8a1   : > { %v5849_v1 = vunpack.c.l.b16 %v2111_v19  ;;  %v6182_v47 = vunpack.c.l.b16 %v5774_v42  ;;  %v13145_v19 = vld [vmem:[#allocation74_spill] sm:$0xff] }
 0x8a2   : > { %5149 = vmatmul.bf16.gmra.mxu0 %v5081_v60  ;;  %v5848_v59 = vunpack.c.l.b16 %v2110_v41  ;;  %v13143_v60 = vld [vmem:[#allocation17_spill] sm:$0xff]  ;;  %v13146_v42 = vpack.c.b16 %v13144_v31, %v13145_v19  ;;  %v5815_v34 = vpack.c.b16 %v5801_v53, %v5800_v11  ;;  %v6089_v41 = vpop.permute.xlu1 %6088  ;;  %v5851_v13 = vunpack.c.l.b16 %v2113_v30  ;;  %v13153_v30 = vld [vmem:[#allocation62_spill] sm:$0xff]  ;;  %v13154_v31 = vld [vmem:[#allocation23_spill] sm:$0xff] }
 0x8a3   : > { %v2112_v50 = vpack.c.bf16 %v13143_v60, %v13143_v60  ;;  %v2724_v53 = vpack.c.bf16 %v13152_v18, %v13152_v18  ;;  %v2723_v11 = vpack.c.bf16 %v13153_v30, %v13153_v30  ;;  %v1496_v19 = vpack.c.bf16 %v13154_v31, %v13154_v31 }
 0x8a4   : > { %v5859_v58 = vpack.c.b16 %v5849_v1, %v5848_v59  ;;  %v6219_v14 = vsel %vm902_vm0, %v5815_v34, %v5865_v12  ;;  %v6201_v59 = vpop.permute.xlu2 %6200  ;;  %v13155_v34 = vld [vmem:[#allocation29_spill] sm:$0xff] }
 0x8a5   : > { %v5907_v60 = vunpack.c.l.b16 %v2724_v53 }
 0x8a6   : > { %6094 = vrot.lane.b32.xlu1 %v13132_v38, %s7943_s16  ;;  %v5748_v24 = vpop.f32.mrf.mxu2  ;;  %v6033_v38 = vpop.permute.xlu0 %6032 }
 0x8a7   : > { %v5775_v57 = vpack.c.bf16 %v5748_v24, %v5748_v24  ;;  %v5850_v24 = vunpack.c.l.b16 %v2112_v50  ;;  %v5906_v50 = vunpack.c.l.b16 %v2723_v11 }
 0x8a9   : > { %v5135_v36 = vpop.f32.mrf.mxu0  ;;  %v6183_v49 = vunpack.c.l.b16 %v5775_v57  ;;  %v6242_v57 = vsel %vm6238_vm15, %v6219_v14, %v5921_v10  ;;  %v5860_v1 = vpack.c.b16 %v5851_v13, %v5850_v24  ;;  %v5805_v13 = vunpack.c.l.b16 %v1496_v19  ;;  %v13156_v14 = vld [vmem:[#allocation5_spill] sm:$0xff] }
 0x8aa   : > { %v5163_v63 = vpack.c.bf16 %v5135_v36, %v5135_v36  ;;  %v6259_v25 = vsel %vm6255_vm2, %v6242_v57, %v5977_v35  ;;  %v5867_v17 = vpop.permute.xlu1 %5866  ;;  %v5916_v35 = vpack.c.b16 %v5907_v60, %v5906_v50  ;;  %v13157_v57 = vld [vmem:[#allocation19_spill] sm:$0xff] }
 0x8ab   : > { %v6194_v52 = vpack.c.b16 %v6183_v49, %v6182_v47  ;;  %v6276_v36 = vsel %vm6272_vm3, %v6259_v25, %v6033_v38  ;;  %v13147_v47 = vld [vmem:[#allocation4_spill] sm:$0xff]  ;;  %v2115_v38 = vpack.c.bf16 %v13156_v14, %v13156_v14  ;;  %v2114_v25 = vpack.c.bf16 %v13157_v57, %v13157_v57 }
 0x8ac   : > { %v6126_v33 = vunpack.c.l.b16 %v5163_v63  ;;  %v1494_v49 = vpack.c.bf16 %v13147_v47, %v13147_v47  ;;  %v6293_v62 = vsel %vm6289_vm5, %v6276_v36, %v6089_v41  ;;  %v1495_v41 = vpack.c.bf16 %v13155_v34, %v13155_v34  ;;  %v13159_v36 = vld [vmem:[#allocation80_spill] sm:$0xff] }
 0x8ad   : > { %6206 = vrot.lane.b32.xlu2 %v6194_v52, %s7942_s15  ;;  %v13165_v34 = vld [vmem:[#allocation24_spill] sm:$0xff] }
 0x8ae   : > { %5872 = vrot.lane.b32.xlu1 %v5859_v58, %s7945_s23  ;;  %v13148_v58 = vld [vmem:[#allocation25_spill] sm:$0xff]  ;;  %v5803_v4 = vunpack.c.l.b16 %v1494_v49  ;;  %v5804_v24 = vunpack.c.l.b16 %v1495_v41  ;;  %v3323_v41 = vpack.c.bf16 %v13165_v34, %v13165_v34 }
 0x8af   : > { %v1493_v26 = vpack.c.bf16 %v13148_v58, %v13148_v58 }
 0x8b1   : > { %v5137_v46 = vpop.f32.mrf.mxu0  ;;  %v5802_v63 = vunpack.c.l.b16 %v1493_v26 }
 0x8b2   : > { %v5164_v44 = vpack.c.bf16 %v5137_v46, %v5137_v46  ;;  %v13150_v46 = vld [vmem:[#allocation78_spill] sm:$0xff]  ;;  %v6035_v51 = vpop.permute.xlu1 %6034 }
 0x8b3   : > { %v13151_v55 = vpack.c.b16 %v13149_v16, %v13150_v46  ;;  %v3947_v16 = vpack.c.bf16 %v12093_v15, %v12093_v15 }
 0x8b4   : > { %v6127_v39 = vunpack.c.l.b16 %v5164_v44  ;;  %v5816_v44 = vpack.c.b16 %v5803_v4, %v5802_v63 }
 0x8b5   : > { %5984 = vrot.lane.b32.xlu2 %v5971_v37, %s7944_s17 }
 0x8b6   : > { %v6138_v2 = vpack.c.b16 %v6127_v39, %v6126_v33  ;;  %6040 = vrot.lane.b32.xlu1 %v13138_v48, %s7940_s13  ;;  %v6222_v33 = vsel %vm902_vm0, %v5816_v44, %v5867_v17  ;;  %v5979_v39 = vpop.permute.xlu2 %5978  ;;  %v5853_v17 = vunpack.c.l.b16 %v2115_v38  ;;  %v13166_v38 = vld [vmem:[#allocation31_spill] sm:$0xff] }
 0x8b8   : > { %6150 = vrot.lane.b32.xlu0 %v6138_v2, %s7941_s14 }
 0x8c0   : > { %5928 = vrot.lane.b32.xlu0 %v5915_v32, %s7946_s24 }
 0x8c8   : > { %6096 = vrot.lane.b32.xlu0 %v13146_v42, %s7943_s16 }
 0x8ce   : > { %v6147_v21 = vpop.permute.xlu2 %6146 }
 0x8d0   : > { %5874 = vrot.lane.b32.xlu0 %v5860_v1, %s7945_s23  ;;  %v13158_v1 = vld [vmem:[#allocation81_spill] sm:$0xff] }
 0x8d1   : > { %v6145_v52 = vpop.permute.xlu0 %6144  ;;  %v13160_v47 = vpack.c.b16 %v13158_v1, %v13159_v36  ;;  %v5951_v36 = vunpack.c.l.b16 %v3323_v41 }
 0x8d2   : > { %v6310_v29 = vsel %vm6306_vm6, %v6293_v62, %v6145_v52  ;;  %v5852_v52 = vunpack.c.l.b16 %v2114_v25 }
 0x8d3   : > { %v6328_v45 = vsel %vm6323_vm7, %v6310_v29, %v6201_v59  ;;  %v5817_v59 = vpack.c.b16 %v5805_v13, %v5804_v24  ;;  %v3322_v24 = vpack.c.bf16 %v13166_v38, %v13166_v38 }
 0x8d4   : > { %6443 = vmatmul.bf16.vlgmr.msra.gmra.mxu3 %v6328_v45  ;;  %v6203_v32 = vpop.permute.xlu1 %6202  ;;  %v5861_v29 = vpack.c.b16 %v5853_v17, %v5852_v52  ;;  %v3948_v45 = vpack.c.bf16 %v12108_v0, %v12108_v0  ;;  %v13167_v17 = vld [vmem:[#allocation26_spill] sm:$0xff] }
 0x8d5   : > { %v5950_v52 = vunpack.c.l.b16 %v3322_v24  ;;  %v13174_v24 = vld [vmem:[#allocation42_spill] sm:$0xff] }
 0x8d6   : > { %v5925_v62 = vpop.permute.xlu2 %5924 }
 0x8d8   : > { %6042 = vrot.lane.b32.xlu0 %v13151_v55, %s7940_s13 }
 0x8d9   : > { %v5923_v37 = vpop.permute.xlu0 %5922 }
 0x8da   : > { %v6244_v2 = vsel %vm6238_vm15, %v6222_v33, %v5923_v37  ;;  %v6021_v37 = vunpack.c.l.b16 %v3948_v45 }
 0x8db   : > { %v6261_v43 = vsel %vm6255_vm2, %v6244_v2, %v5979_v39 }
 0x8dc   : > { %v5140_v9 = vpop.f32.mrf.mxu0  ;;  %v6278_v48 = vsel %vm6272_vm3, %v6261_v43, %v6035_v51  ;;  %v5981_v4 = vpop.permute.xlu1 %5980  ;;  %v6020_v51 = vunpack.c.l.b16 %v3947_v16  ;;  %v13161_v43 = vld [vmem:[#allocation8_spill] sm:$0xff] }
 0x8dd   : > { %v5165_v27 = vpack.c.bf16 %v5140_v9, %v5140_v9 }
 0x8df   : > { %v6128_v12 = vunpack.c.l.b16 %v5165_v27  ;;  %v2101_v27 = vpack.c.bf16 %v13161_v43, %v13161_v43 }
 0x8e1   : > { %v6091_v28 = vpop.permute.xlu0 %6090  ;;  %v5839_v30 = vunpack.c.l.b16 %v2101_v27 }
 0x8e2   : > { %v6295_v20 = vsel %vm6289_vm5, %v6278_v48, %v6091_v28  ;;  %v6093_v48 = vpop.permute.xlu2 %6092  ;;  %v13162_v28 = vld [vmem:[#allocation53_spill] sm:$0xff] }
 0x8e3   : > { %v6312_v8 = vsel %vm6306_vm6, %v6295_v20, %v6147_v21  ;;  %v3335_v15 = vpack.c.bf16 %v13162_v28, %v13162_v28  ;;  %v6029_v21 = vpack.c.b16 %v6021_v37, %v6020_v51  ;;  %v13171_v37 = vld [vmem:[#allocation65_spill] sm:$0xff] }
 0x8e4   : > { %v5142_v3 = vpop.f32.mrf.mxu0  ;;  %v6331_v23 = vsel %vm6323_vm7, %v6312_v8, %v6203_v32 }
 0x8e5   : > { %v5166_v10 = vpack.c.bf16 %v5142_v3, %v5142_v3  ;;  %6448 = vmatmul.bf16.gmra.mxu3 %v6331_v23  ;;  %v13163_v23 = vld [vmem:[#allocation15_spill] sm:$0xff]  ;;  %v5963_v11 = vunpack.c.l.b16 %v3335_v15 }
 0x8e7   : > { %v6129_v6 = vunpack.c.l.b16 %v5166_v10 }
 0x8e9   : > { %v6139_v61 = vpack.c.b16 %v6129_v6, %v6128_v12  ;;  %v5869_v42 = vpop.permute.xlu0 %5868  ;;  %v2100_v12 = vpack.c.bf16 %v13163_v23, %v13163_v23  ;;  %v13164_v6 = vld [vmem:[#allocation51_spill] sm:$0xff] }
 0x8ea   : > { %v6225_v58 = vsel %vm902_vm0, %v5817_v59, %v5869_v42  ;;  %v3334_v18 = vpack.c.bf16 %v13164_v6, %v13164_v6 }
 0x8eb   : > { %6152 = vrot.lane.b32.xlu2 %v6139_v61, %s7941_s14  ;;  %v6246_v63 = vsel %vm6238_vm15, %v6225_v58, %v5925_v62  ;;  %v5838_v50 = vunpack.c.l.b16 %v2100_v12  ;;  %v1498_v62 = vpack.c.bf16 %v13167_v17, %v13167_v17  ;;  %v13168_v58 = vld [vmem:[#allocation66_spill] sm:$0xff]  ;;  %v4558_v12 = vpack.c.bf16 %v12016_v54, %v12016_v54 }
 0x8ec   : > { %v6263_v33 = vsel %vm6255_vm2, %v6246_v63, %v5981_v4  ;;  %v5871_v4 = vpop.permute.xlu2 %5870 }
 0x8ed   : > { %v5854_v31 = vpack.c.b16 %v5839_v30, %v5838_v50  ;;  %v5807_v51 = vunpack.c.l.b16 %v1498_v62  ;;  %v13176_v62 = vld [vmem:[#allocation68_spill] sm:$0xff] }
 0x8f1   : > { %v6037_v26 = vpop.permute.xlu0 %6036 }
 0x8f2   : > { %v6280_v9 = vsel %vm6272_vm3, %v6263_v33, %v6037_v26  ;;  %v2726_v26 = vpack.c.bf16 %v13168_v58, %v13168_v58  ;;  %v2725_v33 = vpack.c.bf16 %v13171_v37, %v13171_v37 }
 0x8f3   : > { %5930 = vrot.lane.b32.xlu2 %v5916_v35, %s7946_s24  ;;  %v6297_v32 = vsel %vm6289_vm5, %v6280_v9, %v6093_v48  ;;  %v5962_v35 = vunpack.c.l.b16 %v3334_v18 }
 0x8f4   : > { %v5908_v28 = vunpack.c.l.b16 %v2725_v33  ;;  %v6039_v6 = vpop.permute.xlu2 %6038 }
 0x8f5   : > { %v5972_v19 = vpack.c.b16 %v5963_v11, %v5962_v35 }
 0x8f7   : > { %v5751_v49 = vpop.f32.mrf.mxu2 }
 0x8f8   : > { %v5776_v46 = vpack.c.bf16 %v5751_v49, %v5751_v49 }
 0x8f9   : > { %v6205_v10 = vpop.permute.xlu0 %6204 }
 0x8fa   : > { %v6184_v2 = vunpack.c.l.b16 %v5776_v46  ;;  %v13170_v46 = vld [vmem:[#allocation30_spill] sm:$0xff] }
 0x8fb   : > { %6098 = vrot.lane.b32.xlu2 %v13160_v47, %s7943_s16 }
 0x8ff   : > { %v5753_v55 = vpop.f32.mrf.mxu2 }
 0x900   : > { %v5145_v44 = vpop.f32.mrf.mxu0  ;;  %v5777_v39 = vpack.c.bf16 %v5753_v55, %v5753_v55  ;;  %v1497_v55 = vpack.c.bf16 %v13170_v46, %v13170_v46 }
 0x901   : > { %v5167_v13 = vpack.c.bf16 %v5145_v44, %v5145_v44  ;;  %v5966_v44 = vpack.c.b16 %v5951_v36, %v5950_v52  ;;  %v5983_v23 = vpop.permute.xlu0 %5982  ;;  %v3934_v52 = vpack.c.bf16 %v13176_v62, %v13176_v62 }
 0x902   : > { %v6185_v0 = vunpack.c.l.b16 %v5777_v39  ;;  %v13172_v39 = vld [vmem:[#allocation55_spill] sm:$0xff]  ;;  %v5806_v48 = vunpack.c.l.b16 %v1497_v55  ;;  %v13179_v55 = vld [vmem:[#allocation58_spill] sm:$0xff] }
 0x903   : > { %5876 = vrot.lane.b32.xlu2 %v5861_v29, %s7945_s23  ;;  %v6130_v47 = vunpack.c.l.b16 %v5167_v13  ;;  %v13169_v29 = vld [vmem:[#allocation57_spill] sm:$0xff]  ;;  %v3336_v9 = vpack.c.bf16 %v13172_v39, %v13172_v39  ;;  %v6007_v46 = vunpack.c.l.b16 %v3934_v52 }
 0x904   : > { %v6195_v20 = vpack.c.b16 %v6185_v0, %v6184_v2  ;;  %v3337_v45 = vpack.c.bf16 %v13169_v29, %v13169_v29  ;;  %v5909_v0 = vunpack.c.l.b16 %v2726_v26  ;;  %v13177_v29 = vld [vmem:[#allocation67_spill] sm:$0xff] }
 0x905   : > { %v5964_v15 = vunpack.c.l.b16 %v3336_v9 }
 0x906   : > { %6208 = vrot.lane.b32.xlu1 %v6195_v20, %s7942_s15  ;;  %v5965_v43 = vunpack.c.l.b16 %v3337_v45  ;;  %v5818_v20 = vpack.c.b16 %v5807_v51, %v5806_v48  ;;  %v3933_v45 = vpack.c.bf16 %v13177_v29, %v13177_v29 }
 0x908   : > { %v6149_v3 = vpop.permute.xlu1 %6148  ;;  %v5756_v61 = vpop.f32.mrf.mxu2  ;;  %v6006_v37 = vunpack.c.l.b16 %v3933_v45 }
 0x909   : > { %v6314_v8 = vsel %vm6306_vm6, %v6297_v32, %v6149_v3  ;;  %v5147_v60 = vpop.f32.mrf.mxu0  ;;  %v5778_v14 = vpack.c.bf16 %v5756_v61, %v5756_v61  ;;  %v5917_v3 = vpack.c.b16 %v5909_v0, %v5908_v28  ;;  %v5973_v32 = vpack.c.b16 %v5965_v43, %v5964_v15  ;;  %v12670_v0 = vld [vmem:[%s12767_s3] ss:$0 sm:$0xff]  ;;  %v13181_v15 = vld [vmem:[#allocation18_spill] sm:$0xff] }
 0x90a   : > { %v6334_v53 = vsel %vm6323_vm7, %v6314_v8, %v6205_v10  ;;  %v5168_v42 = vpack.c.bf16 %v5147_v60, %v5147_v60  ;;  %v4559_v10 = vpack.c.bf16 %v12029_v7, %v12029_v7  ;;  %v6228_v8 = vsel %vm902_vm0, %v5818_v20, %v5871_v4 }
 0x90b   : > { %6044 = vrot.lane.b32.xlu2 %v6029_v21, %s7940_s13  ;;  %6453 = vmatmul.bf16.gmra.mxu3 %v6334_v53  ;;  %v6186_v49 = vunpack.c.l.b16 %v5778_v14  ;;  %v13173_v53 = vpack.c.b16 %v12115_v56, %v12113_v40  ;;  %v6076_v60 = vunpack.c.l.b16 %v4558_v12  ;;  %v6207_v40 = vpop.permute.xlu2 %6206  ;;  %v6022_v39 = vpack.c.b16 %v6007_v46, %v6006_v37 }
 0x90c   : > { %v6131_v25 = vunpack.c.l.b16 %v5168_v42  ;;  %v6077_v61 = vunpack.c.l.b16 %v4559_v10  ;;  %v13182_v10 = vld [vmem:[#allocation13_spill] sm:$0xff] }
 0x90e   : > { %5986 = vrot.lane.b32.xlu1 %v5972_v19, %s7944_s17  ;;  %v6140_v63 = vpack.c.b16 %v6131_v25, %v6130_v47  ;;  %v13175_v47 = vld [vmem:[#allocation40_spill] sm:$0xff] }
 0x910   : > { %v5758_v57 = vpop.f32.mrf.mxu2  ;;  %v5927_v27 = vpop.permute.xlu1 %5926 }
 0x911   : > { %v5779_v1 = vpack.c.bf16 %v5758_v57, %v5758_v57  ;;  %v6248_v18 = vsel %vm6238_vm15, %v6228_v8, %v5927_v27  ;;  %v2712_v57 = vpack.c.bf16 %v13174_v24, %v13174_v24  ;;  %v1499_v8 = vpack.c.bf16 %v13182_v10, %v13182_v10 }
 0x912   : > { %v6265_v7 = vsel %vm6255_vm2, %v6248_v18, %v5983_v23 }
 0x913   : > { %5862 = vrot.lane.b32.xlu2 %v5854_v31, %s7945_s23  ;;  %v6187_v59 = vunpack.c.l.b16 %v5779_v1  ;;  %v6085_v31 = vpack.c.b16 %v6077_v61, %v6076_v60  ;;  %v6282_v19 = vsel %vm6272_vm3, %v6265_v7, %v6039_v6  ;;  %v5895_v17 = vunpack.c.l.b16 %v2712_v57  ;;  %v5985_v48 = vpop.permute.xlu2 %5984 }
 0x914   : > { %v5808_v6 = vunpack.c.l.b16 %v1499_v8 }
 0x915   : > { %v6196_v16 = vpack.c.b16 %v6187_v59, %v6186_v49  ;;  %v2711_v49 = vpack.c.bf16 %v13175_v47, %v13175_v47 }
 0x916   : > { %6154 = vrot.lane.b32.xlu1 %v6140_v63, %s7941_s14  ;;  %v13178_v63 = vld [vmem:[#allocation60_spill] sm:$0xff] }
 0x917   : > { %6210 = vrot.lane.b32.xlu0 %v6196_v16, %s7942_s15  ;;  %v5894_v26 = vunpack.c.l.b16 %v2711_v49  ;;  %v4545_v16 = vpack.c.bf16 %v13178_v63, %v13178_v63  ;;  %v13185_v63 = vld [vmem:[#allocation38_spill] sm:$0xff] }
 0x918   : > { %v5761_v2 = vpop.f32.mrf.mxu2  ;;  %v6095_v50 = vpop.permute.xlu1 %6094 }
 0x919   : > { %v6299_v34 = vsel %vm6289_vm5, %v6282_v19, %v6095_v50  ;;  %v5780_v56 = vpack.c.bf16 %v5761_v2, %v5761_v2  ;;  %v5910_v4 = vpack.c.b16 %v5895_v17, %v5894_v26  ;;  %v6063_v33 = vunpack.c.l.b16 %v4545_v16 }
 0x91a   : > { %v13180_v2 = vpack.c.b16 %v12072_v22, %v12070_v5  ;;  %v1504_v16 = vpack.c.bf16 %v13185_v63, %v13185_v63 }
 0x91b   : > { %5974 = vrot.lane.b32.xlu2 %v5966_v44, %s7944_s17  ;;  %v6188_v59 = vunpack.c.l.b16 %v5780_v56  ;;  %v4544_v44 = vpack.c.bf16 %v13179_v55, %v13179_v55  ;;  %v13186_v55 = vld [vmem:[#allocation36_spill] sm:$0xff] }
 0x91c   : > { %v5813_v37 = vunpack.c.l.b16 %v1504_v16 }
 0x91d   : > { %v6062_v9 = vunpack.c.l.b16 %v4544_v44  ;;  %v1503_v44 = vpack.c.bf16 %v13186_v55, %v13186_v55 }
 0x91e   : > { %5932 = vrot.lane.b32.xlu1 %v5917_v3, %s7946_s24 }
 0x91f   : > { %v5150_v21 = vpop.f32.mrf.mxu0  ;;  %5988 = vrot.lane.b32.xlu0 %v5973_v32, %s7944_s17  ;;  %v6078_v51 = vpack.c.b16 %v6063_v33, %v6062_v9  ;;  %v5812_v9 = vunpack.c.l.b16 %v1503_v44 }
 0x920   : > { %v5763_v30 = vpop.f32.mrf.mxu2  ;;  %v5169_v11 = vpack.c.bf16 %v5150_v21, %v5150_v21  ;;  %v1500_v21 = vpack.c.bf16 %v13181_v15, %v13181_v15  ;;  %v5873_v3 = vpop.permute.xlu1 %5872 }
 0x921   : > { %v5781_v42 = vpack.c.bf16 %v5763_v30, %v5763_v30 }
 0x922   : > { %v6132_v41 = vunpack.c.l.b16 %v5169_v11  ;;  %v5809_v12 = vunpack.c.l.b16 %v1500_v21  ;;  %v13187_v21 = vld [vmem:[#allocation11_spill] sm:$0xff] }
 0x923   : > { %6142 = vrot.lane.b32.xlu2 %v13173_v53, %s7941_s14  ;;  %v6189_v36 = vunpack.c.l.b16 %v5781_v42 }
 0x924   : > { %v5819_v53 = vpack.c.b16 %v5809_v12, %v5808_v6 }
 0x925   : > { %v6197_v58 = vpack.c.b16 %v6189_v36, %v6188_v59 }
 0x926   : > { %6100 = vrot.lane.b32.xlu1 %v6085_v31, %s7943_s16  ;;  %v6231_v30 = vsel %vm902_vm0, %v5819_v53, %v5873_v3 }
 0x927   : > { %v5152_v54 = vpop.f32.mrf.mxu0 }
 0x928   : > { %v5170_v35 = vpack.c.bf16 %v5152_v54, %v5152_v54  ;;  %v6041_v11 = vpop.permute.xlu1 %6040 }
 0x92a   : > { %v6133_v13 = vunpack.c.l.b16 %v5170_v35  ;;  %v6151_v14 = vpop.permute.xlu0 %6150  ;;  %v13183_v35 = vld [vmem:[#allocation34_spill] sm:$0xff] }
 0x92b   : > { %v6316_v38 = vsel %vm6306_vm6, %v6299_v34, %v6151_v14  ;;  %v1502_v31 = vpack.c.bf16 %v13183_v35, %v13183_v35 }
 0x92c   : > { %v6141_v25 = vpack.c.b16 %v6133_v13, %v6132_v41  ;;  %v6337_v1 = vsel %vm6323_vm7, %v6316_v38, %v6207_v40  ;;  %v13184_v41 = vld [vmem:[#allocation32_spill] sm:$0xff] }
 0x92d   : > { %6458 = vmatmul.bf16.gmra.mxu3 %v6337_v1  ;;  %v1501_v13 = vpack.c.bf16 %v13184_v41, %v13184_v41  ;;  %v5811_v38 = vunpack.c.l.b16 %v1502_v31 }
 0x92e   : > { %6156 = vrot.lane.b32.xlu0 %v6141_v25, %s7941_s14  ;;  %6212 = vrot.lane.b32.xlu1 %v6197_v58, %s7942_s15 }
 0x92f   : > { %v5810_v57 = vunpack.c.l.b16 %v1501_v13 }
 0x931   : > { %v5820_v25 = vpack.c.b16 %v5811_v38, %v5810_v57 }
 0x932   : > { %v5929_v28 = vpop.permute.xlu0 %5928 }
 0x933   : > { %v6250_v60 = vsel %vm6238_vm15, %v6231_v30, %v5929_v28 }
 0x934   : > { %v6267_v54 = vsel %vm6255_vm2, %v6250_v60, %v5985_v48 }
 0x935   : > { %v6284_v19 = vsel %vm6272_vm3, %v6267_v54, %v6041_v11 }
 0x936   : > { %5918 = vrot.lane.b32.xlu0 %v5910_v4, %s7946_s24  ;;  %6030 = vrot.lane.b32.xlu1 %v6022_v39, %s7940_s13 }
 0x93a   : > { %v6097_v18 = vpop.permute.xlu0 %6096 }
 0x93b   : > { %v6301_v34 = vsel %vm6289_vm5, %v6284_v19, %v6097_v18 }
 0x93e   : > { %6086 = vrot.lane.b32.xlu0 %v6078_v51, %s7943_s16  ;;  %6198 = vrot.lane.b32.xlu1 %v13180_v2, %s7942_s15  ;;  %v5821_v2 = vpack.c.b16 %v5813_v37, %v5812_v9 }
 0x942   : > { %v5875_v42 = vpop.permute.xlu0 %5874 }
 0x943   : > { %v6234_v1 = vsel %vm902_vm0, %v5820_v25, %v5875_v42 }
 0x945   : > { %v6153_v23 = vpop.permute.xlu2 %6152 }
 0x946   : > { %v6318_v14 = vsel %vm6306_vm6, %v6301_v34, %v6153_v23 }
 0x94a   : > { %v6043_v36 = vpop.permute.xlu0 %6042 }
 0x94d   : > { %v5931_v50 = vpop.permute.xlu2 %5930 }
 0x94e   : > { %v6252_v49 = vsel %vm6238_vm15, %v6234_v1, %v5931_v50 }
 0x955   : > { %v6099_v24 = vpop.permute.xlu2 %6098 }
 0x957   : > { %v6444_v43 = vpop.f32.mrf.mxu3 }
 0x958   : > { %v6536_v27 = vadd.f32 %v12670_v0, %v6444_v43 }
 0x95a   : > { %6552 = vst [vmem:[%s12677_s7 + $0x10] sm:$0xff] %v6536_v27 }
 0x95d   : > { %v5877_v17 = vpop.permute.xlu2 %5876 }
 0x95f   : > { %v6446_v5 = vpop.f32.mrf.mxu3 }
 0x960   : > { %v6537_v22 = vadd.f32 %v12670_v0, %v6446_v5  ;;  %v6237_v5 = vsel %vm902_vm0, %v5821_v2, %v5877_v17 }
 0x962   : > { %6553 = vst [vmem:[%s12677_s7 + $0x18] sm:$0xff] %v6537_v22 }
 0x965   : > { %v6045_v33 = vpop.permute.xlu2 %6044 }
 0x968   : > { %v6449_v20 = vpop.f32.mrf.mxu3 }
 0x969   : > { %v6538_v32 = vadd.f32 %v12670_v0, %v6449_v20  ;;  %v1490_v20 = vpack.c.bf16 %v13187_v21, %v13187_v21 }
 0x96b   : > { %6554 = vst [vmem:[%s12677_s7 + $0x20] sm:$0xff] %v6538_v32  ;;  %v13188_v32 = vld [vmem:[#allocation14_spill] sm:$0xff]  ;;  %v5799_v12 = vunpack.c.l.b16 %v1490_v20 }
 0x96c   : > { %v1489_v10 = vpack.c.bf16 %v13188_v32, %v13188_v32 }
 0x96d   : > { %v5863_v28 = vpop.permute.xlu2 %5862 }
 0x96e   : > { %v5798_v18 = vunpack.c.l.b16 %v1489_v10 }
 0x970   : > { %v6451_v61 = vpop.f32.mrf.mxu3 }
 0x971   : > { %v6539_v7 = vadd.f32 %v12670_v0, %v6451_v61 }
 0x973   : > { %6555 = vst [vmem:[%s12677_s7 + $0x28] sm:$0xff] %v6539_v7  ;;  %v5814_v7 = vpack.c.b16 %v5799_v12, %v5798_v18 }
 0x975   : > { %v5975_v30 = vpop.permute.xlu2 %5974  ;;  %v6216_v60 = vsel %vm902_vm0, %v5814_v7, %v5863_v28 }
 0x978   : > { %v6209_v40 = vpop.permute.xlu1 %6208 }
 0x979   : > { %v6340_v56 = vsel %vm6323_vm7, %v6318_v14, %v6209_v40 }
 0x97a   : > { %6463 = vmatmul.bf16.gmra.mxu3 %v6340_v56 }
 0x97d   : > { %v6143_v13 = vpop.permute.xlu2 %6142 }
 0x980   : > { %v5987_v47 = vpop.permute.xlu1 %5986 }
 0x981   : > { %v6269_v59 = vsel %vm6255_vm2, %v6252_v49, %v5987_v47 }
 0x982   : > { %v6286_v62 = vsel %vm6272_vm3, %v6269_v59, %v6043_v36 }
 0x983   : > { %v6303_v58 = vsel %vm6289_vm5, %v6286_v62, %v6099_v24 }
 0x988   : > { %v6155_v52 = vpop.permute.xlu1 %6154 }
 0x989   : > { %v6211_v26 = vpop.permute.xlu0 %6210  ;;  %v6320_v29 = vsel %vm6306_vm6, %v6303_v58, %v6155_v52 }
 0x98a   : > { %v6343_v45 = vsel %vm6323_vm7, %v6320_v29, %v6211_v26 }
 0x98b   : > { %6468 = vmatmul.bf16.gmra.mxu3 %v6343_v45 }
 0x98e   : > { %v6454_v4 = vpop.f32.mrf.mxu3 }
 0x98f   : > { %v6540_v46 = vadd.f32 %v12670_v0, %v6454_v4 }
 0x990   : > { %v5933_v39 = vpop.permute.xlu1 %5932 }
 0x991   : > { %6556 = vst [vmem:[%s12677_s7 + $0x30] sm:$0xff] %v6540_v46  ;;  %v5989_v43 = vpop.permute.xlu0 %5988  ;;  %v6254_v22 = vsel %vm6238_vm15, %v6237_v5, %v5933_v39 }
 0x992   : > { %v6271_v15 = vsel %vm6255_vm2, %v6254_v22, %v5989_v43 }
 0x993   : > { %v6288_v8 = vsel %vm6272_vm3, %v6271_v15, %v6045_v33 }
 0x996   : > { %v6456_v51 = vpop.f32.mrf.mxu3 }
 0x997   : > { %v6541_v27 = vadd.f32 %v12670_v0, %v6456_v51 }
 0x998   : > { %v6101_v48 = vpop.permute.xlu1 %6100 }
 0x999   : > { %6557 = vst [vmem:[%s12677_s7 + $0x38] sm:$0xff] %v6541_v27  ;;  %v6305_v23 = vsel %vm6289_vm5, %v6288_v8, %v6101_v48 }
 0x9a0   : > { %v6157_v3 = vpop.permute.xlu0 %6156  ;;  %v6213_v53 = vpop.permute.xlu1 %6212 }
 0x9a1   : > { %v6322_v6 = vsel %vm6306_vm6, %v6305_v23, %v6157_v3 }
 0x9a2   : > { %v6346_v61 = vsel %vm6323_vm7, %v6322_v6, %v6213_v53 }
 0x9a3   : > { %6473 = vmatmul.bf16.gmra.mxu3 %v6346_v61 }
 0x9a8   : > { %v5919_v11 = vpop.permute.xlu0 %5918  ;;  %v6031_v54 = vpop.permute.xlu1 %6030 }
 0x9a9   : > { %v6240_v50 = vsel %vm6238_vm15, %v6216_v60, %v5919_v11 }
 0x9aa   : > { %v6257_v35 = vsel %vm6255_vm2, %v6240_v50, %v5975_v30 }
 0x9ab   : > { %v6274_v19 = vsel %vm6272_vm3, %v6257_v35, %v6031_v54 }
 0x9b0   : > { %v6459_v31 = vpop.f32.mrf.mxu3  ;;  %v6087_v42 = vpop.permute.xlu0 %6086 }
 0x9b1   : > { %v6542_v34 = vadd.f32 %v12670_v0, %v6459_v31  ;;  %v6291_v41 = vsel %vm6289_vm5, %v6274_v19, %v6087_v42  ;;  %v6199_v40 = vpop.permute.xlu1 %6198 }
 0x9b2   : > { %v6308_v14 = vsel %vm6306_vm6, %v6291_v41, %v6143_v13 }
 0x9b3   : > { %6558 = vst [vmem:[%s12677_s7 + $0x40] sm:$0xff] %v6542_v34  ;;  %v6325_v56 = vsel %vm6323_vm7, %v6308_v14, %v6199_v40 }
 0x9b4   : > { %6438 = vmatmul.bf16.vlgmr.msrb.gmra.mxu0 %v6325_v56 }
 0x9b8   : > { %v6461_v38 = vpop.f32.mrf.mxu3 }
 0x9b9   : > { %v6543_v24 = vadd.f32 %v12670_v0, %v6461_v38 }
 0x9bb   : > { %6559 = vst [vmem:[%s12677_s7 + $0x48] sm:$0xff] %v6543_v24 }
 0x9fd   : > { %v6464_v57 = vpop.f32.mrf.mxu3 }
 0x9fe   : > { %v6544_v25 = vadd.f32 %v12670_v0, %v6464_v57 }
 0xa00   : > { %6560 = vst [vmem:[%s12677_s7 + $0x50] sm:$0xff] %v6544_v25 }
 0xa05   : > { %v6466_v1 = vpop.f32.mrf.mxu3 }
 0xa06   : > { %v6545_v36 = vadd.f32 %v12670_v0, %v6466_v1 }
 0xa08   : > { %6561 = vst [vmem:[%s12677_s7 + $0x58] sm:$0xff] %v6545_v36 }
 0xa0e   : > { %v6469_v47 = vpop.f32.mrf.mxu3 }
 0xa0f   : > { %v6546_v49 = vadd.f32 %v12670_v0, %v6469_v47 }
 0xa11   : > { %6562 = vst [vmem:[%s12677_s7 + $0x60] sm:$0xff] %v6546_v49 }
 0xa16   : > { %v6471_v59 = vpop.f32.mrf.mxu3 }
 0xa17   : > { %v6547_v17 = vadd.f32 %v12670_v0, %v6471_v59 }
 0xa19   : > { %6563 = vst [vmem:[%s12677_s7 + $0x68] sm:$0xff] %v6547_v17 }
 0xa26   : > { %v6474_v62 = vpop.f32.mrf.mxu3 }
 0xa27   : > { %v6548_v52 = vadd.f32 %v12670_v0, %v6474_v62 }
 0xa29   : > { %6564 = vst [vmem:[%s12677_s7 + $0x70] sm:$0xff] %v6548_v52 }
 0xa2e   : > { %v6476_v58 = vpop.f32.mrf.mxu3 }
 0xa2f   : > { %v6549_v26 = vadd.f32 %v12670_v0, %v6476_v58 }
 0xa31   : > { %v6439_v29 = vpop.f32.mrf.mxu0  ;;  %6565 = vst [vmem:[%s12677_s7 + $0x78] sm:$0xff] %v6549_v26 }
 0xa32   : > { %v6534_v45 = vadd.f32 %v12670_v0, %v6439_v29 }
 0xa34   : > { %6550 = vst [vmem:[%s12677_s7] sm:$0xff] %v6534_v45 }
 0xa39   : > { %v6441_v4 = vpop.f32.mrf.mxu0 }
 0xa3a   : > { %v6535_v63 = vadd.f32 %v12670_v0, %v6441_v4 }
 0xa3c   : > { %6551 = vst [vmem:[%s12677_s7 + $0x8] sm:$0xff] %v6535_v63 }
 0xa3d PF: > { %s16_s20 = sadd.s32 1, %s7938_s20   ;;  %s13189_s18 = smov %s7934_s19 }
 0xa3e   : > { %p13_p5 = scmp.ge.s32.totalorder %s16_s20, 4   ;;  %s13190_s19 = smov %s13192_s21 }
 0xa40   :  { %15 = sbr.rel (!%p13_p5) target bundleno = 2 (0x2), region = 99 }

</bundles_post_ra>
